<compile_context>
chip_gen: v5e
topology: v5e:2x2
jax: 0.10.0
libtpu: 0.0.40
codegen_flags: <defaults>
</compile_context>

<pallas_src>
import functools

import jax
import jax.numpy as jnp
from jax import lax
from jax.experimental import pallas as pl
from jax.experimental.pallas import tpu as pltpu

LANE = 128
TM_MAX = 512
VMEM_LIMIT = 32 * 1024 * 1024


def _round_up(x, m):
    return ((x + m - 1) // m) * m


def _compiler_params(n_parallel_axes):
    return pltpu.CompilerParams(
        dimension_semantics=("parallel",) * n_parallel_axes,
        vmem_limit_bytes=VMEM_LIMIT,
    )


# ----------------------------------------------------------------------------
# Pallas kernels
# ----------------------------------------------------------------------------
def _mm_bn_kernel(x_ref, w_ref, shift_ref, o_ref, *, relu):
    # out = relu?( x @ w + shift )   (BN scale already folded into w)
    acc = jnp.dot(x_ref[...], w_ref[...], preferred_element_type=jnp.float32)
    acc = acc + shift_ref[...]
    if relu:
        acc = jnp.maximum(acc, 0.0)
    o_ref[...] = acc.astype(o_ref.dtype)


def _mm_bn_res_kernel(x_ref, w_ref, shift_ref, res_ref, o_ref, *, relu):
    # out = relu?( x @ w + shift + residual )
    acc = jnp.dot(x_ref[...], w_ref[...], preferred_element_type=jnp.float32)
    acc = acc + shift_ref[...] + res_ref[...].astype(jnp.float32)
    if relu:
        acc = jnp.maximum(acc, 0.0)
    o_ref[...] = acc.astype(o_ref.dtype)


def _conv3x3_bn_kernel(xph_ref, w_ref, shift_ref, o_ref, *, stride, Ho, Wo, relu):
    # One image per grid step; the 9 taps are unrolled (static offsets) and
    # accumulated in f32 -- no im2col matrix ever touches HBM.
    s = stride
    Cin = xph_ref.shape[-1]
    Cout = o_ref.shape[-1]
    acc = jnp.zeros((Ho * Wo, Cout), jnp.float32)
    for i in range(3):
        for j in range(3):
            p = (i % s) * s + (j % s)          # stride phase
            hoff, woff = i // s, j // s        # offset inside the phase tensor
            win = xph_ref[p, 0, hoff:hoff + Ho, woff:woff + Wo, :]   # (Ho, Wo, Cin)
            lhs = win.reshape(Ho * Wo, Cin)
            acc = acc + jnp.dot(lhs, w_ref[i * 3 + j],
                                preferred_element_type=jnp.float32)
    acc = acc + shift_ref[...]
    if relu:
        acc = jnp.maximum(acc, 0.0)
    o_ref[...] = acc.reshape(1, Ho, Wo, Cout).astype(o_ref.dtype)


# ----------------------------------------------------------------------------
# Pallas wrappers
# ----------------------------------------------------------------------------
def matmul_bn(x, w, shift, residual=None, relu=True, out_dtype=jnp.bfloat16):
    """Fused (1x1 conv) matmul + BN shift [+ residual] [+ ReLU].

    x: (M, K) bf16, w: (K, N) bf16 (BN scale folded in), shift: (N,) f32.
    K and N must be lane multiples (channel padding done at the layout boundary).
    """
    M, K = x.shape
    N = w.shape[1]
    assert K % LANE == 0 and N % LANE == 0
    tm = min(TM_MAX, _round_up(M, 8))
    grid = (pl.cdiv(M, tm),)
    shift2 = shift.reshape(1, N).astype(jnp.float32)

    if residual is None:
        kernel = functools.partial(_mm_bn_kernel, relu=relu)
        in_specs = [
            pl.BlockSpec((tm, K), lambda i: (i, 0)),
            pl.BlockSpec((K, N), lambda i: (0, 0)),   # weights stay VMEM-resident
            pl.BlockSpec((1, N), lambda i: (0, 0)),
        ]
        args = (x, w, shift2)
    else:
        kernel = functools.partial(_mm_bn_res_kernel, relu=relu)
        in_specs = [
            pl.BlockSpec((tm, K), lambda i: (i, 0)),
            pl.BlockSpec((K, N), lambda i: (0, 0)),
            pl.BlockSpec((1, N), lambda i: (0, 0)),
            pl.BlockSpec((tm, N), lambda i: (i, 0)),
        ]
        args = (x, w, shift2, residual)

    return pl.pallas_call(
        kernel,
        out_shape=jax.ShapeDtypeStruct((M, N), out_dtype),
        grid=grid,
        in_specs=in_specs,
        out_specs=pl.BlockSpec((tm, N), lambda i: (i, 0)),
        compiler_params=_compiler_params(1),
    )(*args)


def conv3x3_bn(x, w_taps, shift, stride=1, relu=True, out_dtype=jnp.bfloat16):
    """3x3 / pad=1 conv fused with folded BN + ReLU, no im2col in HBM.

    x: (N, H, W, Cin) bf16 (Cin % 128 == 0); w_taps: (9, Cin, Cout) bf16 with the
    BN scale folded in; shift: (Cout,) f32.
    """
    N, H, W, Cin = x.shape
    Cout = w_taps.shape[-1]
    s = stride
    Ho = (H - 1) // s + 1
    Wo = (W - 1) // s + 1
    # TODO(synk): the in-kernel (Ho,Wo,C)->(Ho*Wo,C) flatten assumes Wo % 8 == 0
    #             (true for typical feature-map sizes used here).
    assert Wo % 8 == 0, "conv3x3_bn requires Wo to be a multiple of 8"

    xp = jnp.pad(x, ((0, 0), (1, 1), (1, 1), (0, 0)))
    Hq = Ho + 2 // s
    Wq = Wo + 2 // s
    # Stride-phase split (a 1x-size reorganization); for stride==1 this is just xp.
    phases = []
    for a in range(s):
        for b in range(s):
            ph = xp[:, a::s, b::s, :][:, :Hq, :Wq, :]
            pad_h, pad_w = Hq - ph.shape[1], Wq - ph.shape[2]
            if pad_h or pad_w:
                ph = jnp.pad(ph, ((0, 0), (0, pad_h), (0, pad_w), (0, 0)))
            phases.append(ph)
    xph = jnp.stack(phases, axis=0)          # (s*s, N, Hq, Wq, Cin)
    s2 = s * s
    shift2 = shift.reshape(1, Cout).astype(jnp.float32)

    return pl.pallas_call(
        functools.partial(_conv3x3_bn_kernel, stride=s, Ho=Ho, Wo=Wo, relu=relu),
        out_shape=jax.ShapeDtypeStruct((N, Ho, Wo, Cout), out_dtype),
        grid=(N,),
        in_specs=[
            pl.BlockSpec((s2, 1, Hq, Wq, Cin), lambda n: (0, n, 0, 0, 0)),
            pl.BlockSpec((9, Cin, Cout), lambda n: (0, 0, 0)),   # resident weights
            pl.BlockSpec((1, Cout), lambda n: (0, 0)),
        ],
        out_specs=pl.BlockSpec((1, Ho, Wo, Cout), lambda n: (n, 0, 0, 0)),
        compiler_params=_compiler_params(1),
    )(xph, w_taps, shift2)


# ----------------------------------------------------------------------------
# Parameter prep (BN folding, channel padding, bf16 cast)
# ----------------------------------------------------------------------------
def _fold_bn(gamma, beta, mean, var, eps=1e-5):
    scale = gamma / jnp.sqrt(var + eps)
    shift = beta - mean * scale
    return scale, shift


def _prep_1x1(w, scale, cin_p, cout_p):
    cout, cin = w.shape[0], w.shape[1]
    wmat = w[:, :, 0, 0].T * scale[None, :]
    wmat = jnp.pad(wmat, ((0, cin_p - cin), (0, cout_p - cout)))
    return wmat.astype(jnp.bfloat16)


def _prep_3x3(w, scale, cin_p, cout_p):
    cout, cin = w.shape[0], w.shape[1]
    taps = []
    for i in range(3):
        for j in range(3):
            t = w[:, :, i, j].T * scale[None, :]
            taps.append(jnp.pad(t, ((0, cin_p - cin), (0, cout_p - cout))))
    return jnp.stack(taps, axis=0).astype(jnp.bfloat16)


def _pad_shift(shift, c_p):
    return jnp.pad(shift, (0, c_p - shift.shape[0])).astype(jnp.float32)


def init_bottleneck_params(key, in_channels, out_channels, stride=1,
                           bottleneck_ratio=4, with_downsample=None):
    mid = out_channels // bottleneck_ratio
    if with_downsample is None:
        with_downsample = (stride != 1) or (in_channels != out_channels)
    ks = iter(jax.random.split(key, 32))
    nk = lambda: next(ks)

    def conv_w(cout, cin, k):
        fan_in = cin * k * k
        return jax.random.normal(nk(), (cout, cin, k, k), jnp.float32) * (2.0 / fan_in) ** 0.5

    def bn(c):
        return dict(
            gamma=1.0 + 0.1 * jax.random.normal(nk(), (c,), jnp.float32),
            beta=0.1 * jax.random.normal(nk(), (c,), jnp.float32),
            mean=0.1 * jax.random.normal(nk(), (c,), jnp.float32),
            var=1.0 + 0.1 * jnp.abs(jax.random.normal(nk(), (c,), jnp.float32)),
        )

    p = dict(
        conv1=conv_w(mid, in_channels, 1), bn1=bn(mid),
        conv2=conv_w(mid, mid, 3), bn2=bn(mid),
        conv3=conv_w(out_channels, mid, 1), bn3=bn(out_channels),
        stride=stride,
    )
    if with_downsample:
        p["ds_conv"] = conv_w(out_channels, in_channels, 1)
        p["ds_bn"] = bn(out_channels)
    return p


def prep_bottleneck(params, in_channels):
    mid = params["conv1"].shape[0]
    cout = params["conv3"].shape[0]
    cin_p, mid_p, cout_p = (_round_up(c, LANE) for c in (in_channels, mid, cout))
    s1, b1 = _fold_bn(**params["bn1"])
    s2, b2 = _fold_bn(**params["bn2"])
    s3, b3 = _fold_bn(**params["bn3"])
    prep = dict(
        stride=params["stride"], cin=in_channels, mid=mid, cout=cout,
        cin_p=cin_p, mid_p=mid_p, cout_p=cout_p,
        w1=_prep_1x1(params["conv1"], s1, cin_p, mid_p), sh1=_pad_shift(b1, mid_p),
        w2=_prep_3x3(params["conv2"], s2, mid_p, mid_p), sh2=_pad_shift(b2, mid_p),
        w3=_prep_1x1(params["conv3"], s3, mid_p, cout_p), sh3=_pad_shift(b3, cout_p),
    )
    if "ds_conv" in params:
        sd, bd = _fold_bn(**params["ds_bn"])
        prep["wd"] = _prep_1x1(params["ds_conv"], sd, cin_p, cout_p)
        prep["shd"] = _pad_shift(bd, cout_p)
    return prep


# ----------------------------------------------------------------------------
# BottleneckBlock forward (Pallas) and a plain-JAX reference
# ----------------------------------------------------------------------------
def bottleneck_forward(prep, x_nchw):
    N, Cin, H, W = x_nchw.shape
    s = prep["stride"]
    cin_p, mid_p, cout_p = prep["cin_p"], prep["mid_p"], prep["cout_p"]
    Ho = (H - 1) // s + 1
    Wo = (W - 1) // s + 1

    # layout boundary: NCHW -> NHWC, pad channels to lane multiples, cast to bf16
    x = jnp.transpose(x_nchw, (0, 2, 3, 1))
    x = jnp.pad(x, ((0, 0), (0, 0), (0, 0), (0, cin_p - Cin))).astype(jnp.bfloat16)

    # conv1 (1x1) + bn1 + relu
    h1 = matmul_bn(x.reshape(N * H * W, cin_p), prep["w1"], prep["sh1"], relu=True)
    h1 = h1.reshape(N, H, W, mid_p)

    # conv2 (3x3, stride, pad=1) + bn2 + relu  (in-kernel 9-tap accumulation)
    h2 = conv3x3_bn(h1, prep["w2"], prep["sh2"], stride=s, relu=True)
    h2 = h2.reshape(N * Ho * Wo, mid_p)

    # identity path
    if "wd" in prep:
        xs = x if s == 1 else x[:, ::s, ::s, :][:, :Ho, :Wo, :]
        identity = matmul_bn(xs.reshape(N * Ho * Wo, cin_p),
                             prep["wd"], prep["shd"], relu=False)
    else:
        assert s == 1 and cin_p == cout_p
        identity = x.reshape(N * H * W, cin_p)

    # conv3 (1x1) + bn3 + residual add + final relu, all fused in one kernel
    out = matmul_bn(h2, prep["w3"], prep["sh3"], residual=identity,
                    relu=True, out_dtype=jnp.float32)
    out = out.reshape(N, Ho, Wo, cout_p)[:, :, :, :prep["cout"]]
    return jnp.transpose(out, (0, 3, 1, 2))        # back to NCHW


def bottleneck_reference(prep, x_nchw):
    """Plain-JAX reference (lax.conv) using the same folded bf16 weights and
    mimicking the kernels' bf16 activation storage."""
    N, Cin, H, W = x_nchw.shape
    s = prep["stride"]
    f32 = jnp.float32
    bf = lambda a: a.astype(jnp.bfloat16).astype(f32)

    x = bf(jnp.pad(jnp.transpose(x_nchw, (0, 2, 3, 1)),
                   ((0, 0), (0, 0), (0, 0), (0, prep["cin_p"] - Cin))))

    h1 = bf(jnp.maximum(x @ prep["w1"].astype(f32) + prep["sh1"], 0.0))
    w2 = prep["w2"].astype(f32).reshape(3, 3, prep["mid_p"], prep["mid_p"])  # HWIO
    h2 = lax.conv_general_dilated(h1, w2, (s, s), [(1, 1), (1, 1)],
                                  dimension_numbers=("NHWC", "HWIO", "NHWC"))
    h2 = bf(jnp.maximum(h2 + prep["sh2"], 0.0))
    if "wd" in prep:
        xs = x if s == 1 else x[:, ::s, ::s, :]
        identity = bf(xs @ prep["wd"].astype(f32) + prep["shd"])
    else:
        identity = x
    out = jnp.maximum(h2 @ prep["w3"].astype(f32) + prep["sh3"] + identity, 0.0)
    out = out[:, :, :, :prep["cout"]]
    return jnp.transpose(out, (0, 3, 1, 2))


if __name__ == "__main__":
    key = jax.random.PRNGKey(0)
    kp, kx = jax.random.split(key)

    # Small BottleneckBlock: in=64 -> out=256 (mid=64), stride=1, with a
    # 1x1-conv+BN downsample on the identity path (channels change).
    in_channels, out_channels, stride = 64, 256, 1
    N, H, W = 2, 16, 16

    params = init_bottleneck_params(kp, in_channels, out_channels, stride=stride)
    prep = prep_bottleneck(params, in_channels)
    x = jax.random.normal(kx, (N, in_channels, H, W), jnp.float32)

    fwd = jax.jit(functools.partial(bottleneck_forward, prep))
    out = fwd(x)
    jax.block_until_ready(out)
    assert out.shape == (N, out_channels, H // stride, W // stride)
    assert out.dtype == jnp.float32

    ref = bottleneck_reference(prep, x)
    max_err = float(jnp.max(jnp.abs(out - ref)))
    assert max_err < 5e-2, f"max abs error vs reference: {max_err}"

    print("KERNEL_OK")
</pallas_src>

<mosaic_0001>
module attributes {stable_mosaic.version = 11 : i64} {
  func.func @_mm_bn_kernel(%arg0: i32, %arg1: memref<512x128xbf16, #tpu.memory_space<vmem>>, %arg2: memref<128x128xbf16, #tpu.memory_space<vmem>>, %arg3: memref<1x128xf32, #tpu.memory_space<vmem>>, %arg4: memref<512x128xbf16, #tpu.memory_space<vmem>>) attributes {dimension_semantics = [#tpu.dimension_semantics<parallel>], iteration_bounds = array<i64: 1>, scalar_prefetch = 0 : i64, scratch_operands = 0 : i64, tpu.core_type = #tpu.core_type<tc>, window_params = [{transform_indices = @transform_0, window_bounds = array<i64: 512, 128>}, {pipeline_mode = #tpu.pipeline_mode<synchronous>, transform_indices = @transform_1, window_bounds = array<i64: 128, 128>}, {pipeline_mode = #tpu.pipeline_mode<synchronous>, transform_indices = @transform_2, window_bounds = array<i64: 1, 128>}, {transform_indices = @transform_3, window_bounds = array<i64: 512, 128>}]} {
    %c0 = arith.constant 0 : index
    %c0_0 = arith.constant 0 : index
    %0 = vector.load %arg1[%c0, %c0_0] : memref<512x128xbf16, #tpu.memory_space<vmem>>, vector<512x128xbf16>
    %c0_1 = arith.constant 0 : index
    %c0_2 = arith.constant 0 : index
    %1 = vector.load %arg2[%c0_1, %c0_2] : memref<128x128xbf16, #tpu.memory_space<vmem>>, vector<128x128xbf16>
    %cst = arith.constant dense<0.000000e+00> : vector<512x128xf32>
    %2 = tpu.matmul %0, %1, %cst {dimension_numbers = #tpu.dot_dimension_numbers<[1], [0], [0], [1], [0, 0, 1, 1], [], []>} : vector<512x128xbf16>, vector<128x128xbf16>, vector<512x128xf32> -> vector<512x128xf32>
    %c0_3 = arith.constant 0 : index
    %c0_4 = arith.constant 0 : index
    %3 = vector.load %arg3[%c0_3, %c0_4] : memref<1x128xf32, #tpu.memory_space<vmem>>, vector<1x128xf32>
    %4 = vector.broadcast %3 : vector<1x128xf32> to vector<512x128xf32>
    %5 = arith.addf %2, %4 : vector<512x128xf32>
    %cst_5 = arith.constant 0.000000e+00 : f32
    %6 = vector.broadcast %cst_5 : f32 to vector<512x128xf32>
    %7 = arith.maximumf %5, %6 : vector<512x128xf32>
    %8 = arith.truncf %7 : vector<512x128xf32> to vector<512x128xbf16>
    %c0_6 = arith.constant 0 : index
    %c0_7 = arith.constant 0 : index
    %9 = vector.load %arg4[%c0_6, %c0_7] : memref<512x128xbf16, #tpu.memory_space<vmem>>, vector<512x128xbf16>
    tpu.vector_store %arg4[%c0_6, %c0_7], %8 {strides = array<i32>} : memref<512x128xbf16, #tpu.memory_space<vmem>>, vector<512x128xbf16>,
    return
  }
  func.func @transform_0(%arg0: i32) -> (i32, i32) {
    %c0_i32 = arith.constant 0 : i32
    %c0_i32_0 = arith.constant 0 : i32
    return %arg0, %c0_i32 : i32, i32
  }
  func.func @transform_1(%arg0: i32) -> (i32, i32) {
    %c0_i32 = arith.constant 0 : i32
    %c0_i32_0 = arith.constant 0 : i32
    %c0_i32_1 = arith.constant 0 : i32
    return %c0_i32, %c0_i32_0 : i32, i32
  }
  func.func @transform_2(%arg0: i32) -> (i32, i32) {
    %c0_i32 = arith.constant 0 : i32
    %c0_i32_0 = arith.constant 0 : i32
    %c0_i32_1 = arith.constant 0 : i32
    return %c0_i32, %c0_i32_0 : i32, i32
  }
  func.func @transform_3(%arg0: i32) -> (i32, i32) {
    %c0_i32 = arith.constant 0 : i32
    %c0_i32_0 = arith.constant 0 : i32
    return %arg0, %c0_i32 : i32, i32
  }
}

module attributes {stable_mosaic.version = 11 : i64} {
  func.func @_mm_bn_kernel(%arg0: i32, %arg1: memref<512x128xbf16, #tpu.memory_space<vmem>>, %arg2: memref<128x256xbf16, #tpu.memory_space<vmem>>, %arg3: memref<1x256xf32, #tpu.memory_space<vmem>>, %arg4: memref<512x256xbf16, #tpu.memory_space<vmem>>) attributes {dimension_semantics = [#tpu.dimension_semantics<parallel>], iteration_bounds = array<i64: 1>, scalar_prefetch = 0 : i64, scratch_operands = 0 : i64, tpu.core_type = #tpu.core_type<tc>, window_params = [{transform_indices = @transform_0, window_bounds = array<i64: 512, 128>}, {pipeline_mode = #tpu.pipeline_mode<synchronous>, transform_indices = @transform_1, window_bounds = array<i64: 128, 256>}, {pipeline_mode = #tpu.pipeline_mode<synchronous>, transform_indices = @transform_2, window_bounds = array<i64: 1, 256>}, {transform_indices = @transform_3, window_bounds = array<i64: 512, 256>}]} {
    %c0 = arith.constant 0 : index
    %c0_0 = arith.constant 0 : index
    %0 = vector.load %arg1[%c0, %c0_0] : memref<512x128xbf16, #tpu.memory_space<vmem>>, vector<512x128xbf16>
    %c0_1 = arith.constant 0 : index
    %c0_2 = arith.constant 0 : index
    %1 = vector.load %arg2[%c0_1, %c0_2] : memref<128x256xbf16, #tpu.memory_space<vmem>>, vector<128x256xbf16>
    %cst = arith.constant dense<0.000000e+00> : vector<512x256xf32>
    %2 = tpu.matmul %0, %1, %cst {dimension_numbers = #tpu.dot_dimension_numbers<[1], [0], [0], [1], [0, 0, 1, 1], [], []>} : vector<512x128xbf16>, vector<128x256xbf16>, vector<512x256xf32> -> vector<512x256xf32>
    %c0_3 = arith.constant 0 : index
    %c0_4 = arith.constant 0 : index
    %3 = vector.load %arg3[%c0_3, %c0_4] : memref<1x256xf32, #tpu.memory_space<vmem>>, vector<1x256xf32>
    %4 = vector.broadcast %3 : vector<1x256xf32> to vector<512x256xf32>
    %5 = arith.addf %2, %4 : vector<512x256xf32>
    %6 = arith.truncf %5 : vector<512x256xf32> to vector<512x256xbf16>
    %c0_5 = arith.constant 0 : index
    %c0_6 = arith.constant 0 : index
    %7 = vector.load %arg4[%c0_5, %c0_6] : memref<512x256xbf16, #tpu.memory_space<vmem>>, vector<512x256xbf16>
    tpu.vector_store %arg4[%c0_5, %c0_6], %6 {strides = array<i32>} : memref<512x256xbf16, #tpu.memory_space<vmem>>, vector<512x256xbf16>,
    return
  }
  func.func @transform_0(%arg0: i32) -> (i32, i32) {
    %c0_i32 = arith.constant 0 : i32
    %c0_i32_0 = arith.constant 0 : i32
    return %arg0, %c0_i32 : i32, i32
  }
  func.func @transform_1(%arg0: i32) -> (i32, i32) {
    %c0_i32 = arith.constant 0 : i32
    %c0_i32_0 = arith.constant 0 : i32
    %c0_i32_1 = arith.constant 0 : i32
    return %c0_i32, %c0_i32_0 : i32, i32
  }
  func.func @transform_2(%arg0: i32) -> (i32, i32) {
    %c0_i32 = arith.constant 0 : i32
    %c0_i32_0 = arith.constant 0 : i32
    %c0_i32_1 = arith.constant 0 : i32
    return %c0_i32, %c0_i32_0 : i32, i32
  }
  func.func @transform_3(%arg0: i32) -> (i32, i32) {
    %c0_i32 = arith.constant 0 : i32
    %c0_i32_0 = arith.constant 0 : i32
    return %arg0, %c0_i32 : i32, i32
  }
}

module attributes {stable_mosaic.version = 11 : i64} {
  func.func @_conv3x3_bn_kernel(%arg0: i32, %arg1: memref<1x1x18x18x128xbf16, #tpu.memory_space<vmem>>, %arg2: memref<9x128x128xbf16, #tpu.memory_space<vmem>>, %arg3: memref<1x128xf32, #tpu.memory_space<vmem>>, %arg4: memref<1x16x16x128xbf16, #tpu.memory_space<vmem>>) attributes {dimension_semantics = [#tpu.dimension_semantics<parallel>], iteration_bounds = array<i64: 2>, scalar_prefetch = 0 : i64, scratch_operands = 0 : i64, tpu.core_type = #tpu.core_type<tc>, window_params = [{transform_indices = @transform_0, window_bounds = array<i64: 1, 1, 18, 18, 128>}, {pipeline_mode = #tpu.pipeline_mode<synchronous>, transform_indices = @transform_1, window_bounds = array<i64: 9, 128, 128>}, {pipeline_mode = #tpu.pipeline_mode<synchronous>, transform_indices = @transform_2, window_bounds = array<i64: 1, 128>}, {transform_indices = @transform_3, window_bounds = array<i64: 1, 16, 16, 128>}]} {
    %cst = arith.constant 0.000000e+00 : f32
    %0 = vector.broadcast %cst : f32 to vector<256x128xf32>
    %c0 = arith.constant 0 : index
    %c0_0 = arith.constant 0 : index
    %c0_1 = arith.constant 0 : index
    %c0_2 = arith.constant 0 : index
    %c0_3 = arith.constant 0 : index
    %1 = vector.load %arg1[%c0, %c0_0, %c0_1, %c0_2, %c0_3] : memref<1x1x18x18x128xbf16, #tpu.memory_space<vmem>>, vector<1x1x16x16x128xbf16>
    %2 = vector.shape_cast %1 : vector<1x1x16x16x128xbf16> to vector<16x16x128xbf16>
    %3 = vector.shape_cast %2 : vector<16x16x128xbf16> to vector<256x128xbf16>
    %c0_4 = arith.constant 0 : index
    %c0_5 = arith.constant 0 : index
    %c0_6 = arith.constant 0 : index
    %4 = vector.load %arg2[%c0_4, %c0_5, %c0_6] : memref<9x128x128xbf16, #tpu.memory_space<vmem>>, vector<1x128x128xbf16>
    %5 = vector.shape_cast %4 : vector<1x128x128xbf16> to vector<128x128xbf16>
    %cst_7 = arith.constant dense<0.000000e+00> : vector<256x128xf32>
    %6 = tpu.matmul %3, %5, %cst_7 {dimension_numbers = #tpu.dot_dimension_numbers<[1], [0], [0], [1], [0, 0, 1, 1], [], []>} : vector<256x128xbf16>, vector<128x128xbf16>, vector<256x128xf32> -> vector<256x128xf32>
    %7 = arith.addf %0, %6 : vector<256x128xf32>
    %c0_8 = arith.constant 0 : index
    %c0_9 = arith.constant 0 : index
    %c0_10 = arith.constant 0 : index
    %c1 = arith.constant 1 : index
    %c0_11 = arith.constant 0 : index
    %8 = vector.load %arg1[%c0_8, %c0_9, %c0_10, %c1, %c0_11] : memref<1x1x18x18x128xbf16, #tpu.memory_space<vmem>>, vector<1x1x16x16x128xbf16>
    %9 = vector.shape_cast %8 : vector<1x1x16x16x128xbf16> to vector<16x16x128xbf16>
    %10 = vector.shape_cast %9 : vector<16x16x128xbf16> to vector<256x128xbf16>
    %c1_12 = arith.constant 1 : index
    %c0_13 = arith.constant 0 : index
    %c0_14 = arith.constant 0 : index
    %11 = vector.load %arg2[%c1_12, %c0_13, %c0_14] : memref<9x128x128xbf16, #tpu.memory_space<vmem>>, vector<1x128x128xbf16>
    %12 = vector.shape_cast %11 : vector<1x128x128xbf16> to vector<128x128xbf16>
    %cst_15 = arith.constant dense<0.000000e+00> : vector<256x128xf32>
    %13 = tpu.matmul %10, %12, %cst_15 {dimension_numbers = #tpu.dot_dimension_numbers<[1], [0], [0], [1], [0, 0, 1, 1], [], []>} : vector<256x128xbf16>, vector<128x128xbf16>, vector<256x128xf32> -> vector<256x128xf32>
    %14 = arith.addf %7, %13 : vector<256x128xf32>
    %c0_16 = arith.constant 0 : index
    %c0_17 = arith.constant 0 : index
    %c0_18 = arith.constant 0 : index
    %c2 = arith.constant 2 : index
    %c0_19 = arith.constant 0 : index
    %15 = vector.load %arg1[%c0_16, %c0_17, %c0_18, %c2, %c0_19] : memref<1x1x18x18x128xbf16, #tpu.memory_space<vmem>>, vector<1x1x16x16x128xbf16>
    %16 = vector.shape_cast %15 : vector<1x1x16x16x128xbf16> to vector<16x16x128xbf16>
    %17 = vector.shape_cast %16 : vector<16x16x128xbf16> to vector<256x128xbf16>
    %c2_20 = arith.constant 2 : index
    %c0_21 = arith.constant 0 : index
    %c0_22 = arith.constant 0 : index
    %18 = vector.load %arg2[%c2_20, %c0_21, %c0_22] : memref<9x128x128xbf16, #tpu.memory_space<vmem>>, vector<1x128x128xbf16>
    %19 = vector.shape_cast %18 : vector<1x128x128xbf16> to vector<128x128xbf16>
    %cst_23 = arith.constant dense<0.000000e+00> : vector<256x128xf32>
    %20 = tpu.matmul %17, %19, %cst_23 {dimension_numbers = #tpu.dot_dimension_numbers<[1], [0], [0], [1], [0, 0, 1, 1], [], []>} : vector<256x128xbf16>, vector<128x128xbf16>, vector<256x128xf32> -> vector<256x128xf32>
    %21 = arith.addf %14, %20 : vector<256x128xf32>
    %c0_24 = arith.constant 0 : index
    %c0_25 = arith.constant 0 : index
    %c1_26 = arith.constant 1 : index
    %c0_27 = arith.constant 0 : index
    %c0_28 = arith.constant 0 : index
    %22 = vector.load %arg1[%c0_24, %c0_25, %c1_26, %c0_27, %c0_28] : memref<1x1x18x18x128xbf16, #tpu.memory_space<vmem>>, vector<1x1x16x16x128xbf16>
    %23 = vector.shape_cast %22 : vector<1x1x16x16x128xbf16> to vector<16x16x128xbf16>
    %24 = vector.shape_cast %23 : vector<16x16x128xbf16> to vector<256x128xbf16>
    %c3 = arith.constant 3 : index
    %c0_29 = arith.constant 0 : index
    %c0_30 = arith.constant 0 : index
    %25 = vector.load %arg2[%c3, %c0_29, %c0_30] : memref<9x128x128xbf16, #tpu.memory_space<vmem>>, vector<1x128x128xbf16>
    %26 = vector.shape_cast %25 : vector<1x128x128xbf16> to vector<128x128xbf16>
    %cst_31 = arith.constant dense<0.000000e+00> : vector<256x128xf32>
    %27 = tpu.matmul %24, %26, %cst_31 {dimension_numbers = #tpu.dot_dimension_numbers<[1], [0], [0], [1], [0, 0, 1, 1], [], []>} : vector<256x128xbf16>, vector<128x128xbf16>, vector<256x128xf32> -> vector<256x128xf32>
    %28 = arith.addf %21, %27 : vector<256x128xf32>
    %c0_32 = arith.constant 0 : index
    %c0_33 = arith.constant 0 : index
    %c1_34 = arith.constant 1 : index
    %c1_35 = arith.constant 1 : index
    %c0_36 = arith.constant 0 : index
    %29 = vector.load %arg1[%c0_32, %c0_33, %c1_34, %c1_35, %c0_36] : memref<1x1x18x18x128xbf16, #tpu.memory_space<vmem>>, vector<1x1x16x16x128xbf16>
    %30 = vector.shape_cast %29 : vector<1x1x16x16x128xbf16> to vector<16x16x128xbf16>
    %31 = vector.shape_cast %30 : vector<16x16x128xbf16> to vector<256x128xbf16>
    %c4 = arith.constant 4 : index
    %c0_37 = arith.constant 0 : index
    %c0_38 = arith.constant 0 : index
    %32 = vector.load %arg2[%c4, %c0_37, %c0_38] : memref<9x128x128xbf16, #tpu.memory_space<vmem>>, vector<1x128x128xbf16>
    %33 = vector.shape_cast %32 : vector<1x128x128xbf16> to vector<128x128xbf16>
    %cst_39 = arith.constant dense<0.000000e+00> : vector<256x128xf32>
    %34 = tpu.matmul %31, %33, %cst_39 {dimension_numbers = #tpu.dot_dimension_numbers<[1], [0], [0], [1], [0, 0, 1, 1], [], []>} : vector<256x128xbf16>, vector<128x128xbf16>, vector<256x128xf32> -> vector<256x128xf32>
    %35 = arith.addf %28, %34 : vector<256x128xf32>
    %c0_40 = arith.constant 0 : index
    %c0_41 = arith.constant 0 : index
    %c1_42 = arith.constant 1 : index
    %c2_43 = arith.constant 2 : index
    %c0_44 = arith.constant 0 : index
    %36 = vector.load %arg1[%c0_40, %c0_41, %c1_42, %c2_43, %c0_44] : memref<1x1x18x18x128xbf16, #tpu.memory_space<vmem>>, vector<1x1x16x16x128xbf16>
    %37 = vector.shape_cast %36 : vector<1x1x16x16x128xbf16> to vector<16x16x128xbf16>
    %38 = vector.shape_cast %37 : vector<16x16x128xbf16> to vector<256x128xbf16>
    %c5 = arith.constant 5 : index
    %c0_45 = arith.constant 0 : index
    %c0_46 = arith.constant 0 : index
    %39 = vector.load %arg2[%c5, %c0_45, %c0_46] : memref<9x128x128xbf16, #tpu.memory_space<vmem>>, vector<1x128x128xbf16>
    %40 = vector.shape_cast %39 : vector<1x128x128xbf16> to vector<128x128xbf16>
    %cst_47 = arith.constant dense<0.000000e+00> : vector<256x128xf32>
    %41 = tpu.matmul %38, %40, %cst_47 {dimension_numbers = #tpu.dot_dimension_numbers<[1], [0], [0], [1], [0, 0, 1, 1], [], []>} : vector<256x128xbf16>, vector<128x128xbf16>, vector<256x128xf32> -> vector<256x128xf32>
    %42 = arith.addf %35, %41 : vector<256x128xf32>
    %c0_48 = arith.constant 0 : index
    %c0_49 = arith.constant 0 : index
    %c2_50 = arith.constant 2 : index
    %c0_51 = arith.constant 0 : index
    %c0_52 = arith.constant 0 : index
    %43 = vector.load %arg1[%c0_48, %c0_49, %c2_50, %c0_51, %c0_52] : memref<1x1x18x18x128xbf16, #tpu.memory_space<vmem>>, vector<1x1x16x16x128xbf16>
    %44 = vector.shape_cast %43 : vector<1x1x16x16x128xbf16> to vector<16x16x128xbf16>
    %45 = vector.shape_cast %44 : vector<16x16x128xbf16> to vector<256x128xbf16>
    %c6 = arith.constant 6 : index
    %c0_53 = arith.constant 0 : index
    %c0_54 = arith.constant 0 : index
    %46 = vector.load %arg2[%c6, %c0_53, %c0_54] : memref<9x128x128xbf16, #tpu.memory_space<vmem>>, vector<1x128x128xbf16>
    %47 = vector.shape_cast %46 : vector<1x128x128xbf16> to vector<128x128xbf16>
    %cst_55 = arith.constant dense<0.000000e+00> : vector<256x128xf32>
    %48 = tpu.matmul %45, %47, %cst_55 {dimension_numbers = #tpu.dot_dimension_numbers<[1], [0], [0], [1], [0, 0, 1, 1], [], []>} : vector<256x128xbf16>, vector<128x128xbf16>, vector<256x128xf32> -> vector<256x128xf32>
    %49 = arith.addf %42, %48 : vector<256x128xf32>
    %c0_56 = arith.constant 0 : index
    %c0_57 = arith.constant 0 : index
    %c2_58 = arith.constant 2 : index
    %c1_59 = arith.constant 1 : index
    %c0_60 = arith.constant 0 : index
    %50 = vector.load %arg1[%c0_56, %c0_57, %c2_58, %c1_59, %c0_60] : memref<1x1x18x18x128xbf16, #tpu.memory_space<vmem>>, vector<1x1x16x16x128xbf16>
    %51 = vector.shape_cast %50 : vector<1x1x16x16x128xbf16> to vector<16x16x128xbf16>
    %52 = vector.shape_cast %51 : vector<16x16x128xbf16> to vector<256x128xbf16>
    %c7 = arith.constant 7 : index
    %c0_61 = arith.constant 0 : index
    %c0_62 = arith.constant 0 : index
    %53 = vector.load %arg2[%c7, %c0_61, %c0_62] : memref<9x128x128xbf16, #tpu.memory_space<vmem>>, vector<1x128x128xbf16>
    %54 = vector.shape_cast %53 : vector<1x128x128xbf16> to vector<128x128xbf16>
    %cst_63 = arith.constant dense<0.000000e+00> : vector<256x128xf32>
    %55 = tpu.matmul %52, %54, %cst_63 {dimension_numbers = #tpu.dot_dimension_numbers<[1], [0], [0], [1], [0, 0, 1, 1], [], []>} : vector<256x128xbf16>, vector<128x128xbf16>, vector<256x128xf32> -> vector<256x128xf32>
    %56 = arith.addf %49, %55 : vector<256x128xf32>
    %c0_64 = arith.constant 0 : index
    %c0_65 = arith.constant 0 : index
    %c2_66 = arith.constant 2 : index
    %c2_67 = arith.constant 2 : index
    %c0_68 = arith.constant 0 : index
    %57 = vector.load %arg1[%c0_64, %c0_65, %c2_66, %c2_67, %c0_68] : memref<1x1x18x18x128xbf16, #tpu.memory_space<vmem>>, vector<1x1x16x16x128xbf16>
    %58 = vector.shape_cast %57 : vector<1x1x16x16x128xbf16> to vector<16x16x128xbf16>
    %59 = vector.shape_cast %58 : vector<16x16x128xbf16> to vector<256x128xbf16>
    %c8 = arith.constant 8 : index
    %c0_69 = arith.constant 0 : index
    %c0_70 = arith.constant 0 : index
    %60 = vector.load %arg2[%c8, %c0_69, %c0_70] : memref<9x128x128xbf16, #tpu.memory_space<vmem>>, vector<1x128x128xbf16>
    %61 = vector.shape_cast %60 : vector<1x128x128xbf16> to vector<128x128xbf16>
    %cst_71 = arith.constant dense<0.000000e+00> : vector<256x128xf32>
    %62 = tpu.matmul %59, %61, %cst_71 {dimension_numbers = #tpu.dot_dimension_numbers<[1], [0], [0], [1], [0, 0, 1, 1], [], []>} : vector<256x128xbf16>, vector<128x128xbf16>, vector<256x128xf32> -> vector<256x128xf32>
    %63 = arith.addf %56, %62 : vector<256x128xf32>
    %c0_72 = arith.constant 0 : index
    %c0_73 = arith.constant 0 : index
    %64 = vector.load %arg3[%c0_72, %c0_73] : memref<1x128xf32, #tpu.memory_space<vmem>>, vector<1x128xf32>
    %65 = vector.broadcast %64 : vector<1x128xf32> to vector<256x128xf32>
    %66 = arith.addf %63, %65 : vector<256x128xf32>
    %cst_74 = arith.constant 0.000000e+00 : f32
    %67 = vector.broadcast %cst_74 : f32 to vector<256x128xf32>
    %68 = arith.maximumf %66, %67 : vector<256x128xf32>
    %69 = vector.shape_cast %68 : vector<256x128xf32> to vector<1x16x16x128xf32>
    %70 = arith.truncf %69 : vector<1x16x16x128xf32> to vector<1x16x16x128xbf16>
    %c0_75 = arith.constant 0 : index
    %c0_76 = arith.constant 0 : index
    %c0_77 = arith.constant 0 : index
    %c0_78 = arith.constant 0 : index
    %71 = vector.load %arg4[%c0_75, %c0_76, %c0_77, %c0_78] : memref<1x16x16x128xbf16, #tpu.memory_space<vmem>>, vector<1x16x16x128xbf16>
    tpu.vector_store %arg4[%c0_75, %c0_76, %c0_77, %c0_78], %70 {strides = array<i32>} : memref<1x16x16x128xbf16, #tpu.memory_space<vmem>>, vector<1x16x16x128xbf16>,
    return
  }
  func.func @transform_0(%arg0: i32) -> (i32, i32, i32, i32, i32) {
    %c0_i32 = arith.constant 0 : i32
    %c0_i32_0 = arith.constant 0 : i32
    %c0_i32_1 = arith.constant 0 : i32
    %c0_i32_2 = arith.constant 0 : i32
    %c0_i32_3 = arith.constant 0 : i32
    return %c0_i32, %arg0, %c0_i32_0, %c0_i32_1, %c0_i32_2 : i32, i32, i32, i32, i32
  }
  func.func @transform_1(%arg0: i32) -> (i32, i32, i32) {
    %c0_i32 = arith.constant 0 : i32
    %c0_i32_0 = arith.constant 0 : i32
    %c0_i32_1 = arith.constant 0 : i32
    %c0_i32_2 = arith.constant 0 : i32
    return %c0_i32, %c0_i32_0, %c0_i32_1 : i32, i32, i32
  }
  func.func @transform_2(%arg0: i32) -> (i32, i32) {
    %c0_i32 = arith.constant 0 : i32
    %c0_i32_0 = arith.constant 0 : i32
    %c0_i32_1 = arith.constant 0 : i32
    return %c0_i32, %c0_i32_0 : i32, i32
  }
  func.func @transform_3(%arg0: i32) -> (i32, i32, i32, i32) {
    %c0_i32 = arith.constant 0 : i32
    %c0_i32_0 = arith.constant 0 : i32
    %c0_i32_1 = arith.constant 0 : i32
    %c0_i32_2 = arith.constant 0 : i32
    return %arg0, %c0_i32, %c0_i32_0, %c0_i32_1 : i32, i32, i32, i32
  }
}

module attributes {stable_mosaic.version = 11 : i64} {
  func.func @_mm_bn_res_kernel(%arg0: i32, %arg1: memref<512x128xbf16, #tpu.memory_space<vmem>>, %arg2: memref<128x256xbf16, #tpu.memory_space<vmem>>, %arg3: memref<1x256xf32, #tpu.memory_space<vmem>>, %arg4: memref<512x256xbf16, #tpu.memory_space<vmem>>, %arg5: memref<512x256xf32, #tpu.memory_space<vmem>>) attributes {dimension_semantics = [#tpu.dimension_semantics<parallel>], iteration_bounds = array<i64: 1>, scalar_prefetch = 0 : i64, scratch_operands = 0 : i64, tpu.core_type = #tpu.core_type<tc>, window_params = [{transform_indices = @transform_0, window_bounds = array<i64: 512, 128>}, {pipeline_mode = #tpu.pipeline_mode<synchronous>, transform_indices = @transform_1, window_bounds = array<i64: 128, 256>}, {pipeline_mode = #tpu.pipeline_mode<synchronous>, transform_indices = @transform_2, window_bounds = array<i64: 1, 256>}, {transform_indices = @transform_3, window_bounds = array<i64: 512, 256>}, {transform_indices = @transform_4, window_bounds = array<i64: 512, 256>}]} {
    %c0 = arith.constant 0 : index
    %c0_0 = arith.constant 0 : index
    %0 = vector.load %arg1[%c0, %c0_0] : memref<512x128xbf16, #tpu.memory_space<vmem>>, vector<512x128xbf16>
    %c0_1 = arith.constant 0 : index
    %c0_2 = arith.constant 0 : index
    %1 = vector.load %arg2[%c0_1, %c0_2] : memref<128x256xbf16, #tpu.memory_space<vmem>>, vector<128x256xbf16>
    %cst = arith.constant dense<0.000000e+00> : vector<512x256xf32>
    %2 = tpu.matmul %0, %1, %cst {dimension_numbers = #tpu.dot_dimension_numbers<[1], [0], [0], [1], [0, 0, 1, 1], [], []>} : vector<512x128xbf16>, vector<128x256xbf16>, vector<512x256xf32> -> vector<512x256xf32>
    %c0_3 = arith.constant 0 : index
    %c0_4 = arith.constant 0 : index
    %3 = vector.load %arg3[%c0_3, %c0_4] : memref<1x256xf32, #tpu.memory_space<vmem>>, vector<1x256xf32>
    %4 = vector.broadcast %3 : vector<1x256xf32> to vector<512x256xf32>
    %5 = arith.addf %2, %4 : vector<512x256xf32>
    %c0_5 = arith.constant 0 : index
    %c0_6 = arith.constant 0 : index
    %6 = vector.load %arg4[%c0_5, %c0_6] : memref<512x256xbf16, #tpu.memory_space<vmem>>, vector<512x256xbf16>
    %7 = arith.extf %6 : vector<512x256xbf16> to vector<512x256xf32>
    %8 = arith.addf %5, %7 : vector<512x256xf32>
    %cst_7 = arith.constant 0.000000e+00 : f32
    %9 = vector.broadcast %cst_7 : f32 to vector<512x256xf32>
    %10 = arith.maximumf %8, %9 : vector<512x256xf32>
    %c0_8 = arith.constant 0 : index
    %c0_9 = arith.constant 0 : index
    %11 = vector.load %arg5[%c0_8, %c0_9] : memref<512x256xf32, #tpu.memory_space<vmem>>, vector<512x256xf32>
    tpu.vector_store %arg5[%c0_8, %c0_9], %10 {strides = array<i32>} : memref<512x256xf32, #tpu.memory_space<vmem>>, vector<512x256xf32>,
    return
  }
  func.func @transform_0(%arg0: i32) -> (i32, i32) {
    %c0_i32 = arith.constant 0 : i32
    %c0_i32_0 = arith.constant 0 : i32
    return %arg0, %c0_i32 : i32, i32
  }
  func.func @transform_1(%arg0: i32) -> (i32, i32) {
    %c0_i32 = arith.constant 0 : i32
    %c0_i32_0 = arith.constant 0 : i32
    %c0_i32_1 = arith.constant 0 : i32
    return %c0_i32, %c0_i32_0 : i32, i32
  }
  func.func @transform_2(%arg0: i32) -> (i32, i32) {
    %c0_i32 = arith.constant 0 : i32
    %c0_i32_0 = arith.constant 0 : i32
    %c0_i32_1 = arith.constant 0 : i32
    return %c0_i32, %c0_i32_0 : i32, i32
  }
  func.func @transform_3(%arg0: i32) -> (i32, i32) {
    %c0_i32 = arith.constant 0 : i32
    %c0_i32_0 = arith.constant 0 : i32
    return %arg0, %c0_i32 : i32, i32
  }
  func.func @transform_4(%arg0: i32) -> (i32, i32) {
    %c0_i32 = arith.constant 0 : i32
    %c0_i32_0 = arith.constant 0 : i32
    return %arg0, %c0_i32 : i32, i32
  }
}

</mosaic_0001>

<bundles_post_ra>
// kernel: bottleneck_forward.4
= control target key start
LH: loop header
LB: loop body
LE: loop exit
PB: predicated region body
PF: predicated region fallthrough
CT: control target
= control target key end

     0   :  { %s1424_s1 = inlined_call_operand.vmem [shape: bf16[128,128], index: 1, kind: input, shape index: {}]   ;;  %s1425_s2 = inlined_call_operand.vmem [shape: f32[1,128], index: 2, kind: input, shape index: {}]   ;;  %s1426_s0 = inlined_call_operand.vmem [shape: bf16[512,128], index: 0, kind: input, shape index: {}]   ;;  %s1427_s3 = inlined_call_operand.vmem [shape: bf16[512,128], index: 3, kind: output, shape index: {}]  }
   0x1   :  { %v902_v0 = vld [vmem:[%s1424_s1 + $0x38] sm:$0xff]  ;;  %v901_v1 = vld [vmem:[%s1424_s1 + $0x30] sm:$0xff]  ;;  %v900_v2 = vld [vmem:[%s1424_s1 + $0x28] sm:$0xff] }
   0x2   :  { %338 = vmatpush.bf16.msra.mxu0 %v902_v0  ;;  %1094 = vmatpush.bf16.msra.mxu1 %v902_v0  ;;  %v899_v3 = vld [vmem:[%s1424_s1 + $0x20] sm:$0xff]  ;;  %v898_v4 = vld [vmem:[%s1424_s1 + $0x18] sm:$0xff]  ;;  %v897_v5 = vld [vmem:[%s1424_s1 + $0x10] sm:$0xff] }
   0x3   :  { %1095 = vmatpush.bf16.msra.mxu2 %v902_v0  ;;  %1096 = vmatpush.bf16.msra.mxu3 %v902_v0  ;;  %v896_v6 = vld [vmem:[%s1424_s1 + $0x8] sm:$0xff]  ;;  %v895_v7 = vld [vmem:[%s1424_s1] sm:$0xff]  ;;  %v865_v16 = vld [vmem:[%s1426_s0 + $0x10] sm:$0xff] }
   0x4   :  { %v863_v8 = vld [vmem:[%s1426_s0] sm:$0xff]  ;;  %v864_v12 = vld [vmem:[%s1426_s0 + $0x8] sm:$0xff]  ;;  %v873_v17 = vld [vmem:[%s1426_s0 + $0x50] sm:$0xff] }
   0x5   :  { %v871_v9 = vld [vmem:[%s1426_s0 + $0x40] sm:$0xff]  ;;  %v872_v13 = vld [vmem:[%s1426_s0 + $0x48] sm:$0xff]  ;;  %v881_v18 = vld [vmem:[%s1426_s0 + $0x90] sm:$0xff] }
   0x6   :  { %339 = vmatpush.bf16.msra.mxu0 %v901_v1  ;;  %1097 = vmatpush.bf16.msra.mxu1 %v901_v1  ;;  %v879_v10 = vld [vmem:[%s1426_s0 + $0x80] sm:$0xff]  ;;  %v880_v14 = vld [vmem:[%s1426_s0 + $0x88] sm:$0xff]  ;;  %v889_v19 = vld [vmem:[%s1426_s0 + $0xd0] sm:$0xff] }
   0x7   :  { %1098 = vmatpush.bf16.msra.mxu2 %v901_v1  ;;  %1099 = vmatpush.bf16.msra.mxu3 %v901_v1  ;;  %v887_v11 = vld [vmem:[%s1426_s0 + $0xc0] sm:$0xff]  ;;  %v888_v15 = vld [vmem:[%s1426_s0 + $0xc8] sm:$0xff]  ;;  %v866_v20 = vld [vmem:[%s1426_s0 + $0x18] sm:$0xff] }
   0x8   :  { %v874_v21 = vld [vmem:[%s1426_s0 + $0x58] sm:$0xff]  ;;  %v867_v24 = vld [vmem:[%s1426_s0 + $0x20] sm:$0xff]  ;;  %v868_v28 = vld [vmem:[%s1426_s0 + $0x28] sm:$0xff] }
   0x9   :  { %v882_v22 = vld [vmem:[%s1426_s0 + $0x98] sm:$0xff]  ;;  %v875_v25 = vld [vmem:[%s1426_s0 + $0x60] sm:$0xff]  ;;  %v876_v29 = vld [vmem:[%s1426_s0 + $0x68] sm:$0xff] }
   0xa   :  { %340 = vmatpush.bf16.msra.mxu0 %v900_v2  ;;  %1100 = vmatpush.bf16.msra.mxu1 %v900_v2  ;;  %v890_v23 = vld [vmem:[%s1426_s0 + $0xd8] sm:$0xff]  ;;  %v883_v26 = vld [vmem:[%s1426_s0 + $0xa0] sm:$0xff]  ;;  %v884_v30 = vld [vmem:[%s1426_s0 + $0xa8] sm:$0xff] }
   0xb   :  { %1101 = vmatpush.bf16.msra.mxu2 %v900_v2  ;;  %1102 = vmatpush.bf16.msra.mxu3 %v900_v2  ;;  %v891_v27 = vld [vmem:[%s1426_s0 + $0xe0] sm:$0xff]  ;;  %v892_v31 = vld [vmem:[%s1426_s0 + $0xe8] sm:$0xff]  ;;  %v869_v32 = vld [vmem:[%s1426_s0 + $0x30] sm:$0xff] }
   0xc   :  { %v877_v33 = vld [vmem:[%s1426_s0 + $0x70] sm:$0xff]  ;;  %v870_v36 = vld [vmem:[%s1426_s0 + $0x38] sm:$0xff]  ;;  %v1262_v42 = vld [vmem:[%s1425_s2] ss:$0 sm:$0xff] }
   0xd   :  { %v885_v34 = vld [vmem:[%s1426_s0 + $0xb0] sm:$0xff]  ;;  %v878_v37 = vld [vmem:[%s1426_s0 + $0x78] sm:$0xff] }
   0xe   :  { %341 = vmatpush.bf16.msra.mxu0 %v899_v3  ;;  %1103 = vmatpush.bf16.msra.mxu1 %v899_v3  ;;  %v893_v35 = vld [vmem:[%s1426_s0 + $0xf0] sm:$0xff]  ;;  %v886_v38 = vld [vmem:[%s1426_s0 + $0xb8] sm:$0xff] }
   0xf   :  { %1104 = vmatpush.bf16.msra.mxu2 %v899_v3  ;;  %1105 = vmatpush.bf16.msra.mxu3 %v899_v3  ;;  %v894_v39 = vld [vmem:[%s1426_s0 + $0xf8] sm:$0xff] }
  0x12   :  { %342 = vmatpush.bf16.msra.mxu0 %v898_v4  ;;  %1106 = vmatpush.bf16.msra.mxu1 %v898_v4 }
  0x13   :  { %1107 = vmatpush.bf16.msra.mxu2 %v898_v4  ;;  %1108 = vmatpush.bf16.msra.mxu3 %v898_v4 }
  0x16   :  { %343 = vmatpush.bf16.msra.mxu0 %v897_v5  ;;  %1109 = vmatpush.bf16.msra.mxu1 %v897_v5 }
  0x17   :  { %1110 = vmatpush.bf16.msra.mxu2 %v897_v5  ;;  %1111 = vmatpush.bf16.msra.mxu3 %v897_v5 }
  0x1a   :  { %344 = vmatpush.bf16.msra.mxu0 %v896_v6  ;;  %1112 = vmatpush.bf16.msra.mxu1 %v896_v6 }
  0x1b   :  { %1113 = vmatpush.bf16.msra.mxu2 %v896_v6  ;;  %1114 = vmatpush.bf16.msra.mxu3 %v896_v6 }
  0x1e   :  { %345 = vmatpush.bf16.msra.mxu0 %v895_v7  ;;  %1115 = vmatpush.bf16.msra.mxu1 %v895_v7 }
  0x1f   :  { %1116 = vmatpush.bf16.msra.mxu2 %v895_v7  ;;  %1117 = vmatpush.bf16.msra.mxu3 %v895_v7 }
  0x21   :  { %346 = vmatmul.bf16.vlgmr.msra.gmra.mxu0 %v863_v8  ;;  %386 = vmatmul.bf16.vlgmr.msra.gmra.mxu1 %v871_v9 }
  0x22   :  { %426 = vmatmul.bf16.vlgmr.msra.gmra.mxu2 %v879_v10  ;;  %466 = vmatmul.bf16.vlgmr.msra.gmra.mxu3 %v887_v11 }
  0x31   :  { %351 = vmatmul.bf16.gmra.mxu0 %v864_v12  ;;  %391 = vmatmul.bf16.gmra.mxu1 %v872_v13 }
  0x32   :  { %431 = vmatmul.bf16.gmra.mxu2 %v880_v14  ;;  %471 = vmatmul.bf16.gmra.mxu3 %v888_v15 }
  0x41   :  { %356 = vmatmul.bf16.gmra.mxu0 %v865_v16  ;;  %396 = vmatmul.bf16.gmra.mxu1 %v873_v17 }
  0x42   :  { %436 = vmatmul.bf16.gmra.mxu2 %v881_v18  ;;  %476 = vmatmul.bf16.gmra.mxu3 %v889_v19 }
  0x51   :  { %361 = vmatmul.bf16.gmra.mxu0 %v866_v20  ;;  %401 = vmatmul.bf16.gmra.mxu1 %v874_v21 }
  0x52   :  { %441 = vmatmul.bf16.gmra.mxu2 %v882_v22  ;;  %481 = vmatmul.bf16.gmra.mxu3 %v890_v23 }
  0x61   :  { %366 = vmatmul.bf16.gmra.mxu0 %v867_v24  ;;  %406 = vmatmul.bf16.gmra.mxu1 %v875_v25 }
  0x62   :  { %446 = vmatmul.bf16.gmra.mxu2 %v883_v26  ;;  %486 = vmatmul.bf16.gmra.mxu3 %v891_v27 }
  0x71   :  { %371 = vmatmul.bf16.gmra.mxu0 %v868_v28  ;;  %411 = vmatmul.bf16.gmra.mxu1 %v876_v29 }
  0x72   :  { %451 = vmatmul.bf16.gmra.mxu2 %v884_v30  ;;  %491 = vmatmul.bf16.gmra.mxu3 %v892_v31 }
  0x81   :  { %376 = vmatmul.bf16.gmra.mxu0 %v869_v32  ;;  %416 = vmatmul.bf16.gmra.mxu1 %v877_v33 }
  0x82   :  { %456 = vmatmul.bf16.gmra.mxu2 %v885_v34  ;;  %496 = vmatmul.bf16.gmra.mxu3 %v893_v35 }
  0x91   :  { %381 = vmatmul.bf16.gmra.mxu0 %v870_v36  ;;  %421 = vmatmul.bf16.gmra.mxu1 %v878_v37 }
  0x92   :  { %461 = vmatmul.bf16.gmra.mxu2 %v886_v38  ;;  %501 = vmatmul.bf16.gmra.mxu3 %v894_v39 }
  0x9e   :  { %v347_v40 = vpop.f32.mrf.mxu0  ;;  %v387_v41 = vpop.f32.mrf.mxu1 }
  0x9f   :  { %v348_v43 = vadd.f32 %v1262_v42, %v347_v40  ;;  %v388_v44 = vadd.f32 %v1262_v42, %v387_v41 }
  0xa1   :  { %v507_v51 = vmax.f32 %v348_v43, 0.0  ;;  %v523_v52 = vmax.f32 %v388_v44, 0.0 }
  0xa5   :  { %v427_v45 = vpop.f32.mrf.mxu2  ;;  %v467_v46 = vpop.f32.mrf.mxu3 }
  0xa6   :  { %v349_v47 = vpop.f32.mrf.mxu0  ;;  %v389_v48 = vpop.f32.mrf.mxu1  ;;  %v428_v57 = vadd.f32 %v1262_v42, %v427_v45  ;;  %v468_v58 = vadd.f32 %v1262_v42, %v467_v46 }
  0xa7   :  { %v350_v49 = vadd.f32 %v1262_v42, %v349_v47  ;;  %v390_v50 = vadd.f32 %v1262_v42, %v389_v48 }
  0xa8   :  { %v539_v1 = vmax.f32 %v428_v57, 0.0  ;;  %v555_v2 = vmax.f32 %v468_v58, 0.0 }
  0xa9   :  { %v508_v53 = vmax.f32 %v350_v49, 0.0  ;;  %v524_v54 = vmax.f32 %v390_v50, 0.0 }
  0xab   :  { %v906_v55 = vpack.c.bf16 %v508_v53, %v507_v51  ;;  %v946_v56 = vpack.c.bf16 %v524_v54, %v523_v52 }
  0xad   :  { %907 = vst [vmem:[%s1427_s3] sm:$0xff] %v906_v55   ;;  %v429_v59 = vpop.f32.mrf.mxu2  ;;  %v469_v60 = vpop.f32.mrf.mxu3 }
  0xae   :  { %1070 = vst [vmem:[%s1427_s3 + $0x40] sm:$0xff] %v946_v56   ;;  %v430_v61 = vadd.f32 %v1262_v42, %v429_v59  ;;  %v470_v62 = vadd.f32 %v1262_v42, %v469_v60  ;;  %v352_v63 = vpop.f32.mrf.mxu0  ;;  %v392_v0 = vpop.f32.mrf.mxu1 }
  0xaf   :  { %v353_v7 = vadd.f32 %v1262_v42, %v352_v63  ;;  %v393_v8 = vadd.f32 %v1262_v42, %v392_v0 }
  0xb0   :  { %v540_v3 = vmax.f32 %v430_v61, 0.0  ;;  %v556_v4 = vmax.f32 %v470_v62, 0.0 }
  0xb1   :  { %v509_v15 = vmax.f32 %v353_v7, 0.0  ;;  %v525_v16 = vmax.f32 %v393_v8, 0.0 }
  0xb2   :  { %v986_v5 = vpack.c.bf16 %v540_v3, %v539_v1  ;;  %v1026_v6 = vpack.c.bf16 %v556_v4, %v555_v2 }
  0xb4   :  { %1078 = vst [vmem:[%s1427_s3 + $0x80] sm:$0xff] %v986_v5  }
  0xb5   :  { %1086 = vst [vmem:[%s1427_s3 + $0xc0] sm:$0xff] %v1026_v6   ;;  %v432_v9 = vpop.f32.mrf.mxu2  ;;  %v472_v10 = vpop.f32.mrf.mxu3 }
  0xb6   :  { %v354_v11 = vpop.f32.mrf.mxu0  ;;  %v394_v12 = vpop.f32.mrf.mxu1  ;;  %v433_v21 = vadd.f32 %v1262_v42, %v432_v9  ;;  %v473_v22 = vadd.f32 %v1262_v42, %v472_v10 }
  0xb7   :  { %v355_v13 = vadd.f32 %v1262_v42, %v354_v11  ;;  %v395_v14 = vadd.f32 %v1262_v42, %v394_v12 }
  0xb8   :  { %v541_v29 = vmax.f32 %v433_v21, 0.0  ;;  %v557_v30 = vmax.f32 %v473_v22, 0.0 }
  0xb9   :  { %v510_v17 = vmax.f32 %v355_v13, 0.0  ;;  %v526_v18 = vmax.f32 %v395_v14, 0.0 }
  0xbb   :  { %v911_v19 = vpack.c.bf16 %v510_v17, %v509_v15  ;;  %v951_v20 = vpack.c.bf16 %v526_v18, %v525_v16 }
  0xbd   :  { %1063 = vst [vmem:[%s1427_s3 + $0x8] sm:$0xff] %v911_v19   ;;  %v434_v23 = vpop.f32.mrf.mxu2  ;;  %v474_v24 = vpop.f32.mrf.mxu3 }
  0xbe   :  { %1071 = vst [vmem:[%s1427_s3 + $0x48] sm:$0xff] %v951_v20   ;;  %v435_v25 = vadd.f32 %v1262_v42, %v434_v23  ;;  %v475_v26 = vadd.f32 %v1262_v42, %v474_v24  ;;  %v357_v27 = vpop.f32.mrf.mxu0  ;;  %v397_v28 = vpop.f32.mrf.mxu1 }
  0xbf   :  { %v358_v35 = vadd.f32 %v1262_v42, %v357_v27  ;;  %v398_v36 = vadd.f32 %v1262_v42, %v397_v28 }
  0xc0   :  { %v542_v31 = vmax.f32 %v435_v25, 0.0  ;;  %v558_v32 = vmax.f32 %v475_v26, 0.0 }
  0xc1   :  { %v511_v44 = vmax.f32 %v358_v35, 0.0  ;;  %v527_v45 = vmax.f32 %v398_v36, 0.0 }
  0xc2   :  { %v991_v33 = vpack.c.bf16 %v542_v31, %v541_v29  ;;  %v1031_v34 = vpack.c.bf16 %v558_v32, %v557_v30 }
  0xc4   :  { %1079 = vst [vmem:[%s1427_s3 + $0x88] sm:$0xff] %v991_v33  }
  0xc5   :  { %1087 = vst [vmem:[%s1427_s3 + $0xc8] sm:$0xff] %v1031_v34   ;;  %v437_v37 = vpop.f32.mrf.mxu2  ;;  %v477_v38 = vpop.f32.mrf.mxu3 }
  0xc6   :  { %v359_v39 = vpop.f32.mrf.mxu0  ;;  %v399_v40 = vpop.f32.mrf.mxu1  ;;  %v438_v50 = vadd.f32 %v1262_v42, %v437_v37  ;;  %v478_v51 = vadd.f32 %v1262_v42, %v477_v38 }
  0xc7   :  { %v360_v41 = vadd.f32 %v1262_v42, %v359_v39  ;;  %v400_v43 = vadd.f32 %v1262_v42, %v399_v40 }
  0xc8   :  { %v543_v58 = vmax.f32 %v438_v50, 0.0  ;;  %v559_v59 = vmax.f32 %v478_v51, 0.0 }
  0xc9   :  { %v512_v46 = vmax.f32 %v360_v41, 0.0  ;;  %v528_v47 = vmax.f32 %v400_v43, 0.0 }
  0xcb   :  { %v916_v48 = vpack.c.bf16 %v512_v46, %v511_v44  ;;  %v956_v49 = vpack.c.bf16 %v528_v47, %v527_v45 }
  0xcd   :  { %1064 = vst [vmem:[%s1427_s3 + $0x10] sm:$0xff] %v916_v48   ;;  %v439_v52 = vpop.f32.mrf.mxu2  ;;  %v479_v53 = vpop.f32.mrf.mxu3 }
  0xce   :  { %1072 = vst [vmem:[%s1427_s3 + $0x50] sm:$0xff] %v956_v49   ;;  %v440_v54 = vadd.f32 %v1262_v42, %v439_v52  ;;  %v480_v55 = vadd.f32 %v1262_v42, %v479_v53  ;;  %v362_v56 = vpop.f32.mrf.mxu0  ;;  %v402_v57 = vpop.f32.mrf.mxu1 }
  0xcf   :  { %v363_v0 = vadd.f32 %v1262_v42, %v362_v56  ;;  %v403_v1 = vadd.f32 %v1262_v42, %v402_v57 }
  0xd0   :  { %v544_v60 = vmax.f32 %v440_v54, 0.0  ;;  %v560_v61 = vmax.f32 %v480_v55, 0.0 }
  0xd1   :  { %v513_v8 = vmax.f32 %v363_v0, 0.0  ;;  %v529_v9 = vmax.f32 %v403_v1, 0.0 }
  0xd2   :  { %v996_v62 = vpack.c.bf16 %v544_v60, %v543_v58  ;;  %v1036_v63 = vpack.c.bf16 %v560_v61, %v559_v59 }
  0xd4   :  { %1080 = vst [vmem:[%s1427_s3 + $0x90] sm:$0xff] %v996_v62  }
  0xd5   :  { %1088 = vst [vmem:[%s1427_s3 + $0xd0] sm:$0xff] %v1036_v63   ;;  %v442_v2 = vpop.f32.mrf.mxu2  ;;  %v482_v3 = vpop.f32.mrf.mxu3 }
  0xd6   :  { %v364_v4 = vpop.f32.mrf.mxu0  ;;  %v404_v5 = vpop.f32.mrf.mxu1  ;;  %v443_v14 = vadd.f32 %v1262_v42, %v442_v2  ;;  %v483_v15 = vadd.f32 %v1262_v42, %v482_v3 }
  0xd7   :  { %v365_v6 = vadd.f32 %v1262_v42, %v364_v4  ;;  %v405_v7 = vadd.f32 %v1262_v42, %v404_v5 }
  0xd8   :  { %v545_v22 = vmax.f32 %v443_v14, 0.0  ;;  %v561_v23 = vmax.f32 %v483_v15, 0.0 }
  0xd9   :  { %v514_v10 = vmax.f32 %v365_v6, 0.0  ;;  %v530_v11 = vmax.f32 %v405_v7, 0.0 }
  0xdb   :  { %v921_v12 = vpack.c.bf16 %v514_v10, %v513_v8  ;;  %v961_v13 = vpack.c.bf16 %v530_v11, %v529_v9 }
  0xdd   :  { %1065 = vst [vmem:[%s1427_s3 + $0x18] sm:$0xff] %v921_v12   ;;  %v444_v16 = vpop.f32.mrf.mxu2  ;;  %v484_v17 = vpop.f32.mrf.mxu3 }
  0xde   :  { %1073 = vst [vmem:[%s1427_s3 + $0x58] sm:$0xff] %v961_v13   ;;  %v445_v18 = vadd.f32 %v1262_v42, %v444_v16  ;;  %v485_v19 = vadd.f32 %v1262_v42, %v484_v17  ;;  %v367_v20 = vpop.f32.mrf.mxu0  ;;  %v407_v21 = vpop.f32.mrf.mxu1 }
  0xdf   :  { %v368_v28 = vadd.f32 %v1262_v42, %v367_v20  ;;  %v408_v29 = vadd.f32 %v1262_v42, %v407_v21 }
  0xe0   :  { %v546_v24 = vmax.f32 %v445_v18, 0.0  ;;  %v562_v25 = vmax.f32 %v485_v19, 0.0 }
  0xe1   :  { %v515_v36 = vmax.f32 %v368_v28, 0.0  ;;  %v531_v37 = vmax.f32 %v408_v29, 0.0 }
  0xe2   :  { %v1001_v26 = vpack.c.bf16 %v546_v24, %v545_v22  ;;  %v1041_v27 = vpack.c.bf16 %v562_v25, %v561_v23 }
  0xe4   :  { %1081 = vst [vmem:[%s1427_s3 + $0x98] sm:$0xff] %v1001_v26  }
  0xe5   :  { %1089 = vst [vmem:[%s1427_s3 + $0xd8] sm:$0xff] %v1041_v27   ;;  %v447_v30 = vpop.f32.mrf.mxu2  ;;  %v487_v31 = vpop.f32.mrf.mxu3 }
  0xe6   :  { %v369_v32 = vpop.f32.mrf.mxu0  ;;  %v409_v33 = vpop.f32.mrf.mxu1  ;;  %v448_v43 = vadd.f32 %v1262_v42, %v447_v30  ;;  %v488_v44 = vadd.f32 %v1262_v42, %v487_v31 }
  0xe7   :  { %v370_v34 = vadd.f32 %v1262_v42, %v369_v32  ;;  %v410_v35 = vadd.f32 %v1262_v42, %v409_v33 }
  0xe8   :  { %v547_v51 = vmax.f32 %v448_v43, 0.0  ;;  %v563_v52 = vmax.f32 %v488_v44, 0.0 }
  0xe9   :  { %v516_v38 = vmax.f32 %v370_v34, 0.0  ;;  %v532_v39 = vmax.f32 %v410_v35, 0.0 }
  0xeb   :  { %v926_v40 = vpack.c.bf16 %v516_v38, %v515_v36  ;;  %v966_v41 = vpack.c.bf16 %v532_v39, %v531_v37 }
  0xed   :  { %1066 = vst [vmem:[%s1427_s3 + $0x20] sm:$0xff] %v926_v40   ;;  %v449_v45 = vpop.f32.mrf.mxu2  ;;  %v489_v46 = vpop.f32.mrf.mxu3 }
  0xee   :  { %1074 = vst [vmem:[%s1427_s3 + $0x60] sm:$0xff] %v966_v41   ;;  %v450_v47 = vadd.f32 %v1262_v42, %v449_v45  ;;  %v490_v48 = vadd.f32 %v1262_v42, %v489_v46  ;;  %v372_v49 = vpop.f32.mrf.mxu0  ;;  %v412_v50 = vpop.f32.mrf.mxu1 }
  0xef   :  { %v373_v57 = vadd.f32 %v1262_v42, %v372_v49  ;;  %v413_v58 = vadd.f32 %v1262_v42, %v412_v50 }
  0xf0   :  { %v548_v53 = vmax.f32 %v450_v47, 0.0  ;;  %v564_v54 = vmax.f32 %v490_v48, 0.0 }
  0xf1   :  { %v517_v1 = vmax.f32 %v373_v57, 0.0  ;;  %v533_v2 = vmax.f32 %v413_v58, 0.0 }
  0xf2   :  { %v1006_v55 = vpack.c.bf16 %v548_v53, %v547_v51  ;;  %v1046_v56 = vpack.c.bf16 %v564_v54, %v563_v52 }
  0xf4   :  { %1082 = vst [vmem:[%s1427_s3 + $0xa0] sm:$0xff] %v1006_v55  }
  0xf5   :  { %1090 = vst [vmem:[%s1427_s3 + $0xe0] sm:$0xff] %v1046_v56   ;;  %v452_v59 = vpop.f32.mrf.mxu2  ;;  %v492_v60 = vpop.f32.mrf.mxu3 }
  0xf6   :  { %v374_v61 = vpop.f32.mrf.mxu0  ;;  %v414_v62 = vpop.f32.mrf.mxu1  ;;  %v453_v7 = vadd.f32 %v1262_v42, %v452_v59  ;;  %v493_v8 = vadd.f32 %v1262_v42, %v492_v60 }
  0xf7   :  { %v375_v63 = vadd.f32 %v1262_v42, %v374_v61  ;;  %v415_v0 = vadd.f32 %v1262_v42, %v414_v62 }
  0xf8   :  { %v549_v15 = vmax.f32 %v453_v7, 0.0  ;;  %v565_v16 = vmax.f32 %v493_v8, 0.0 }
  0xf9   :  { %v518_v3 = vmax.f32 %v375_v63, 0.0  ;;  %v534_v4 = vmax.f32 %v415_v0, 0.0 }
  0xfb   :  { %v931_v5 = vpack.c.bf16 %v518_v3, %v517_v1  ;;  %v971_v6 = vpack.c.bf16 %v534_v4, %v533_v2 }
  0xfd   :  { %1067 = vst [vmem:[%s1427_s3 + $0x28] sm:$0xff] %v931_v5   ;;  %v454_v9 = vpop.f32.mrf.mxu2  ;;  %v494_v10 = vpop.f32.mrf.mxu3 }
  0xfe   :  { %1075 = vst [vmem:[%s1427_s3 + $0x68] sm:$0xff] %v971_v6   ;;  %v455_v11 = vadd.f32 %v1262_v42, %v454_v9  ;;  %v495_v12 = vadd.f32 %v1262_v42, %v494_v10  ;;  %v377_v13 = vpop.f32.mrf.mxu0  ;;  %v417_v14 = vpop.f32.mrf.mxu1 }
  0xff   :  { %v378_v21 = vadd.f32 %v1262_v42, %v377_v13  ;;  %v418_v22 = vadd.f32 %v1262_v42, %v417_v14 }
 0x100   :  { %v550_v17 = vmax.f32 %v455_v11, 0.0  ;;  %v566_v18 = vmax.f32 %v495_v12, 0.0 }
 0x101   :  { %v519_v29 = vmax.f32 %v378_v21, 0.0  ;;  %v535_v30 = vmax.f32 %v418_v22, 0.0 }
 0x102   :  { %v1011_v19 = vpack.c.bf16 %v550_v17, %v549_v15  ;;  %v1051_v20 = vpack.c.bf16 %v566_v18, %v565_v16 }
 0x104   :  { %1083 = vst [vmem:[%s1427_s3 + $0xa8] sm:$0xff] %v1011_v19  }
 0x105   :  { %1091 = vst [vmem:[%s1427_s3 + $0xe8] sm:$0xff] %v1051_v20   ;;  %v457_v23 = vpop.f32.mrf.mxu2  ;;  %v497_v24 = vpop.f32.mrf.mxu3 }
 0x106   :  { %v379_v25 = vpop.f32.mrf.mxu0  ;;  %v419_v26 = vpop.f32.mrf.mxu1  ;;  %v458_v35 = vadd.f32 %v1262_v42, %v457_v23  ;;  %v498_v36 = vadd.f32 %v1262_v42, %v497_v24 }
 0x107   :  { %v380_v27 = vadd.f32 %v1262_v42, %v379_v25  ;;  %v420_v28 = vadd.f32 %v1262_v42, %v419_v26 }
 0x108   :  { %v551_v44 = vmax.f32 %v458_v35, 0.0  ;;  %v567_v45 = vmax.f32 %v498_v36, 0.0 }
 0x109   :  { %v520_v31 = vmax.f32 %v380_v27, 0.0  ;;  %v536_v32 = vmax.f32 %v420_v28, 0.0 }
 0x10b   :  { %v936_v33 = vpack.c.bf16 %v520_v31, %v519_v29  ;;  %v976_v34 = vpack.c.bf16 %v536_v32, %v535_v30 }
 0x10d   :  { %1068 = vst [vmem:[%s1427_s3 + $0x30] sm:$0xff] %v936_v33   ;;  %v459_v37 = vpop.f32.mrf.mxu2  ;;  %v499_v38 = vpop.f32.mrf.mxu3 }
 0x10e   :  { %1076 = vst [vmem:[%s1427_s3 + $0x70] sm:$0xff] %v976_v34   ;;  %v460_v39 = vadd.f32 %v1262_v42, %v459_v37  ;;  %v500_v40 = vadd.f32 %v1262_v42, %v499_v38  ;;  %v382_v41 = vpop.f32.mrf.mxu0  ;;  %v422_v43 = vpop.f32.mrf.mxu1 }
 0x10f   :  { %v383_v50 = vadd.f32 %v1262_v42, %v382_v41  ;;  %v423_v51 = vadd.f32 %v1262_v42, %v422_v43 }
 0x110   :  { %v552_v46 = vmax.f32 %v460_v39, 0.0  ;;  %v568_v47 = vmax.f32 %v500_v40, 0.0 }
 0x111   :  { %v521_v58 = vmax.f32 %v383_v50, 0.0  ;;  %v537_v59 = vmax.f32 %v423_v51, 0.0 }
 0x112   :  { %v1016_v48 = vpack.c.bf16 %v552_v46, %v551_v44  ;;  %v1056_v49 = vpack.c.bf16 %v568_v47, %v567_v45 }
 0x114   :  { %1084 = vst [vmem:[%s1427_s3 + $0xb0] sm:$0xff] %v1016_v48  }
 0x115   :  { %1092 = vst [vmem:[%s1427_s3 + $0xf0] sm:$0xff] %v1056_v49   ;;  %v462_v52 = vpop.f32.mrf.mxu2  ;;  %v502_v53 = vpop.f32.mrf.mxu3 }
 0x116   :  { %v384_v54 = vpop.f32.mrf.mxu0  ;;  %v424_v55 = vpop.f32.mrf.mxu1  ;;  %v463_v0 = vadd.f32 %v1262_v42, %v462_v52  ;;  %v503_v1 = vadd.f32 %v1262_v42, %v502_v53 }
 0x117   :  { %v385_v56 = vadd.f32 %v1262_v42, %v384_v54  ;;  %v425_v57 = vadd.f32 %v1262_v42, %v424_v55 }
 0x118   :  { %v553_v6 = vmax.f32 %v463_v0, 0.0  ;;  %v569_v7 = vmax.f32 %v503_v1, 0.0 }
 0x119   :  { %v522_v60 = vmax.f32 %v385_v56, 0.0  ;;  %v538_v61 = vmax.f32 %v425_v57, 0.0 }
 0x11b   :  { %v941_v62 = vpack.c.bf16 %v522_v60, %v521_v58  ;;  %v981_v63 = vpack.c.bf16 %v538_v61, %v537_v59 }
 0x11d   :  { %1069 = vst [vmem:[%s1427_s3 + $0x38] sm:$0xff] %v941_v62   ;;  %v464_v2 = vpop.f32.mrf.mxu2  ;;  %v504_v3 = vpop.f32.mrf.mxu3 }
 0x11e   :  { %1077 = vst [vmem:[%s1427_s3 + $0x78] sm:$0xff] %v981_v63   ;;  %v465_v4 = vadd.f32 %v1262_v42, %v464_v2  ;;  %v505_v5 = vadd.f32 %v1262_v42, %v504_v3 }
 0x120   :  { %v554_v8 = vmax.f32 %v465_v4, 0.0  ;;  %v570_v9 = vmax.f32 %v505_v5, 0.0 }
 0x122   :  { %v1021_v10 = vpack.c.bf16 %v554_v8, %v553_v6  ;;  %v1061_v11 = vpack.c.bf16 %v570_v9, %v569_v7 }
 0x124   :  { %1085 = vst [vmem:[%s1427_s3 + $0xb8] sm:$0xff] %v1021_v10  }
 0x125   :  { %1093 = vst [vmem:[%s1427_s3 + $0xf8] sm:$0xff] %v1061_v11  }

// kernel: bottleneck_forward.6
= control target key start
LH: loop header
LB: loop body
LE: loop exit
PB: predicated region body
PF: predicated region fallthrough
CT: control target
= control target key end

     0   :  { %s1637_s1 = inlined_call_operand.vmem [shape: bf16[128,256], index: 1, kind: input, shape index: {}]   ;;  %s1638_s0 = inlined_call_operand.vmem [shape: bf16[512,128], index: 0, kind: input, shape index: {}]   ;;  %s1639_s2 = inlined_call_operand.vmem [shape: f32[1,256], index: 2, kind: input, shape index: {}]   ;;  %s1640_s3 = inlined_call_operand.vmem [shape: bf16[512,256], index: 3, kind: output, shape index: {}]  }
   0x1   :  { %v1028_v0 = vld [vmem:[%s1637_s1 + $0x70] sm:$0xf]  ;;  %v1081_v1 = vld [vmem:[%s1637_s1 + $0x74] sm:$0xf0]  ;;  %v1080_v2 = vld [vmem:[%s1637_s1 + $0x74] sm:$0xf] }
   0x2   :  { %v1029_v3 = vor.u32 %v1081_v1, %v1028_v0  ;;  %v1030_v4 = vld [vmem:[%s1637_s1 + $0x78] sm:$0xf0]  ;;  %v1020_v5 = vld [vmem:[%s1637_s1 + $0x60] sm:$0xf]  ;;  %v1079_v6 = vld [vmem:[%s1637_s1 + $0x64] sm:$0xf0] }
   0x3   :  { %v1033_v7 = vor.u32 %v1080_v2, %v1030_v4  ;;  %v1078_v8 = vld [vmem:[%s1637_s1 + $0x64] sm:$0xf]  ;;  %v1022_v9 = vld [vmem:[%s1637_s1 + $0x68] sm:$0xf0]  ;;  %v1021_v10 = vor.u32 %v1079_v6, %v1020_v5  ;;  %v1012_v12 = vld [vmem:[%s1637_s1 + $0x50] sm:$0xf] }
   0x4   :  { %372 = vmatpush.bf16.msra.mxu0 %v1029_v3  ;;  %1082 = vmatpush.bf16.msra.mxu2 %v1029_v3  ;;  %v1025_v11 = vor.u32 %v1078_v8, %v1022_v9  ;;  %v1077_v13 = vld [vmem:[%s1637_s1 + $0x54] sm:$0xf0]  ;;  %v1076_v14 = vld [vmem:[%s1637_s1 + $0x54] sm:$0xf]  ;;  %v1014_v15 = vld [vmem:[%s1637_s1 + $0x58] sm:$0xf0] }
   0x5   :  { %541 = vmatpush.bf16.msra.mxu1 %v1033_v7  ;;  %1090 = vmatpush.bf16.msra.mxu3 %v1033_v7  ;;  %v1013_v16 = vor.u32 %v1077_v13, %v1012_v12  ;;  %v1017_v17 = vor.u32 %v1076_v14, %v1014_v15  ;;  %v1004_v18 = vld [vmem:[%s1637_s1 + $0x40] sm:$0xf]  ;;  %v1075_v19 = vld [vmem:[%s1637_s1 + $0x44] sm:$0xf0]  ;;  %v1074_v20 = vld [vmem:[%s1637_s1 + $0x44] sm:$0xf] }
   0x6   :  { %v1006_v21 = vld [vmem:[%s1637_s1 + $0x48] sm:$0xf0]  ;;  %v1005_v22 = vor.u32 %v1075_v19, %v1004_v18  ;;  %v996_v24 = vld [vmem:[%s1637_s1 + $0x30] sm:$0xf]  ;;  %v1073_v25 = vld [vmem:[%s1637_s1 + $0x34] sm:$0xf0] }
   0x7   :  { %v1009_v23 = vor.u32 %v1074_v20, %v1006_v21  ;;  %v1072_v26 = vld [vmem:[%s1637_s1 + $0x34] sm:$0xf]  ;;  %v998_v27 = vld [vmem:[%s1637_s1 + $0x38] sm:$0xf0]  ;;  %v997_v28 = vor.u32 %v1073_v25, %v996_v24  ;;  %v988_v30 = vld [vmem:[%s1637_s1 + $0x20] sm:$0xf] }
   0x8   :  { %373 = vmatpush.bf16.msra.mxu0 %v1021_v10  ;;  %1083 = vmatpush.bf16.msra.mxu2 %v1021_v10  ;;  %v1001_v29 = vor.u32 %v1072_v26, %v998_v27  ;;  %v1071_v31 = vld [vmem:[%s1637_s1 + $0x24] sm:$0xf0]  ;;  %v1070_v32 = vld [vmem:[%s1637_s1 + $0x24] sm:$0xf]  ;;  %v990_v33 = vld [vmem:[%s1637_s1 + $0x28] sm:$0xf0] }
   0x9   :  { %542 = vmatpush.bf16.msra.mxu1 %v1025_v11  ;;  %1091 = vmatpush.bf16.msra.mxu3 %v1025_v11  ;;  %v989_v34 = vor.u32 %v1071_v31, %v988_v30  ;;  %v993_v35 = vor.u32 %v1070_v32, %v990_v33  ;;  %v980_v36 = vld [vmem:[%s1637_s1 + $0x10] sm:$0xf]  ;;  %v1069_v37 = vld [vmem:[%s1637_s1 + $0x14] sm:$0xf0]  ;;  %v1068_v38 = vld [vmem:[%s1637_s1 + $0x14] sm:$0xf] }
   0xa   :  { %v982_v39 = vld [vmem:[%s1637_s1 + $0x18] sm:$0xf0]  ;;  %v981_v40 = vor.u32 %v1069_v37, %v980_v36  ;;  %v972_v42 = vld [vmem:[%s1637_s1] sm:$0xf]  ;;  %v1067_v43 = vld [vmem:[%s1637_s1 + $0x4] sm:$0xf0] }
   0xb   :  { %v985_v41 = vor.u32 %v1068_v38, %v982_v39  ;;  %v1066_v44 = vld [vmem:[%s1637_s1 + $0x4] sm:$0xf]  ;;  %v974_v45 = vld [vmem:[%s1637_s1 + $0x8] sm:$0xf0]  ;;  %v973_v46 = vor.u32 %v1067_v43, %v972_v42  ;;  %v1036_v52 = vld [vmem:[%s1638_s0 + $0x10] sm:$0xff] }
   0xc   :  { %374 = vmatpush.bf16.msra.mxu0 %v1013_v16  ;;  %1084 = vmatpush.bf16.msra.mxu2 %v1013_v16  ;;  %v977_v47 = vor.u32 %v1066_v44, %v974_v45  ;;  %v1034_v48 = vld [vmem:[%s1638_s0] sm:$0xff]  ;;  %v1035_v50 = vld [vmem:[%s1638_s0 + $0x8] sm:$0xff]  ;;  %v1052_v53 = vld [vmem:[%s1638_s0 + $0x90] sm:$0xff] }
   0xd   :  { %543 = vmatpush.bf16.msra.mxu1 %v1017_v17  ;;  %1092 = vmatpush.bf16.msra.mxu3 %v1017_v17  ;;  %v1050_v49 = vld [vmem:[%s1638_s0 + $0x80] sm:$0xff]  ;;  %v1051_v51 = vld [vmem:[%s1638_s0 + $0x88] sm:$0xff]  ;;  %v1037_v54 = vld [vmem:[%s1638_s0 + $0x18] sm:$0xff] }
   0xe   :  { %v1053_v55 = vld [vmem:[%s1638_s0 + $0x98] sm:$0xff]  ;;  %v1038_v56 = vld [vmem:[%s1638_s0 + $0x20] sm:$0xff]  ;;  %v1039_v58 = vld [vmem:[%s1638_s0 + $0x28] sm:$0xff] }
   0xf   :  { %v1054_v57 = vld [vmem:[%s1638_s0 + $0xa0] sm:$0xff]  ;;  %v1055_v59 = vld [vmem:[%s1638_s0 + $0xa8] sm:$0xff]  ;;  %v1040_v60 = vld [vmem:[%s1638_s0 + $0x30] sm:$0xff] }
  0x10   :  { %375 = vmatpush.bf16.msra.mxu0 %v1005_v22  ;;  %1085 = vmatpush.bf16.msra.mxu2 %v1005_v22  ;;  %v1056_v61 = vld [vmem:[%s1638_s0 + $0xb0] sm:$0xff]  ;;  %v1041_v62 = vld [vmem:[%s1638_s0 + $0x38] sm:$0xff]  ;;  %v94_v0 = vld [vmem:[%s1639_s2] sm:$0x3] }
  0x11   :  { %544 = vmatpush.bf16.msra.mxu1 %v1009_v23  ;;  %1093 = vmatpush.bf16.msra.mxu3 %v1009_v23  ;;  %v1057_v63 = vld [vmem:[%s1638_s0 + $0xb8] sm:$0xff]  ;;  %v1265_v1 = vperm.slane %v94_v0, 0  ;;  %v1267_v2 = vperm.slane %v94_v0, 1  ;;  %v1042_v3 = vld [vmem:[%s1638_s0 + $0x40] sm:$0xff]  ;;  %v1043_v23 = vld [vmem:[%s1638_s0 + $0x48] sm:$0xff] }
  0x12   :  { %v1058_v4 = vld [vmem:[%s1638_s0 + $0xc0] sm:$0xff]  ;;  %v1059_v24 = vld [vmem:[%s1638_s0 + $0xc8] sm:$0xff]  ;;  %v1044_v45 = vld [vmem:[%s1638_s0 + $0x50] sm:$0xff] }
  0x14   :  { %376 = vmatpush.bf16.msra.mxu0 %v997_v28  ;;  %1086 = vmatpush.bf16.msra.mxu2 %v997_v28 }
  0x15   :  { %545 = vmatpush.bf16.msra.mxu1 %v1001_v29  ;;  %1094 = vmatpush.bf16.msra.mxu3 %v1001_v29 }
  0x18   :  { %377 = vmatpush.bf16.msra.mxu0 %v989_v34  ;;  %1087 = vmatpush.bf16.msra.mxu2 %v989_v34 }
  0x19   :  { %546 = vmatpush.bf16.msra.mxu1 %v993_v35  ;;  %1095 = vmatpush.bf16.msra.mxu3 %v993_v35 }
  0x1c   :  { %378 = vmatpush.bf16.msra.mxu0 %v981_v40  ;;  %1088 = vmatpush.bf16.msra.mxu2 %v981_v40 }
  0x1d   :  { %547 = vmatpush.bf16.msra.mxu1 %v985_v41  ;;  %1096 = vmatpush.bf16.msra.mxu3 %v985_v41 }
  0x20   :  { %379 = vmatpush.bf16.msra.mxu0 %v973_v46  ;;  %1089 = vmatpush.bf16.msra.mxu2 %v973_v46  ;;  %v1060_v46 = vld [vmem:[%s1638_s0 + $0xd0] sm:$0xff] }
  0x21   :  { %548 = vmatpush.bf16.msra.mxu1 %v977_v47  ;;  %1097 = vmatpush.bf16.msra.mxu3 %v977_v47 }
  0x23   :  { %380 = vmatmul.bf16.vlgmr.msra.gmra.mxu0 %v1034_v48  ;;  %460 = vmatmul.bf16.vlgmr.msra.gmra.mxu2 %v1050_v49 }
  0x24   :  { %549 = vmatmul.bf16.vlgmr.msra.gmra.mxu1 %v1034_v48  ;;  %629 = vmatmul.bf16.vlgmr.msra.gmra.mxu3 %v1050_v49 }
  0x33   :  { %385 = vmatmul.bf16.gmra.mxu0 %v1035_v50  ;;  %465 = vmatmul.bf16.gmra.mxu2 %v1051_v51 }
  0x34   :  { %554 = vmatmul.bf16.gmra.mxu1 %v1035_v50  ;;  %634 = vmatmul.bf16.gmra.mxu3 %v1051_v51 }
  0x43   :  { %390 = vmatmul.bf16.gmra.mxu0 %v1036_v52  ;;  %470 = vmatmul.bf16.gmra.mxu2 %v1052_v53 }
  0x44   :  { %559 = vmatmul.bf16.gmra.mxu1 %v1036_v52  ;;  %639 = vmatmul.bf16.gmra.mxu3 %v1052_v53 }
  0x53   :  { %395 = vmatmul.bf16.gmra.mxu0 %v1037_v54  ;;  %475 = vmatmul.bf16.gmra.mxu2 %v1053_v55 }
  0x54   :  { %564 = vmatmul.bf16.gmra.mxu1 %v1037_v54  ;;  %644 = vmatmul.bf16.gmra.mxu3 %v1053_v55 }
  0x63   :  { %400 = vmatmul.bf16.gmra.mxu0 %v1038_v56  ;;  %480 = vmatmul.bf16.gmra.mxu2 %v1054_v57 }
  0x64   :  { %569 = vmatmul.bf16.gmra.mxu1 %v1038_v56  ;;  %649 = vmatmul.bf16.gmra.mxu3 %v1054_v57 }
  0x73   :  { %405 = vmatmul.bf16.gmra.mxu0 %v1039_v58  ;;  %485 = vmatmul.bf16.gmra.mxu2 %v1055_v59 }
  0x74   :  { %574 = vmatmul.bf16.gmra.mxu1 %v1039_v58  ;;  %654 = vmatmul.bf16.gmra.mxu3 %v1055_v59 }
  0x83   :  { %410 = vmatmul.bf16.gmra.mxu0 %v1040_v60  ;;  %490 = vmatmul.bf16.gmra.mxu2 %v1056_v61 }
  0x84   :  { %579 = vmatmul.bf16.gmra.mxu1 %v1040_v60  ;;  %659 = vmatmul.bf16.gmra.mxu3 %v1056_v61 }
  0x93   :  { %415 = vmatmul.bf16.gmra.mxu0 %v1041_v62  ;;  %495 = vmatmul.bf16.gmra.mxu2 %v1057_v63 }
  0x94   :  { %584 = vmatmul.bf16.gmra.mxu1 %v1041_v62  ;;  %664 = vmatmul.bf16.gmra.mxu3 %v1057_v63 }
  0xa0   :  { %v381_v5 = vpop.f32.mrf.mxu0 }
  0xa1   :  { %v382_v6 = vadd.f32 %v381_v5, %v1265_v1  ;;  %v550_v7 = vpop.f32.mrf.mxu1  ;;  %v1045_v5 = vld [vmem:[%s1638_s0 + $0x58] sm:$0xff] }
  0xa2   :  { %v551_v8 = vadd.f32 %v550_v7, %v1267_v2 }
  0xa3   :  { %420 = vmatmul.bf16.gmra.mxu0 %v1042_v3  ;;  %500 = vmatmul.bf16.gmra.mxu2 %v1058_v4 }
  0xa4   :  { %v710_v9 = vpack.c.bf16 %v551_v8, %v382_v6  ;;  %589 = vmatmul.bf16.gmra.mxu1 %v1042_v3  ;;  %669 = vmatmul.bf16.gmra.mxu3 %v1058_v4  ;;  %v1061_v6 = vld [vmem:[%s1638_s0 + $0xd8] sm:$0xff] }
  0xa6   :  { %774 = vst [vmem:[%s1640_s3] sm:$0xff] %v710_v9  ;;  %v461_v10 = vpop.f32.mrf.mxu2 }
  0xa7   :  { %v462_v11 = vadd.f32 %v461_v10, %v1265_v1  ;;  %v630_v12 = vpop.f32.mrf.mxu3 }
  0xa8   :  { %v631_v13 = vadd.f32 %v630_v12, %v1267_v2  ;;  %v383_v14 = vpop.f32.mrf.mxu0 }
  0xa9   :  { %v384_v15 = vadd.f32 %v383_v14, %v1265_v1  ;;  %v552_v16 = vpop.f32.mrf.mxu1 }
  0xaa   :  { %v742_v17 = vpack.c.bf16 %v631_v13, %v462_v11  ;;  %v553_v18 = vadd.f32 %v552_v16, %v1267_v2 }
  0xac   :  { %806 = vst [vmem:[%s1640_s3 + $0x100] sm:$0xff] %v742_v17  ;;  %v711_v19 = vpack.c.bf16 %v553_v18, %v384_v15 }
  0xae   :  { %775 = vst [vmem:[%s1640_s3 + $0x8] sm:$0xff] %v711_v19  ;;  %v463_v20 = vpop.f32.mrf.mxu2 }
  0xaf   :  { %v464_v21 = vadd.f32 %v463_v20, %v1265_v1  ;;  %v632_v22 = vpop.f32.mrf.mxu3 }
  0xb0   :  { %v633_v25 = vadd.f32 %v632_v22, %v1267_v2  ;;  %v386_v26 = vpop.f32.mrf.mxu0 }
  0xb1   :  { %v387_v27 = vadd.f32 %v386_v26, %v1265_v1  ;;  %v555_v28 = vpop.f32.mrf.mxu1 }
  0xb2   :  { %v743_v29 = vpack.c.bf16 %v633_v25, %v464_v21  ;;  %v556_v30 = vadd.f32 %v555_v28, %v1267_v2  ;;  %v1062_v28 = vld [vmem:[%s1638_s0 + $0xe0] sm:$0xff] }
  0xb3   :  { %425 = vmatmul.bf16.gmra.mxu0 %v1043_v23  ;;  %505 = vmatmul.bf16.gmra.mxu2 %v1059_v24 }
  0xb4   :  { %807 = vst [vmem:[%s1640_s3 + $0x108] sm:$0xff] %v743_v29  ;;  %v712_v31 = vpack.c.bf16 %v556_v30, %v387_v27  ;;  %594 = vmatmul.bf16.gmra.mxu1 %v1043_v23  ;;  %674 = vmatmul.bf16.gmra.mxu3 %v1059_v24  ;;  %v1046_v27 = vld [vmem:[%s1638_s0 + $0x60] sm:$0xff] }
  0xb6   :  { %776 = vst [vmem:[%s1640_s3 + $0x10] sm:$0xff] %v712_v31  ;;  %v466_v32 = vpop.f32.mrf.mxu2 }
  0xb7   :  { %v467_v33 = vadd.f32 %v466_v32, %v1265_v1  ;;  %v635_v34 = vpop.f32.mrf.mxu3 }
  0xb8   :  { %v636_v35 = vadd.f32 %v635_v34, %v1267_v2  ;;  %v388_v36 = vpop.f32.mrf.mxu0 }
  0xb9   :  { %v389_v37 = vadd.f32 %v388_v36, %v1265_v1  ;;  %v557_v38 = vpop.f32.mrf.mxu1 }
  0xba   :  { %v744_v39 = vpack.c.bf16 %v636_v35, %v467_v33  ;;  %v558_v40 = vadd.f32 %v557_v38, %v1267_v2 }
  0xbc   :  { %808 = vst [vmem:[%s1640_s3 + $0x110] sm:$0xff] %v744_v39  ;;  %v713_v41 = vpack.c.bf16 %v558_v40, %v389_v37 }
  0xbe   :  { %777 = vst [vmem:[%s1640_s3 + $0x18] sm:$0xff] %v713_v41  ;;  %v468_v42 = vpop.f32.mrf.mxu2 }
  0xbf   :  { %v469_v43 = vadd.f32 %v468_v42, %v1265_v1  ;;  %v637_v44 = vpop.f32.mrf.mxu3 }
  0xc0   :  { %v638_v47 = vadd.f32 %v637_v44, %v1267_v2  ;;  %v391_v48 = vpop.f32.mrf.mxu0 }
  0xc1   :  { %v392_v49 = vadd.f32 %v391_v48, %v1265_v1  ;;  %v560_v50 = vpop.f32.mrf.mxu1 }
  0xc2   :  { %v745_v51 = vpack.c.bf16 %v638_v47, %v469_v43  ;;  %v561_v52 = vadd.f32 %v560_v50, %v1267_v2  ;;  %v1063_v50 = vld [vmem:[%s1638_s0 + $0xe8] sm:$0xff] }
  0xc3   :  { %430 = vmatmul.bf16.gmra.mxu0 %v1044_v45  ;;  %510 = vmatmul.bf16.gmra.mxu2 %v1060_v46 }
  0xc4   :  { %809 = vst [vmem:[%s1640_s3 + $0x118] sm:$0xff] %v745_v51  ;;  %v714_v53 = vpack.c.bf16 %v561_v52, %v392_v49  ;;  %599 = vmatmul.bf16.gmra.mxu1 %v1044_v45  ;;  %679 = vmatmul.bf16.gmra.mxu3 %v1060_v46  ;;  %v1047_v49 = vld [vmem:[%s1638_s0 + $0x68] sm:$0xff] }
  0xc6   :  { %778 = vst [vmem:[%s1640_s3 + $0x20] sm:$0xff] %v714_v53  ;;  %v471_v54 = vpop.f32.mrf.mxu2 }
  0xc7   :  { %v472_v55 = vadd.f32 %v471_v54, %v1265_v1  ;;  %v640_v56 = vpop.f32.mrf.mxu3 }
  0xc8   :  { %v641_v57 = vadd.f32 %v640_v56, %v1267_v2  ;;  %v393_v58 = vpop.f32.mrf.mxu0 }
  0xc9   :  { %v394_v59 = vadd.f32 %v393_v58, %v1265_v1  ;;  %v562_v60 = vpop.f32.mrf.mxu1 }
  0xca   :  { %v746_v61 = vpack.c.bf16 %v641_v57, %v472_v55  ;;  %v563_v62 = vadd.f32 %v562_v60, %v1267_v2 }
  0xcc   :  { %810 = vst [vmem:[%s1640_s3 + $0x120] sm:$0xff] %v746_v61  ;;  %v715_v63 = vpack.c.bf16 %v563_v62, %v394_v59 }
  0xce   :  { %779 = vst [vmem:[%s1640_s3 + $0x28] sm:$0xff] %v715_v63  ;;  %v473_v0 = vpop.f32.mrf.mxu2 }
  0xcf   :  { %v474_v3 = vadd.f32 %v473_v0, %v1265_v1  ;;  %v642_v4 = vpop.f32.mrf.mxu3 }
  0xd0   :  { %v643_v7 = vadd.f32 %v642_v4, %v1267_v2  ;;  %v396_v8 = vpop.f32.mrf.mxu0 }
  0xd1   :  { %v397_v9 = vadd.f32 %v396_v8, %v1265_v1  ;;  %v565_v10 = vpop.f32.mrf.mxu1 }
  0xd2   :  { %v747_v11 = vpack.c.bf16 %v643_v7, %v474_v3  ;;  %v566_v12 = vadd.f32 %v565_v10, %v1267_v2  ;;  %v1064_v10 = vld [vmem:[%s1638_s0 + $0xf0] sm:$0xff] }
  0xd3   :  { %435 = vmatmul.bf16.gmra.mxu0 %v1045_v5  ;;  %515 = vmatmul.bf16.gmra.mxu2 %v1061_v6 }
  0xd4   :  { %811 = vst [vmem:[%s1640_s3 + $0x128] sm:$0xff] %v747_v11  ;;  %v716_v13 = vpack.c.bf16 %v566_v12, %v397_v9  ;;  %604 = vmatmul.bf16.gmra.mxu1 %v1045_v5  ;;  %684 = vmatmul.bf16.gmra.mxu3 %v1061_v6  ;;  %v1048_v9 = vld [vmem:[%s1638_s0 + $0x70] sm:$0xff] }
  0xd6   :  { %780 = vst [vmem:[%s1640_s3 + $0x30] sm:$0xff] %v716_v13  ;;  %v476_v14 = vpop.f32.mrf.mxu2 }
  0xd7   :  { %v477_v15 = vadd.f32 %v476_v14, %v1265_v1  ;;  %v645_v16 = vpop.f32.mrf.mxu3 }
  0xd8   :  { %v646_v17 = vadd.f32 %v645_v16, %v1267_v2  ;;  %v398_v18 = vpop.f32.mrf.mxu0 }
  0xd9   :  { %v399_v19 = vadd.f32 %v398_v18, %v1265_v1  ;;  %v567_v20 = vpop.f32.mrf.mxu1 }
  0xda   :  { %v748_v21 = vpack.c.bf16 %v646_v17, %v477_v15  ;;  %v568_v22 = vadd.f32 %v567_v20, %v1267_v2 }
  0xdc   :  { %812 = vst [vmem:[%s1640_s3 + $0x130] sm:$0xff] %v748_v21  ;;  %v717_v23 = vpack.c.bf16 %v568_v22, %v399_v19 }
  0xde   :  { %781 = vst [vmem:[%s1640_s3 + $0x38] sm:$0xff] %v717_v23  ;;  %v478_v24 = vpop.f32.mrf.mxu2 }
  0xdf   :  { %v479_v25 = vadd.f32 %v478_v24, %v1265_v1  ;;  %v647_v26 = vpop.f32.mrf.mxu3 }
  0xe0   :  { %v648_v29 = vadd.f32 %v647_v26, %v1267_v2  ;;  %v401_v30 = vpop.f32.mrf.mxu0 }
  0xe1   :  { %v402_v31 = vadd.f32 %v401_v30, %v1265_v1  ;;  %v570_v32 = vpop.f32.mrf.mxu1 }
  0xe2   :  { %v749_v33 = vpack.c.bf16 %v648_v29, %v479_v25  ;;  %v571_v34 = vadd.f32 %v570_v32, %v1267_v2  ;;  %v1065_v32 = vld [vmem:[%s1638_s0 + $0xf8] sm:$0xff] }
  0xe3   :  { %440 = vmatmul.bf16.gmra.mxu0 %v1046_v27  ;;  %520 = vmatmul.bf16.gmra.mxu2 %v1062_v28 }
  0xe4   :  { %813 = vst [vmem:[%s1640_s3 + $0x138] sm:$0xff] %v749_v33  ;;  %v718_v35 = vpack.c.bf16 %v571_v34, %v402_v31  ;;  %609 = vmatmul.bf16.gmra.mxu1 %v1046_v27  ;;  %689 = vmatmul.bf16.gmra.mxu3 %v1062_v28  ;;  %v1049_v31 = vld [vmem:[%s1638_s0 + $0x78] sm:$0xff] }
  0xe6   :  { %782 = vst [vmem:[%s1640_s3 + $0x40] sm:$0xff] %v718_v35  ;;  %v481_v36 = vpop.f32.mrf.mxu2 }
  0xe7   :  { %v482_v37 = vadd.f32 %v481_v36, %v1265_v1  ;;  %v650_v38 = vpop.f32.mrf.mxu3 }
  0xe8   :  { %v651_v39 = vadd.f32 %v650_v38, %v1267_v2  ;;  %v403_v40 = vpop.f32.mrf.mxu0 }
  0xe9   :  { %v404_v41 = vadd.f32 %v403_v40, %v1265_v1  ;;  %v572_v42 = vpop.f32.mrf.mxu1 }
  0xea   :  { %v750_v43 = vpack.c.bf16 %v651_v39, %v482_v37  ;;  %v573_v44 = vadd.f32 %v572_v42, %v1267_v2 }
  0xec   :  { %814 = vst [vmem:[%s1640_s3 + $0x140] sm:$0xff] %v750_v43  ;;  %v719_v45 = vpack.c.bf16 %v573_v44, %v404_v41 }
  0xee   :  { %783 = vst [vmem:[%s1640_s3 + $0x48] sm:$0xff] %v719_v45  ;;  %v483_v46 = vpop.f32.mrf.mxu2 }
  0xef   :  { %v484_v47 = vadd.f32 %v483_v46, %v1265_v1  ;;  %v652_v48 = vpop.f32.mrf.mxu3 }
  0xf0   :  { %v653_v51 = vadd.f32 %v652_v48, %v1267_v2  ;;  %v406_v52 = vpop.f32.mrf.mxu0 }
  0xf1   :  { %v407_v53 = vadd.f32 %v406_v52, %v1265_v1  ;;  %v575_v54 = vpop.f32.mrf.mxu1 }
  0xf2   :  { %v751_v55 = vpack.c.bf16 %v653_v51, %v484_v47  ;;  %v576_v56 = vadd.f32 %v575_v54, %v1267_v2 }
  0xf3   :  { %445 = vmatmul.bf16.gmra.mxu0 %v1047_v49  ;;  %525 = vmatmul.bf16.gmra.mxu2 %v1063_v50 }
  0xf4   :  { %815 = vst [vmem:[%s1640_s3 + $0x148] sm:$0xff] %v751_v55  ;;  %v720_v57 = vpack.c.bf16 %v576_v56, %v407_v53  ;;  %614 = vmatmul.bf16.gmra.mxu1 %v1047_v49  ;;  %694 = vmatmul.bf16.gmra.mxu3 %v1063_v50 }
  0xf6   :  { %784 = vst [vmem:[%s1640_s3 + $0x50] sm:$0xff] %v720_v57  ;;  %v486_v58 = vpop.f32.mrf.mxu2 }
  0xf7   :  { %v487_v59 = vadd.f32 %v486_v58, %v1265_v1  ;;  %v655_v60 = vpop.f32.mrf.mxu3 }
  0xf8   :  { %v656_v61 = vadd.f32 %v655_v60, %v1267_v2  ;;  %v408_v62 = vpop.f32.mrf.mxu0 }
  0xf9   :  { %v409_v63 = vadd.f32 %v408_v62, %v1265_v1  ;;  %v577_v0 = vpop.f32.mrf.mxu1 }
  0xfa   :  { %v752_v3 = vpack.c.bf16 %v656_v61, %v487_v59  ;;  %v578_v4 = vadd.f32 %v577_v0, %v1267_v2 }
  0xfc   :  { %816 = vst [vmem:[%s1640_s3 + $0x150] sm:$0xff] %v752_v3  ;;  %v721_v5 = vpack.c.bf16 %v578_v4, %v409_v63 }
  0xfe   :  { %785 = vst [vmem:[%s1640_s3 + $0x58] sm:$0xff] %v721_v5  ;;  %v488_v6 = vpop.f32.mrf.mxu2 }
  0xff   :  { %v489_v7 = vadd.f32 %v488_v6, %v1265_v1  ;;  %v657_v8 = vpop.f32.mrf.mxu3 }
 0x100   :  { %v658_v11 = vadd.f32 %v657_v8, %v1267_v2  ;;  %v411_v12 = vpop.f32.mrf.mxu0 }
 0x101   :  { %v412_v13 = vadd.f32 %v411_v12, %v1265_v1  ;;  %v580_v14 = vpop.f32.mrf.mxu1 }
 0x102   :  { %v753_v15 = vpack.c.bf16 %v658_v11, %v489_v7  ;;  %v581_v16 = vadd.f32 %v580_v14, %v1267_v2 }
 0x103   :  { %450 = vmatmul.bf16.gmra.mxu0 %v1048_v9  ;;  %530 = vmatmul.bf16.gmra.mxu2 %v1064_v10 }
 0x104   :  { %817 = vst [vmem:[%s1640_s3 + $0x158] sm:$0xff] %v753_v15  ;;  %v722_v17 = vpack.c.bf16 %v581_v16, %v412_v13  ;;  %619 = vmatmul.bf16.gmra.mxu1 %v1048_v9  ;;  %699 = vmatmul.bf16.gmra.mxu3 %v1064_v10 }
 0x106   :  { %786 = vst [vmem:[%s1640_s3 + $0x60] sm:$0xff] %v722_v17  ;;  %v491_v18 = vpop.f32.mrf.mxu2 }
 0x107   :  { %v492_v19 = vadd.f32 %v491_v18, %v1265_v1  ;;  %v660_v20 = vpop.f32.mrf.mxu3 }
 0x108   :  { %v661_v21 = vadd.f32 %v660_v20, %v1267_v2  ;;  %v413_v22 = vpop.f32.mrf.mxu0 }
 0x109   :  { %v414_v23 = vadd.f32 %v413_v22, %v1265_v1  ;;  %v582_v24 = vpop.f32.mrf.mxu1 }
 0x10a   :  { %v754_v25 = vpack.c.bf16 %v661_v21, %v492_v19  ;;  %v583_v26 = vadd.f32 %v582_v24, %v1267_v2 }
 0x10c   :  { %818 = vst [vmem:[%s1640_s3 + $0x160] sm:$0xff] %v754_v25  ;;  %v723_v27 = vpack.c.bf16 %v583_v26, %v414_v23 }
 0x10e   :  { %787 = vst [vmem:[%s1640_s3 + $0x68] sm:$0xff] %v723_v27  ;;  %v493_v28 = vpop.f32.mrf.mxu2 }
 0x10f   :  { %v494_v29 = vadd.f32 %v493_v28, %v1265_v1  ;;  %v662_v30 = vpop.f32.mrf.mxu3 }
 0x110   :  { %v663_v33 = vadd.f32 %v662_v30, %v1267_v2  ;;  %v416_v34 = vpop.f32.mrf.mxu0 }
 0x111   :  { %v417_v35 = vadd.f32 %v416_v34, %v1265_v1  ;;  %v585_v36 = vpop.f32.mrf.mxu1 }
 0x112   :  { %v755_v37 = vpack.c.bf16 %v663_v33, %v494_v29  ;;  %v586_v38 = vadd.f32 %v585_v36, %v1267_v2 }
 0x113   :  { %455 = vmatmul.bf16.gmra.mxu0 %v1049_v31  ;;  %535 = vmatmul.bf16.gmra.mxu2 %v1065_v32 }
 0x114   :  { %819 = vst [vmem:[%s1640_s3 + $0x168] sm:$0xff] %v755_v37  ;;  %v724_v39 = vpack.c.bf16 %v586_v38, %v417_v35  ;;  %624 = vmatmul.bf16.gmra.mxu1 %v1049_v31  ;;  %704 = vmatmul.bf16.gmra.mxu3 %v1065_v32 }
 0x116   :  { %788 = vst [vmem:[%s1640_s3 + $0x70] sm:$0xff] %v724_v39  ;;  %v496_v40 = vpop.f32.mrf.mxu2 }
 0x117   :  { %v497_v41 = vadd.f32 %v496_v40, %v1265_v1  ;;  %v665_v42 = vpop.f32.mrf.mxu3 }
 0x118   :  { %v666_v43 = vadd.f32 %v665_v42, %v1267_v2  ;;  %v418_v44 = vpop.f32.mrf.mxu0 }
 0x119   :  { %v419_v45 = vadd.f32 %v418_v44, %v1265_v1  ;;  %v587_v46 = vpop.f32.mrf.mxu1 }
 0x11a   :  { %v756_v47 = vpack.c.bf16 %v666_v43, %v497_v41  ;;  %v588_v48 = vadd.f32 %v587_v46, %v1267_v2 }
 0x11c   :  { %820 = vst [vmem:[%s1640_s3 + $0x170] sm:$0xff] %v756_v47  ;;  %v725_v49 = vpack.c.bf16 %v588_v48, %v419_v45 }
 0x11e   :  { %789 = vst [vmem:[%s1640_s3 + $0x78] sm:$0xff] %v725_v49  ;;  %v498_v50 = vpop.f32.mrf.mxu2 }
 0x11f   :  { %v499_v51 = vadd.f32 %v498_v50, %v1265_v1  ;;  %v667_v52 = vpop.f32.mrf.mxu3 }
 0x120   :  { %v668_v53 = vadd.f32 %v667_v52, %v1267_v2  ;;  %v421_v54 = vpop.f32.mrf.mxu0 }
 0x121   :  { %v422_v55 = vadd.f32 %v421_v54, %v1265_v1  ;;  %v590_v56 = vpop.f32.mrf.mxu1 }
 0x122   :  { %v757_v57 = vpack.c.bf16 %v668_v53, %v499_v51  ;;  %v591_v58 = vadd.f32 %v590_v56, %v1267_v2 }
 0x124   :  { %821 = vst [vmem:[%s1640_s3 + $0x178] sm:$0xff] %v757_v57  ;;  %v726_v59 = vpack.c.bf16 %v591_v58, %v422_v55 }
 0x126   :  { %790 = vst [vmem:[%s1640_s3 + $0x80] sm:$0xff] %v726_v59  ;;  %v501_v60 = vpop.f32.mrf.mxu2 }
 0x127   :  { %v502_v61 = vadd.f32 %v501_v60, %v1265_v1  ;;  %v670_v62 = vpop.f32.mrf.mxu3 }
 0x128   :  { %v671_v63 = vadd.f32 %v670_v62, %v1267_v2  ;;  %v423_v0 = vpop.f32.mrf.mxu0 }
 0x129   :  { %v424_v3 = vadd.f32 %v423_v0, %v1265_v1  ;;  %v592_v4 = vpop.f32.mrf.mxu1 }
 0x12a   :  { %v758_v5 = vpack.c.bf16 %v671_v63, %v502_v61  ;;  %v593_v6 = vadd.f32 %v592_v4, %v1267_v2 }
 0x12c   :  { %822 = vst [vmem:[%s1640_s3 + $0x180] sm:$0xff] %v758_v5  ;;  %v727_v7 = vpack.c.bf16 %v593_v6, %v424_v3 }
 0x12e   :  { %791 = vst [vmem:[%s1640_s3 + $0x88] sm:$0xff] %v727_v7  ;;  %v503_v8 = vpop.f32.mrf.mxu2 }
 0x12f   :  { %v504_v9 = vadd.f32 %v503_v8, %v1265_v1  ;;  %v672_v10 = vpop.f32.mrf.mxu3 }
 0x130   :  { %v673_v11 = vadd.f32 %v672_v10, %v1267_v2  ;;  %v426_v12 = vpop.f32.mrf.mxu0 }
 0x131   :  { %v427_v13 = vadd.f32 %v426_v12, %v1265_v1  ;;  %v595_v14 = vpop.f32.mrf.mxu1 }
 0x132   :  { %v759_v15 = vpack.c.bf16 %v673_v11, %v504_v9  ;;  %v596_v16 = vadd.f32 %v595_v14, %v1267_v2 }
 0x134   :  { %823 = vst [vmem:[%s1640_s3 + $0x188] sm:$0xff] %v759_v15  ;;  %v728_v17 = vpack.c.bf16 %v596_v16, %v427_v13 }
 0x136   :  { %792 = vst [vmem:[%s1640_s3 + $0x90] sm:$0xff] %v728_v17  ;;  %v506_v18 = vpop.f32.mrf.mxu2 }
 0x137   :  { %v507_v19 = vadd.f32 %v506_v18, %v1265_v1  ;;  %v675_v20 = vpop.f32.mrf.mxu3 }
 0x138   :  { %v676_v21 = vadd.f32 %v675_v20, %v1267_v2  ;;  %v428_v22 = vpop.f32.mrf.mxu0 }
 0x139   :  { %v429_v23 = vadd.f32 %v428_v22, %v1265_v1  ;;  %v597_v24 = vpop.f32.mrf.mxu1 }
 0x13a   :  { %v760_v25 = vpack.c.bf16 %v676_v21, %v507_v19  ;;  %v598_v26 = vadd.f32 %v597_v24, %v1267_v2 }
 0x13c   :  { %824 = vst [vmem:[%s1640_s3 + $0x190] sm:$0xff] %v760_v25  ;;  %v729_v27 = vpack.c.bf16 %v598_v26, %v429_v23 }
 0x13e   :  { %793 = vst [vmem:[%s1640_s3 + $0x98] sm:$0xff] %v729_v27  ;;  %v508_v28 = vpop.f32.mrf.mxu2 }
 0x13f   :  { %v509_v29 = vadd.f32 %v508_v28, %v1265_v1  ;;  %v677_v30 = vpop.f32.mrf.mxu3 }
 0x140   :  { %v678_v31 = vadd.f32 %v677_v30, %v1267_v2  ;;  %v431_v32 = vpop.f32.mrf.mxu0 }
 0x141   :  { %v432_v33 = vadd.f32 %v431_v32, %v1265_v1  ;;  %v600_v34 = vpop.f32.mrf.mxu1 }
 0x142   :  { %v761_v35 = vpack.c.bf16 %v678_v31, %v509_v29  ;;  %v601_v36 = vadd.f32 %v600_v34, %v1267_v2 }
 0x144   :  { %825 = vst [vmem:[%s1640_s3 + $0x198] sm:$0xff] %v761_v35  ;;  %v730_v37 = vpack.c.bf16 %v601_v36, %v432_v33 }
 0x146   :  { %794 = vst [vmem:[%s1640_s3 + $0xa0] sm:$0xff] %v730_v37  ;;  %v511_v38 = vpop.f32.mrf.mxu2 }
 0x147   :  { %v512_v39 = vadd.f32 %v511_v38, %v1265_v1  ;;  %v680_v40 = vpop.f32.mrf.mxu3 }
 0x148   :  { %v681_v41 = vadd.f32 %v680_v40, %v1267_v2  ;;  %v433_v42 = vpop.f32.mrf.mxu0 }
 0x149   :  { %v434_v43 = vadd.f32 %v433_v42, %v1265_v1  ;;  %v602_v44 = vpop.f32.mrf.mxu1 }
 0x14a   :  { %v762_v45 = vpack.c.bf16 %v681_v41, %v512_v39  ;;  %v603_v46 = vadd.f32 %v602_v44, %v1267_v2 }
 0x14c   :  { %826 = vst [vmem:[%s1640_s3 + $0x1a0] sm:$0xff] %v762_v45  ;;  %v731_v47 = vpack.c.bf16 %v603_v46, %v434_v43 }
 0x14e   :  { %795 = vst [vmem:[%s1640_s3 + $0xa8] sm:$0xff] %v731_v47  ;;  %v513_v48 = vpop.f32.mrf.mxu2 }
 0x14f   :  { %v514_v49 = vadd.f32 %v513_v48, %v1265_v1  ;;  %v682_v50 = vpop.f32.mrf.mxu3 }
 0x150   :  { %v683_v51 = vadd.f32 %v682_v50, %v1267_v2  ;;  %v436_v52 = vpop.f32.mrf.mxu0 }
 0x151   :  { %v437_v53 = vadd.f32 %v436_v52, %v1265_v1  ;;  %v605_v54 = vpop.f32.mrf.mxu1 }
 0x152   :  { %v763_v55 = vpack.c.bf16 %v683_v51, %v514_v49  ;;  %v606_v56 = vadd.f32 %v605_v54, %v1267_v2 }
 0x154   :  { %827 = vst [vmem:[%s1640_s3 + $0x1a8] sm:$0xff] %v763_v55  ;;  %v732_v57 = vpack.c.bf16 %v606_v56, %v437_v53 }
 0x156   :  { %796 = vst [vmem:[%s1640_s3 + $0xb0] sm:$0xff] %v732_v57  ;;  %v516_v58 = vpop.f32.mrf.mxu2 }
 0x157   :  { %v517_v59 = vadd.f32 %v516_v58, %v1265_v1  ;;  %v685_v60 = vpop.f32.mrf.mxu3 }
 0x158   :  { %v686_v61 = vadd.f32 %v685_v60, %v1267_v2  ;;  %v438_v62 = vpop.f32.mrf.mxu0 }
 0x159   :  { %v439_v63 = vadd.f32 %v438_v62, %v1265_v1  ;;  %v607_v0 = vpop.f32.mrf.mxu1 }
 0x15a   :  { %v764_v3 = vpack.c.bf16 %v686_v61, %v517_v59  ;;  %v608_v4 = vadd.f32 %v607_v0, %v1267_v2 }
 0x15c   :  { %828 = vst [vmem:[%s1640_s3 + $0x1b0] sm:$0xff] %v764_v3  ;;  %v733_v5 = vpack.c.bf16 %v608_v4, %v439_v63 }
 0x15e   :  { %797 = vst [vmem:[%s1640_s3 + $0xb8] sm:$0xff] %v733_v5  ;;  %v518_v6 = vpop.f32.mrf.mxu2 }
 0x15f   :  { %v519_v7 = vadd.f32 %v518_v6, %v1265_v1  ;;  %v687_v8 = vpop.f32.mrf.mxu3 }
 0x160   :  { %v688_v9 = vadd.f32 %v687_v8, %v1267_v2  ;;  %v441_v10 = vpop.f32.mrf.mxu0 }
 0x161   :  { %v442_v11 = vadd.f32 %v441_v10, %v1265_v1  ;;  %v610_v12 = vpop.f32.mrf.mxu1 }
 0x162   :  { %v765_v13 = vpack.c.bf16 %v688_v9, %v519_v7  ;;  %v611_v14 = vadd.f32 %v610_v12, %v1267_v2 }
 0x164   :  { %829 = vst [vmem:[%s1640_s3 + $0x1b8] sm:$0xff] %v765_v13  ;;  %v734_v15 = vpack.c.bf16 %v611_v14, %v442_v11 }
 0x166   :  { %798 = vst [vmem:[%s1640_s3 + $0xc0] sm:$0xff] %v734_v15  ;;  %v521_v16 = vpop.f32.mrf.mxu2 }
 0x167   :  { %v522_v17 = vadd.f32 %v521_v16, %v1265_v1  ;;  %v690_v18 = vpop.f32.mrf.mxu3 }
 0x168   :  { %v691_v19 = vadd.f32 %v690_v18, %v1267_v2  ;;  %v443_v20 = vpop.f32.mrf.mxu0 }
 0x169   :  { %v444_v21 = vadd.f32 %v443_v20, %v1265_v1  ;;  %v612_v22 = vpop.f32.mrf.mxu1 }
 0x16a   :  { %v766_v23 = vpack.c.bf16 %v691_v19, %v522_v17  ;;  %v613_v24 = vadd.f32 %v612_v22, %v1267_v2 }
 0x16c   :  { %830 = vst [vmem:[%s1640_s3 + $0x1c0] sm:$0xff] %v766_v23  ;;  %v735_v25 = vpack.c.bf16 %v613_v24, %v444_v21 }
 0x16e   :  { %799 = vst [vmem:[%s1640_s3 + $0xc8] sm:$0xff] %v735_v25  ;;  %v523_v26 = vpop.f32.mrf.mxu2 }
 0x16f   :  { %v524_v27 = vadd.f32 %v523_v26, %v1265_v1  ;;  %v692_v28 = vpop.f32.mrf.mxu3 }
 0x170   :  { %v693_v29 = vadd.f32 %v692_v28, %v1267_v2  ;;  %v446_v30 = vpop.f32.mrf.mxu0 }
 0x171   :  { %v447_v31 = vadd.f32 %v446_v30, %v1265_v1  ;;  %v615_v32 = vpop.f32.mrf.mxu1 }
 0x172   :  { %v767_v33 = vpack.c.bf16 %v693_v29, %v524_v27  ;;  %v616_v34 = vadd.f32 %v615_v32, %v1267_v2 }
 0x174   :  { %831 = vst [vmem:[%s1640_s3 + $0x1c8] sm:$0xff] %v767_v33  ;;  %v736_v35 = vpack.c.bf16 %v616_v34, %v447_v31 }
 0x176   :  { %800 = vst [vmem:[%s1640_s3 + $0xd0] sm:$0xff] %v736_v35  ;;  %v526_v36 = vpop.f32.mrf.mxu2 }
 0x177   :  { %v527_v37 = vadd.f32 %v526_v36, %v1265_v1  ;;  %v695_v38 = vpop.f32.mrf.mxu3 }
 0x178   :  { %v696_v39 = vadd.f32 %v695_v38, %v1267_v2  ;;  %v448_v40 = vpop.f32.mrf.mxu0 }
 0x179   :  { %v449_v41 = vadd.f32 %v448_v40, %v1265_v1  ;;  %v617_v42 = vpop.f32.mrf.mxu1 }
 0x17a   :  { %v768_v43 = vpack.c.bf16 %v696_v39, %v527_v37  ;;  %v618_v44 = vadd.f32 %v617_v42, %v1267_v2 }
 0x17c   :  { %832 = vst [vmem:[%s1640_s3 + $0x1d0] sm:$0xff] %v768_v43  ;;  %v737_v45 = vpack.c.bf16 %v618_v44, %v449_v41 }
 0x17e   :  { %801 = vst [vmem:[%s1640_s3 + $0xd8] sm:$0xff] %v737_v45  ;;  %v528_v46 = vpop.f32.mrf.mxu2 }
 0x17f   :  { %v529_v47 = vadd.f32 %v528_v46, %v1265_v1  ;;  %v697_v48 = vpop.f32.mrf.mxu3 }
 0x180   :  { %v698_v49 = vadd.f32 %v697_v48, %v1267_v2  ;;  %v451_v50 = vpop.f32.mrf.mxu0 }
 0x181   :  { %v452_v51 = vadd.f32 %v451_v50, %v1265_v1  ;;  %v620_v52 = vpop.f32.mrf.mxu1 }
 0x182   :  { %v769_v53 = vpack.c.bf16 %v698_v49, %v529_v47  ;;  %v621_v54 = vadd.f32 %v620_v52, %v1267_v2 }
 0x184   :  { %833 = vst [vmem:[%s1640_s3 + $0x1d8] sm:$0xff] %v769_v53  ;;  %v738_v55 = vpack.c.bf16 %v621_v54, %v452_v51 }
 0x186   :  { %802 = vst [vmem:[%s1640_s3 + $0xe0] sm:$0xff] %v738_v55  ;;  %v531_v56 = vpop.f32.mrf.mxu2 }
 0x187   :  { %v532_v57 = vadd.f32 %v531_v56, %v1265_v1  ;;  %v700_v58 = vpop.f32.mrf.mxu3 }
 0x188   :  { %v701_v59 = vadd.f32 %v700_v58, %v1267_v2  ;;  %v453_v60 = vpop.f32.mrf.mxu0 }
 0x189   :  { %v454_v61 = vadd.f32 %v453_v60, %v1265_v1  ;;  %v622_v62 = vpop.f32.mrf.mxu1 }
 0x18a   :  { %v770_v63 = vpack.c.bf16 %v701_v59, %v532_v57  ;;  %v623_v0 = vadd.f32 %v622_v62, %v1267_v2 }
 0x18c   :  { %834 = vst [vmem:[%s1640_s3 + $0x1e0] sm:$0xff] %v770_v63  ;;  %v739_v3 = vpack.c.bf16 %v623_v0, %v454_v61 }
 0x18e   :  { %803 = vst [vmem:[%s1640_s3 + $0xe8] sm:$0xff] %v739_v3  ;;  %v533_v4 = vpop.f32.mrf.mxu2 }
 0x18f   :  { %v534_v5 = vadd.f32 %v533_v4, %v1265_v1  ;;  %v702_v6 = vpop.f32.mrf.mxu3 }
 0x190   :  { %v703_v7 = vadd.f32 %v702_v6, %v1267_v2  ;;  %v456_v8 = vpop.f32.mrf.mxu0 }
 0x191   :  { %v457_v9 = vadd.f32 %v456_v8, %v1265_v1  ;;  %v625_v10 = vpop.f32.mrf.mxu1 }
 0x192   :  { %v771_v11 = vpack.c.bf16 %v703_v7, %v534_v5  ;;  %v626_v12 = vadd.f32 %v625_v10, %v1267_v2 }
 0x194   :  { %835 = vst [vmem:[%s1640_s3 + $0x1e8] sm:$0xff] %v771_v11  ;;  %v740_v13 = vpack.c.bf16 %v626_v12, %v457_v9 }
 0x196   :  { %804 = vst [vmem:[%s1640_s3 + $0xf0] sm:$0xff] %v740_v13  ;;  %v536_v14 = vpop.f32.mrf.mxu2 }
 0x197   :  { %v537_v15 = vadd.f32 %v536_v14, %v1265_v1  ;;  %v705_v16 = vpop.f32.mrf.mxu3 }
 0x198   :  { %v706_v17 = vadd.f32 %v705_v16, %v1267_v2  ;;  %v458_v18 = vpop.f32.mrf.mxu0 }
 0x199   :  { %v459_v19 = vadd.f32 %v458_v18, %v1265_v1  ;;  %v627_v20 = vpop.f32.mrf.mxu1 }
 0x19a   :  { %v772_v21 = vpack.c.bf16 %v706_v17, %v537_v15  ;;  %v628_v22 = vadd.f32 %v627_v20, %v1267_v2 }
 0x19c   :  { %836 = vst [vmem:[%s1640_s3 + $0x1f0] sm:$0xff] %v772_v21  ;;  %v741_v23 = vpack.c.bf16 %v628_v22, %v459_v19 }
 0x19e   :  { %805 = vst [vmem:[%s1640_s3 + $0xf8] sm:$0xff] %v741_v23  ;;  %v538_v24 = vpop.f32.mrf.mxu2 }
 0x19f   :  { %v539_v25 = vadd.f32 %v538_v24, %v1265_v1  ;;  %v707_v26 = vpop.f32.mrf.mxu3 }
 0x1a0   :  { %v708_v27 = vadd.f32 %v707_v26, %v1267_v2 }
 0x1a2   :  { %v773_v28 = vpack.c.bf16 %v708_v27, %v539_v25 }
 0x1a4   :  { %837 = vst [vmem:[%s1640_s3 + $0x1f8] sm:$0xff] %v773_v28 }

// kernel: bottleneck_forward.7
= control target key start
LH: loop header
LB: loop body
LE: loop exit
PB: predicated region body
PF: predicated region fallthrough
CT: control target
= control target key end

     0   :  { %s2143_s0 = inlined_call_operand.vmem [shape: bf16[512,128], index: 0, kind: input, shape index: {}]   ;;  %s2144_s1 = inlined_call_operand.vmem [shape: bf16[128,256], index: 1, kind: input, shape index: {}]   ;;  %s2145_s2 = inlined_call_operand.vmem [shape: f32[1,256], index: 2, kind: input, shape index: {}]   ;;  %s2146_s3 = inlined_call_operand.vmem [shape: bf16[512,256], index: 3, kind: input, shape index: {}]   ;;  %s2147_s4 = inlined_call_operand.hbm [shape: f32[512,256], index: 4, kind: output, shape index: {}]  }
   0x1   :  { %v1494_v0 = vld [vmem:[%s2144_s1 + $0x70] sm:$0xf]  ;;  %v1547_v1 = vld [vmem:[%s2144_s1 + $0x74] sm:$0xf0]  ;;  %v1546_v2 = vld [vmem:[%s2144_s1 + $0x74] sm:$0xf] }
   0x2   :  { %v1495_v3 = vor.u32 %v1547_v1, %v1494_v0  ;;  %v1496_v4 = vld [vmem:[%s2144_s1 + $0x78] sm:$0xf0]  ;;  %v1486_v5 = vld [vmem:[%s2144_s1 + $0x60] sm:$0xf]  ;;  %v1545_v6 = vld [vmem:[%s2144_s1 + $0x64] sm:$0xf0] }
   0x3   :  { %v1499_v7 = vor.u32 %v1546_v2, %v1496_v4  ;;  %v1544_v8 = vld [vmem:[%s2144_s1 + $0x64] sm:$0xf]  ;;  %v1488_v9 = vld [vmem:[%s2144_s1 + $0x68] sm:$0xf0]  ;;  %v1487_v10 = vor.u32 %v1545_v6, %v1486_v5  ;;  %v1478_v12 = vld [vmem:[%s2144_s1 + $0x50] sm:$0xf] }
   0x4   :  { %376 = vmatpush.bf16.msra.mxu0 %v1495_v3  ;;  %1548 = vmatpush.bf16.msra.mxu2 %v1495_v3  ;;  %v1491_v11 = vor.u32 %v1544_v8, %v1488_v9  ;;  %v1543_v13 = vld [vmem:[%s2144_s1 + $0x54] sm:$0xf0]  ;;  %v1542_v14 = vld [vmem:[%s2144_s1 + $0x54] sm:$0xf]  ;;  %v1480_v15 = vld [vmem:[%s2144_s1 + $0x58] sm:$0xf0] }
   0x5   :  { %545 = vmatpush.bf16.msra.mxu1 %v1499_v7  ;;  %1556 = vmatpush.bf16.msra.mxu3 %v1499_v7  ;;  %v1479_v16 = vor.u32 %v1543_v13, %v1478_v12  ;;  %v1483_v17 = vor.u32 %v1542_v14, %v1480_v15  ;;  %v1470_v18 = vld [vmem:[%s2144_s1 + $0x40] sm:$0xf]  ;;  %v1541_v19 = vld [vmem:[%s2144_s1 + $0x44] sm:$0xf0]  ;;  %v1540_v20 = vld [vmem:[%s2144_s1 + $0x44] sm:$0xf] }
   0x6   :  { %v1472_v21 = vld [vmem:[%s2144_s1 + $0x48] sm:$0xf0]  ;;  %v1471_v22 = vor.u32 %v1541_v19, %v1470_v18 }
   0x8   :  { %377 = vmatpush.bf16.msra.mxu0 %v1487_v10  ;;  %1549 = vmatpush.bf16.msra.mxu2 %v1487_v10 }
   0x9   :  { %546 = vmatpush.bf16.msra.mxu1 %v1491_v11  ;;  %1557 = vmatpush.bf16.msra.mxu3 %v1491_v11 }
   0xc   :  { %378 = vmatpush.bf16.msra.mxu0 %v1479_v16  ;;  %1550 = vmatpush.bf16.msra.mxu2 %v1479_v16 }
   0xd   :  { %9 = vsyncpa [#allocation3], 0  ;;  %547 = vmatpush.bf16.msra.mxu1 %v1483_v17  ;;  %1558 = vmatpush.bf16.msra.mxu3 %v1483_v17  ;;  %v1475_v23 = vor.u32 %v1540_v20, %v1472_v21  ;;  %v1462_v24 = vld [vmem:[%s2144_s1 + $0x30] sm:$0xf]  ;;  %v1539_v25 = vld [vmem:[%s2144_s1 + $0x34] sm:$0xf0] }
   0xe   :  { %v1538_v26 = vld [vmem:[%s2144_s1 + $0x34] sm:$0xf]  ;;  %v1464_v27 = vld [vmem:[%s2144_s1 + $0x38] sm:$0xf0]  ;;  %v1463_v28 = vor.u32 %v1539_v25, %v1462_v24  ;;  %v1454_v30 = vld [vmem:[%s2144_s1 + $0x20] sm:$0xf] }
   0xf   :  { %v1467_v29 = vor.u32 %v1538_v26, %v1464_v27  ;;  %v1537_v31 = vld [vmem:[%s2144_s1 + $0x24] sm:$0xf0]  ;;  %v1536_v32 = vld [vmem:[%s2144_s1 + $0x24] sm:$0xf]  ;;  %v1456_v33 = vld [vmem:[%s2144_s1 + $0x28] sm:$0xf0] }
  0x10   :  { %379 = vmatpush.bf16.msra.mxu0 %v1471_v22  ;;  %1551 = vmatpush.bf16.msra.mxu2 %v1471_v22  ;;  %v1455_v34 = vor.u32 %v1537_v31, %v1454_v30  ;;  %v1459_v35 = vor.u32 %v1536_v32, %v1456_v33  ;;  %v1446_v36 = vld [vmem:[%s2144_s1 + $0x10] sm:$0xf]  ;;  %v1535_v37 = vld [vmem:[%s2144_s1 + $0x14] sm:$0xf0]  ;;  %v1534_v38 = vld [vmem:[%s2144_s1 + $0x14] sm:$0xf] }
  0x11   :  { %548 = vmatpush.bf16.msra.mxu1 %v1475_v23  ;;  %1559 = vmatpush.bf16.msra.mxu3 %v1475_v23  ;;  %v1448_v39 = vld [vmem:[%s2144_s1 + $0x18] sm:$0xf0]  ;;  %v1447_v40 = vor.u32 %v1535_v37, %v1446_v36  ;;  %v1438_v42 = vld [vmem:[%s2144_s1] sm:$0xf]  ;;  %v1533_v43 = vld [vmem:[%s2144_s1 + $0x4] sm:$0xf0] }
  0x12   :  { %v1451_v41 = vor.u32 %v1534_v38, %v1448_v39  ;;  %v1532_v44 = vld [vmem:[%s2144_s1 + $0x4] sm:$0xf]  ;;  %v1440_v45 = vld [vmem:[%s2144_s1 + $0x8] sm:$0xf0]  ;;  %v1439_v46 = vor.u32 %v1533_v43, %v1438_v42  ;;  %v1502_v52 = vld [vmem:[%s2143_s0 + $0x10] sm:$0xff]  ;;  %s1593_s23 = smov [#allocation2]  }
  0x13   :  { %v1443_v47 = vor.u32 %v1532_v44, %v1440_v45  ;;  %v1500_v48 = vld [vmem:[%s2143_s0] sm:$0xff]  ;;  %v1501_v50 = vld [vmem:[%s2143_s0 + $0x8] sm:$0xff]  ;;  %v1518_v53 = vld [vmem:[%s2143_s0 + $0x90] sm:$0xff]  ;;  %s1296_s26 = sshll.u32 %s2147_s4, 4  ;;  %s1594_s27 = smov 256   ;;  %s1297_s26 = int_to_ptr.hbm [resolvable:$true] %s1296_s26 }
  0x14   :  { %380 = vmatpush.bf16.msra.mxu0 %v1463_v28  ;;  %1552 = vmatpush.bf16.msra.mxu2 %v1463_v28  ;;  %v1516_v49 = vld [vmem:[%s2143_s0 + $0x80] sm:$0xff]  ;;  %v1517_v51 = vld [vmem:[%s2143_s0 + $0x88] sm:$0xff]  ;;  %v1503_v54 = vld [vmem:[%s2143_s0 + $0x18] sm:$0xff]  ;;  %s1595_s28 = smov 16  }
  0x15   :  { %549 = vmatpush.bf16.msra.mxu1 %v1467_v29  ;;  %1560 = vmatpush.bf16.msra.mxu3 %v1467_v29  ;;  %v1519_v55 = vld [vmem:[%s2143_s0 + $0x98] sm:$0xff]  ;;  %v1504_v56 = vld [vmem:[%s2143_s0 + $0x20] sm:$0xff]  ;;  %v1505_v58 = vld [vmem:[%s2143_s0 + $0x28] sm:$0xff] }
  0x16   :  { %v1520_v57 = vld [vmem:[%s2143_s0 + $0xa0] sm:$0xff]  ;;  %v1521_v59 = vld [vmem:[%s2143_s0 + $0xa8] sm:$0xff]  ;;  %v1506_v60 = vld [vmem:[%s2143_s0 + $0x30] sm:$0xff] }
  0x17   :  { %v1522_v61 = vld [vmem:[%s2143_s0 + $0xb0] sm:$0xff]  ;;  %v1507_v62 = vld [vmem:[%s2143_s0 + $0x38] sm:$0xff]  ;;  %v98_v0 = vld [vmem:[%s2145_s2] sm:$0x3] }
  0x18   :  { %381 = vmatpush.bf16.msra.mxu0 %v1455_v34  ;;  %1553 = vmatpush.bf16.msra.mxu2 %v1455_v34  ;;  %v1523_v63 = vld [vmem:[%s2143_s0 + $0xb8] sm:$0xff]  ;;  %v714_v1 = vld [vmem:[%s2146_s3] sm:$0xff]  ;;  %v1771_v2 = vperm.slane %v98_v0, 0  ;;  %v1773_v3 = vperm.slane %v98_v0, 1  ;;  %v715_v15 = vld [vmem:[%s2146_s3 + $0x8] sm:$0xff] }
  0x19   :  { %550 = vmatpush.bf16.msra.mxu1 %v1459_v35  ;;  %1561 = vmatpush.bf16.msra.mxu3 %v1459_v35  ;;  %v778_v4 = vunpack.c.l.bf16 %v714_v1  ;;  %v1508_v5 = vld [vmem:[%s2143_s0 + $0x40] sm:$0xff]  ;;  %v779_v8 = vunpack.c.h.bf16 %v714_v1  ;;  %v780_v23 = vunpack.c.l.bf16 %v715_v15  ;;  %v781_v26 = vunpack.c.h.bf16 %v715_v15  ;;  %v747_v32 = vld [vmem:[%s2146_s3 + $0x108] sm:$0xff]  ;;  %v716_v37 = vld [vmem:[%s2146_s3 + $0x10] sm:$0xff] }
  0x1a   :  { %v1524_v6 = vld [vmem:[%s2143_s0 + $0xc0] sm:$0xff]  ;;  %v844_v39 = vunpack.c.l.bf16 %v747_v32  ;;  %v845_v42 = vunpack.c.h.bf16 %v747_v32  ;;  %v782_v45 = vunpack.c.l.bf16 %v716_v37 }
  0x1b   :  { %v746_v12 = vld [vmem:[%s2146_s3 + $0x100] sm:$0xff] }
  0x1c   :  { %382 = vmatpush.bf16.msra.mxu0 %v1447_v40  ;;  %1554 = vmatpush.bf16.msra.mxu2 %v1447_v40  ;;  %v842_v17 = vunpack.c.l.bf16 %v746_v12  ;;  %v843_v20 = vunpack.c.h.bf16 %v746_v12 }
  0x1d   :  { %551 = vmatpush.bf16.msra.mxu1 %v1451_v41  ;;  %1562 = vmatpush.bf16.msra.mxu3 %v1451_v41 }
  0x20   :  { %383 = vmatpush.bf16.msra.mxu0 %v1439_v46  ;;  %1555 = vmatpush.bf16.msra.mxu2 %v1439_v46  ;;  %v1509_v46 = vld [vmem:[%s2143_s0 + $0x48] sm:$0xff] }
  0x21   :  { %552 = vmatpush.bf16.msra.mxu1 %v1443_v47  ;;  %1563 = vmatpush.bf16.msra.mxu3 %v1443_v47  ;;  %v1525_v47 = vld [vmem:[%s2143_s0 + $0xc8] sm:$0xff] }
  0x23   :  { %384 = vmatmul.bf16.vlgmr.msra.gmra.mxu0 %v1500_v48  ;;  %464 = vmatmul.bf16.vlgmr.msra.gmra.mxu2 %v1516_v49 }
  0x24   :  { %553 = vmatmul.bf16.vlgmr.msra.gmra.mxu1 %v1500_v48  ;;  %633 = vmatmul.bf16.vlgmr.msra.gmra.mxu3 %v1516_v49 }
  0x33   :  { %389 = vmatmul.bf16.gmra.mxu0 %v1501_v50  ;;  %469 = vmatmul.bf16.gmra.mxu2 %v1517_v51 }
  0x34   :  { %558 = vmatmul.bf16.gmra.mxu1 %v1501_v50  ;;  %638 = vmatmul.bf16.gmra.mxu3 %v1517_v51  ;;  %v783_v50 = vunpack.c.h.bf16 %v716_v37 }
  0x43   :  { %394 = vmatmul.bf16.gmra.mxu0 %v1502_v52  ;;  %474 = vmatmul.bf16.gmra.mxu2 %v1518_v53 }
  0x44   :  { %563 = vmatmul.bf16.gmra.mxu1 %v1502_v52  ;;  %643 = vmatmul.bf16.gmra.mxu3 %v1518_v53 }
  0x53   :  { %399 = vmatmul.bf16.gmra.mxu0 %v1503_v54  ;;  %479 = vmatmul.bf16.gmra.mxu2 %v1519_v55 }
  0x54   :  { %568 = vmatmul.bf16.gmra.mxu1 %v1503_v54  ;;  %648 = vmatmul.bf16.gmra.mxu3 %v1519_v55 }
  0x63   :  { %404 = vmatmul.bf16.gmra.mxu0 %v1504_v56  ;;  %484 = vmatmul.bf16.gmra.mxu2 %v1520_v57 }
  0x64   :  { %573 = vmatmul.bf16.gmra.mxu1 %v1504_v56  ;;  %653 = vmatmul.bf16.gmra.mxu3 %v1520_v57  ;;  %v748_v56 = vld [vmem:[%s2146_s3 + $0x110] sm:$0xff] }
  0x73   :  { %409 = vmatmul.bf16.gmra.mxu0 %v1505_v58  ;;  %489 = vmatmul.bf16.gmra.mxu2 %v1521_v59 }
  0x74   :  { %578 = vmatmul.bf16.gmra.mxu1 %v1505_v58  ;;  %658 = vmatmul.bf16.gmra.mxu3 %v1521_v59 }
  0x83   :  { %414 = vmatmul.bf16.gmra.mxu0 %v1506_v60  ;;  %494 = vmatmul.bf16.gmra.mxu2 %v1522_v61 }
  0x84   :  { %583 = vmatmul.bf16.gmra.mxu1 %v1506_v60  ;;  %663 = vmatmul.bf16.gmra.mxu3 %v1522_v61  ;;  %v717_v61 = vld [vmem:[%s2146_s3 + $0x18] sm:$0xff] }
  0x93   :  { %419 = vmatmul.bf16.gmra.mxu0 %v1507_v62  ;;  %499 = vmatmul.bf16.gmra.mxu2 %v1523_v63 }
  0x94   :  { %588 = vmatmul.bf16.gmra.mxu1 %v1507_v62  ;;  %668 = vmatmul.bf16.gmra.mxu3 %v1523_v63  ;;  %v846_v63 = vunpack.c.l.bf16 %v748_v56 }
  0xa0   :  { %v385_v7 = vpop.f32.mrf.mxu0 }
  0xa1   :  { %v386_v9 = vadd.f32 %v385_v7, %v1771_v2  ;;  %v554_v10 = vpop.f32.mrf.mxu1  ;;  %v784_v7 = vunpack.c.l.bf16 %v717_v61 }
  0xa2   :  { %v555_v11 = vadd.f32 %v554_v10, %v1773_v3  ;;  %v785_v10 = vunpack.c.h.bf16 %v717_v61 }
  0xa3   :  { %v906_v13 = vadd.f32 %v778_v4, %v386_v9  ;;  %424 = vmatmul.bf16.gmra.mxu0 %v1508_v5  ;;  %504 = vmatmul.bf16.gmra.mxu2 %v1524_v6  ;;  %v847_v4 = vunpack.c.h.bf16 %v748_v56 }
  0xa4   :  { %v907_v14 = vadd.f32 %v779_v8, %v555_v11  ;;  %593 = vmatmul.bf16.gmra.mxu1 %v1508_v5  ;;  %673 = vmatmul.bf16.gmra.mxu3 %v1524_v6 }
  0xa5   :  { %v1034_v16 = vmax.f32 %v906_v13, 0.0 }
  0xa6   :  { %v1035_v18 = vmax.f32 %v907_v14, 0.0  ;;  %v465_v19 = vpop.f32.mrf.mxu2 }
  0xa7   :  { %1162 = vst [vmem:[#allocation2] sm:$0xff] %v1034_v16  ;;  %v466_v21 = vadd.f32 %v465_v19, %v1771_v2  ;;  %v634_v22 = vpop.f32.mrf.mxu3  ;;  %v749_v16 = vld [vmem:[%s2146_s3 + $0x118] sm:$0xff] }
  0xa8   :  { %1163 = vst [vmem:[#allocation2 + $0x8] sm:$0xff] %v1035_v18  ;;  %v635_v24 = vadd.f32 %v634_v22, %v1773_v3  ;;  %v387_v25 = vpop.f32.mrf.mxu0 }
  0xa9   :  { %v970_v27 = vadd.f32 %v842_v17, %v466_v21  ;;  %v388_v28 = vadd.f32 %v387_v25, %v1771_v2  ;;  %v556_v29 = vpop.f32.mrf.mxu1  ;;  %v718_v21 = vld [vmem:[%s2146_s3 + $0x20] sm:$0xff] }
  0xaa   :  { %v971_v30 = vadd.f32 %v843_v20, %v635_v24  ;;  %v557_v31 = vadd.f32 %v556_v29, %v1773_v3  ;;  %v786_v29 = vunpack.c.l.bf16 %v718_v21 }
  0xab   :  { %v1098_v33 = vmax.f32 %v970_v27, 0.0  ;;  %v908_v34 = vadd.f32 %v780_v23, %v388_v28  ;;  %v848_v23 = vunpack.c.l.bf16 %v749_v16 }
  0xac   :  { %v1099_v35 = vmax.f32 %v971_v30, 0.0  ;;  %v909_v36 = vadd.f32 %v781_v26, %v557_v31  ;;  %v849_v26 = vunpack.c.h.bf16 %v749_v16  ;;  %v1510_v30 = vld [vmem:[%s2143_s0 + $0x50] sm:$0xff] }
  0xad   :  { %1226 = vst [vmem:[#allocation2 + $0x200] sm:$0xff] %v1098_v33  ;;  %v1036_v38 = vmax.f32 %v908_v34, 0.0  ;;  %v1526_v31 = vld [vmem:[%s2143_s0 + $0xd0] sm:$0xff]  ;;  %v787_v34 = vunpack.c.h.bf16 %v718_v21 }
  0xae   :  { %1227 = vst [vmem:[#allocation2 + $0x208] sm:$0xff] %v1099_v35  ;;  %v1037_v40 = vmax.f32 %v909_v36, 0.0  ;;  %v467_v41 = vpop.f32.mrf.mxu2 }
  0xaf   :  { %1164 = vst [vmem:[#allocation2 + $0x10] sm:$0xff] %v1036_v38  ;;  %v468_v43 = vadd.f32 %v467_v41, %v1771_v2  ;;  %v636_v44 = vpop.f32.mrf.mxu3 }
  0xb0   :  { %1165 = vst [vmem:[#allocation2 + $0x18] sm:$0xff] %v1037_v40  ;;  %v637_v48 = vadd.f32 %v636_v44, %v1773_v3  ;;  %v390_v49 = vpop.f32.mrf.mxu0  ;;  %v750_v40 = vld [vmem:[%s2146_s3 + $0x120] sm:$0xff] }
  0xb1   :  { %v972_v51 = vadd.f32 %v844_v39, %v468_v43  ;;  %v391_v52 = vadd.f32 %v390_v49, %v1771_v2  ;;  %v559_v53 = vpop.f32.mrf.mxu1 }
  0xb2   :  { %v973_v54 = vadd.f32 %v845_v42, %v637_v48  ;;  %v560_v55 = vadd.f32 %v559_v53, %v1773_v3 }
  0xb3   :  { %v1100_v57 = vmax.f32 %v972_v51, 0.0  ;;  %v910_v58 = vadd.f32 %v782_v45, %v391_v52  ;;  %429 = vmatmul.bf16.gmra.mxu0 %v1509_v46  ;;  %509 = vmatmul.bf16.gmra.mxu2 %v1525_v47  ;;  %v719_v45 = vld [vmem:[%s2146_s3 + $0x28] sm:$0xff] }
  0xb4   :  { %v1101_v59 = vmax.f32 %v973_v54, 0.0  ;;  %v911_v60 = vadd.f32 %v783_v50, %v560_v55  ;;  %598 = vmatmul.bf16.gmra.mxu1 %v1509_v46  ;;  %678 = vmatmul.bf16.gmra.mxu3 %v1525_v47  ;;  %v850_v47 = vunpack.c.l.bf16 %v750_v40  ;;  %v851_v50 = vunpack.c.h.bf16 %v750_v40 }
  0xb5   :  { %1228 = vst [vmem:[#allocation2 + $0x210] sm:$0xff] %v1100_v57  ;;  %v1038_v62 = vmax.f32 %v910_v58, 0.0  ;;  %v788_v53 = vunpack.c.l.bf16 %v719_v45  ;;  %v789_v56 = vunpack.c.h.bf16 %v719_v45 }
  0xb6   :  { %1229 = vst [vmem:[#allocation2 + $0x218] sm:$0xff] %v1101_v59  ;;  %v1039_v0 = vmax.f32 %v911_v60, 0.0  ;;  %v470_v1 = vpop.f32.mrf.mxu2 }
  0xb7   :  { %1166 = vst [vmem:[#allocation2 + $0x20] sm:$0xff] %v1038_v62  ;;  %v471_v5 = vadd.f32 %v470_v1, %v1771_v2  ;;  %v639_v6 = vpop.f32.mrf.mxu3  ;;  %v751_v62 = vld [vmem:[%s2146_s3 + $0x128] sm:$0xff] }
  0xb8   :  { %1167 = vst [vmem:[#allocation2 + $0x28] sm:$0xff] %v1039_v0  ;;  %v640_v8 = vadd.f32 %v639_v6, %v1773_v3  ;;  %v392_v9 = vpop.f32.mrf.mxu0 }
  0xb9   :  { %v974_v11 = vadd.f32 %v846_v63, %v471_v5  ;;  %v393_v12 = vadd.f32 %v392_v9, %v1771_v2  ;;  %v561_v13 = vpop.f32.mrf.mxu1  ;;  %v720_v5 = vld [vmem:[%s2146_s3 + $0x30] sm:$0xff] }
  0xba   :  { %v975_v14 = vadd.f32 %v847_v4, %v640_v8  ;;  %v562_v15 = vadd.f32 %v561_v13, %v1773_v3  ;;  %v790_v13 = vunpack.c.l.bf16 %v720_v5 }
  0xbb   :  { %v1102_v17 = vmax.f32 %v974_v11, 0.0  ;;  %v912_v18 = vadd.f32 %v784_v7, %v393_v12  ;;  %v852_v7 = vunpack.c.l.bf16 %v751_v62 }
  0xbc   :  { %v1103_v19 = vmax.f32 %v975_v14, 0.0  ;;  %v913_v20 = vadd.f32 %v785_v10, %v562_v15  ;;  %v853_v10 = vunpack.c.h.bf16 %v751_v62  ;;  %v1511_v14 = vld [vmem:[%s2143_s0 + $0x58] sm:$0xff] }
  0xbd   :  { %1230 = vst [vmem:[#allocation2 + $0x220] sm:$0xff] %v1102_v17  ;;  %v1040_v22 = vmax.f32 %v912_v18, 0.0  ;;  %v1527_v15 = vld [vmem:[%s2143_s0 + $0xd8] sm:$0xff]  ;;  %v791_v18 = vunpack.c.h.bf16 %v720_v5 }
  0xbe   :  { %1231 = vst [vmem:[#allocation2 + $0x228] sm:$0xff] %v1103_v19  ;;  %v1041_v24 = vmax.f32 %v913_v20, 0.0  ;;  %v472_v25 = vpop.f32.mrf.mxu2 }
  0xbf   :  { %1168 = vst [vmem:[#allocation2 + $0x30] sm:$0xff] %v1040_v22  ;;  %v473_v27 = vadd.f32 %v472_v25, %v1771_v2  ;;  %v641_v28 = vpop.f32.mrf.mxu3 }
  0xc0   :  { %1169 = vst [vmem:[#allocation2 + $0x38] sm:$0xff] %v1041_v24  ;;  %v642_v32 = vadd.f32 %v641_v28, %v1773_v3  ;;  %v395_v33 = vpop.f32.mrf.mxu0  ;;  %v752_v24 = vld [vmem:[%s2146_s3 + $0x130] sm:$0xff] }
  0xc1   :  { %v976_v35 = vadd.f32 %v848_v23, %v473_v27  ;;  %v396_v36 = vadd.f32 %v395_v33, %v1771_v2  ;;  %v564_v37 = vpop.f32.mrf.mxu1 }
  0xc2   :  { %v977_v38 = vadd.f32 %v849_v26, %v642_v32  ;;  %v565_v39 = vadd.f32 %v564_v37, %v1773_v3 }
  0xc3   :  { %v1104_v41 = vmax.f32 %v976_v35, 0.0  ;;  %v914_v42 = vadd.f32 %v786_v29, %v396_v36  ;;  %434 = vmatmul.bf16.gmra.mxu0 %v1510_v30  ;;  %514 = vmatmul.bf16.gmra.mxu2 %v1526_v31  ;;  %v721_v29 = vld [vmem:[%s2146_s3 + $0x38] sm:$0xff] }
  0xc4   :  { %v1105_v43 = vmax.f32 %v977_v38, 0.0  ;;  %v915_v44 = vadd.f32 %v787_v34, %v565_v39  ;;  %603 = vmatmul.bf16.gmra.mxu1 %v1510_v30  ;;  %683 = vmatmul.bf16.gmra.mxu3 %v1526_v31  ;;  %v854_v31 = vunpack.c.l.bf16 %v752_v24  ;;  %v855_v34 = vunpack.c.h.bf16 %v752_v24 }
  0xc5   :  { %1232 = vst [vmem:[#allocation2 + $0x230] sm:$0xff] %v1104_v41  ;;  %v1042_v46 = vmax.f32 %v914_v42, 0.0  ;;  %v792_v37 = vunpack.c.l.bf16 %v721_v29  ;;  %v793_v40 = vunpack.c.h.bf16 %v721_v29 }
  0xc6   :  { %1233 = vst [vmem:[#allocation2 + $0x238] sm:$0xff] %v1105_v43  ;;  %v1043_v48 = vmax.f32 %v915_v44, 0.0  ;;  %v475_v49 = vpop.f32.mrf.mxu2 }
  0xc7   :  { %1170 = vst [vmem:[#allocation2 + $0x40] sm:$0xff] %v1042_v46  ;;  %v476_v51 = vadd.f32 %v475_v49, %v1771_v2  ;;  %v644_v52 = vpop.f32.mrf.mxu3  ;;  %v753_v46 = vld [vmem:[%s2146_s3 + $0x138] sm:$0xff] }
  0xc8   :  { %1171 = vst [vmem:[#allocation2 + $0x48] sm:$0xff] %v1043_v48  ;;  %v645_v54 = vadd.f32 %v644_v52, %v1773_v3  ;;  %v397_v55 = vpop.f32.mrf.mxu0 }
  0xc9   :  { %v978_v57 = vadd.f32 %v850_v47, %v476_v51  ;;  %v398_v58 = vadd.f32 %v397_v55, %v1771_v2  ;;  %v566_v59 = vpop.f32.mrf.mxu1  ;;  %v722_v51 = vld [vmem:[%s2146_s3 + $0x40] sm:$0xff] }
  0xca   :  { %v979_v60 = vadd.f32 %v851_v50, %v645_v54  ;;  %v567_v61 = vadd.f32 %v566_v59, %v1773_v3  ;;  %v794_v59 = vunpack.c.l.bf16 %v722_v51 }
  0xcb   :  { %v1106_v63 = vmax.f32 %v978_v57, 0.0  ;;  %v916_v0 = vadd.f32 %v788_v53, %v398_v58  ;;  %v856_v53 = vunpack.c.l.bf16 %v753_v46 }
  0xcc   :  { %v1107_v1 = vmax.f32 %v979_v60, 0.0  ;;  %v917_v4 = vadd.f32 %v789_v56, %v567_v61  ;;  %v857_v56 = vunpack.c.h.bf16 %v753_v46  ;;  %v1512_v60 = vld [vmem:[%s2143_s0 + $0x60] sm:$0xff] }
  0xcd   :  { %1234 = vst [vmem:[#allocation2 + $0x240] sm:$0xff] %v1106_v63  ;;  %v1044_v6 = vmax.f32 %v916_v0, 0.0  ;;  %v1528_v61 = vld [vmem:[%s2143_s0 + $0xe0] sm:$0xff]  ;;  %v795_v0 = vunpack.c.h.bf16 %v722_v51 }
  0xce   :  { %1235 = vst [vmem:[#allocation2 + $0x248] sm:$0xff] %v1107_v1  ;;  %v1045_v8 = vmax.f32 %v917_v4, 0.0  ;;  %v477_v9 = vpop.f32.mrf.mxu2 }
  0xcf   :  { %1172 = vst [vmem:[#allocation2 + $0x50] sm:$0xff] %v1044_v6  ;;  %v478_v11 = vadd.f32 %v477_v9, %v1771_v2  ;;  %v646_v12 = vpop.f32.mrf.mxu3 }
  0xd0   :  { %1173 = vst [vmem:[#allocation2 + $0x58] sm:$0xff] %v1045_v8  ;;  %v647_v16 = vadd.f32 %v646_v12, %v1773_v3  ;;  %v400_v17 = vpop.f32.mrf.mxu0  ;;  %v754_v8 = vld [vmem:[%s2146_s3 + $0x140] sm:$0xff] }
  0xd1   :  { %v980_v19 = vadd.f32 %v852_v7, %v478_v11  ;;  %v401_v20 = vadd.f32 %v400_v17, %v1771_v2  ;;  %v569_v21 = vpop.f32.mrf.mxu1 }
  0xd2   :  { %v981_v22 = vadd.f32 %v853_v10, %v647_v16  ;;  %v570_v23 = vadd.f32 %v569_v21, %v1773_v3 }
  0xd3   :  { %v1108_v25 = vmax.f32 %v980_v19, 0.0  ;;  %v918_v26 = vadd.f32 %v790_v13, %v401_v20  ;;  %439 = vmatmul.bf16.gmra.mxu0 %v1511_v14  ;;  %519 = vmatmul.bf16.gmra.mxu2 %v1527_v15  ;;  %v723_v13 = vld [vmem:[%s2146_s3 + $0x48] sm:$0xff] }
  0xd4   :  { %v1109_v27 = vmax.f32 %v981_v22, 0.0  ;;  %v919_v28 = vadd.f32 %v791_v18, %v570_v23  ;;  %608 = vmatmul.bf16.gmra.mxu1 %v1511_v14  ;;  %688 = vmatmul.bf16.gmra.mxu3 %v1527_v15  ;;  %v858_v15 = vunpack.c.l.bf16 %v754_v8  ;;  %v859_v18 = vunpack.c.h.bf16 %v754_v8 }
  0xd5   :  { %1236 = vst [vmem:[#allocation2 + $0x250] sm:$0xff] %v1108_v25  ;;  %v1046_v30 = vmax.f32 %v918_v26, 0.0  ;;  %v796_v21 = vunpack.c.l.bf16 %v723_v13  ;;  %v797_v24 = vunpack.c.h.bf16 %v723_v13 }
  0xd6   :  { %1237 = vst [vmem:[#allocation2 + $0x258] sm:$0xff] %v1109_v27  ;;  %v1047_v32 = vmax.f32 %v919_v28, 0.0  ;;  %v480_v33 = vpop.f32.mrf.mxu2 }
  0xd7   :  { %1174 = vst [vmem:[#allocation2 + $0x60] sm:$0xff] %v1046_v30  ;;  %v481_v35 = vadd.f32 %v480_v33, %v1771_v2  ;;  %v649_v36 = vpop.f32.mrf.mxu3  ;;  %v755_v30 = vld [vmem:[%s2146_s3 + $0x148] sm:$0xff] }
  0xd8   :  { %1175 = vst [vmem:[#allocation2 + $0x68] sm:$0xff] %v1047_v32  ;;  %v650_v38 = vadd.f32 %v649_v36, %v1773_v3  ;;  %v402_v39 = vpop.f32.mrf.mxu0 }
  0xd9   :  { %v982_v41 = vadd.f32 %v854_v31, %v481_v35  ;;  %v403_v42 = vadd.f32 %v402_v39, %v1771_v2  ;;  %v571_v43 = vpop.f32.mrf.mxu1  ;;  %v724_v35 = vld [vmem:[%s2146_s3 + $0x50] sm:$0xff] }
  0xda   :  { %v983_v44 = vadd.f32 %v855_v34, %v650_v38  ;;  %v572_v45 = vadd.f32 %v571_v43, %v1773_v3  ;;  %v798_v43 = vunpack.c.l.bf16 %v724_v35 }
  0xdb   :  { %v1110_v47 = vmax.f32 %v982_v41, 0.0  ;;  %v920_v48 = vadd.f32 %v792_v37, %v403_v42  ;;  %v860_v37 = vunpack.c.l.bf16 %v755_v30 }
  0xdc   :  { %v1111_v49 = vmax.f32 %v983_v44, 0.0  ;;  %v921_v50 = vadd.f32 %v793_v40, %v572_v45  ;;  %v861_v40 = vunpack.c.h.bf16 %v755_v30  ;;  %v1513_v44 = vld [vmem:[%s2143_s0 + $0x68] sm:$0xff] }
  0xdd   :  { %1238 = vst [vmem:[#allocation2 + $0x260] sm:$0xff] %v1110_v47  ;;  %v1048_v52 = vmax.f32 %v920_v48, 0.0  ;;  %v1529_v45 = vld [vmem:[%s2143_s0 + $0xe8] sm:$0xff]  ;;  %v799_v48 = vunpack.c.h.bf16 %v724_v35 }
  0xde   :  { %1239 = vst [vmem:[#allocation2 + $0x268] sm:$0xff] %v1111_v49  ;;  %v1049_v54 = vmax.f32 %v921_v50, 0.0  ;;  %v482_v55 = vpop.f32.mrf.mxu2 }
  0xdf   :  { %1176 = vst [vmem:[#allocation2 + $0x70] sm:$0xff] %v1048_v52  ;;  %v483_v57 = vadd.f32 %v482_v55, %v1771_v2  ;;  %v651_v58 = vpop.f32.mrf.mxu3 }
  0xe0   :  { %1177 = vst [vmem:[#allocation2 + $0x78] sm:$0xff] %v1049_v54  ;;  %v652_v62 = vadd.f32 %v651_v58, %v1773_v3  ;;  %v405_v63 = vpop.f32.mrf.mxu0  ;;  %v756_v54 = vld [vmem:[%s2146_s3 + $0x150] sm:$0xff] }
  0xe1   :  { %v984_v1 = vadd.f32 %v856_v53, %v483_v57  ;;  %v406_v4 = vadd.f32 %v405_v63, %v1771_v2  ;;  %v574_v5 = vpop.f32.mrf.mxu1 }
  0xe2   :  { %v985_v6 = vadd.f32 %v857_v56, %v652_v62  ;;  %v575_v7 = vadd.f32 %v574_v5, %v1773_v3 }
  0xe3   :  { %v1112_v9 = vmax.f32 %v984_v1, 0.0  ;;  %v922_v10 = vadd.f32 %v794_v59, %v406_v4  ;;  %444 = vmatmul.bf16.gmra.mxu0 %v1512_v60  ;;  %524 = vmatmul.bf16.gmra.mxu2 %v1528_v61  ;;  %v725_v59 = vld [vmem:[%s2146_s3 + $0x58] sm:$0xff] }
  0xe4   :  { %v1113_v11 = vmax.f32 %v985_v6, 0.0  ;;  %v923_v12 = vadd.f32 %v795_v0, %v575_v7  ;;  %613 = vmatmul.bf16.gmra.mxu1 %v1512_v60  ;;  %693 = vmatmul.bf16.gmra.mxu3 %v1528_v61  ;;  %v862_v61 = vunpack.c.l.bf16 %v756_v54  ;;  %v863_v0 = vunpack.c.h.bf16 %v756_v54 }
  0xe5   :  { %1240 = vst [vmem:[#allocation2 + $0x270] sm:$0xff] %v1112_v9  ;;  %v1050_v14 = vmax.f32 %v922_v10, 0.0  ;;  %v800_v5 = vunpack.c.l.bf16 %v725_v59  ;;  %v801_v8 = vunpack.c.h.bf16 %v725_v59 }
  0xe6   :  { %1241 = vst [vmem:[#allocation2 + $0x278] sm:$0xff] %v1113_v11  ;;  %v1051_v16 = vmax.f32 %v923_v12, 0.0  ;;  %v485_v17 = vpop.f32.mrf.mxu2 }
  0xe7   :  { %1178 = vst [vmem:[#allocation2 + $0x80] sm:$0xff] %v1050_v14  ;;  %v486_v19 = vadd.f32 %v485_v17, %v1771_v2  ;;  %v654_v20 = vpop.f32.mrf.mxu3  ;;  %v757_v14 = vld [vmem:[%s2146_s3 + $0x158] sm:$0xff] }
  0xe8   :  { %1179 = vst [vmem:[#allocation2 + $0x88] sm:$0xff] %v1051_v16  ;;  %v655_v22 = vadd.f32 %v654_v20, %v1773_v3  ;;  %v407_v23 = vpop.f32.mrf.mxu0 }
  0xe9   :  { %v986_v25 = vadd.f32 %v858_v15, %v486_v19  ;;  %v408_v26 = vadd.f32 %v407_v23, %v1771_v2  ;;  %v576_v27 = vpop.f32.mrf.mxu1  ;;  %v726_v19 = vld [vmem:[%s2146_s3 + $0x60] sm:$0xff] }
  0xea   :  { %v987_v28 = vadd.f32 %v859_v18, %v655_v22  ;;  %v577_v29 = vadd.f32 %v576_v27, %v1773_v3  ;;  %v802_v27 = vunpack.c.l.bf16 %v726_v19 }
  0xeb   :  { %v1114_v31 = vmax.f32 %v986_v25, 0.0  ;;  %v924_v32 = vadd.f32 %v796_v21, %v408_v26  ;;  %v864_v21 = vunpack.c.l.bf16 %v757_v14 }
  0xec   :  { %v1115_v33 = vmax.f32 %v987_v28, 0.0  ;;  %v925_v34 = vadd.f32 %v797_v24, %v577_v29  ;;  %v865_v24 = vunpack.c.h.bf16 %v757_v14  ;;  %v1514_v28 = vld [vmem:[%s2143_s0 + $0x70] sm:$0xff] }
  0xed   :  { %1242 = vst [vmem:[#allocation2 + $0x280] sm:$0xff] %v1114_v31  ;;  %v1052_v36 = vmax.f32 %v924_v32, 0.0  ;;  %v1530_v29 = vld [vmem:[%s2143_s0 + $0xf0] sm:$0xff]  ;;  %v803_v32 = vunpack.c.h.bf16 %v726_v19 }
  0xee   :  { %1243 = vst [vmem:[#allocation2 + $0x288] sm:$0xff] %v1115_v33  ;;  %v1053_v38 = vmax.f32 %v925_v34, 0.0  ;;  %v487_v39 = vpop.f32.mrf.mxu2 }
  0xef   :  { %1180 = vst [vmem:[#allocation2 + $0x90] sm:$0xff] %v1052_v36  ;;  %v488_v41 = vadd.f32 %v487_v39, %v1771_v2  ;;  %v656_v42 = vpop.f32.mrf.mxu3 }
  0xf0   :  { %1181 = vst [vmem:[#allocation2 + $0x98] sm:$0xff] %v1053_v38  ;;  %v657_v46 = vadd.f32 %v656_v42, %v1773_v3  ;;  %v410_v47 = vpop.f32.mrf.mxu0  ;;  %v758_v38 = vld [vmem:[%s2146_s3 + $0x160] sm:$0xff] }
  0xf1   :  { %v988_v49 = vadd.f32 %v860_v37, %v488_v41  ;;  %v411_v50 = vadd.f32 %v410_v47, %v1771_v2  ;;  %v579_v51 = vpop.f32.mrf.mxu1 }
  0xf2   :  { %v989_v52 = vadd.f32 %v861_v40, %v657_v46  ;;  %v580_v53 = vadd.f32 %v579_v51, %v1773_v3 }
  0xf3   :  { %v1116_v55 = vmax.f32 %v988_v49, 0.0  ;;  %v926_v56 = vadd.f32 %v798_v43, %v411_v50  ;;  %449 = vmatmul.bf16.gmra.mxu0 %v1513_v44  ;;  %529 = vmatmul.bf16.gmra.mxu2 %v1529_v45  ;;  %v727_v43 = vld [vmem:[%s2146_s3 + $0x68] sm:$0xff] }
  0xf4   :  { %v1117_v57 = vmax.f32 %v989_v52, 0.0  ;;  %v927_v58 = vadd.f32 %v799_v48, %v580_v53  ;;  %618 = vmatmul.bf16.gmra.mxu1 %v1513_v44  ;;  %698 = vmatmul.bf16.gmra.mxu3 %v1529_v45  ;;  %v866_v45 = vunpack.c.l.bf16 %v758_v38  ;;  %v867_v48 = vunpack.c.h.bf16 %v758_v38 }
  0xf5   :  { %1244 = vst [vmem:[#allocation2 + $0x290] sm:$0xff] %v1116_v55  ;;  %v1054_v60 = vmax.f32 %v926_v56, 0.0  ;;  %v804_v51 = vunpack.c.l.bf16 %v727_v43  ;;  %v805_v54 = vunpack.c.h.bf16 %v727_v43 }
  0xf6   :  { %1245 = vst [vmem:[#allocation2 + $0x298] sm:$0xff] %v1117_v57  ;;  %v1055_v62 = vmax.f32 %v927_v58, 0.0  ;;  %v490_v63 = vpop.f32.mrf.mxu2 }
  0xf7   :  { %1182 = vst [vmem:[#allocation2 + $0xa0] sm:$0xff] %v1054_v60  ;;  %v491_v1 = vadd.f32 %v490_v63, %v1771_v2  ;;  %v659_v4 = vpop.f32.mrf.mxu3  ;;  %v759_v60 = vld [vmem:[%s2146_s3 + $0x168] sm:$0xff] }
  0xf8   :  { %1183 = vst [vmem:[#allocation2 + $0xa8] sm:$0xff] %v1055_v62  ;;  %v660_v6 = vadd.f32 %v659_v4, %v1773_v3  ;;  %v412_v7 = vpop.f32.mrf.mxu0 }
  0xf9   :  { %v990_v9 = vadd.f32 %v862_v61, %v491_v1  ;;  %v413_v10 = vadd.f32 %v412_v7, %v1771_v2  ;;  %v581_v11 = vpop.f32.mrf.mxu1  ;;  %v728_v1 = vld [vmem:[%s2146_s3 + $0x70] sm:$0xff] }
  0xfa   :  { %v991_v12 = vadd.f32 %v863_v0, %v660_v6  ;;  %v582_v13 = vadd.f32 %v581_v11, %v1773_v3  ;;  %v806_v11 = vunpack.c.l.bf16 %v728_v1 }
  0xfb   :  { %v1118_v15 = vmax.f32 %v990_v9, 0.0  ;;  %v928_v16 = vadd.f32 %v800_v5, %v413_v10  ;;  %v868_v5 = vunpack.c.l.bf16 %v759_v60 }
  0xfc   :  { %v1119_v17 = vmax.f32 %v991_v12, 0.0  ;;  %v929_v18 = vadd.f32 %v801_v8, %v582_v13  ;;  %v869_v8 = vunpack.c.h.bf16 %v759_v60  ;;  %v1515_v12 = vld [vmem:[%s2143_s0 + $0x78] sm:$0xff] }
  0xfd   :  { %1246 = vst [vmem:[#allocation2 + $0x2a0] sm:$0xff] %v1118_v15  ;;  %v1056_v20 = vmax.f32 %v928_v16, 0.0  ;;  %v1531_v13 = vld [vmem:[%s2143_s0 + $0xf8] sm:$0xff]  ;;  %v807_v16 = vunpack.c.h.bf16 %v728_v1 }
  0xfe   :  { %1247 = vst [vmem:[#allocation2 + $0x2a8] sm:$0xff] %v1119_v17  ;;  %v1057_v22 = vmax.f32 %v929_v18, 0.0  ;;  %v492_v23 = vpop.f32.mrf.mxu2 }
  0xff   :  { %1184 = vst [vmem:[#allocation2 + $0xb0] sm:$0xff] %v1056_v20  ;;  %v493_v25 = vadd.f32 %v492_v23, %v1771_v2  ;;  %v661_v26 = vpop.f32.mrf.mxu3 }
 0x100   :  { %1185 = vst [vmem:[#allocation2 + $0xb8] sm:$0xff] %v1057_v22  ;;  %v662_v30 = vadd.f32 %v661_v26, %v1773_v3  ;;  %v415_v31 = vpop.f32.mrf.mxu0  ;;  %v760_v22 = vld [vmem:[%s2146_s3 + $0x170] sm:$0xff] }
 0x101   :  { %v992_v33 = vadd.f32 %v864_v21, %v493_v25  ;;  %v416_v34 = vadd.f32 %v415_v31, %v1771_v2  ;;  %v584_v35 = vpop.f32.mrf.mxu1 }
 0x102   :  { %v993_v36 = vadd.f32 %v865_v24, %v662_v30  ;;  %v585_v37 = vadd.f32 %v584_v35, %v1773_v3 }
 0x103   :  { %v1120_v39 = vmax.f32 %v992_v33, 0.0  ;;  %v930_v40 = vadd.f32 %v802_v27, %v416_v34  ;;  %454 = vmatmul.bf16.gmra.mxu0 %v1514_v28  ;;  %534 = vmatmul.bf16.gmra.mxu2 %v1530_v29  ;;  %v729_v27 = vld [vmem:[%s2146_s3 + $0x78] sm:$0xff] }
 0x104   :  { %v1121_v41 = vmax.f32 %v993_v36, 0.0  ;;  %v931_v42 = vadd.f32 %v803_v32, %v585_v37  ;;  %623 = vmatmul.bf16.gmra.mxu1 %v1514_v28  ;;  %703 = vmatmul.bf16.gmra.mxu3 %v1530_v29  ;;  %v870_v29 = vunpack.c.l.bf16 %v760_v22  ;;  %v871_v32 = vunpack.c.h.bf16 %v760_v22 }
 0x105   :  { %1248 = vst [vmem:[#allocation2 + $0x2b0] sm:$0xff] %v1120_v39  ;;  %v1058_v44 = vmax.f32 %v930_v40, 0.0  ;;  %v808_v35 = vunpack.c.l.bf16 %v729_v27  ;;  %v809_v38 = vunpack.c.h.bf16 %v729_v27 }
 0x106   :  { %1249 = vst [vmem:[#allocation2 + $0x2b8] sm:$0xff] %v1121_v41  ;;  %v1059_v46 = vmax.f32 %v931_v42, 0.0  ;;  %v495_v47 = vpop.f32.mrf.mxu2 }
 0x107   :  { %1186 = vst [vmem:[#allocation2 + $0xc0] sm:$0xff] %v1058_v44  ;;  %v496_v49 = vadd.f32 %v495_v47, %v1771_v2  ;;  %v664_v50 = vpop.f32.mrf.mxu3  ;;  %v761_v44 = vld [vmem:[%s2146_s3 + $0x178] sm:$0xff] }
 0x108   :  { %1187 = vst [vmem:[#allocation2 + $0xc8] sm:$0xff] %v1059_v46  ;;  %v665_v52 = vadd.f32 %v664_v50, %v1773_v3  ;;  %v417_v53 = vpop.f32.mrf.mxu0 }
 0x109   :  { %v994_v55 = vadd.f32 %v866_v45, %v496_v49  ;;  %v418_v56 = vadd.f32 %v417_v53, %v1771_v2  ;;  %v586_v57 = vpop.f32.mrf.mxu1  ;;  %v730_v49 = vld [vmem:[%s2146_s3 + $0x80] sm:$0xff] }
 0x10a   :  { %v995_v58 = vadd.f32 %v867_v48, %v665_v52  ;;  %v587_v59 = vadd.f32 %v586_v57, %v1773_v3  ;;  %v810_v57 = vunpack.c.l.bf16 %v730_v49  ;;  %v811_v60 = vunpack.c.h.bf16 %v730_v49 }
 0x10b   :  { %v1122_v61 = vmax.f32 %v994_v55, 0.0  ;;  %v932_v62 = vadd.f32 %v804_v51, %v418_v56  ;;  %v872_v51 = vunpack.c.l.bf16 %v761_v44 }
 0x10c   :  { %v1123_v63 = vmax.f32 %v995_v58, 0.0  ;;  %v933_v0 = vadd.f32 %v805_v54, %v587_v59  ;;  %v873_v54 = vunpack.c.h.bf16 %v761_v44 }
 0x10d   :  { %1250 = vst [vmem:[#allocation2 + $0x2c0] sm:$0xff] %v1122_v61  ;;  %v1060_v4 = vmax.f32 %v932_v62, 0.0 }
 0x10e   :  { %1251 = vst [vmem:[#allocation2 + $0x2c8] sm:$0xff] %v1123_v63  ;;  %v1061_v6 = vmax.f32 %v933_v0, 0.0  ;;  %v497_v7 = vpop.f32.mrf.mxu2 }
 0x10f   :  { %1188 = vst [vmem:[#allocation2 + $0xd0] sm:$0xff] %v1060_v4  ;;  %v498_v9 = vadd.f32 %v497_v7, %v1771_v2  ;;  %v666_v10 = vpop.f32.mrf.mxu3  ;;  %v762_v4 = vld [vmem:[%s2146_s3 + $0x180] sm:$0xff] }
 0x110   :  { %1189 = vst [vmem:[#allocation2 + $0xd8] sm:$0xff] %v1061_v6  ;;  %v667_v14 = vadd.f32 %v666_v10, %v1773_v3  ;;  %v420_v15 = vpop.f32.mrf.mxu0 }
 0x111   :  { %v996_v17 = vadd.f32 %v868_v5, %v498_v9  ;;  %v421_v18 = vadd.f32 %v420_v15, %v1771_v2  ;;  %v589_v19 = vpop.f32.mrf.mxu1  ;;  %v731_v9 = vld [vmem:[%s2146_s3 + $0x88] sm:$0xff] }
 0x112   :  { %v997_v20 = vadd.f32 %v869_v8, %v667_v14  ;;  %v590_v21 = vadd.f32 %v589_v19, %v1773_v3  ;;  %v875_v14 = vunpack.c.h.bf16 %v762_v4 }
 0x113   :  { %v1124_v23 = vmax.f32 %v996_v17, 0.0  ;;  %v934_v24 = vadd.f32 %v806_v11, %v421_v18  ;;  %459 = vmatmul.bf16.gmra.mxu0 %v1515_v12  ;;  %539 = vmatmul.bf16.gmra.mxu2 %v1531_v13  ;;  %v874_v11 = vunpack.c.l.bf16 %v762_v4  ;;  %v812_v17 = vunpack.c.l.bf16 %v731_v9 }
 0x114   :  { %v1125_v25 = vmax.f32 %v997_v20, 0.0  ;;  %v935_v26 = vadd.f32 %v807_v16, %v590_v21  ;;  %628 = vmatmul.bf16.gmra.mxu1 %v1515_v12  ;;  %708 = vmatmul.bf16.gmra.mxu3 %v1531_v13  ;;  %v813_v20 = vunpack.c.h.bf16 %v731_v9 }
 0x115   :  { %1252 = vst [vmem:[#allocation2 + $0x2d0] sm:$0xff] %v1124_v23  ;;  %v1062_v28 = vmax.f32 %v934_v24, 0.0 }
 0x116   :  { %1253 = vst [vmem:[#allocation2 + $0x2d8] sm:$0xff] %v1125_v25  ;;  %v1063_v30 = vmax.f32 %v935_v26, 0.0  ;;  %v500_v31 = vpop.f32.mrf.mxu2  ;;  %v763_v26 = vld [vmem:[%s2146_s3 + $0x188] sm:$0xff] }
 0x117   :  { %1190 = vst [vmem:[#allocation2 + $0xe0] sm:$0xff] %v1062_v28  ;;  %v501_v33 = vadd.f32 %v500_v31, %v1771_v2  ;;  %v669_v34 = vpop.f32.mrf.mxu3  ;;  %v732_v31 = vld [vmem:[%s2146_s3 + $0x90] sm:$0xff] }
 0x118   :  { %1191 = vst [vmem:[#allocation2 + $0xe8] sm:$0xff] %v1063_v30  ;;  %v670_v36 = vadd.f32 %v669_v34, %v1773_v3  ;;  %v422_v37 = vpop.f32.mrf.mxu0 }
 0x119   :  { %v998_v39 = vadd.f32 %v870_v29, %v501_v33  ;;  %v423_v40 = vadd.f32 %v422_v37, %v1771_v2  ;;  %v591_v41 = vpop.f32.mrf.mxu1  ;;  %v876_v33 = vunpack.c.l.bf16 %v763_v26 }
 0x11a   :  { %v999_v42 = vadd.f32 %v871_v32, %v670_v36  ;;  %v592_v43 = vadd.f32 %v591_v41, %v1773_v3  ;;  %v877_v36 = vunpack.c.h.bf16 %v763_v26 }
 0x11b   :  { %v1126_v45 = vmax.f32 %v998_v39, 0.0  ;;  %v936_v46 = vadd.f32 %v808_v35, %v423_v40  ;;  %v814_v39 = vunpack.c.l.bf16 %v732_v31 }
 0x11c   :  { %v1127_v47 = vmax.f32 %v999_v42, 0.0  ;;  %v937_v48 = vadd.f32 %v809_v38, %v592_v43  ;;  %v815_v42 = vunpack.c.h.bf16 %v732_v31 }
 0x11d   :  { %1254 = vst [vmem:[#allocation2 + $0x2e0] sm:$0xff] %v1126_v45  ;;  %v1064_v50 = vmax.f32 %v936_v46, 0.0 }
 0x11e   :  { %1255 = vst [vmem:[#allocation2 + $0x2e8] sm:$0xff] %v1127_v47  ;;  %v1065_v52 = vmax.f32 %v937_v48, 0.0  ;;  %v502_v53 = vpop.f32.mrf.mxu2  ;;  %v764_v48 = vld [vmem:[%s2146_s3 + $0x190] sm:$0xff] }
 0x11f   :  { %1192 = vst [vmem:[#allocation2 + $0xf0] sm:$0xff] %v1064_v50  ;;  %v503_v55 = vadd.f32 %v502_v53, %v1771_v2  ;;  %v671_v56 = vpop.f32.mrf.mxu3  ;;  %v733_v53 = vld [vmem:[%s2146_s3 + $0x98] sm:$0xff] }
 0x120   :  { %1193 = vst [vmem:[#allocation2 + $0xf8] sm:$0xff] %v1065_v52  ;;  %v672_v58 = vadd.f32 %v671_v56, %v1773_v3  ;;  %v425_v59 = vpop.f32.mrf.mxu0 }
 0x121   :  { %v1000_v61 = vadd.f32 %v872_v51, %v503_v55  ;;  %v426_v62 = vadd.f32 %v425_v59, %v1771_v2  ;;  %v594_v63 = vpop.f32.mrf.mxu1  ;;  %v878_v55 = vunpack.c.l.bf16 %v764_v48 }
 0x122   :  { %v1001_v0 = vadd.f32 %v873_v54, %v672_v58  ;;  %v595_v1 = vadd.f32 %v594_v63, %v1773_v3  ;;  %v879_v58 = vunpack.c.h.bf16 %v764_v48 }
 0x123   :  { %v1128_v5 = vmax.f32 %v1000_v61, 0.0  ;;  %v938_v6 = vadd.f32 %v810_v57, %v426_v62  ;;  %v816_v61 = vunpack.c.l.bf16 %v733_v53 }
 0x124   :  { %v1129_v7 = vmax.f32 %v1001_v0, 0.0  ;;  %v939_v8 = vadd.f32 %v811_v60, %v595_v1  ;;  %v817_v0 = vunpack.c.h.bf16 %v733_v53 }
 0x125   :  { %1256 = vst [vmem:[#allocation2 + $0x2f0] sm:$0xff] %v1128_v5  ;;  %v1066_v10 = vmax.f32 %v938_v6, 0.0 }
 0x126   :  { %1257 = vst [vmem:[#allocation2 + $0x2f8] sm:$0xff] %v1129_v7  ;;  %v1067_v12 = vmax.f32 %v939_v8, 0.0  ;;  %v505_v13 = vpop.f32.mrf.mxu2  ;;  %v765_v8 = vld [vmem:[%s2146_s3 + $0x198] sm:$0xff] }
 0x127   :  { %1194 = vst [vmem:[#allocation2 + $0x100] sm:$0xff] %v1066_v10  ;;  %v506_v15 = vadd.f32 %v505_v13, %v1771_v2  ;;  %v674_v16 = vpop.f32.mrf.mxu3  ;;  %v734_v13 = vld [vmem:[%s2146_s3 + $0xa0] sm:$0xff] }
 0x128   :  { %1195 = vst [vmem:[#allocation2 + $0x108] sm:$0xff] %v1067_v12  ;;  %v675_v18 = vadd.f32 %v674_v16, %v1773_v3  ;;  %v427_v19 = vpop.f32.mrf.mxu0 }
 0x129   :  { %v1002_v21 = vadd.f32 %v874_v11, %v506_v15  ;;  %v428_v22 = vadd.f32 %v427_v19, %v1771_v2  ;;  %v596_v23 = vpop.f32.mrf.mxu1  ;;  %v880_v15 = vunpack.c.l.bf16 %v765_v8 }
 0x12a   :  { %v1003_v24 = vadd.f32 %v875_v14, %v675_v18  ;;  %v597_v25 = vadd.f32 %v596_v23, %v1773_v3  ;;  %v881_v18 = vunpack.c.h.bf16 %v765_v8 }
 0x12b   :  { %v1130_v27 = vmax.f32 %v1002_v21, 0.0  ;;  %v940_v28 = vadd.f32 %v812_v17, %v428_v22  ;;  %v818_v21 = vunpack.c.l.bf16 %v734_v13 }
 0x12c   :  { %v1131_v29 = vmax.f32 %v1003_v24, 0.0  ;;  %v941_v30 = vadd.f32 %v813_v20, %v597_v25  ;;  %v819_v24 = vunpack.c.h.bf16 %v734_v13 }
 0x12d   :  { %1258 = vst [vmem:[#allocation2 + $0x300] sm:$0xff] %v1130_v27  ;;  %v1068_v32 = vmax.f32 %v940_v28, 0.0 }
 0x12e   :  { %1259 = vst [vmem:[#allocation2 + $0x308] sm:$0xff] %v1131_v29  ;;  %v1069_v34 = vmax.f32 %v941_v30, 0.0  ;;  %v507_v35 = vpop.f32.mrf.mxu2  ;;  %v766_v30 = vld [vmem:[%s2146_s3 + $0x1a0] sm:$0xff] }
 0x12f   :  { %1196 = vst [vmem:[#allocation2 + $0x110] sm:$0xff] %v1068_v32  ;;  %v508_v37 = vadd.f32 %v507_v35, %v1771_v2  ;;  %v676_v38 = vpop.f32.mrf.mxu3  ;;  %v735_v35 = vld [vmem:[%s2146_s3 + $0xa8] sm:$0xff] }
 0x130   :  { %1197 = vst [vmem:[#allocation2 + $0x118] sm:$0xff] %v1069_v34  ;;  %v677_v40 = vadd.f32 %v676_v38, %v1773_v3  ;;  %v430_v41 = vpop.f32.mrf.mxu0 }
 0x131   :  { %v1004_v43 = vadd.f32 %v876_v33, %v508_v37  ;;  %v431_v44 = vadd.f32 %v430_v41, %v1771_v2  ;;  %v599_v45 = vpop.f32.mrf.mxu1  ;;  %v882_v37 = vunpack.c.l.bf16 %v766_v30 }
 0x132   :  { %v1005_v46 = vadd.f32 %v877_v36, %v677_v40  ;;  %v600_v47 = vadd.f32 %v599_v45, %v1773_v3  ;;  %v883_v40 = vunpack.c.h.bf16 %v766_v30 }
 0x133   :  { %v1132_v49 = vmax.f32 %v1004_v43, 0.0  ;;  %v942_v50 = vadd.f32 %v814_v39, %v431_v44  ;;  %v820_v43 = vunpack.c.l.bf16 %v735_v35 }
 0x134   :  { %v1133_v51 = vmax.f32 %v1005_v46, 0.0  ;;  %v943_v52 = vadd.f32 %v815_v42, %v600_v47  ;;  %v821_v46 = vunpack.c.h.bf16 %v735_v35 }
 0x135   :  { %1260 = vst [vmem:[#allocation2 + $0x310] sm:$0xff] %v1132_v49  ;;  %v1070_v54 = vmax.f32 %v942_v50, 0.0 }
 0x136   :  { %1261 = vst [vmem:[#allocation2 + $0x318] sm:$0xff] %v1133_v51  ;;  %v1071_v56 = vmax.f32 %v943_v52, 0.0  ;;  %v510_v57 = vpop.f32.mrf.mxu2  ;;  %v767_v52 = vld [vmem:[%s2146_s3 + $0x1a8] sm:$0xff] }
 0x137   :  { %1198 = vst [vmem:[#allocation2 + $0x120] sm:$0xff] %v1070_v54  ;;  %v511_v59 = vadd.f32 %v510_v57, %v1771_v2  ;;  %v679_v60 = vpop.f32.mrf.mxu3  ;;  %v736_v57 = vld [vmem:[%s2146_s3 + $0xb0] sm:$0xff] }
 0x138   :  { %1199 = vst [vmem:[#allocation2 + $0x128] sm:$0xff] %v1071_v56  ;;  %v680_v62 = vadd.f32 %v679_v60, %v1773_v3  ;;  %v432_v63 = vpop.f32.mrf.mxu0 }
 0x139   :  { %v1006_v1 = vadd.f32 %v878_v55, %v511_v59  ;;  %v433_v4 = vadd.f32 %v432_v63, %v1771_v2  ;;  %v601_v5 = vpop.f32.mrf.mxu1  ;;  %v884_v59 = vunpack.c.l.bf16 %v767_v52 }
 0x13a   :  { %v1007_v6 = vadd.f32 %v879_v58, %v680_v62  ;;  %v602_v7 = vadd.f32 %v601_v5, %v1773_v3  ;;  %v885_v62 = vunpack.c.h.bf16 %v767_v52 }
 0x13b   :  { %v1134_v9 = vmax.f32 %v1006_v1, 0.0  ;;  %v944_v10 = vadd.f32 %v816_v61, %v433_v4  ;;  %v822_v1 = vunpack.c.l.bf16 %v736_v57 }
 0x13c   :  { %v1135_v11 = vmax.f32 %v1007_v6, 0.0  ;;  %v945_v12 = vadd.f32 %v817_v0, %v602_v7  ;;  %v823_v6 = vunpack.c.h.bf16 %v736_v57 }
 0x13d   :  { %1262 = vst [vmem:[#allocation2 + $0x320] sm:$0xff] %v1134_v9  ;;  %v1072_v14 = vmax.f32 %v944_v10, 0.0 }
 0x13e   :  { %1263 = vst [vmem:[#allocation2 + $0x328] sm:$0xff] %v1135_v11  ;;  %v1073_v16 = vmax.f32 %v945_v12, 0.0  ;;  %v512_v17 = vpop.f32.mrf.mxu2  ;;  %v768_v12 = vld [vmem:[%s2146_s3 + $0x1b0] sm:$0xff] }
 0x13f   :  { %1200 = vst [vmem:[#allocation2 + $0x130] sm:$0xff] %v1072_v14  ;;  %v513_v19 = vadd.f32 %v512_v17, %v1771_v2  ;;  %v681_v20 = vpop.f32.mrf.mxu3  ;;  %v737_v17 = vld [vmem:[%s2146_s3 + $0xb8] sm:$0xff] }
 0x140   :  { %1201 = vst [vmem:[#allocation2 + $0x138] sm:$0xff] %v1073_v16  ;;  %v682_v22 = vadd.f32 %v681_v20, %v1773_v3  ;;  %v435_v23 = vpop.f32.mrf.mxu0 }
 0x141   :  { %v1008_v25 = vadd.f32 %v880_v15, %v513_v19  ;;  %v436_v26 = vadd.f32 %v435_v23, %v1771_v2  ;;  %v604_v27 = vpop.f32.mrf.mxu1  ;;  %v886_v19 = vunpack.c.l.bf16 %v768_v12 }
 0x142   :  { %v1009_v28 = vadd.f32 %v881_v18, %v682_v22  ;;  %v605_v29 = vadd.f32 %v604_v27, %v1773_v3  ;;  %v887_v22 = vunpack.c.h.bf16 %v768_v12 }
 0x143   :  { %v1136_v31 = vmax.f32 %v1008_v25, 0.0  ;;  %v946_v32 = vadd.f32 %v818_v21, %v436_v26  ;;  %v824_v25 = vunpack.c.l.bf16 %v737_v17 }
 0x144   :  { %v1137_v33 = vmax.f32 %v1009_v28, 0.0  ;;  %v947_v34 = vadd.f32 %v819_v24, %v605_v29  ;;  %v825_v28 = vunpack.c.h.bf16 %v737_v17 }
 0x145   :  { %1264 = vst [vmem:[#allocation2 + $0x330] sm:$0xff] %v1136_v31  ;;  %v1074_v36 = vmax.f32 %v946_v32, 0.0 }
 0x146   :  { %1265 = vst [vmem:[#allocation2 + $0x338] sm:$0xff] %v1137_v33  ;;  %v1075_v38 = vmax.f32 %v947_v34, 0.0  ;;  %v515_v39 = vpop.f32.mrf.mxu2  ;;  %v769_v34 = vld [vmem:[%s2146_s3 + $0x1b8] sm:$0xff] }
 0x147   :  { %1202 = vst [vmem:[#allocation2 + $0x140] sm:$0xff] %v1074_v36  ;;  %v516_v41 = vadd.f32 %v515_v39, %v1771_v2  ;;  %v684_v42 = vpop.f32.mrf.mxu3  ;;  %v738_v39 = vld [vmem:[%s2146_s3 + $0xc0] sm:$0xff] }
 0x148   :  { %1203 = vst [vmem:[#allocation2 + $0x148] sm:$0xff] %v1075_v38  ;;  %v685_v44 = vadd.f32 %v684_v42, %v1773_v3  ;;  %v437_v45 = vpop.f32.mrf.mxu0 }
 0x149   :  { %v1010_v47 = vadd.f32 %v882_v37, %v516_v41  ;;  %v438_v48 = vadd.f32 %v437_v45, %v1771_v2  ;;  %v606_v49 = vpop.f32.mrf.mxu1  ;;  %v888_v41 = vunpack.c.l.bf16 %v769_v34 }
 0x14a   :  { %v1011_v50 = vadd.f32 %v883_v40, %v685_v44  ;;  %v607_v51 = vadd.f32 %v606_v49, %v1773_v3  ;;  %v889_v44 = vunpack.c.h.bf16 %v769_v34 }
 0x14b   :  { %v1138_v53 = vmax.f32 %v1010_v47, 0.0  ;;  %v948_v54 = vadd.f32 %v820_v43, %v438_v48  ;;  %v826_v47 = vunpack.c.l.bf16 %v738_v39 }
 0x14c   :  { %v1139_v55 = vmax.f32 %v1011_v50, 0.0  ;;  %v949_v56 = vadd.f32 %v821_v46, %v607_v51  ;;  %v827_v50 = vunpack.c.h.bf16 %v738_v39 }
 0x14d   :  { %1266 = vst [vmem:[#allocation2 + $0x340] sm:$0xff] %v1138_v53  ;;  %v1076_v58 = vmax.f32 %v948_v54, 0.0 }
 0x14e   :  { %1267 = vst [vmem:[#allocation2 + $0x348] sm:$0xff] %v1139_v55  ;;  %v1077_v60 = vmax.f32 %v949_v56, 0.0  ;;  %v517_v61 = vpop.f32.mrf.mxu2  ;;  %v770_v56 = vld [vmem:[%s2146_s3 + $0x1c0] sm:$0xff] }
 0x14f   :  { %1204 = vst [vmem:[#allocation2 + $0x150] sm:$0xff] %v1076_v58  ;;  %v518_v63 = vadd.f32 %v517_v61, %v1771_v2  ;;  %v686_v0 = vpop.f32.mrf.mxu3  ;;  %v739_v61 = vld [vmem:[%s2146_s3 + $0xc8] sm:$0xff] }
 0x150   :  { %1205 = vst [vmem:[#allocation2 + $0x158] sm:$0xff] %v1077_v60  ;;  %v687_v4 = vadd.f32 %v686_v0, %v1773_v3  ;;  %v440_v5 = vpop.f32.mrf.mxu0 }
 0x151   :  { %v1012_v7 = vadd.f32 %v884_v59, %v518_v63  ;;  %v441_v8 = vadd.f32 %v440_v5, %v1771_v2  ;;  %v609_v9 = vpop.f32.mrf.mxu1  ;;  %v890_v63 = vunpack.c.l.bf16 %v770_v56 }
 0x152   :  { %v1013_v10 = vadd.f32 %v885_v62, %v687_v4  ;;  %v610_v11 = vadd.f32 %v609_v9, %v1773_v3  ;;  %v891_v4 = vunpack.c.h.bf16 %v770_v56 }
 0x153   :  { %v1140_v13 = vmax.f32 %v1012_v7, 0.0  ;;  %v950_v14 = vadd.f32 %v822_v1, %v441_v8  ;;  %v828_v7 = vunpack.c.l.bf16 %v739_v61 }
 0x154   :  { %v1141_v15 = vmax.f32 %v1013_v10, 0.0  ;;  %v951_v16 = vadd.f32 %v823_v6, %v610_v11  ;;  %v829_v10 = vunpack.c.h.bf16 %v739_v61 }
 0x155   :  { %1268 = vst [vmem:[#allocation2 + $0x350] sm:$0xff] %v1140_v13  ;;  %v1078_v18 = vmax.f32 %v950_v14, 0.0 }
 0x156   :  { %1269 = vst [vmem:[#allocation2 + $0x358] sm:$0xff] %v1141_v15  ;;  %v1079_v20 = vmax.f32 %v951_v16, 0.0  ;;  %v520_v21 = vpop.f32.mrf.mxu2  ;;  %v771_v16 = vld [vmem:[%s2146_s3 + $0x1c8] sm:$0xff] }
 0x157   :  { %1206 = vst [vmem:[#allocation2 + $0x160] sm:$0xff] %v1078_v18  ;;  %v521_v23 = vadd.f32 %v520_v21, %v1771_v2  ;;  %v689_v24 = vpop.f32.mrf.mxu3  ;;  %v740_v21 = vld [vmem:[%s2146_s3 + $0xd0] sm:$0xff] }
 0x158   :  { %1207 = vst [vmem:[#allocation2 + $0x168] sm:$0xff] %v1079_v20  ;;  %v690_v26 = vadd.f32 %v689_v24, %v1773_v3  ;;  %v442_v27 = vpop.f32.mrf.mxu0 }
 0x159   :  { %v1014_v29 = vadd.f32 %v886_v19, %v521_v23  ;;  %v443_v30 = vadd.f32 %v442_v27, %v1771_v2  ;;  %v611_v31 = vpop.f32.mrf.mxu1  ;;  %v892_v23 = vunpack.c.l.bf16 %v771_v16 }
 0x15a   :  { %v1015_v32 = vadd.f32 %v887_v22, %v690_v26  ;;  %v612_v33 = vadd.f32 %v611_v31, %v1773_v3  ;;  %v893_v26 = vunpack.c.h.bf16 %v771_v16 }
 0x15b   :  { %v1142_v35 = vmax.f32 %v1014_v29, 0.0  ;;  %v952_v36 = vadd.f32 %v824_v25, %v443_v30  ;;  %v830_v29 = vunpack.c.l.bf16 %v740_v21 }
 0x15c   :  { %v1143_v37 = vmax.f32 %v1015_v32, 0.0  ;;  %v953_v38 = vadd.f32 %v825_v28, %v612_v33  ;;  %v831_v32 = vunpack.c.h.bf16 %v740_v21 }
 0x15d   :  { %1270 = vst [vmem:[#allocation2 + $0x360] sm:$0xff] %v1142_v35  ;;  %v1080_v40 = vmax.f32 %v952_v36, 0.0 }
 0x15e   :  { %1271 = vst [vmem:[#allocation2 + $0x368] sm:$0xff] %v1143_v37  ;;  %v1081_v42 = vmax.f32 %v953_v38, 0.0  ;;  %v522_v43 = vpop.f32.mrf.mxu2  ;;  %v772_v38 = vld [vmem:[%s2146_s3 + $0x1d0] sm:$0xff] }
 0x15f   :  { %1208 = vst [vmem:[#allocation2 + $0x170] sm:$0xff] %v1080_v40  ;;  %v523_v45 = vadd.f32 %v522_v43, %v1771_v2  ;;  %v691_v46 = vpop.f32.mrf.mxu3  ;;  %v741_v43 = vld [vmem:[%s2146_s3 + $0xd8] sm:$0xff] }
 0x160   :  { %1209 = vst [vmem:[#allocation2 + $0x178] sm:$0xff] %v1081_v42  ;;  %v692_v48 = vadd.f32 %v691_v46, %v1773_v3  ;;  %v445_v49 = vpop.f32.mrf.mxu0 }
 0x161   :  { %v1016_v51 = vadd.f32 %v888_v41, %v523_v45  ;;  %v446_v52 = vadd.f32 %v445_v49, %v1771_v2  ;;  %v614_v53 = vpop.f32.mrf.mxu1  ;;  %v894_v45 = vunpack.c.l.bf16 %v772_v38 }
 0x162   :  { %v1017_v54 = vadd.f32 %v889_v44, %v692_v48  ;;  %v615_v55 = vadd.f32 %v614_v53, %v1773_v3  ;;  %v895_v48 = vunpack.c.h.bf16 %v772_v38 }
 0x163   :  { %v1144_v57 = vmax.f32 %v1016_v51, 0.0  ;;  %v954_v58 = vadd.f32 %v826_v47, %v446_v52  ;;  %v832_v51 = vunpack.c.l.bf16 %v741_v43 }
 0x164   :  { %v1145_v59 = vmax.f32 %v1017_v54, 0.0  ;;  %v955_v60 = vadd.f32 %v827_v50, %v615_v55  ;;  %v833_v54 = vunpack.c.h.bf16 %v741_v43 }
 0x165   :  { %1272 = vst [vmem:[#allocation2 + $0x370] sm:$0xff] %v1144_v57  ;;  %v1082_v62 = vmax.f32 %v954_v58, 0.0 }
 0x166   :  { %1273 = vst [vmem:[#allocation2 + $0x378] sm:$0xff] %v1145_v59  ;;  %v1083_v0 = vmax.f32 %v955_v60, 0.0  ;;  %v525_v1 = vpop.f32.mrf.mxu2  ;;  %v773_v60 = vld [vmem:[%s2146_s3 + $0x1d8] sm:$0xff] }
 0x167   :  { %1210 = vst [vmem:[#allocation2 + $0x180] sm:$0xff] %v1082_v62  ;;  %v526_v5 = vadd.f32 %v525_v1, %v1771_v2  ;;  %v694_v6 = vpop.f32.mrf.mxu3  ;;  %v742_v1 = vld [vmem:[%s2146_s3 + $0xe0] sm:$0xff] }
 0x168   :  { %1211 = vst [vmem:[#allocation2 + $0x188] sm:$0xff] %v1083_v0  ;;  %v695_v8 = vadd.f32 %v694_v6, %v1773_v3  ;;  %v447_v9 = vpop.f32.mrf.mxu0 }
 0x169   :  { %v1018_v11 = vadd.f32 %v890_v63, %v526_v5  ;;  %v448_v12 = vadd.f32 %v447_v9, %v1771_v2  ;;  %v616_v13 = vpop.f32.mrf.mxu1  ;;  %v896_v5 = vunpack.c.l.bf16 %v773_v60 }
 0x16a   :  { %v1019_v14 = vadd.f32 %v891_v4, %v695_v8  ;;  %v617_v15 = vadd.f32 %v616_v13, %v1773_v3  ;;  %v897_v8 = vunpack.c.h.bf16 %v773_v60 }
 0x16b   :  { %v1146_v17 = vmax.f32 %v1018_v11, 0.0  ;;  %v956_v18 = vadd.f32 %v828_v7, %v448_v12  ;;  %v834_v11 = vunpack.c.l.bf16 %v742_v1 }
 0x16c   :  { %v1147_v19 = vmax.f32 %v1019_v14, 0.0  ;;  %v957_v20 = vadd.f32 %v829_v10, %v617_v15  ;;  %v835_v14 = vunpack.c.h.bf16 %v742_v1 }
 0x16d   :  { %1274 = vst [vmem:[#allocation2 + $0x380] sm:$0xff] %v1146_v17  ;;  %v1084_v22 = vmax.f32 %v956_v18, 0.0 }
 0x16e   :  { %1275 = vst [vmem:[#allocation2 + $0x388] sm:$0xff] %v1147_v19  ;;  %v1085_v24 = vmax.f32 %v957_v20, 0.0  ;;  %v527_v25 = vpop.f32.mrf.mxu2  ;;  %v774_v20 = vld [vmem:[%s2146_s3 + $0x1e0] sm:$0xff] }
 0x16f   :  { %1212 = vst [vmem:[#allocation2 + $0x190] sm:$0xff] %v1084_v22  ;;  %v528_v27 = vadd.f32 %v527_v25, %v1771_v2  ;;  %v696_v28 = vpop.f32.mrf.mxu3  ;;  %v743_v25 = vld [vmem:[%s2146_s3 + $0xe8] sm:$0xff] }
 0x170   :  { %1213 = vst [vmem:[#allocation2 + $0x198] sm:$0xff] %v1085_v24  ;;  %v697_v30 = vadd.f32 %v696_v28, %v1773_v3  ;;  %v450_v31 = vpop.f32.mrf.mxu0 }
 0x171   :  { %v1020_v33 = vadd.f32 %v892_v23, %v528_v27  ;;  %v451_v34 = vadd.f32 %v450_v31, %v1771_v2  ;;  %v619_v35 = vpop.f32.mrf.mxu1  ;;  %v898_v27 = vunpack.c.l.bf16 %v774_v20 }
 0x172   :  { %v1021_v36 = vadd.f32 %v893_v26, %v697_v30  ;;  %v620_v37 = vadd.f32 %v619_v35, %v1773_v3  ;;  %v899_v30 = vunpack.c.h.bf16 %v774_v20 }
 0x173   :  { %v1148_v39 = vmax.f32 %v1020_v33, 0.0  ;;  %v958_v40 = vadd.f32 %v830_v29, %v451_v34  ;;  %v836_v33 = vunpack.c.l.bf16 %v743_v25 }
 0x174   :  { %v1149_v41 = vmax.f32 %v1021_v36, 0.0  ;;  %v959_v42 = vadd.f32 %v831_v32, %v620_v37  ;;  %v837_v36 = vunpack.c.h.bf16 %v743_v25 }
 0x175   :  { %1276 = vst [vmem:[#allocation2 + $0x390] sm:$0xff] %v1148_v39  ;;  %v1086_v44 = vmax.f32 %v958_v40, 0.0 }
 0x176   :  { %1277 = vst [vmem:[#allocation2 + $0x398] sm:$0xff] %v1149_v41  ;;  %v1087_v46 = vmax.f32 %v959_v42, 0.0  ;;  %v530_v47 = vpop.f32.mrf.mxu2  ;;  %v775_v42 = vld [vmem:[%s2146_s3 + $0x1e8] sm:$0xff] }
 0x177   :  { %1214 = vst [vmem:[#allocation2 + $0x1a0] sm:$0xff] %v1086_v44  ;;  %v531_v49 = vadd.f32 %v530_v47, %v1771_v2  ;;  %v699_v50 = vpop.f32.mrf.mxu3  ;;  %v744_v47 = vld [vmem:[%s2146_s3 + $0xf0] sm:$0xff] }
 0x178   :  { %1215 = vst [vmem:[#allocation2 + $0x1a8] sm:$0xff] %v1087_v46  ;;  %v700_v52 = vadd.f32 %v699_v50, %v1773_v3  ;;  %v452_v53 = vpop.f32.mrf.mxu0 }
 0x179   :  { %v1022_v55 = vadd.f32 %v894_v45, %v531_v49  ;;  %v453_v56 = vadd.f32 %v452_v53, %v1771_v2  ;;  %v621_v57 = vpop.f32.mrf.mxu1  ;;  %v900_v49 = vunpack.c.l.bf16 %v775_v42 }
 0x17a   :  { %v1023_v58 = vadd.f32 %v895_v48, %v700_v52  ;;  %v622_v59 = vadd.f32 %v621_v57, %v1773_v3  ;;  %v901_v52 = vunpack.c.h.bf16 %v775_v42 }
 0x17b   :  { %v1150_v61 = vmax.f32 %v1022_v55, 0.0  ;;  %v960_v62 = vadd.f32 %v832_v51, %v453_v56  ;;  %v838_v55 = vunpack.c.l.bf16 %v744_v47 }
 0x17c   :  { %v1151_v63 = vmax.f32 %v1023_v58, 0.0  ;;  %v961_v0 = vadd.f32 %v833_v54, %v622_v59  ;;  %v839_v58 = vunpack.c.h.bf16 %v744_v47 }
 0x17d   :  { %1278 = vst [vmem:[#allocation2 + $0x3a0] sm:$0xff] %v1150_v61  ;;  %v1088_v4 = vmax.f32 %v960_v62, 0.0 }
 0x17e   :  { %1279 = vst [vmem:[#allocation2 + $0x3a8] sm:$0xff] %v1151_v63  ;;  %v1089_v6 = vmax.f32 %v961_v0, 0.0  ;;  %v532_v7 = vpop.f32.mrf.mxu2  ;;  %v776_v0 = vld [vmem:[%s2146_s3 + $0x1f0] sm:$0xff] }
 0x17f   :  { %1216 = vst [vmem:[#allocation2 + $0x1b0] sm:$0xff] %v1088_v4  ;;  %v533_v9 = vadd.f32 %v532_v7, %v1771_v2  ;;  %v701_v10 = vpop.f32.mrf.mxu3  ;;  %v745_v7 = vld [vmem:[%s2146_s3 + $0xf8] sm:$0xff] }
 0x180   :  { %1217 = vst [vmem:[#allocation2 + $0x1b8] sm:$0xff] %v1089_v6  ;;  %v702_v12 = vadd.f32 %v701_v10, %v1773_v3  ;;  %v455_v13 = vpop.f32.mrf.mxu0 }
 0x181   :  { %v1024_v15 = vadd.f32 %v896_v5, %v533_v9  ;;  %v456_v16 = vadd.f32 %v455_v13, %v1771_v2  ;;  %v624_v17 = vpop.f32.mrf.mxu1  ;;  %v902_v9 = vunpack.c.l.bf16 %v776_v0 }
 0x182   :  { %v1025_v18 = vadd.f32 %v897_v8, %v702_v12  ;;  %v625_v19 = vadd.f32 %v624_v17, %v1773_v3  ;;  %v903_v12 = vunpack.c.h.bf16 %v776_v0 }
 0x183   :  { %v1152_v21 = vmax.f32 %v1024_v15, 0.0  ;;  %v962_v22 = vadd.f32 %v834_v11, %v456_v16  ;;  %v840_v15 = vunpack.c.l.bf16 %v745_v7 }
 0x184   :  { %v1153_v23 = vmax.f32 %v1025_v18, 0.0  ;;  %v963_v24 = vadd.f32 %v835_v14, %v625_v19  ;;  %v841_v18 = vunpack.c.h.bf16 %v745_v7 }
 0x185   :  { %1280 = vst [vmem:[#allocation2 + $0x3b0] sm:$0xff] %v1152_v21  ;;  %v1090_v26 = vmax.f32 %v962_v22, 0.0 }
 0x186   :  { %1281 = vst [vmem:[#allocation2 + $0x3b8] sm:$0xff] %v1153_v23  ;;  %v1091_v28 = vmax.f32 %v963_v24, 0.0  ;;  %v535_v29 = vpop.f32.mrf.mxu2  ;;  %v777_v24 = vld [vmem:[%s2146_s3 + $0x1f8] sm:$0xff]  ;;  %s1294_s3 = sshll.u32 %s1593_s23, 4  ;;  %s1295_s3 = int_to_ptr.vmem [resolvable:$true] %s1294_s3 }
 0x187   :  { %1218 = vst [vmem:[#allocation2 + $0x1c0] sm:$0xff] %v1090_v26  ;;  %v536_v31 = vadd.f32 %v535_v29, %v1771_v2  ;;  %v704_v32 = vpop.f32.mrf.mxu3 }
 0x188   :  { %1219 = vst [vmem:[#allocation2 + $0x1c8] sm:$0xff] %v1091_v28  ;;  %v705_v34 = vadd.f32 %v704_v32, %v1773_v3  ;;  %v457_v35 = vpop.f32.mrf.mxu0 }
 0x189   :  { %v1026_v37 = vadd.f32 %v898_v27, %v536_v31  ;;  %v458_v38 = vadd.f32 %v457_v35, %v1771_v2  ;;  %v626_v39 = vpop.f32.mrf.mxu1 }
 0x18a   :  { %v1027_v40 = vadd.f32 %v899_v30, %v705_v34  ;;  %v627_v41 = vadd.f32 %v626_v39, %v1773_v3  ;;  %v904_v30 = vunpack.c.l.bf16 %v777_v24 }
 0x18b   :  { %v1154_v43 = vmax.f32 %v1026_v37, 0.0  ;;  %v964_v44 = vadd.f32 %v836_v33, %v458_v38  ;;  %v905_v33 = vunpack.c.h.bf16 %v777_v24 }
 0x18c   :  { %v1155_v45 = vmax.f32 %v1027_v40, 0.0  ;;  %v965_v46 = vadd.f32 %v837_v36, %v627_v41 }
 0x18d   :  { %1282 = vst [vmem:[#allocation2 + $0x3c0] sm:$0xff] %v1154_v43  ;;  %v1092_v48 = vmax.f32 %v964_v44, 0.0 }
 0x18e   :  { %1283 = vst [vmem:[#allocation2 + $0x3c8] sm:$0xff] %v1155_v45  ;;  %v1093_v50 = vmax.f32 %v965_v46, 0.0  ;;  %v537_v51 = vpop.f32.mrf.mxu2 }
 0x18f   :  { %1220 = vst [vmem:[#allocation2 + $0x1d0] sm:$0xff] %v1092_v48  ;;  %v538_v53 = vadd.f32 %v537_v51, %v1771_v2  ;;  %v706_v54 = vpop.f32.mrf.mxu3 }
 0x190   :  { %1221 = vst [vmem:[#allocation2 + $0x1d8] sm:$0xff] %v1093_v50  ;;  %v707_v56 = vadd.f32 %v706_v54, %v1773_v3  ;;  %v460_v57 = vpop.f32.mrf.mxu0 }
 0x191   :  { %v1028_v59 = vadd.f32 %v900_v49, %v538_v53  ;;  %v461_v60 = vadd.f32 %v460_v57, %v1771_v2  ;;  %v629_v61 = vpop.f32.mrf.mxu1 }
 0x192   :  { %v1029_v62 = vadd.f32 %v901_v52, %v707_v56  ;;  %v630_v63 = vadd.f32 %v629_v61, %v1773_v3 }
 0x193   :  { %v1156_v1 = vmax.f32 %v1028_v59, 0.0  ;;  %v966_v4 = vadd.f32 %v838_v55, %v461_v60 }
 0x194   :  { %v1157_v5 = vmax.f32 %v1029_v62, 0.0  ;;  %v967_v6 = vadd.f32 %v839_v58, %v630_v63 }
 0x195   :  { %1284 = vst [vmem:[#allocation2 + $0x3d0] sm:$0xff] %v1156_v1  ;;  %v1094_v8 = vmax.f32 %v966_v4, 0.0 }
 0x196   :  { %1285 = vst [vmem:[#allocation2 + $0x3d8] sm:$0xff] %v1157_v5  ;;  %v1095_v10 = vmax.f32 %v967_v6, 0.0  ;;  %v540_v11 = vpop.f32.mrf.mxu2 }
 0x197   :  { %1222 = vst [vmem:[#allocation2 + $0x1e0] sm:$0xff] %v1094_v8  ;;  %v541_v13 = vadd.f32 %v540_v11, %v1771_v2  ;;  %v709_v14 = vpop.f32.mrf.mxu3 }
 0x198   :  { %1223 = vst [vmem:[#allocation2 + $0x1e8] sm:$0xff] %v1095_v10  ;;  %v710_v16 = vadd.f32 %v709_v14, %v1773_v3  ;;  %v462_v17 = vpop.f32.mrf.mxu0 }
 0x199   :  { %v1030_v19 = vadd.f32 %v902_v9, %v541_v13  ;;  %v463_v20 = vadd.f32 %v462_v17, %v1771_v2  ;;  %v631_v21 = vpop.f32.mrf.mxu1 }
 0x19a   :  { %v1031_v22 = vadd.f32 %v903_v12, %v710_v16  ;;  %v632_v23 = vadd.f32 %v631_v21, %v1773_v3 }
 0x19b   :  { %v1158_v25 = vmax.f32 %v1030_v19, 0.0  ;;  %v968_v26 = vadd.f32 %v840_v15, %v463_v20 }
 0x19c   :  { %v1159_v27 = vmax.f32 %v1031_v22, 0.0  ;;  %v969_v28 = vadd.f32 %v841_v18, %v632_v23 }
 0x19d   :  { %1286 = vst [vmem:[#allocation2 + $0x3e0] sm:$0xff] %v1158_v25  ;;  %v1096_v29 = vmax.f32 %v968_v26, 0.0 }
 0x19e   :  { %1287 = vst [vmem:[#allocation2 + $0x3e8] sm:$0xff] %v1159_v27  ;;  %v1097_v31 = vmax.f32 %v969_v28, 0.0  ;;  %v542_v32 = vpop.f32.mrf.mxu2 }
 0x19f   :  { %1224 = vst [vmem:[#allocation2 + $0x1f0] sm:$0xff] %v1096_v29  ;;  %v543_v34 = vadd.f32 %v542_v32, %v1771_v2  ;;  %v711_v35 = vpop.f32.mrf.mxu3 }
 0x1a0   :  { %1225 = vst [vmem:[#allocation2 + $0x1f8] sm:$0xff] %v1097_v31  ;;  %v712_v36 = vadd.f32 %v711_v35, %v1773_v3 }
 0x1a1   :  { %v1032_v37 = vadd.f32 %v904_v30, %v543_v34 }
 0x1a2   :  { %v1033_v38 = vadd.f32 %v905_v33, %v712_v36 }
 0x1a3   :  { %v1160_v39 = vmax.f32 %v1032_v37, 0.0 }
 0x1a4   :  { %v1161_v40 = vmax.f32 %v1033_v38, 0.0 }
 0x1a5   :  { %1288 = vst [vmem:[#allocation2 + $0x3f0] sm:$0xff] %v1160_v39 }
 0x1a6   :  { %1289 = vst [vmem:[#allocation2 + $0x3f8] sm:$0xff] %v1161_v40 }
 0x1a7   :  { %1302 = dma.vmem_to_hbm [thread:$0]  %s1295_s3, 16384, %s1297_s26, [#allocation3], %s1594_s27, %s1594_s27, %s1595_s28  }
 0x1a8   :  { %1591 = dma.done.wait [#allocation3], 16384  }
 0x1a9   :  { %1592 = vsyncadd [#allocation3], 4294950912 }
 0x1aa   :  { %1307 = vsyncpa [#allocation3], 1 }

// kernel: bottleneck_forward.5
= control target key start
LH: loop header
LB: loop body
LE: loop exit
PB: predicated region body
PF: predicated region fallthrough
CT: control target
= control target key end

     0   :  { %s5709_s12 = smov 0   ;;  %s7146_s0 = inlined_call_operand.vmem [shape: bf16[1,2,18,18,128], index: 0, kind: input, shape index: {}]   ;;  %s7147_s1 = inlined_call_operand.vmem [shape: bf16[9,128,128], index: 1, kind: input, shape index: {}]   ;;  %s7148_s2 = inlined_call_operand.vmem [shape: f32[1,128], index: 2, kind: input, shape index: {}]   ;;  %s7149_s3 = inlined_call_operand.vmem [shape: bf16[2,16,16,128], index: 3, kind: output, shape index: {}]  }
   0x1 LB: > { %s4519_s13 = sadd.s32 4294967295, %s5687_s12   ;;  %p4523_p0 = scmp.ge.s32.totalorder %s5687_s12, 1  ;;  %s5687_s12 = sphi %s5709_s12, %s13_s12  }
   0x2   : > { %p137_p1 = scmp.lt.s32.totalorder %s5687_s12, 3 }
   0x4   : > { %p138_p2 = pnand %p4523_p0, %p137_p1 }
   0x6   : > { %141 = sbr.rel (%p138_p2) target bundleno = 760 (0x2f8), region = 32 }
   0xb   : > { %v5409_v0 = vld [vmem:[%s7147_s1 + $0x78] sm:$0xff]  ;;  %p161_p3 = scmp.lt.s32.totalorder %s4519_s13, 1  ;;  %v5408_v1 = vld [vmem:[%s7147_s1 + $0x70] sm:$0xff]  ;;  %v5407_v2 = vld [vmem:[%s7147_s1 + $0x68] sm:$0xff]  ;;  %vm235_vm0 = vsmask.f32 3328 }
   0xc   : > { %5593 = vmatpush.bf16.msra.mxu1 %v5409_v0  ;;  %5594 = vmatpush.bf16.msra.mxu2 %v5409_v0  ;;  %vm236_vm1 = vsmask.f32 7440  ;;  %v5406_v6 = vld [vmem:[%s7147_s1 + $0x60] sm:$0xff]  ;;  %v5405_v35 = vld [vmem:[%s7147_s1 + $0x58] sm:$0xff]  ;;  %v5404_v54 = vld [vmem:[%s7147_s1 + $0x50] sm:$0xff]  ;;  %vm1121_vm3 = vcmask 1042432  }
   0xd   : > { %s7159_s13 = smov (!%p161_p3, %s4519_s13), 1  ;;  %5595 = vmatpush.bf16.msra.mxu3 %v5409_v0  ;;  %751 = vmatpush.bf16.msra.mxu0 %v5409_v0  ;;  %vm5747_vm2 = vmor %vm235_vm0, %vm236_vm1  ;;  %vm1122_vm4 = vcmask 1046532  }
   0xe   : > { %s5617_s18 = smul.u32 216, %s7159_s13  ;;  %vm6047_vm5 = vmor %vm1121_vm3, %vm1122_vm4  ;;  %s5377_s19 = sshll.u32 %s7159_s13, 7 }
   0xf   : > { %s6909_s21 = scalar_lea.vmem %s7149_s3, %s5377_s19 }
  0x10   : > { %5596 = vmatpush.bf16.msra.mxu1 %v5408_v1  ;;  %5597 = vmatpush.bf16.msra.mxu2 %v5408_v1  ;;  %s5732_s23 = scalar_lea.vmem %s7146_s0, %s5617_s18 }
  0x11   : > { %5598 = vmatpush.bf16.msra.mxu3 %v5408_v1  ;;  %752 = vmatpush.bf16.msra.mxu0 %v5408_v1  ;;  %v179_v3 = vld [vmem:[%s5732_s23 + $0x30] sm:$0xf]  ;;  %v180_v4 = vld [vmem:[%s5732_s23 + $0x34] sm:$0xf]  ;;  %v223_v5 = vld [vmem:[%s5732_s23 + $0x38] sm:$0x1] }
  0x12   : > { %v335_v7 = vshrl.u32 %v179_v3, 16  ;;  %v338_v8 = vshll.u32 %v179_v3, 16  ;;  %v344_v9 = vshll.u32 %v180_v4, 16  ;;  %v348_v10 = vshrl.u32 %v180_v4, 16  ;;  %v187_v11 = vld [vmem:[%s5732_s23 + $0x60] sm:$0xf] }
  0x13   : > { %v354_v12 = vshll.u32 %v223_v5, 16  ;;  %v188_v13 = vld [vmem:[%s5732_s23 + $0x64] sm:$0xf]  ;;  %v227_v14 = vld [vmem:[%s5732_s23 + $0x68] sm:$0x1]  ;;  %v431_v15 = vshrl.u32 %v187_v11, 16 }
  0x14   : > { %5599 = vmatpush.bf16.msra.mxu1 %v5407_v2  ;;  %5600 = vmatpush.bf16.msra.mxu2 %v5407_v2  ;;  %v337_v16 = vrot.slane %v335_v7, 4  ;;  %v340_v17 = vrot.slane %v338_v8, 5  ;;  %v346_v18 = vrot.slane %v344_v9, 5  ;;  %v350_v19 = vrot.slane %v348_v10, 4  ;;  %v195_v20 = vld [vmem:[%s5732_s23 + $0x90] sm:$0xf] }
  0x15   : > { %5601 = vmatpush.bf16.msra.mxu3 %v5407_v2  ;;  %753 = vmatpush.bf16.msra.mxu0 %v5407_v2  ;;  %v356_v21 = vrot.slane %v354_v12, 5  ;;  %v433_v22 = vrot.slane %v431_v15, 4  ;;  %v434_v23 = vshll.u32 %v187_v11, 16  ;;  %v440_v24 = vshll.u32 %v188_v13, 16  ;;  %v196_v29 = vld [vmem:[%s5732_s23 + $0x94] sm:$0xf] }
  0x16   : > { %v341_v25 = vor.u32 %v340_v17, %v337_v16  ;;  %v351_v26 = vor.u32 %v350_v19, %v346_v18  ;;  %v444_v27 = vshrl.u32 %v188_v13, 16  ;;  %v450_v28 = vshll.u32 %v227_v14, 16  ;;  %v231_v41 = vld [vmem:[%s5732_s23 + $0x98] sm:$0x1]  ;;  %v171_v49 = vld [vmem:[%s5732_s23] sm:$0xf] }
  0x17   : > { %v436_v31 = vrot.slane %v434_v23, 5  ;;  %v442_v32 = vrot.slane %v440_v24, 5  ;;  %v527_v33 = vshrl.u32 %v195_v20, 16  ;;  %v530_v34 = vshll.u32 %v195_v20, 16  ;;  %v5772_v62 = vld [vmem:[%s5732_s23 + $0x4] sm:$0xf] }
  0x18   : > { %5602 = vmatpush.bf16.msra.mxu1 %v5406_v6  ;;  %5603 = vmatpush.bf16.msra.mxu2 %v5406_v6  ;;  %v342_v36 = vrot.slane %v341_v25, 4  ;;  %v352_v37 = vrot.slane %v351_v26, 4  ;;  %v446_v38 = vrot.slane %v444_v27, 4  ;;  %v452_v39 = vrot.slane %v450_v28, 5  ;;  %v5779_v4 = vld [vmem:[%s5732_s23 + $0x8] sm:$0x1] }
  0x19   : > { %5604 = vmatpush.bf16.msra.mxu3 %v5406_v6  ;;  %754 = vmatpush.bf16.msra.mxu0 %v5406_v6  ;;  %v437_v40 = vor.u32 %v436_v31, %v433_v22  ;;  %v529_v42 = vrot.slane %v527_v33, 4  ;;  %v532_v43 = vrot.slane %v530_v34, 5  ;;  %v536_v44 = vshll.u32 %v196_v29, 16  ;;  %v181_v5 = vld [vmem:[%s5732_s23 + $0x3c] sm:$0xf]  ;;  %v5403_v10 = vld [vmem:[%s7147_s1 + $0x48] sm:$0xff] }
  0x1a   : > { %v347_v45 = vsel %vm5747_vm2, %v342_v36, %v346_v18  ;;  %v357_v46 = vsel %vm5747_vm2, %v352_v37, %v356_v21  ;;  %v447_v47 = vor.u32 %v446_v38, %v442_v32  ;;  %v540_v48 = vshrl.u32 %v196_v29, 16  ;;  %v182_v15 = vld [vmem:[%s5732_s23 + $0x40] sm:$0xf]  ;;  %v224_v19 = vld [vmem:[%s5732_s23 + $0x44] sm:$0x1]  ;;  %v5417_v37 = vld [vmem:[%s7147_s1 + $0xb8] sm:$0xff] }
  0x1b   : > { %v5760_v50 = vunpack.c.l.b16 %v347_v45  ;;  %v5762_v51 = vunpack.c.l.b16 %v357_v46  ;;  %v438_v52 = vrot.slane %v437_v40, 4  ;;  %v533_v53 = vor.u32 %v532_v43, %v529_v42  ;;  %v189_v25 = vld [vmem:[%s5732_s23 + $0x6c] sm:$0xf]  ;;  %v5402_v31 = vld [vmem:[%s7147_s1 + $0x40] sm:$0xff]  ;;  %v190_v40 = vld [vmem:[%s5732_s23 + $0x70] sm:$0xf] }
  0x1c   : > { %5605 = vmatpush.bf16.msra.mxu1 %v5405_v35  ;;  %5606 = vmatpush.bf16.msra.mxu2 %v5405_v35  ;;  %v448_v55 = vrot.slane %v447_v47, 4  ;;  %v538_v56 = vrot.slane %v536_v44, 5  ;;  %v542_v57 = vrot.slane %v540_v48, 4  ;;  %v546_v58 = vshll.u32 %v231_v41, 16  ;;  %v5441_v43 = vld [vmem:[%s7147_s1 + $0xf8] sm:$0xff] }
  0x1d   : > { %5607 = vmatpush.bf16.msra.mxu3 %v5405_v35  ;;  %755 = vmatpush.bf16.msra.mxu0 %v5405_v35  ;;  %v675_v59 = vpack.c.b16 %v5762_v51, %v5760_v50  ;;  %v443_v60 = vsel %vm5747_vm2, %v438_v52, %v442_v32  ;;  %v534_v61 = vrot.slane %v533_v53, 4  ;;  %v239_v63 = vshrl.u32 %v171_v49, 16  ;;  %v228_v47 = vld [vmem:[%s5732_s23 + $0x74] sm:$0x1] }
  0x1e   : > { %v453_v0 = vsel %vm5747_vm2, %v448_v55, %v452_v39  ;;  %v5776_v1 = vunpack.c.l.b16 %v443_v60  ;;  %v543_v2 = vor.u32 %v542_v57, %v538_v56  ;;  %v548_v3 = vrot.slane %v546_v58, 5  ;;  %v5401_v57 = vld [vmem:[%s7147_s1 + $0x38] sm:$0xff] }
  0x1f   : > { %v5782_v6 = vunpack.c.l.b16 %v453_v0  ;;  %v539_v7 = vsel %vm5747_vm2, %v534_v61, %v538_v56  ;;  %v241_v8 = vrot.slane %v239_v63, 4  ;;  %v242_v9 = vshll.u32 %v171_v49, 16  ;;  %v5416_v63 = vld [vmem:[%s7147_s1 + $0xb0] sm:$0xff] }
  0x20   : > { %5608 = vmatpush.bf16.msra.mxu1 %v5404_v54  ;;  %5609 = vmatpush.bf16.msra.mxu2 %v5404_v54  ;;  %v544_v11 = vrot.slane %v543_v2, 4  ;;  %v5789_v12 = vunpack.c.l.b16 %v539_v7  ;;  %v248_v13 = vshll.u32 %v5772_v62, 16  ;;  %v252_v14 = vshrl.u32 %v5772_v62, 16 }
  0x21   : > { %5610 = vmatpush.bf16.msra.mxu3 %v5404_v54  ;;  %756 = vmatpush.bf16.msra.mxu0 %v5404_v54  ;;  %v679_v16 = vpack.c.b16 %v5782_v6, %v5776_v1  ;;  %v244_v17 = vrot.slane %v242_v9, 5  ;;  %v258_v18 = vshll.u32 %v5779_v4, 16  ;;  %v359_v20 = vshrl.u32 %v181_v5, 16  ;;  %v197_v54 = vld [vmem:[%s5732_s23 + $0x9c] sm:$0xf] }
  0x22   : > { %v549_v21 = vsel %vm5747_vm2, %v544_v11, %v548_v3  ;;  %v250_v22 = vrot.slane %v248_v13, 5  ;;  %v254_v23 = vrot.slane %v252_v14, 4  ;;  %v362_v24 = vshll.u32 %v181_v5, 16  ;;  %v5440_v3 = vld [vmem:[%s7147_s1 + $0xf0] sm:$0xff]  ;;  %v5449_v11 = vld [vmem:[%s7147_s1 + $0x138] sm:$0xff] }
  0x23   : > { %v664_v26 = vunpack.c.l.b16 %v549_v21  ;;  %v245_v27 = vor.u32 %v244_v17, %v241_v8  ;;  %v260_v28 = vrot.slane %v258_v18, 5  ;;  %v361_v29 = vrot.slane %v359_v20, 4  ;;  %v198_v8 = vld [vmem:[%s5732_s23 + $0xa0] sm:$0xf]  ;;  %v173_v17 = vld [vmem:[%s5732_s23 + $0xc] sm:$0xf] }
  0x24   : > { %5611 = vmatpush.bf16.msra.mxu1 %v5403_v10  ;;  %5612 = vmatpush.bf16.msra.mxu2 %v5403_v10  ;;  %v255_v32 = vor.u32 %v254_v23, %v250_v22  ;;  %v364_v33 = vrot.slane %v362_v24, 5  ;;  %v368_v34 = vshll.u32 %v182_v15, 16  ;;  %v372_v35 = vshrl.u32 %v182_v15, 16  ;;  %v232_v15 = vld [vmem:[%s5732_s23 + $0xa4] sm:$0x1]  ;;  %v5400_v18 = vld [vmem:[%s7147_s1 + $0x30] sm:$0xff] }
  0x25   : > { %5613 = vmatpush.bf16.msra.mxu3 %v5403_v10  ;;  %757 = vmatpush.bf16.msra.mxu0 %v5403_v10  ;;  %v683_v36 = vpack.c.b16 %v664_v26, %v5789_v12  ;;  %v246_v38 = vrot.slane %v245_v27, 4  ;;  %v378_v39 = vshll.u32 %v224_v19, 16  ;;  %v455_v41 = vshrl.u32 %v189_v25, 16  ;;  %v5415_v23 = vld [vmem:[%s7147_s1 + $0xa8] sm:$0xff]  ;;  %v5851_v27 = vld [vmem:[%s5732_s23 + $0x10] sm:$0xf] }
  0x26   : > { %v256_v42 = vrot.slane %v255_v32, 4  ;;  %v365_v44 = vor.u32 %v364_v33, %v361_v29  ;;  %v370_v45 = vrot.slane %v368_v34, 5  ;;  %v374_v46 = vrot.slane %v372_v35, 4  ;;  %v5439_v29 = vld [vmem:[%s7147_s1 + $0xe8] sm:$0xff]  ;;  %v5861_v35 = vld [vmem:[%s5732_s23 + $0x14] sm:$0x1] }
  0x27   : > { %v251_v48 = vsel %vm5747_vm2, %v246_v38, %v250_v22  ;;  %v380_v49 = vrot.slane %v378_v39, 5  ;;  %v457_v52 = vrot.slane %v455_v41, 4  ;;  %v458_v53 = vshll.u32 %v189_v25, 16  ;;  %v5399_v41 = vld [vmem:[%s7147_s1 + $0x28] sm:$0xff] }
  0x28   : > { %5614 = vmatpush.bf16.msra.mxu1 %v5402_v31  ;;  %5615 = vmatpush.bf16.msra.mxu2 %v5402_v31  ;;  %v261_v55 = vsel %vm5747_vm2, %v256_v42, %v260_v28  ;;  %v639_v56 = vunpack.c.l.b16 %v251_v48  ;;  %v366_v58 = vrot.slane %v365_v44, 4  ;;  %v375_v60 = vor.u32 %v374_v46, %v370_v45  ;;  %v183_v46 = vld [vmem:[%s5732_s23 + $0x48] sm:$0xf] }
  0x29   : > { %5616 = vmatpush.bf16.msra.mxu3 %v5402_v31  ;;  %758 = vmatpush.bf16.msra.mxu0 %v5402_v31  ;;  %v640_v61 = vunpack.c.l.b16 %v261_v55  ;;  %v460_v0 = vrot.slane %v458_v53, 5  ;;  %v464_v1 = vshll.u32 %v190_v40, 16  ;;  %v468_v2 = vshrl.u32 %v190_v40, 16  ;;  %v5414_v53 = vld [vmem:[%s7147_s1 + $0xa0] sm:$0xff] }
  0x2a   : > { %v371_v5 = vsel %vm5747_vm2, %v366_v58, %v370_v45  ;;  %v376_v6 = vrot.slane %v375_v60, 4  ;;  %v474_v7 = vshll.u32 %v228_v47, 16  ;;  %v551_v9 = vshrl.u32 %v197_v54, 16  ;;  %v5447_v60 = vld [vmem:[%s7147_s1 + $0x128] sm:$0xff] }
  0x2b   : > { %779 = vmatmul.bf16.vlgmr.msra.gmra.mxu1 %v675_v59  ;;  %799 = vmatmul.bf16.vlgmr.msra.gmra.mxu2 %v679_v16  ;;  %v671_v10 = vpack.c.b16 %v640_v61, %v639_v56  ;;  %v5836_v12 = vunpack.c.l.b16 %v371_v5  ;;  %v461_v13 = vor.u32 %v460_v0, %v457_v52  ;;  %v466_v14 = vrot.slane %v464_v1, 5  ;;  %v5398_v61 = vld [vmem:[%s7147_s1 + $0x20] sm:$0xff] }
  0x2c   : > { %1365 = vmatpush.bf16.msrb.mxu2 %v5417_v37  ;;  %819 = vmatmul.bf16.vlgmr.msra.gmra.mxu3 %v683_v36  ;;  %v381_v50 = vsel %vm5747_vm2, %v376_v6, %v380_v49  ;;  %v470_v51 = vrot.slane %v468_v2, 4  ;;  %v476_v59 = vrot.slane %v474_v7, 5  ;;  %v553_v16 = vrot.slane %v551_v9, 4  ;;  %v5448_v36 = vld [vmem:[%s7147_s1 + $0x130] sm:$0xff]  ;;  %v5890_v2 = vld [vmem:[%s5732_s23 + $0x4c] sm:$0xf] }
  0x2d   : > { %1680 = vmatpush.bf16.msrb.mxu3 %v5441_v43  ;;  %984 = vmatpush.bf16.msrb.mxu1 %v5401_v57  ;;  %v5845_v19 = vunpack.c.l.b16 %v381_v50  ;;  %v462_v20 = vrot.slane %v461_v13, 4  ;;  %v554_v21 = vshll.u32 %v197_v54, 16  ;;  %v560_v22 = vshll.u32 %v198_v8, 16  ;;  %v5438_v54 = vld [vmem:[%s7147_s1 + $0xe0] sm:$0xff] }
  0x2e   : > { %759 = vmatmul.bf16.vlgmr.msra.gmra.mxu0 %v671_v10  ;;  %v471_v24 = vor.u32 %v470_v51, %v466_v14  ;;  %v564_v25 = vshrl.u32 %v198_v8, 16  ;;  %v570_v26 = vshll.u32 %v232_v15, 16  ;;  %v263_v28 = vshrl.u32 %v173_v17, 16  ;;  %v225_v8 = vld [vmem:[%s5732_s23 + $0x50] sm:$0x1] }
  0x2f   : > { %2362 = vmatpush.bf16.msrb.mxu0 %v5449_v11  ;;  %v676_v31 = vpack.c.b16 %v5845_v19, %v5836_v12  ;;  %v467_v32 = vsel %vm5747_vm2, %v462_v20, %v466_v14  ;;  %v556_v33 = vrot.slane %v554_v21, 5  ;;  %v562_v34 = vrot.slane %v560_v22, 5  ;;  %v191_v10 = vld [vmem:[%s5732_s23 + $0x78] sm:$0xf] }
  0x30   : > { %1366 = vmatpush.bf16.msrb.mxu2 %v5416_v63  ;;  %v472_v37 = vrot.slane %v471_v24, 4  ;;  %v5866_v38 = vunpack.c.l.b16 %v467_v32  ;;  %v566_v39 = vrot.slane %v564_v25, 4  ;;  %v572_v40 = vrot.slane %v570_v26, 5  ;;  %v5446_v24 = vld [vmem:[%s7147_s1 + $0x120] sm:$0xff]  ;;  %v192_v32 = vld [vmem:[%s5732_s23 + $0x7c] sm:$0xf] }
  0x31   : > { %1681 = vmatpush.bf16.msrb.mxu3 %v5440_v3  ;;  %985 = vmatpush.bf16.msrb.mxu1 %v5400_v18  ;;  %v557_v42 = vor.u32 %v556_v33, %v553_v16  ;;  %v265_v43 = vrot.slane %v263_v28, 4  ;;  %v266_v44 = vshll.u32 %v173_v17, 16  ;;  %v272_v45 = vshll.u32 %v5851_v27, 16  ;;  %v5413_v17 = vld [vmem:[%s7147_s1 + $0x98] sm:$0xff]  ;;  %v229_v33 = vld [vmem:[%s5732_s23 + $0x80] sm:$0x1] }
  0x32   : > { %v477_v47 = vsel %vm5747_vm2, %v472_v37, %v476_v59  ;;  %v567_v48 = vor.u32 %v566_v39, %v562_v34  ;;  %v276_v49 = vshrl.u32 %v5851_v27, 16  ;;  %v282_v52 = vshll.u32 %v5861_v35, 16  ;;  %v5437_v18 = vld [vmem:[%s7147_s1 + $0xd8] sm:$0xff] }
  0x33   : > { %v658_v55 = vunpack.c.l.b16 %v477_v47  ;;  %v558_v56 = vrot.slane %v557_v42, 4  ;;  %v268_v57 = vrot.slane %v266_v44, 5  ;;  %v274_v58 = vrot.slane %v272_v45, 5  ;;  %2363 = vmatpush.bf16.msrb.mxu0 %v5448_v36  ;;  %v5436_v42 = vld [vmem:[%s7147_s1 + $0xd0] sm:$0xff] }
  0x34   : > { %1367 = vmatpush.bf16.msrb.mxu2 %v5415_v23  ;;  %v568_v63 = vrot.slane %v567_v48, 4  ;;  %v278_v0 = vrot.slane %v276_v49, 4  ;;  %v284_v1 = vrot.slane %v282_v52, 5  ;;  %v383_v3 = vshrl.u32 %v183_v46, 16 }
  0x35   : > { %1682 = vmatpush.bf16.msrb.mxu3 %v5439_v29  ;;  %986 = vmatpush.bf16.msrb.mxu1 %v5399_v41  ;;  %v680_v5 = vpack.c.b16 %v658_v55, %v5866_v38  ;;  %v563_v6 = vsel %vm5747_vm2, %v558_v56, %v562_v34  ;;  %v269_v7 = vor.u32 %v268_v57, %v265_v43  ;;  %v386_v9 = vshll.u32 %v183_v46, 16  ;;  %v5397_v34 = vld [vmem:[%s7147_s1 + $0x18] sm:$0xff]  ;;  %v5412_v41 = vld [vmem:[%s7147_s1 + $0x90] sm:$0xff] }
  0x36   : > { %v573_v11 = vsel %vm5747_vm2, %v568_v63, %v572_v40  ;;  %v665_v13 = vunpack.c.l.b16 %v563_v6  ;;  %v279_v14 = vor.u32 %v278_v0, %v274_v58  ;;  %v385_v15 = vrot.slane %v383_v3, 4  ;;  %v199_v40 = vld [vmem:[%s5732_s23 + $0xa8] sm:$0xf]  ;;  %v5396_v56 = vld [vmem:[%s7147_s1 + $0x10] sm:$0xff]  ;;  %v175_v6 = vld [vmem:[%s5732_s23 + $0x18] sm:$0xf] }
  0x37   : > { %v666_v50 = vunpack.c.l.b16 %v573_v11  ;;  %v270_v51 = vrot.slane %v269_v7, 4  ;;  %2364 = vmatpush.bf16.msrb.mxu0 %v5447_v60  ;;  %v388_v59 = vrot.slane %v386_v9, 5  ;;  %v392_v16 = vshll.u32 %v5890_v2, 16  ;;  %v233_v63 = vld [vmem:[%s5732_s23 + $0xb0] sm:$0x1] }
  0x38   : > { %1368 = vmatpush.bf16.msrb.mxu2 %v5414_v53  ;;  %v280_v20 = vrot.slane %v279_v14, 4  ;;  %v396_v21 = vshrl.u32 %v5890_v2, 16  ;;  %v402_v22 = vshll.u32 %v225_v8, 16  ;;  %v479_v23 = vshrl.u32 %v191_v10, 16  ;;  %v5445_v53 = vld [vmem:[%s7147_s1 + $0x118] sm:$0xff] }
  0x39   : > { %1683 = vmatpush.bf16.msrb.mxu3 %v5438_v54  ;;  %987 = vmatpush.bf16.msrb.mxu1 %v5398_v61  ;;  %v684_v25 = vpack.c.b16 %v666_v50, %v665_v13  ;;  %v275_v26 = vsel %vm5747_vm2, %v270_v51, %v274_v58  ;;  %v389_v28 = vor.u32 %v388_v59, %v385_v15  ;;  %v394_v29 = vrot.slane %v392_v16, 5  ;;  %v5948_v59 = vld [vmem:[%s5732_s23 + $0x1c] sm:$0xf] }
  0x3a   : > { %v285_v36 = vsel %vm5747_vm2, %v280_v20, %v284_v1  ;;  %v641_v37 = vunpack.c.l.b16 %v275_v26  ;;  %v398_v38 = vrot.slane %v396_v21, 4  ;;  %v404_v39 = vrot.slane %v402_v22, 5 }
  0x3b   : > { %784 = vmatmul.bf16.gmra.mxu1 %v676_v31  ;;  %804 = vmatmul.bf16.gmra.mxu2 %v680_v5  ;;  %v642_v43 = vunpack.c.l.b16 %v285_v36  ;;  %v390_v44 = vrot.slane %v389_v28, 4  ;;  %v481_v45 = vrot.slane %v479_v23, 4  ;;  %v482_v46 = vshll.u32 %v191_v10, 16  ;;  %v200_v31 = vld [vmem:[%s5732_s23 + $0xac] sm:$0xf] }
  0x3c   : > { %1369 = vmatpush.bf16.msrb.mxu2 %v5413_v17  ;;  %824 = vmatmul.bf16.gmra.mxu3 %v684_v25  ;;  %v399_v47 = vor.u32 %v398_v38, %v394_v29  ;;  %v488_v48 = vshll.u32 %v192_v32, 16  ;;  %v492_v49 = vshrl.u32 %v192_v32, 16  ;;  %v498_v52 = vshll.u32 %v229_v33, 16  ;;  %v5411_v17 = vld [vmem:[%s7147_s1 + $0x88] sm:$0xff]  ;;  %v185_v25 = vld [vmem:[%s5732_s23 + $0x54] sm:$0xf] }
  0x3d   : > { %1684 = vmatpush.bf16.msrb.mxu3 %v5437_v18  ;;  %2365 = vmatpush.bf16.msrb.mxu0 %v5446_v24  ;;  %v672_v54 = vpack.c.b16 %v642_v43, %v641_v37  ;;  %v395_v12 = vsel %vm5747_vm2, %v390_v44, %v394_v29  ;;  %v484_v19 = vrot.slane %v482_v46, 5  ;;  %v575_v55 = vshrl.u32 %v199_v40, 16  ;;  %v5954_v24 = vld [vmem:[%s5732_s23 + $0x20] sm:$0x1]  ;;  %v5435_v38 = vld [vmem:[%s7147_s1 + $0xc8] sm:$0xff] }
  0x3e   : > { %988 = vmatpush.bf16.msrb.mxu1 %v5397_v34  ;;  %v400_v57 = vrot.slane %v399_v47, 4  ;;  %v5938_v58 = vunpack.c.l.b16 %v395_v12  ;;  %v490_v60 = vrot.slane %v488_v48, 5  ;;  %v494_v61 = vrot.slane %v492_v49, 4 }
  0x3f   : > { %764 = vmatmul.bf16.gmra.mxu0 %v672_v54  ;;  %v485_v0 = vor.u32 %v484_v19, %v481_v45  ;;  %v500_v1 = vrot.slane %v498_v52, 5  ;;  %v577_v3 = vrot.slane %v575_v55, 4  ;;  %v578_v5 = vshll.u32 %v199_v40, 16  ;;  %v5395_v40 = vld [vmem:[%s7147_s1 + $0x8] sm:$0xff]  ;;  %v5410_v45 = vld [vmem:[%s7147_s1 + $0x80] sm:$0xff] }
  0x40   : > { %1370 = vmatpush.bf16.msrb.mxu2 %v5412_v41  ;;  %v405_v7 = vsel %vm5747_vm2, %v400_v57, %v404_v39  ;;  %v495_v8 = vor.u32 %v494_v61, %v490_v60  ;;  %v584_v9 = vshll.u32 %v200_v31, 16  ;;  %v588_v10 = vshrl.u32 %v200_v31, 16  ;;  %v5444_v39 = vld [vmem:[%s7147_s1 + $0x110] sm:$0xff]  ;;  %v5977_v52 = vld [vmem:[%s5732_s23 + $0x58] sm:$0xf]  ;;  %v5443_v57 = vld [vmem:[%s7147_s1 + $0x108] sm:$0xff] }
  0x41   : > { %1685 = vmatpush.bf16.msrb.mxu3 %v5436_v42  ;;  %2366 = vmatpush.bf16.msrb.mxu0 %v5445_v53  ;;  %v652_v11 = vunpack.c.l.b16 %v405_v7  ;;  %v486_v13 = vrot.slane %v485_v0, 4  ;;  %v580_v14 = vrot.slane %v578_v5, 5  ;;  %v594_v15 = vshll.u32 %v233_v63, 16  ;;  %v5980_v53 = vld [vmem:[%s5732_s23 + $0x5c] sm:$0x1]  ;;  %v5394_v0 = vld [vmem:[%s7147_s1] sm:$0xff] }
  0x42   : > { %989 = vmatpush.bf16.msrb.mxu1 %v5396_v56  ;;  %v496_v18 = vrot.slane %v495_v8, 4  ;;  %v586_v50 = vrot.slane %v584_v9, 5  ;;  %v590_v51 = vrot.slane %v588_v10, 4  ;;  %v287_v16 = vshrl.u32 %v175_v6, 16  ;;  %v193_v55 = vld [vmem:[%s5732_s23 + $0x84] sm:$0xf] }
  0x43   : > { %v677_v20 = vpack.c.b16 %v652_v11, %v5938_v58  ;;  %v491_v21 = vsel %vm5747_vm2, %v486_v13, %v490_v60  ;;  %v581_v22 = vor.u32 %v580_v14, %v577_v3  ;;  %v596_v23 = vrot.slane %v594_v15, 5  ;;  %v5434_v56 = vld [vmem:[%s7147_s1 + $0xc0] sm:$0xff]  ;;  %v194_v10 = vld [vmem:[%s5732_s23 + $0x88] sm:$0xf] }
  0x44   : > { %1371 = vmatpush.bf16.msrb.mxu2 %v5411_v17  ;;  %v501_v26 = vsel %vm5747_vm2, %v496_v18, %v500_v1  ;;  %v659_v28 = vunpack.c.l.b16 %v491_v21  ;;  %v591_v29 = vor.u32 %v590_v51, %v586_v50  ;;  %v289_v32 = vrot.slane %v287_v16, 4  ;;  %v5442_v18 = vld [vmem:[%s7147_s1 + $0x100] sm:$0xff]  ;;  %v230_v16 = vld [vmem:[%s5732_s23 + $0x8c] sm:$0x1] }
  0x45   : > { %v660_v33 = vunpack.c.l.b16 %v501_v26  ;;  %v582_v34 = vrot.slane %v581_v22, 4  ;;  %v290_v36 = vshll.u32 %v175_v6, 16  ;;  %v296_v37 = vshll.u32 %v5948_v59, 16  ;;  %1686 = vmatpush.bf16.msrb.mxu3 %v5435_v38  ;;  %2367 = vmatpush.bf16.msrb.mxu0 %v5444_v39  ;;  %v201_v22 = vld [vmem:[%s5732_s23 + $0xb4] sm:$0xf] }
  0x46   : > { %v592_v41 = vrot.slane %v591_v29, 4  ;;  %v300_v42 = vshrl.u32 %v5948_v59, 16  ;;  %v306_v43 = vshll.u32 %v5954_v24, 16  ;;  %v407_v44 = vshrl.u32 %v185_v25, 16  ;;  %990 = vmatpush.bf16.msrb.mxu1 %v5395_v40  ;;  %v202_v39 = vld [vmem:[%s5732_s23 + $0xb8] sm:$0xf] }
  0x47   : > { %v681_v46 = vpack.c.b16 %v660_v33, %v659_v28  ;;  %v587_v47 = vsel %vm5747_vm2, %v582_v34, %v586_v50  ;;  %v292_v48 = vrot.slane %v290_v36, 5  ;;  %v298_v49 = vrot.slane %v296_v37, 5 }
  0x48   : > { %v597_v54 = vsel %vm5747_vm2, %v592_v41, %v596_v23  ;;  %v667_v12 = vunpack.c.l.b16 %v587_v47  ;;  %v302_v19 = vrot.slane %v300_v42, 4  ;;  %v308_v31 = vrot.slane %v306_v43, 5  ;;  %1372 = vmatpush.bf16.msrb.mxu2 %v5410_v45  ;;  %v234_v45 = vld [vmem:[%s5732_s23 + $0xbc] sm:$0x1] }
  0x49   : > { %v668_v58 = vunpack.c.l.b16 %v597_v54  ;;  %v293_v60 = vor.u32 %v292_v48, %v289_v32  ;;  %v409_v61 = vrot.slane %v407_v44, 4  ;;  %v410_v63 = vshll.u32 %v185_v25, 16  ;;  %1687 = vmatpush.bf16.msrb.mxu3 %v5434_v56  ;;  %2368 = vmatpush.bf16.msrb.mxu0 %v5443_v57  ;;  %v5481_v47 = vld [vmem:[%s7147_s1 + $0x1b8] sm:$0xff] }
  0x4a   : > { %v303_v1 = vor.u32 %v302_v19, %v298_v49  ;;  %v416_v3 = vshll.u32 %v5977_v52, 16  ;;  %v420_v5 = vshrl.u32 %v5977_v52, 16  ;;  %v426_v6 = vshll.u32 %v5980_v53, 16  ;;  %991 = vmatpush.bf16.msrb.mxu1 %v5394_v0 }
  0x4b   : > { %789 = vmatmul.bf16.gmra.mxu1 %v677_v20  ;;  %809 = vmatmul.bf16.gmra.mxu2 %v681_v46  ;;  %v685_v7 = vpack.c.b16 %v668_v58, %v667_v12  ;;  %v294_v8 = vrot.slane %v293_v60, 4  ;;  %v412_v9 = vrot.slane %v410_v63, 5  ;;  %v503_v11 = vshrl.u32 %v193_v55, 16  ;;  %v177_v46 = vld [vmem:[%s5732_s23 + $0x24] sm:$0xf] }
  0x4c   : > { %v304_v13 = vrot.slane %v303_v1, 4  ;;  %v418_v14 = vrot.slane %v416_v3, 5  ;;  %v422_v15 = vrot.slane %v420_v5, 4  ;;  %v428_v17 = vrot.slane %v426_v6, 5  ;;  %3103 = vmatpush.bf16.msra.mxu2 %v5481_v47  ;;  %v5489_v6 = vld [vmem:[%s7147_s1 + $0x1f8] sm:$0xff] }
  0x4d   : > { %829 = vmatmul.bf16.gmra.mxu3 %v685_v7  ;;  %v299_v50 = vsel %vm5747_vm2, %v294_v8, %v298_v49  ;;  %v413_v51 = vor.u32 %v412_v9, %v409_v61  ;;  %v505_v20 = vrot.slane %v503_v11, 4  ;;  %v506_v21 = vshll.u32 %v193_v55, 16  ;;  %2369 = vmatpush.bf16.msrb.mxu0 %v5442_v18  ;;  %v6018_v61 = vld [vmem:[%s5732_s23 + $0x28] sm:$0xf]  ;;  %v5457_v7 = vld [vmem:[%s7147_s1 + $0x178] sm:$0xff] }
  0x4e   : > { %v309_v23 = vsel %vm5747_vm2, %v304_v13, %v308_v31  ;;  %v643_v25 = vunpack.c.l.b16 %v299_v50  ;;  %v423_v26 = vor.u32 %v422_v15, %v418_v14  ;;  %v512_v28 = vshll.u32 %v194_v10, 16  ;;  %v5497_v8 = vld [vmem:[%s7147_s1 + $0x238] sm:$0xff]  ;;  %3785 = vmatpush.bf16.msra.mxu3 %v5489_v6  ;;  %2788 = vmatpush.bf16.msra.mxu1 %v5457_v7 }
  0x4f   : > { %v644_v29 = vunpack.c.l.b16 %v309_v23  ;;  %v414_v32 = vrot.slane %v413_v51, 4  ;;  %v508_v33 = vrot.slane %v506_v21, 5  ;;  %v516_v34 = vshrl.u32 %v194_v10, 16 }
  0x50   : > { %v424_v36 = vrot.slane %v423_v26, 4  ;;  %v514_v37 = vrot.slane %v512_v28, 5  ;;  %v522_v38 = vshll.u32 %v230_v16, 16  ;;  %v599_v40 = vshrl.u32 %v201_v22, 16  ;;  %v1073_v26 = vld [vmem:[%s5732_s23] sm:$0xe] }
  0x51   : > { %v673_v41 = vpack.c.b16 %v644_v29, %v643_v25  ;;  %v419_v42 = vsel %vm5747_vm2, %v414_v32, %v418_v14  ;;  %v509_v43 = vor.u32 %v508_v33, %v505_v20  ;;  %v518_v44 = vrot.slane %v516_v34, 4  ;;  %v6032_v14 = vld [vmem:[%s5732_s23 + $0x2c] sm:$0x1]  ;;  %4211 = vmatpush.bf16.msra.mxu0 %v5497_v8 }
  0x52   : > { %v429_v48 = vsel %vm5747_vm2, %v424_v36, %v428_v17  ;;  %v653_v49 = vunpack.c.l.b16 %v419_v42  ;;  %v524_v54 = vrot.slane %v522_v38, 5  ;;  %v601_v12 = vrot.slane %v599_v40, 4  ;;  %v4879_v38 = vld [vmem:[%s5732_s23 + $0xc] sm:$0xf] }
  0x53   : > { %769 = vmatmul.bf16.gmra.mxu0 %v673_v41  ;;  %v654_v19 = vunpack.c.l.b16 %v429_v48  ;;  %v510_v31 = vrot.slane %v509_v43, 4  ;;  %v519_v55 = vor.u32 %v518_v44, %v514_v37  ;;  %v602_v56 = vshll.u32 %v201_v22, 16 }
  0x54   : > { %v608_v57 = vshll.u32 %v202_v39, 16  ;;  %v612_v58 = vshrl.u32 %v202_v39, 16  ;;  %v618_v60 = vshll.u32 %v234_v45, 16  ;;  %v311_v63 = vshrl.u32 %v177_v46, 16  ;;  %v4880_v39 = vld [vmem:[%s5732_s23 + $0x10] sm:$0xf] }
  0x55   : > { %v678_v0 = vpack.c.b16 %v654_v19, %v653_v49  ;;  %v515_v1 = vsel %vm5747_vm2, %v510_v31, %v514_v37  ;;  %v520_v3 = vrot.slane %v519_v55, 4  ;;  %v604_v5 = vrot.slane %v602_v56, 5 }
  0x56   : > { %v661_v9 = vunpack.c.l.b16 %v515_v1  ;;  %v610_v10 = vrot.slane %v608_v57, 5  ;;  %v614_v11 = vrot.slane %v612_v58, 4  ;;  %v620_v13 = vrot.slane %v618_v60, 5  ;;  %v4881_v58 = vld [vmem:[%s5732_s23 + $0x14] sm:$0x1] }
  0x57   : > { %v525_v15 = vsel %vm5747_vm2, %v520_v3, %v524_v54  ;;  %v605_v17 = vor.u32 %v604_v5, %v601_v12  ;;  %v313_v18 = vrot.slane %v311_v63, 4  ;;  %v314_v50 = vshll.u32 %v177_v46, 16 }
  0x58   : > { %v662_v51 = vunpack.c.l.b16 %v525_v15  ;;  %v615_v16 = vor.u32 %v614_v11, %v610_v10  ;;  %v320_v20 = vshll.u32 %v6018_v61, 16  ;;  %v324_v21 = vshrl.u32 %v6018_v61, 16 }
  0x59   : > { %v606_v22 = vrot.slane %v605_v17, 4  ;;  %v316_v23 = vrot.slane %v314_v50, 5  ;;  %v330_v25 = vshll.u32 %v6032_v14, 16  ;;  %v4671_v44 = vrot.slane %v1073_v26, 9  ;;  %v4882_v50 = vld [vmem:[%s5732_s23 + $0x18] sm:$0xf] }
  0x5a   : > { %v682_v28 = vpack.c.b16 %v662_v51, %v661_v9  ;;  %v616_v29 = vrot.slane %v615_v16, 4  ;;  %v322_v32 = vrot.slane %v320_v20, 5  ;;  %v326_v33 = vrot.slane %v324_v21, 4  ;;  %v5378_v51 = vld [vmem:[%s5732_s23] sm:$0xff]  ;;  %v4883_v16 = vld [vmem:[%s5732_s23 + $0x1c] sm:$0xf] }
  0x5b   : > { %794 = vmatmul.bf16.gmra.mxu1 %v678_v0  ;;  %v611_v34 = vsel %vm5747_vm2, %v606_v22, %v610_v10  ;;  %v317_v36 = vor.u32 %v316_v23, %v313_v18  ;;  %v332_v37 = vrot.slane %v330_v25, 5  ;;  %v1126_v47 = vrot.slane %v5772_v62, 5  ;;  %v1074_v21 = vld [vmem:[%s5732_s23 + $0xc] sm:$0xe] }
  0x5c   : > { %814 = vmatmul.bf16.gmra.mxu2 %v682_v28  ;;  %v621_v40 = vsel %vm5747_vm2, %v616_v29, %v620_v13  ;;  %v669_v41 = vunpack.c.l.b16 %v611_v34  ;;  %v327_v42 = vor.u32 %v326_v33, %v322_v32  ;;  %v1129_v48 = vrot.slane %v5779_v4, 5  ;;  %v5418_v34 = vld [vmem:[%s5732_s23 + $0xc] sm:$0xff] }
  0x5d   : > { %v670_v45 = vunpack.c.l.b16 %v621_v40  ;;  %v318_v46 = vrot.slane %v317_v36, 4  ;;  %v1850_v54 = vshrl.u32 %v4879_v38, 16  ;;  %v1853_v12 = vshll.u32 %v4879_v38, 16 }
  0x5e   : > { %v328_v49 = vrot.slane %v327_v42, 4  ;;  %v1859_v19 = vshll.u32 %v4880_v39, 16  ;;  %v1127_v56 = vsel %vm6047_vm5, %v4671_v44, %v1126_v47  ;;  %v1128_v57 = vrot.slane %v1126_v47, 4  ;;  %v4884_v44 = vld [vmem:[%s5732_s23 + $0x20] sm:$0x1] }
  0x5f   : > { %v686_v31 = vpack.c.b16 %v670_v45, %v669_v41  ;;  %v323_v55 = vsel %vm5747_vm2, %v318_v46, %v322_v32  ;;  %v1253_v62 = vunpack.c.l.b16 %v1127_v56  ;;  %v1852_v0 = vrot.slane %v1850_v54, 4  ;;  %v5456_v56 = vld [vmem:[%s7147_s1 + $0x170] sm:$0xff] }
  0x60   : > { %v333_v60 = vsel %vm5747_vm2, %v328_v49, %v332_v37  ;;  %v645_v63 = vunpack.c.l.b16 %v323_v55  ;;  %v1130_v1 = vsel %vm6047_vm5, %v1128_v57, %v1129_v48  ;;  %v1855_v3 = vrot.slane %v1853_v12, 5  ;;  %v5480_v48 = vld [vmem:[%s7147_s1 + $0x1b0] sm:$0xff]  ;;  %2789 = vmatpush.bf16.msra.mxu1 %v5456_v56 }
  0x61   : > { %834 = vmatmul.bf16.gmra.mxu3 %v686_v31  ;;  %v646_v4 = vunpack.c.l.b16 %v333_v60  ;;  %v1254_v5 = vunpack.c.l.b16 %v1130_v1  ;;  %v1861_v6 = vrot.slane %v1859_v19, 5  ;;  %v1863_v7 = vshrl.u32 %v4880_v39, 16  ;;  %3104 = vmatpush.bf16.msra.mxu2 %v5480_v48  ;;  %v4885_v31 = vld [vmem:[%s5732_s23 + $0x24] sm:$0xf]  ;;  %v5488_v55 = vld [vmem:[%s7147_s1 + $0x1f0] sm:$0xff] }
  0x62   : > { %v1869_v8 = vshll.u32 %v4881_v58, 16  ;;  %v1856_v10 = vor.u32 %v1855_v3, %v1852_v0  ;;  %v1133_v22 = vrot.slane %v5851_v27, 5  ;;  %v1874_v23 = vshrl.u32 %v4882_v50, 16  ;;  %v5496_v57 = vld [vmem:[%s7147_s1 + $0x230] sm:$0xff]  ;;  %3786 = vmatpush.bf16.msra.mxu3 %v5488_v55  ;;  %v1076_v48 = vld [vmem:[%s5732_s23 + $0x24] sm:$0xe] }
  0x63   : > { %v674_v9 = vpack.c.b16 %v646_v4, %v645_v63  ;;  %v1285_v11 = vpack.c.b16 %v1254_v5, %v1253_v62  ;;  %v1865_v13 = vrot.slane %v1863_v7, 4  ;;  %v1877_v25 = vshll.u32 %v4882_v50, 16  ;;  %v4886_v62 = vld [vmem:[%s5732_s23 + $0x28] sm:$0xf]  ;;  %v5379_v0 = vld [vmem:[%s5732_s23 + $0xc] sm:$0xff]  ;;  %4212 = vmatpush.bf16.msra.mxu0 %v5496_v57 }
  0x64   : > { %v1857_v15 = vrot.slane %v1856_v10, 4  ;;  %v1871_v18 = vrot.slane %v1869_v8, 5  ;;  %v1883_v29 = vshll.u32 %v4883_v16, 16  ;;  %v1887_v32 = vshrl.u32 %v4883_v16, 16 }
  0x65   : > { %774 = vmatmul.bf16.gmra.mxu0 %v674_v9  ;;  %v1866_v17 = vor.u32 %v1865_v13, %v1861_v6  ;;  %v4672_v33 = vrot.slane %v1074_v21, 9  ;;  %v1135_v38 = vrot.slane %v1133_v22, 4  ;;  %v1136_v27 = vrot.slane %v5861_v35, 5  ;;  %v4887_v21 = vld [vmem:[%s5732_s23 + $0x2c] sm:$0x1] }
  0x66   : > { %v1862_v26 = vsel %vm5747_vm2, %v1857_v15, %v1861_v6  ;;  %v1876_v39 = vrot.slane %v1874_v23, 4  ;;  %v1879_v40 = vrot.slane %v1877_v25, 5  ;;  %v1885_v41 = vrot.slane %v1883_v29, 5  ;;  %v1075_v6 = vld [vmem:[%s5732_s23 + $0x18] sm:$0xe] }
  0x67   : > { %v1867_v20 = vrot.slane %v1866_v17, 4  ;;  %v2250_v36 = vunpack.c.l.b16 %v1862_v26  ;;  %v1889_v42 = vrot.slane %v1887_v32, 4  ;;  %v1134_v46 = vsel %vm6047_vm5, %v4672_v33, %v1133_v22 }
  0x68   : > { %v1137_v47 = vsel %vm6047_vm5, %v1135_v38, %v1136_v27  ;;  %v1880_v35 = vor.u32 %v1879_v40, %v1876_v39  ;;  %v1893_v54 = vshll.u32 %v4884_v44, 16  ;;  %v1255_v12 = vunpack.c.l.b16 %v1134_v46  ;;  %v4889_v38 = vld [vmem:[%s5732_s23 + $0x34] sm:$0xf]  ;;  %v5380_v27 = vld [vmem:[%s5732_s23 + $0x18] sm:$0xff] }
  0x69   : > { %v1872_v28 = vsel %vm5747_vm2, %v1867_v20, %v1871_v18  ;;  %v1890_v49 = vor.u32 %v1889_v42, %v1885_v41  ;;  %v1256_v19 = vunpack.c.l.b16 %v1137_v47  ;;  %v1140_v1 = vrot.slane %v5948_v59, 5  ;;  %v5419_v18 = vld [vmem:[%s5732_s23 + $0x18] sm:$0xff] }
  0x6a   : > { %v2251_v37 = vunpack.c.l.b16 %v1872_v28  ;;  %v1881_v58 = vrot.slane %v1880_v35, 4  ;;  %v1895_v63 = vrot.slane %v1893_v54, 5  ;;  %v1898_v3 = vshrl.u32 %v4885_v31, 16 }
  0x6b   : > { %992 = vmatmul.bf16.vlgmr.msrb.gmra.mxu1 %v5378_v51  ;;  %v1891_v60 = vrot.slane %v1890_v49, 4  ;;  %v1286_v4 = vpack.c.b16 %v1256_v19, %v1255_v12  ;;  %v1901_v5 = vshll.u32 %v4885_v31, 16  ;;  %v1907_v7 = vshll.u32 %v4886_v62, 16  ;;  %v5420_v31 = vld [vmem:[%s5732_s23 + $0x24] sm:$0xff] }
  0x6c   : > { %1373 = vmatmul.bf16.vlgmr.msrb.gmra.mxu2 %v1285_v11  ;;  %v2282_v45 = vpack.c.b16 %v2251_v37, %v2250_v36  ;;  %v1911_v8 = vshrl.u32 %v4886_v62, 16  ;;  %v1886_v9 = vsel %vm5747_vm2, %v1881_v58, %v1885_v41  ;;  %v1143_v11 = vrot.slane %v5954_v24, 5  ;;  %v4888_v37 = vld [vmem:[%s5732_s23 + $0x30] sm:$0xf] }
  0x6d   : > { %v1896_v10 = vsel %vm5747_vm2, %v1891_v60, %v1895_v63  ;;  %v4673_v13 = vrot.slane %v1075_v6, 9  ;;  %v1142_v59 = vrot.slane %v1140_v1, 4  ;;  %v1900_v15 = vrot.slane %v1898_v3, 4  ;;  %v4891_v6 = vld [vmem:[%s5732_s23 + $0x3c] sm:$0xf] }
  0x6e   : > { %v1903_v17 = vrot.slane %v1901_v5, 5  ;;  %v2252_v50 = vunpack.c.l.b16 %v1886_v9  ;;  %v2253_v51 = vunpack.c.l.b16 %v1896_v10  ;;  %v1909_v16 = vrot.slane %v1907_v7, 5  ;;  %v4892_v7 = vld [vmem:[%s5732_s23 + $0x40] sm:$0xf] }
  0x6f   : > { %v1913_v20 = vrot.slane %v1911_v8, 4  ;;  %v1141_v22 = vsel %vm6047_vm5, %v4673_v13, %v1140_v1  ;;  %v1144_v25 = vsel %vm6047_vm5, %v1142_v59, %v1143_v11  ;;  %v1917_v28 = vshll.u32 %v4887_v21, 16  ;;  %v5479_v1 = vld [vmem:[%s7147_s1 + $0x1a8] sm:$0xff]  ;;  %v5627_v21 = vld [vmem:[%s5732_s23 + $0x34] sm:$0xf] }
  0x70   : > { %v1904_v23 = vor.u32 %v1903_v17, %v1900_v15  ;;  %v2283_v24 = vpack.c.b16 %v2253_v51, %v2252_v50  ;;  %v1257_v29 = vunpack.c.l.b16 %v1141_v22  ;;  %v1258_v32 = vunpack.c.l.b16 %v1144_v25  ;;  %3105 = vmatpush.bf16.msra.mxu2 %v5479_v1  ;;  %v5487_v11 = vld [vmem:[%s7147_s1 + $0x1e8] sm:$0xff]  ;;  %v1078_v1 = vld [vmem:[%s5732_s23 + $0x3c] sm:$0xe] }
  0x71   : > { %1688 = vmatmul.bf16.vlgmr.msrb.gmra.mxu3 %v5418_v34  ;;  %v1914_v26 = vor.u32 %v1913_v20, %v1909_v16  ;;  %v1919_v36 = vrot.slane %v1917_v28, 5  ;;  %v1922_v41 = vshrl.u32 %v4888_v37, 16  ;;  %v1925_v42 = vshll.u32 %v4888_v37, 16  ;;  %v5455_v13 = vld [vmem:[%s7147_s1 + $0x168] sm:$0xff]  ;;  %v5628_v37 = vld [vmem:[%s5732_s23 + $0x38] sm:$0x1] }
  0x72   : > { %v1905_v33 = vrot.slane %v1904_v23, 4  ;;  %v1287_v39 = vpack.c.b16 %v1258_v32, %v1257_v29  ;;  %v1931_v46 = vshll.u32 %v4889_v38, 16  ;;  %v1935_v47 = vshrl.u32 %v4889_v38, 16  ;;  %v5495_v59 = vld [vmem:[%s7147_s1 + $0x228] sm:$0xff]  ;;  %3787 = vmatpush.bf16.msra.mxu3 %v5487_v11  ;;  %2790 = vmatpush.bf16.msra.mxu1 %v5455_v13  ;;  %v5630_v13 = vld [vmem:[%s5732_s23 + $0x44] sm:$0x1] }
  0x73   : > { %v1915_v34 = vrot.slane %v1914_v26, 4  ;;  %v1150_v54 = vrot.slane %v6032_v14, 5  ;;  %v1924_v12 = vrot.slane %v1922_v41, 4  ;;  %v1927_v19 = vrot.slane %v1925_v42, 5  ;;  %v5381_v15 = vld [vmem:[%s5732_s23 + $0x24] sm:$0xff]  ;;  %4213 = vmatpush.bf16.msra.mxu0 %v5495_v59 }
  0x74   : > { %v1910_v40 = vsel %vm5747_vm2, %v1905_v33, %v1909_v16  ;;  %v4674_v55 = vrot.slane %v1076_v48, 9  ;;  %v1933_v57 = vrot.slane %v1931_v46, 5  ;;  %v1937_v58 = vrot.slane %v1935_v47, 4  ;;  %v5421_v33 = vld [vmem:[%s5732_s23 + $0x30] sm:$0xff] }
  0x75   : > { %2370 = vmatmul.bf16.vlgmr.msrb.gmra.mxu0 %v2282_v45  ;;  %v1920_v44 = vsel %vm5747_vm2, %v1915_v34, %v1919_v36  ;;  %v1147_v45 = vrot.slane %v6018_v61, 5  ;;  %v2254_v35 = vunpack.c.l.b16 %v1910_v40  ;;  %v4890_v61 = vld [vmem:[%s5732_s23 + $0x38] sm:$0x1]  ;;  %v1928_v63 = vor.u32 %v1927_v19, %v1924_v12  ;;  %v4894_v12 = vld [vmem:[%s5732_s23 + $0x48] sm:$0xf] }
  0x76   : > { %v2255_v49 = vunpack.c.l.b16 %v1920_v44  ;;  %v1938_v14 = vor.u32 %v1937_v58, %v1933_v57  ;;  %v1946_v17 = vshrl.u32 %v4891_v6, 16  ;;  %v1955_v51 = vshll.u32 %v4892_v7, 16  ;;  %v4895_v19 = vld [vmem:[%s5732_s23 + $0x4c] sm:$0xf] }
  0x77   : > { %v1149_v56 = vrot.slane %v1147_v45, 4  ;;  %v1148_v62 = vsel %vm6047_vm5, %v4674_v55, %v1147_v45  ;;  %v1929_v8 = vrot.slane %v1928_v63, 4  ;;  %v1154_v22 = vrot.slane %v5627_v21, 5 }
  0x78   : > { %v2284_v60 = vpack.c.b16 %v2255_v49, %v2254_v35  ;;  %v1259_v3 = vunpack.c.l.b16 %v1148_v62  ;;  %v1939_v9 = vrot.slane %v1938_v14, 4  ;;  %v1959_v23 = vshrl.u32 %v4892_v7, 16  ;;  %v5629_v62 = vld [vmem:[%s5732_s23 + $0x40] sm:$0xf] }
  0x79   : > { %v1934_v16 = vsel %vm5747_vm2, %v1929_v8, %v1933_v57  ;;  %v1948_v25 = vrot.slane %v1946_v17, 4  ;;  %v1957_v32 = vrot.slane %v1955_v51, 5  ;;  %v1156_v36 = vrot.slane %v1154_v22, 4 }
  0x7a   : > { %v2256_v28 = vunpack.c.l.b16 %v1934_v16  ;;  %v1157_v38 = vrot.slane %v5628_v37, 5  ;;  %v1970_v58 = vshrl.u32 %v4894_v12, 16  ;;  %v1983_v14 = vshrl.u32 %v4895_v19, 16  ;;  %v4898_v37 = vld [vmem:[%s5732_s23 + $0x58] sm:$0xf] }
  0x7b   : > { %997 = vmatmul.bf16.gmra.mxu1 %v5379_v0  ;;  %v1151_v0 = vsel %vm6047_vm5, %v1149_v56, %v1150_v54  ;;  %v1164_v59 = vrot.slane %v5630_v13, 5 }
  0x7c   : > { %1378 = vmatmul.bf16.gmra.mxu2 %v1286_v4  ;;  %v1941_v4 = vshll.u32 %v4890_v61, 16  ;;  %v1260_v5 = vunpack.c.l.b16 %v1151_v0  ;;  %v1158_v44 = vsel %vm6047_vm5, %v1156_v36, %v1157_v38  ;;  %v1973_v61 = vshll.u32 %v4894_v12, 16  ;;  %v5486_v38 = vld [vmem:[%s7147_s1 + $0x1e0] sm:$0xff] }
  0x7d   : > { %v1262_v35 = vunpack.c.l.b16 %v1158_v44  ;;  %v1161_v0 = vrot.slane %v5629_v62, 5  ;;  %3788 = vmatpush.bf16.msra.mxu3 %v5486_v38  ;;  %v2007_v12 = vshrl.u32 %v4898_v37, 16 }
  0x7e   : > { %v1943_v10 = vrot.slane %v1941_v4, 5  ;;  %v1288_v50 = vpack.c.b16 %v1260_v5, %v1259_v3  ;;  %v1975_v7 = vrot.slane %v1973_v61, 5 }
  0x7f   : > { %v1163_v11 = vrot.slane %v1161_v0, 4 }
  0x80   : > { %v1944_v20 = vsel %vm5747_vm2, %v1939_v9, %v1943_v10  ;;  %v5422_v9 = vld [vmem:[%s5732_s23 + $0x3c] sm:$0xff]  ;;  %v4676_v10 = vrot.slane %v1078_v1, 9 }
  0x81   : > { %1693 = vmatmul.bf16.gmra.mxu3 %v5419_v18  ;;  %v1949_v18 = vshll.u32 %v4891_v6, 16  ;;  %v2257_v29 = vunpack.c.l.b16 %v1944_v20  ;;  %v1972_v6 = vrot.slane %v1970_v58, 4 }
  0x82   : > { %v1162_v21 = vsel %vm6047_vm5, %v4676_v10, %v1161_v0 }
  0x83   : > { %v1951_v26 = vrot.slane %v1949_v18, 5  ;;  %v2285_v41 = vpack.c.b16 %v2257_v29, %v2256_v28  ;;  %v4896_v18 = vld [vmem:[%s5732_s23 + $0x50] sm:$0x1]  ;;  %v1976_v20 = vor.u32 %v1975_v7, %v1972_v6  ;;  %v1263_v28 = vunpack.c.l.b16 %v1162_v21 }
  0x85   : > { %2375 = vmatmul.bf16.gmra.mxu0 %v2283_v24  ;;  %v1077_v24 = vld [vmem:[%s5732_s23 + $0x30] sm:$0xe]  ;;  %v1952_v40 = vor.u32 %v1951_v26, %v1948_v25  ;;  %v5478_v25 = vld [vmem:[%s7147_s1 + $0x1a0] sm:$0xff] }
  0x86   : > { %v4675_v34 = vrot.slane %v1077_v24, 9  ;;  %v1989_v24 = vshll.u32 %v4896_v18, 16  ;;  %3106 = vmatpush.bf16.msra.mxu2 %v5478_v25 }
  0x87   : > { %v1953_v47 = vrot.slane %v1952_v40, 4 }
  0x88   : > { %v1155_v42 = vsel %vm6047_vm5, %v4675_v34, %v1154_v22  ;;  %v1165_v22 = vsel %vm6047_vm5, %v1163_v11, %v1164_v59  ;;  %v1991_v36 = vrot.slane %v1989_v24, 5 }
  0x89   : > { %v1261_v48 = vunpack.c.l.b16 %v1155_v42  ;;  %v1958_v55 = vsel %vm5747_vm2, %v1953_v47, %v1957_v32  ;;  %v1264_v29 = vunpack.c.l.b16 %v1165_v22  ;;  %v2003_v47 = vshll.u32 %v4898_v37, 16  ;;  %v4900_v22 = vld [vmem:[%s5732_s23 + $0x60] sm:$0xf] }
  0x8a   : > { %v2258_v3 = vunpack.c.l.b16 %v1958_v55  ;;  %v2021_v37 = vshll.u32 %v4900_v22, 16 }
  0x8b   : > { %1002 = vmatmul.bf16.gmra.mxu1 %v5380_v27  ;;  %v1961_v27 = vrot.slane %v1959_v23, 4  ;;  %v1289_v57 = vpack.c.b16 %v1262_v35, %v1261_v48  ;;  %v5494_v48 = vld [vmem:[%s7147_s1 + $0x220] sm:$0xff] }
  0x8c   : > { %1383 = vmatmul.bf16.gmra.mxu2 %v1287_v39  ;;  %v4893_v39 = vld [vmem:[%s5732_s23 + $0x44] sm:$0x1]  ;;  %4214 = vmatpush.bf16.msra.mxu0 %v5494_v48 }
  0x8d   : > { %v1962_v45 = vor.u32 %v1961_v27, %v1957_v32  ;;  %v1965_v46 = vshll.u32 %v4893_v39, 16  ;;  %v1977_v32 = vrot.slane %v1976_v20, 4  ;;  %v5454_v27 = vld [vmem:[%s7147_s1 + $0x160] sm:$0xff] }
  0x8e   : > { %2791 = vmatpush.bf16.msra.mxu1 %v5454_v27 }
  0x8f   : > { %v1963_v49 = vrot.slane %v1962_v45, 4  ;;  %v1967_v54 = vrot.slane %v1965_v46, 5  ;;  %v1290_v46 = vpack.c.b16 %v1264_v29, %v1263_v28  ;;  %v5384_v29 = vld [vmem:[%s5732_s23 + $0x48] sm:$0xff] }
  0x91   : > { %1698 = vmatmul.bf16.gmra.mxu3 %v5420_v31  ;;  %v5382_v31 = vld [vmem:[%s5732_s23 + $0x30] sm:$0xff]  ;;  %v1968_v63 = vsel %vm5747_vm2, %v1963_v49, %v1967_v54  ;;  %v1168_v54 = vrot.slane %v5890_v2, 5 }
  0x92   : > { %v2259_v5 = vunpack.c.l.b16 %v1968_v63  ;;  %v5423_v63 = vld [vmem:[%s5732_s23 + $0x48] sm:$0xff] }
  0x93   : > { %v1170_v0 = vrot.slane %v1168_v54, 4 }
  0x94   : > { %v2286_v51 = vpack.c.b16 %v2259_v5, %v2258_v3  ;;  %v2009_v3 = vrot.slane %v2007_v12, 4  ;;  %v4899_v5 = vld [vmem:[%s5732_s23 + $0x5c] sm:$0x1] }
  0x95   : > { %2380 = vmatmul.bf16.gmra.mxu0 %v2284_v60  ;;  %v1979_v60 = vshll.u32 %v4895_v19, 16  ;;  %v1079_v19 = vld [vmem:[%s5732_s23 + $0x48] sm:$0xe]  ;;  %v2013_v59 = vshll.u32 %v4899_v5, 16  ;;  %v5477_v5 = vld [vmem:[%s7147_s1 + $0x198] sm:$0xff] }
  0x96   : > { %v4677_v62 = vrot.slane %v1079_v19, 9  ;;  %3107 = vmatpush.bf16.msra.mxu2 %v5477_v5 }
  0x97   : > { %v1981_v8 = vrot.slane %v1979_v60, 5  ;;  %v2005_v60 = vrot.slane %v2003_v47, 5  ;;  %v2015_v21 = vrot.slane %v2013_v59, 5  ;;  %v4903_v59 = vld [vmem:[%s5732_s23 + $0x6c] sm:$0xf] }
  0x98   : > { %v1169_v10 = vsel %vm6047_vm5, %v4677_v62, %v1168_v54  ;;  %v5424_v54 = vld [vmem:[%s5732_s23 + $0x54] sm:$0xff] }
  0x99   : > { %v1982_v35 = vsel %vm5747_vm2, %v1977_v32, %v1981_v8  ;;  %v2010_v13 = vor.u32 %v2009_v3, %v2005_v60  ;;  %v1265_v18 = vunpack.c.l.b16 %v1169_v10 }
  0x9a   : > { %v2260_v58 = vunpack.c.l.b16 %v1982_v35  ;;  %v2023_v35 = vrot.slane %v2021_v37, 5  ;;  %v5632_v37 = vld [vmem:[%s5732_s23 + $0x64] sm:$0xf] }
  0x9b   : > { %1007 = vmatmul.bf16.gmra.mxu1 %v5381_v15  ;;  %v1985_v15 = vrot.slane %v1983_v14, 4  ;;  %v5631_v14 = vld [vmem:[%s5732_s23 + $0x50] sm:$0x1]  ;;  %v2011_v20 = vrot.slane %v2010_v13, 4 }
  0x9c   : > { %1388 = vmatmul.bf16.gmra.mxu2 %v1288_v50  ;;  %v1171_v1 = vrot.slane %v5631_v14, 5 }
  0x9d   : > { %v1986_v23 = vor.u32 %v1985_v15, %v1981_v8  ;;  %v2016_v27 = vsel %vm5747_vm2, %v2011_v20, %v2015_v21  ;;  %v5385_v20 = vld [vmem:[%s5732_s23 + $0x54] sm:$0xff]  ;;  %v4904_v21 = vld [vmem:[%s5732_s23 + $0x70] sm:$0xf] }
  0x9e   : > { %v1172_v11 = vsel %vm6047_vm5, %v1170_v0, %v1171_v1  ;;  %v2263_v47 = vunpack.c.l.b16 %v2016_v27  ;;  %v2045_v27 = vshll.u32 %v4903_v59, 16 }
  0x9f   : > { %v1987_v34 = vrot.slane %v1986_v23, 4  ;;  %v4901_v23 = vld [vmem:[%s5732_s23 + $0x64] sm:$0xf] }
  0xa0   : > { %v2027_v38 = vshll.u32 %v4901_v23, 16 }
  0xa1   : > { %1703 = vmatmul.bf16.gmra.mxu3 %v5421_v33  ;;  %v4897_v33 = vld [vmem:[%s5732_s23 + $0x54] sm:$0xf]  ;;  %v1992_v49 = vsel %vm5747_vm2, %v1987_v34, %v1991_v36  ;;  %v2018_v36 = vshrl.u32 %v4900_v22, 16 }
  0xa2   : > { %v1994_v42 = vshrl.u32 %v4897_v33, 16  ;;  %v1997_v44 = vshll.u32 %v4897_v33, 16  ;;  %v2261_v61 = vunpack.c.l.b16 %v1992_v49  ;;  %v2029_v49 = vrot.slane %v2027_v38, 5 }
  0xa3   : > { %v2020_v48 = vrot.slane %v2018_v36, 4  ;;  %v1182_v38 = vrot.slane %v5632_v37, 5 }
  0xa4   : > { %v1999_v55 = vrot.slane %v1997_v44, 5  ;;  %v2287_v8 = vpack.c.b16 %v2261_v61, %v2260_v58  ;;  %v1080_v44 = vld [vmem:[%s5732_s23 + $0x54] sm:$0xe]  ;;  %v4902_v61 = vld [vmem:[%s5732_s23 + $0x68] sm:$0x1] }
  0xa5   : > { %2385 = vmatmul.bf16.gmra.mxu0 %v2285_v41  ;;  %v5383_v41 = vld [vmem:[%s5732_s23 + $0x3c] sm:$0xff]  ;;  %v4678_v12 = vrot.slane %v1080_v44, 9  ;;  %v2024_v62 = vor.u32 %v2023_v35, %v2020_v48  ;;  %v2037_v3 = vshll.u32 %v4902_v61, 16  ;;  %v2051_v44 = vshll.u32 %v4904_v21, 16 }
  0xa6   : > { %v2047_v61 = vrot.slane %v2045_v27, 5  ;;  %v5386_v27 = vld [vmem:[%s5732_s23 + $0x60] sm:$0xff] }
  0xa7   : > { %v2025_v10 = vrot.slane %v2024_v62, 4  ;;  %v2039_v13 = vrot.slane %v2037_v3, 5 }
  0xa8   : > { %v6155_v56 = vpop.f32.mrf.mxu1 }
  0xab   : > { %v6160_v4 = vpop.f32.mrf.mxu0  ;;  %1012 = vmatmul.bf16.gmra.mxu1 %v5382_v31  ;;  %v1996_v31 = vrot.slane %v1994_v42, 4  ;;  %v2031_v42 = vshrl.u32 %v4901_v23, 16 }
  0xac   : > { %1393 = vmatmul.bf16.gmra.mxu2 %v1289_v57 }
  0xad   : > { %v2000_v7 = vor.u32 %v1999_v55, %v1996_v31  ;;  %v1178_v31 = vrot.slane %v5980_v53, 5  ;;  %v2033_v55 = vrot.slane %v2031_v42, 4  ;;  %v1081_v42 = vld [vmem:[%s5732_s23 + $0x60] sm:$0xe] }
  0xae   : > { %v6165_v17 = vpop.f32.mrf.mxu2 }
  0xaf   : > { %v6168_v50 = vpop.f32.mrf.mxu3  ;;  %v2001_v15 = vrot.slane %v2000_v7, 4  ;;  %v2034_v1 = vor.u32 %v2033_v55, %v2029_v49 }
  0xb0   : > { %v6170_v16 = vpop.f32.mrf.mxu1 }
  0xb1   : > { %1708 = vmatmul.bf16.gmra.mxu3 %v5422_v9  ;;  %v2006_v32 = vsel %vm5747_vm2, %v2001_v15, %v2005_v60  ;;  %v5485_v15 = vld [vmem:[%s7147_s1 + $0x1d8] sm:$0xff] }
  0xb2   : > { %3789 = vmatpush.bf16.msra.mxu3 %v5485_v15 }
  0xb3   : > { %v6179_v26 = vpop.f32.mrf.mxu0 }
  0xb5   : > { %2390 = vmatmul.bf16.gmra.mxu0 %v2286_v51  ;;  %v1266_v51 = vunpack.c.l.b16 %v1172_v11  ;;  %v2035_v11 = vrot.slane %v2034_v1, 4 }
  0xb6   : > { %v6189_v39 = vpop.f32.mrf.mxu2 }
  0xb7   : > { %v6191_v40 = vpop.f32.mrf.mxu3  ;;  %v1291_v34 = vpack.c.b16 %v1266_v51, %v1265_v18  ;;  %v5453_v18 = vld [vmem:[%s7147_s1 + $0x158] sm:$0xff]  ;;  %v2040_v36 = vsel %vm5747_vm2, %v2035_v11, %v2039_v13 }
  0xb8   : > { %v6194_v45 = vpop.f32.mrf.mxu1  ;;  %2792 = vmatpush.bf16.msra.mxu1 %v5453_v18  ;;  %v2265_v35 = vunpack.c.l.b16 %v2040_v36 }
  0xbb   : > { %1017 = vmatmul.bf16.gmra.mxu1 %v5383_v41  ;;  %v1175_v41 = vrot.slane %v5977_v52, 5 }
  0xbc   : > { %v6205_v57 = vpop.f32.mrf.mxu0  ;;  %1398 = vmatmul.bf16.gmra.mxu2 %v1290_v46  ;;  %v2262_v46 = vunpack.c.l.b16 %v2006_v32 }
  0xbd   : > { %v1177_v19 = vrot.slane %v1175_v41, 4  ;;  %v1176_v14 = vsel %vm6047_vm5, %v4678_v12, %v1175_v41  ;;  %v4679_v12 = vrot.slane %v1081_v42, 9 }
  0xbe   : > { %v6209_v2 = vpop.f32.mrf.mxu2  ;;  %v2288_v60 = vpack.c.b16 %v2263_v47, %v2262_v46  ;;  %v1267_v7 = vunpack.c.l.b16 %v1176_v14  ;;  %v2055_v46 = vshrl.u32 %v4904_v21, 16  ;;  %v5493_v47 = vld [vmem:[%s7147_s1 + $0x218] sm:$0xff] }
  0xbf   : > { %v6212_v6 = vpop.f32.mrf.mxu3  ;;  %v1179_v53 = vsel %vm6047_vm5, %v1177_v19, %v1178_v31  ;;  %4215 = vmatpush.bf16.msra.mxu0 %v5493_v47  ;;  %v1184_v19 = vrot.slane %v1182_v38, 4  ;;  %v5633_v31 = vld [vmem:[%s5732_s23 + $0x68] sm:$0x1]  ;;  %v1183_v5 = vsel %vm6047_vm5, %v4679_v12, %v1182_v38  ;;  %v4907_v21 = vld [vmem:[%s5732_s23 + $0x7c] sm:$0xf] }
  0xc0   : > { %v6214_v9 = vpop.f32.mrf.mxu1  ;;  %v1185_v55 = vrot.slane %v5633_v31, 5  ;;  %v2057_v62 = vrot.slane %v2055_v46, 4  ;;  %v1269_v18 = vunpack.c.l.b16 %v1183_v5  ;;  %v2075_v42 = vshll.u32 %v4907_v21, 16  ;;  %v5634_v47 = vld [vmem:[%s5732_s23 + $0x70] sm:$0xf] }
  0xc1   : > { %1713 = vmatmul.bf16.gmra.mxu3 %v5423_v63 }
  0xc4   : > { %v6222_v24 = vpop.f32.mrf.mxu0 }
  0xc5   : > { %2395 = vmatmul.bf16.gmra.mxu0 %v2287_v8  ;;  %v1268_v8 = vunpack.c.l.b16 %v1179_v53  ;;  %v4905_v53 = vld [vmem:[%s5732_s23 + $0x74] sm:$0x1] }
  0xc6   : > { %v6224_v25 = vpop.f32.mrf.mxu2  ;;  %v2061_v13 = vshll.u32 %v4905_v53, 16 }
  0xc7   : > { %v6226_v28 = vpop.f32.mrf.mxu3  ;;  %v1292_v23 = vpack.c.b16 %v1268_v8, %v1267_v7  ;;  %v1186_v7 = vsel %vm6047_vm5, %v1184_v19, %v1185_v55 }
  0xc8   : > { %v6231_v33 = vpop.f32.mrf.mxu1 }
  0xcb   : > { %1022 = vmatmul.bf16.gmra.mxu1 %v5384_v29  ;;  %v2042_v29 = vshrl.u32 %v4903_v59, 16  ;;  %v4906_v59 = vld [vmem:[%s5732_s23 + $0x78] sm:$0xf] }
  0xcc   : > { %1403 = vmatmul.bf16.gmra.mxu2 %v1291_v34  ;;  %v2030_v34 = vsel %vm5747_vm2, %v2025_v10, %v2029_v49  ;;  %v2066_v36 = vshrl.u32 %v4906_v59, 16  ;;  %v2069_v37 = vshll.u32 %v4906_v59, 16 }
  0xcd   : > { %v2264_v48 = vunpack.c.l.b16 %v2030_v34  ;;  %v2044_v49 = vrot.slane %v2042_v29, 4  ;;  %v2063_v34 = vrot.slane %v2061_v13, 5  ;;  %v5426_v13 = vld [vmem:[%s5732_s23 + $0x6c] sm:$0xff] }
  0xce   : > { %v6239_v58 = vpop.f32.mrf.mxu2  ;;  %v2068_v55 = vrot.slane %v2066_v36, 4 }
  0xcf   : > { %v2289_v1 = vpack.c.b16 %v2265_v35, %v2264_v48  ;;  %v2048_v8 = vor.u32 %v2047_v61, %v2044_v49  ;;  %v1189_v48 = vrot.slane %v5634_v47, 5  ;;  %v2071_v61 = vrot.slane %v2069_v37, 5  ;;  %v5476_v47 = vld [vmem:[%s7147_s1 + $0x190] sm:$0xff] }
  0xd0   : > { %v6242_v52 = vpop.f32.mrf.mxu0  ;;  %v6244_v63 = vpop.f32.mrf.mxu3  ;;  %3108 = vmatpush.bf16.msra.mxu2 %v5476_v47 }
  0xd1   : > { %1718 = vmatmul.bf16.gmra.mxu3 %v5424_v54  ;;  %v6246_v0 = vpop.f32.mrf.mxu1  ;;  %v5425_v54 = vld [vmem:[%s5732_s23 + $0x60] sm:$0xff] }
  0xd5   : > { %2400 = vmatmul.bf16.gmra.mxu0 %v2288_v60  ;;  %v2053_v60 = vrot.slane %v2051_v44, 5  ;;  %v2079_v44 = vshrl.u32 %v4907_v21, 16 }
  0xd6   : > { %v6262_v51 = vpop.f32.mrf.mxu2 }
  0xd7   : > { %v2058_v11 = vor.u32 %v2057_v62, %v2053_v60  ;;  %v2077_v62 = vrot.slane %v2075_v42, 5  ;;  %v2081_v53 = vrot.slane %v2079_v44, 4 }
  0xd8   : > { %v6266_v22 = vpop.f32.mrf.mxu0  ;;  %v6275_v41 = vpop.f32.mrf.mxu3 }
  0xd9   : > { %v6268_v32 = vpop.f32.mrf.mxu1  ;;  %v2059_v29 = vrot.slane %v2058_v11, 4  ;;  %v4908_v11 = vld [vmem:[%s5732_s23 + $0x80] sm:$0x1]  ;;  %v2082_v21 = vor.u32 %v2081_v53, %v2077_v62  ;;  %v5452_v53 = vld [vmem:[%s7147_s1 + $0x150] sm:$0xff] }
  0xda   : > { %2793 = vmatpush.bf16.msra.mxu1 %v5452_v53 }
  0xdb   : > { %1027 = vmatmul.bf16.gmra.mxu1 %v5385_v20  ;;  %v1270_v20 = vunpack.c.l.b16 %v1186_v7  ;;  %v2064_v31 = vsel %vm5747_vm2, %v2059_v29, %v2063_v34  ;;  %v5635_v7 = vld [vmem:[%s5732_s23 + $0x74] sm:$0x1] }
  0xdc   : > { %1408 = vmatmul.bf16.gmra.mxu2 %v1292_v23  ;;  %v2049_v23 = vrot.slane %v2048_v8, 4  ;;  %v1192_v8 = vrot.slane %v5635_v7, 5  ;;  %v5387_v7 = vld [vmem:[%s5732_s23 + $0x6c] sm:$0xff] }
  0xdd   : > { %v1293_v46 = vpack.c.b16 %v1270_v20, %v1269_v18  ;;  %v2267_v18 = vunpack.c.l.b16 %v2064_v31  ;;  %v4909_v31 = vld [vmem:[%s5732_s23 + $0x84] sm:$0xf] }
  0xde   : > { %v2054_v49 = vsel %vm5747_vm2, %v2049_v23, %v2053_v60  ;;  %v1191_v60 = vrot.slane %v1189_v48, 4  ;;  %v2085_v23 = vshll.u32 %v4908_v11, 16 }
  0xdf   : > { %v6283_v14 = vpop.f32.mrf.mxu2  ;;  %v2266_v59 = vunpack.c.l.b16 %v2054_v49 }
  0xe0   : > { %v1193_v36 = vsel %vm6047_vm5, %v1191_v60, %v1192_v8 }
  0xe1   : > { %1723 = vmatmul.bf16.gmra.mxu3 %v5425_v54  ;;  %v6286_v3 = vpop.f32.mrf.mxu1  ;;  %v1082_v54 = vld [vmem:[%s5732_s23 + $0x6c] sm:$0xe]  ;;  %v2290_v37 = vpack.c.b16 %v2267_v18, %v2266_v59  ;;  %v1272_v49 = vunpack.c.l.b16 %v1193_v36 }
  0xe2   : > { %v6292_v10 = vpop.f32.mrf.mxu0  ;;  %v4680_v5 = vrot.slane %v1082_v54, 9  ;;  %v2083_v54 = vrot.slane %v2082_v21, 4 }
  0xe4   : > { %v6295_v15 = vpop.f32.mrf.mxu3  ;;  %v1190_v34 = vsel %vm6047_vm5, %v4680_v5, %v1189_v48  ;;  %v2087_v48 = vrot.slane %v2085_v23, 5 }
  0xe5   : > { %2405 = vmatmul.bf16.gmra.mxu0 %v2289_v1 }
  0xe6   : > { %v2088_v11 = vsel %vm5747_vm2, %v2083_v54, %v2087_v48 }
  0xe7   : > { %v6298_v38 = vpop.f32.mrf.mxu2 }
  0xe9   : > { %v993_v35 = vpop.f32.mrf.mxu1 }
  0xea   : > { %v6305_v12 = vpop.f32.mrf.mxu0  ;;  %v994_v19 = vadd.f32 %v993_v35, %v6160_v4  ;;  %v2072_v4 = vor.u32 %v2071_v61, %v2068_v55  ;;  %v1271_v35 = vunpack.c.l.b16 %v1190_v34  ;;  %v4910_v61 = vld [vmem:[%s5732_s23 + $0x88] sm:$0xf] }
  0xeb   : > { %1032 = vmatmul.bf16.gmra.mxu1 %v5386_v27  ;;  %v2103_v21 = vshrl.u32 %v4910_v61, 16 }
  0xec   : > { %v6310_v1 = vpop.f32.mrf.mxu3  ;;  %1413 = vmatmul.bf16.gmra.mxu2 %v1293_v46  ;;  %v2073_v46 = vrot.slane %v2072_v4, 4  ;;  %v1294_v8 = vpack.c.b16 %v1272_v49, %v1271_v35  ;;  %v2093_v4 = vshll.u32 %v4909_v31, 16 }
  0xed   : > { %v2105_v54 = vrot.slane %v2103_v21, 4 }
  0xee   : > { %v2078_v5 = vsel %vm5747_vm2, %v2073_v46, %v2077_v62  ;;  %v2095_v35 = vrot.slane %v2093_v4, 5 }
  0xef   : > { %v1374_v20 = vpop.f32.mrf.mxu2 }
  0xf0   : > { %v1454_v29 = vadd.f32 %v1374_v20, %v994_v19  ;;  %v2099_v20 = vshll.u32 %v4910_v61, 16 }
  0xf1   : > { %1728 = vmatmul.bf16.gmra.mxu3 %v5426_v13  ;;  %v995_v27 = vpop.f32.mrf.mxu1  ;;  %v2090_v13 = vshrl.u32 %v4909_v31, 16 }
  0xf2   : > { %v2371_v42 = vpop.f32.mrf.mxu0  ;;  %v996_v44 = vadd.f32 %v995_v27, %v6179_v26  ;;  %v5484_v26 = vld [vmem:[%s7147_s1 + $0x1d0] sm:$0xff]  ;;  %v2101_v49 = vrot.slane %v2099_v20, 5 }
  0xf3   : > { %3790 = vmatpush.bf16.msra.mxu3 %v5484_v26  ;;  %v5492_v27 = vld [vmem:[%s7147_s1 + $0x210] sm:$0xff]  ;;  %v2092_v47 = vrot.slane %v2090_v13, 4  ;;  %v4911_v26 = vld [vmem:[%s5732_s23 + $0x8c] sm:$0x1] }
  0xf4   : > { %v1689_v19 = vpop.f32.mrf.mxu3  ;;  %4216 = vmatpush.bf16.msra.mxu0 %v5492_v27  ;;  %v2109_v4 = vshll.u32 %v4911_v26, 16  ;;  %v5638_v26 = vld [vmem:[%s5732_s23 + $0x88] sm:$0xf] }
  0xf5   : > { %2410 = vmatmul.bf16.gmra.mxu0 %v2290_v37  ;;  %v1769_v55 = vadd.f32 %v1689_v19, %v1454_v29  ;;  %v5636_v29 = vld [vmem:[%s5732_s23 + $0x7c] sm:$0xf]  ;;  %v1083_v37 = vld [vmem:[%s5732_s23 + $0x78] sm:$0xe] }
  0xf6   : > { %v1196_v34 = vrot.slane %v5636_v29, 5  ;;  %v5427_v19 = vld [vmem:[%s5732_s23 + $0x78] sm:$0xff] }
  0xf7   : > { %v1376_v60 = vpop.f32.mrf.mxu2  ;;  %v6336_v59 = vadd.f32 %v2371_v42, %v1769_v55  ;;  %v2268_v42 = vunpack.c.l.b16 %v2078_v5  ;;  %v5637_v55 = vld [vmem:[%s5732_s23 + $0x80] sm:$0x1] }
  0xf8   : > { %v1455_v18 = vadd.f32 %v1376_v60, %v996_v44  ;;  %v2269_v44 = vunpack.c.l.b16 %v2088_v11  ;;  %v1198_v31 = vrot.slane %v1196_v34, 4  ;;  %v1199_v61 = vrot.slane %v5637_v55, 5 }
  0xf9   : > { %v998_v23 = vpop.f32.mrf.mxu1 }
  0xfa   : > { %v2373_v62 = vpop.f32.mrf.mxu0  ;;  %v999_v36 = vadd.f32 %v998_v23, %v6205_v57  ;;  %v4681_v57 = vrot.slane %v1083_v37, 9  ;;  %v2291_v60 = vpack.c.b16 %v2269_v44, %v2268_v42  ;;  %v2096_v23 = vor.u32 %v2095_v35, %v2092_v47  ;;  %v5388_v47 = vld [vmem:[%s5732_s23 + $0x78] sm:$0xff]  ;;  %v4913_v35 = vld [vmem:[%s5732_s23 + $0x94] sm:$0xf] }
  0xfb   : > { %1037 = vmatmul.bf16.gmra.mxu1 %v5387_v7  ;;  %v1200_v13 = vsel %vm6047_vm5, %v1198_v31, %v1199_v61  ;;  %v2111_v44 = vrot.slane %v2109_v4, 5 }
  0xfc   : > { %v1691_v46 = vpop.f32.mrf.mxu3  ;;  %1418 = vmatmul.bf16.gmra.mxu2 %v1294_v8  ;;  %v1197_v11 = vsel %vm6047_vm5, %v4681_v57, %v1196_v34  ;;  %v2097_v27 = vrot.slane %v2096_v23, 4  ;;  %v4912_v34 = vld [vmem:[%s5732_s23 + $0x90] sm:$0xf]  ;;  %v1084_v23 = vld [vmem:[%s5732_s23 + $0x84] sm:$0xe] }
  0xfd   : > { %v1770_v48 = vadd.f32 %v1691_v46, %v1455_v18  ;;  %v2106_v18 = vor.u32 %v2105_v54, %v2101_v49  ;;  %v2114_v57 = vshrl.u32 %v4912_v34, 16 }
  0xfe   : > { %v2102_v55 = vsel %vm5747_vm2, %v2097_v27, %v2101_v49 }
  0xff   : > { %v1379_v53 = vpop.f32.mrf.mxu2  ;;  %v6347_v5 = vadd.f32 %v2373_v62, %v1770_v48  ;;  %v1274_v62 = vunpack.c.l.b16 %v1200_v13  ;;  %v2107_v42 = vrot.slane %v2106_v18, 4  ;;  %v2270_v18 = vunpack.c.l.b16 %v2102_v55 }
 0x100   : > { %v1456_v7 = vadd.f32 %v1379_v53, %v999_v36  ;;  %v1273_v36 = vunpack.c.l.b16 %v1197_v11  ;;  %v1203_v53 = vrot.slane %v5638_v26, 5  ;;  %v2127_v11 = vshrl.u32 %v4913_v35, 16 }
 0x101   : > { %1733 = vmatmul.bf16.gmra.mxu3 %v5427_v19  ;;  %v1000_v8 = vpop.f32.mrf.mxu1  ;;  %v2112_v61 = vsel %vm5747_vm2, %v2107_v42, %v2111_v44  ;;  %v2116_v49 = vrot.slane %v2114_v57, 4 }
 0x102   : > { %v2376_v20 = vpop.f32.mrf.mxu0  ;;  %v1001_v21 = vadd.f32 %v1000_v8, %v6222_v24  ;;  %v1295_v19 = vpack.c.b16 %v1274_v62, %v1273_v36  ;;  %v2117_v24 = vshll.u32 %v4912_v34, 16  ;;  %v2123_v8 = vshll.u32 %v4913_v35, 16  ;;  %v4914_v34 = vld [vmem:[%s5732_s23 + $0x98] sm:$0x1] }
 0x103   : > { %v2271_v4 = vunpack.c.l.b16 %v2112_v61  ;;  %v4682_v36 = vrot.slane %v1084_v23, 9  ;;  %v1205_v62 = vrot.slane %v1203_v53, 4  ;;  %v2133_v26 = vshll.u32 %v4914_v34, 16 }
 0x104   : > { %v1694_v29 = vpop.f32.mrf.mxu3  ;;  %v6368_v42 = vrot.slane %v2123_v8, 5 }
 0x105   : > { %2415 = vmatmul.bf16.gmra.mxu0 %v2291_v60  ;;  %v1771_v37 = vadd.f32 %v1694_v29, %v1456_v7  ;;  %v5428_v29 = vld [vmem:[%s5732_s23 + $0x84] sm:$0xff]  ;;  %v2292_v35 = vpack.c.b16 %v2271_v4, %v2270_v18 }
 0x106   : > { %v5451_v4 = vld [vmem:[%s7147_s1 + $0x148] sm:$0xff] }
 0x107   : > { %v1381_v46 = vpop.f32.mrf.mxu2  ;;  %v6357_v48 = vadd.f32 %v2376_v20, %v1771_v37  ;;  %v2119_v20 = vrot.slane %v2117_v24, 5  ;;  %v5639_v37 = vld [vmem:[%s5732_s23 + $0x8c] sm:$0x1]  ;;  %2794 = vmatpush.bf16.msra.mxu1 %v5451_v4 }
 0x108   : > { %v1457_v54 = vadd.f32 %v1381_v46, %v1001_v21  ;;  %v1206_v27 = vrot.slane %v5639_v37, 5 }
 0x109   : > { %v1003_v31 = vpop.f32.mrf.mxu1  ;;  %v2120_v24 = vor.u32 %v2119_v20, %v2116_v49  ;;  %v2135_v20 = vrot.slane %v2133_v26, 5 }
 0x10a   : > { %v2378_v60 = vpop.f32.mrf.mxu0  ;;  %v1004_v7 = vadd.f32 %v1003_v31, %v6242_v52  ;;  %v2129_v52 = vrot.slane %v2127_v11, 4  ;;  %v1207_v57 = vsel %vm6047_vm5, %v1205_v62, %v1206_v27  ;;  %v5389_v62 = vld [vmem:[%s5732_s23 + $0x84] sm:$0xff] }
 0x10b   : > { %1042 = vmatmul.bf16.gmra.mxu1 %v5388_v47  ;;  %v1276_v11 = vunpack.c.l.b16 %v1207_v57  ;;  %v2121_v18 = vrot.slane %v2120_v24, 4  ;;  %v1085_v57 = vld [vmem:[%s5732_s23 + $0x90] sm:$0xe] }
 0x10c   : > { %v1696_v13 = vpop.f32.mrf.mxu3  ;;  %1423 = vmatmul.bf16.gmra.mxu2 %v1295_v19  ;;  %v2130_v61 = vor.u32 %v2129_v52, %v6368_v42 }
 0x10d   : > { %v1772_v21 = vadd.f32 %v1696_v13, %v1457_v54  ;;  %v1204_v54 = vsel %vm6047_vm5, %v4682_v36, %v1203_v53  ;;  %v4916_v53 = vld [vmem:[%s5732_s23 + $0xa0] sm:$0xf] }
 0x10e   : > { %v1275_v8 = vunpack.c.l.b16 %v1204_v54  ;;  %v2131_v49 = vrot.slane %v2130_v61, 4  ;;  %v2147_v37 = vshll.u32 %v4916_v53, 16  ;;  %v2151_v27 = vshrl.u32 %v4916_v53, 16  ;;  %v5641_v53 = vld [vmem:[%s5732_s23 + $0x98] sm:$0x1] }
 0x10f   : > { %v1384_v44 = vpop.f32.mrf.mxu2  ;;  %v6371_v47 = vadd.f32 %v2378_v60, %v1772_v21  ;;  %v5475_v60 = vld [vmem:[%s7147_s1 + $0x188] sm:$0xff]  ;;  %v2126_v54 = vsel %vm5747_vm2, %v2121_v18, %v6368_v42  ;;  %v4683_v42 = vrot.slane %v1085_v57, 9 }
 0x110   : > { %v1458_v46 = vadd.f32 %v1384_v44, %v1004_v7  ;;  %v4915_v7 = vld [vmem:[%s5732_s23 + $0x9c] sm:$0xf]  ;;  %3109 = vmatpush.bf16.msra.mxu2 %v5475_v60  ;;  %v1296_v34 = vpack.c.b16 %v1276_v11, %v1275_v8  ;;  %v2136_v26 = vsel %vm5747_vm2, %v2131_v49, %v2135_v20  ;;  %v5491_v60 = vld [vmem:[%s7147_s1 + $0x208] sm:$0xff]  ;;  %v2272_v4 = vunpack.c.l.b16 %v2126_v54 }
 0x111   : > { %1738 = vmatmul.bf16.gmra.mxu3 %v5428_v29  ;;  %v1005_v19 = vpop.f32.mrf.mxu1  ;;  %v2138_v21 = vshrl.u32 %v4915_v7, 16  ;;  %v2141_v29 = vshll.u32 %v4915_v7, 16  ;;  %v2149_v7 = vrot.slane %v2147_v37, 5  ;;  %4217 = vmatpush.bf16.msra.mxu0 %v5491_v60  ;;  %v2273_v49 = vunpack.c.l.b16 %v2136_v26 }
 0x112   : > { %v2381_v31 = vpop.f32.mrf.mxu0  ;;  %v1006_v55 = vadd.f32 %v1005_v19, %v6266_v22  ;;  %v5483_v22 = vld [vmem:[%s7147_s1 + $0x1c8] sm:$0xff] }
 0x113   : > { %3791 = vmatpush.bf16.msra.mxu3 %v5483_v22  ;;  %v5429_v22 = vld [vmem:[%s5732_s23 + $0x90] sm:$0xff] }
 0x114   : > { %v1699_v23 = vpop.f32.mrf.mxu3 }
 0x115   : > { %2420 = vmatmul.bf16.gmra.mxu0 %v2292_v35  ;;  %v1773_v13 = vadd.f32 %v1699_v23, %v1458_v46  ;;  %v5640_v46 = vld [vmem:[%s5732_s23 + $0x94] sm:$0xf]  ;;  %v2153_v23 = vrot.slane %v2151_v27, 4 }
 0x116   : > { %v1210_v35 = vrot.slane %v5640_v46, 5 }
 0x117   : > { %v1386_v36 = vpop.f32.mrf.mxu2  ;;  %v6391_v52 = vadd.f32 %v2381_v31, %v1773_v13  ;;  %v2140_v31 = vrot.slane %v2138_v21, 4  ;;  %v1213_v13 = vrot.slane %v5641_v53, 5 }
 0x118   : > { %v1459_v44 = vadd.f32 %v1386_v36, %v1006_v55  ;;  %v2143_v55 = vrot.slane %v2141_v29, 5  ;;  %v1212_v11 = vrot.slane %v1210_v35, 4  ;;  %v2154_v29 = vor.u32 %v2153_v23, %v2149_v7 }
 0x119   : > { %v1008_v19 = vpop.f32.mrf.mxu1  ;;  %v1211_v37 = vsel %vm6047_vm5, %v4683_v42, %v1210_v35  ;;  %v4918_v35 = vld [vmem:[%s5732_s23 + $0xa8] sm:$0xf] }
 0x11a   : > { %v2383_v24 = vpop.f32.mrf.mxu0  ;;  %v1009_v61 = vadd.f32 %v1008_v19, %v6292_v10  ;;  %v4917_v10 = vld [vmem:[%s5732_s23 + $0xa4] sm:$0x1]  ;;  %v2144_v20 = vor.u32 %v2143_v55, %v2140_v31  ;;  %v1214_v27 = vsel %vm6047_vm5, %v1212_v11, %v1213_v13  ;;  %v1277_v26 = vunpack.c.l.b16 %v1211_v37  ;;  %v5390_v11 = vld [vmem:[%s5732_s23 + $0x90] sm:$0xff] }
 0x11b   : > { %1047 = vmatmul.bf16.gmra.mxu1 %v5389_v62  ;;  %v2157_v36 = vshll.u32 %v4917_v10, 16  ;;  %v1278_v31 = vunpack.c.l.b16 %v1214_v27  ;;  %v2162_v13 = vshrl.u32 %v4918_v35, 16 }
 0x11c   : > { %v1701_v8 = vpop.f32.mrf.mxu3  ;;  %1428 = vmatmul.bf16.gmra.mxu2 %v1296_v34  ;;  %v2145_v57 = vrot.slane %v2144_v20, 4 }
 0x11d   : > { %v1774_v18 = vadd.f32 %v1701_v8, %v1459_v44  ;;  %v2293_v44 = vpack.c.b16 %v2273_v49, %v2272_v4  ;;  %v2159_v55 = vrot.slane %v2157_v36, 5  ;;  %v4919_v8 = vld [vmem:[%s5732_s23 + $0xac] sm:$0xf]  ;;  %v1297_v53 = vpack.c.b16 %v1278_v31, %v1277_v26  ;;  %v5430_v26 = vld [vmem:[%s5732_s23 + $0x9c] sm:$0xff] }
 0x11e   : > { %v2171_v4 = vshll.u32 %v4919_v8, 16  ;;  %v2175_v49 = vshrl.u32 %v4919_v8, 16 }
 0x11f   : > { %v1389_v21 = vpop.f32.mrf.mxu2  ;;  %v6411_v34 = vadd.f32 %v2383_v24, %v1774_v18  ;;  %v2150_v24 = vsel %vm5747_vm2, %v2145_v57, %v2149_v7  ;;  %v1086_v7 = vld [vmem:[%s5732_s23 + $0x9c] sm:$0xe] }
 0x120   : > { %v1460_v62 = vadd.f32 %v1389_v21, %v1009_v61  ;;  %v2155_v61 = vrot.slane %v2154_v29, 4  ;;  %v5642_v21 = vld [vmem:[%s5732_s23 + $0xa0] sm:$0xf]  ;;  %v4684_v31 = vrot.slane %v1086_v7, 9  ;;  %v4921_v7 = vld [vmem:[%s5732_s23 + $0xb4] sm:$0xf] }
 0x121   : > { %1743 = vmatmul.bf16.gmra.mxu3 %v5429_v22  ;;  %v1010_v46 = vpop.f32.mrf.mxu1  ;;  %v2165_v22 = vshll.u32 %v4918_v35, 16  ;;  %v1217_v29 = vrot.slane %v5642_v21, 5 }
 0x122   : > { %v2386_v19 = vpop.f32.mrf.mxu0  ;;  %v1011_v54 = vadd.f32 %v1010_v46, %v6305_v12  ;;  %v2160_v12 = vsel %vm5747_vm2, %v2155_v61, %v2159_v55  ;;  %v5643_v55 = vld [vmem:[%s5732_s23 + $0xa4] sm:$0x1] }
 0x123   : > { %v2275_v37 = vunpack.c.l.b16 %v2160_v12  ;;  %v2167_v46 = vrot.slane %v2165_v22, 5  ;;  %v1219_v61 = vrot.slane %v1217_v29, 4 }
 0x124   : > { %v1704_v60 = vpop.f32.mrf.mxu3 }
 0x125   : > { %2425 = vmatmul.bf16.gmra.mxu0 %v2293_v44  ;;  %v1775_v23 = vadd.f32 %v1704_v60, %v1460_v62  ;;  %v2274_v62 = vunpack.c.l.b16 %v2150_v24  ;;  %v2164_v44 = vrot.slane %v2162_v13, 4  ;;  %v1220_v60 = vrot.slane %v5643_v55, 5 }
 0x126   : > { %v1218_v13 = vsel %vm6047_vm5, %v4684_v31, %v1217_v29  ;;  %v4922_v31 = vld [vmem:[%s5732_s23 + $0xb8] sm:$0xf]  ;;  %v2189_v55 = vshll.u32 %v4921_v7, 16 }
 0x127   : > { %v1391_v42 = vpop.f32.mrf.mxu2  ;;  %v6421_v10 = vadd.f32 %v2386_v19, %v1775_v23  ;;  %v2173_v19 = vrot.slane %v2171_v4, 5  ;;  %v4920_v23 = vld [vmem:[%s5732_s23 + $0xb0] sm:$0x1]  ;;  %v1279_v21 = vunpack.c.l.b16 %v1218_v13  ;;  %v1087_v13 = vld [vmem:[%s5732_s23 + $0xa8] sm:$0xe] }
 0x128   : > { %v1461_v18 = vadd.f32 %v1391_v42, %v1011_v54  ;;  %v2177_v54 = vrot.slane %v2175_v49, 4  ;;  %v2294_v42 = vpack.c.b16 %v2275_v37, %v2274_v62  ;;  %v2181_v4 = vshll.u32 %v4920_v23, 16 }
 0x129   : > { %v1013_v20 = vpop.f32.mrf.mxu1 }
 0x12a   : > { %v2388_v36 = vpop.f32.mrf.mxu0  ;;  %v1014_v35 = vadd.f32 %v1013_v20, %v6155_v56  ;;  %v2178_v22 = vor.u32 %v2177_v54, %v2173_v19  ;;  %v5474_v56 = vld [vmem:[%s7147_s1 + $0x180] sm:$0xff] }
 0x12b   : > { %1052 = vmatmul.bf16.gmra.mxu1 %v5390_v11  ;;  %v2168_v11 = vor.u32 %v2167_v46, %v2164_v44  ;;  %3110 = vmatpush.bf16.msra.mxu2 %v5474_v56  ;;  %v5482_v44 = vld [vmem:[%s7147_s1 + $0x1c0] sm:$0xff]  ;;  %v2191_v56 = vrot.slane %v2189_v55, 5 }
 0x12c   : > { %v1706_v27 = vpop.f32.mrf.mxu3  ;;  %1433 = vmatmul.bf16.gmra.mxu2 %v1297_v53  ;;  %v2179_v37 = vrot.slane %v2178_v22, 4  ;;  %v5450_v46 = vld [vmem:[%s7147_s1 + $0x140] sm:$0xff]  ;;  %3792 = vmatpush.bf16.msra.mxu3 %v5482_v44  ;;  %v2199_v22 = vshrl.u32 %v4922_v31, 16 }
 0x12d   : > { %v1776_v57 = vadd.f32 %v1706_v27, %v1461_v18  ;;  %v1221_v18 = vsel %vm6047_vm5, %v1219_v61, %v1220_v60  ;;  %v2169_v29 = vrot.slane %v2168_v11, 4  ;;  %v2183_v27 = vrot.slane %v2181_v4, 5  ;;  %2795 = vmatpush.bf16.msra.mxu1 %v5450_v46  ;;  %v5490_v4 = vld [vmem:[%s7147_s1 + $0x200] sm:$0xff] }
 0x12e   : > { %v2186_v61 = vshrl.u32 %v4921_v7, 16  ;;  %4218 = vmatpush.bf16.msra.mxu0 %v5490_v4  ;;  %v5431_v7 = vld [vmem:[%s5732_s23 + $0xa8] sm:$0xff]  ;;  %v4924_v4 = vld [vmem:[%s5732_s23 + $0xc0] sm:$0xf] }
 0x12f   : > { %v1394_v8 = vpop.f32.mrf.mxu2  ;;  %v6429_v12 = vadd.f32 %v2388_v36, %v1776_v57  ;;  %v1280_v36 = vunpack.c.l.b16 %v1221_v18  ;;  %v2195_v18 = vshll.u32 %v4922_v31, 16 }
 0x130   : > { %v1462_v24 = vadd.f32 %v1394_v8, %v1014_v35 }
 0x131   : > { %1748 = vmatmul.bf16.gmra.mxu3 %v5430_v26  ;;  %v1015_v53 = vpop.f32.mrf.mxu1  ;;  %v5391_v26 = vld [vmem:[%s5732_s23 + $0x9c] sm:$0xff]  ;;  %v1298_v23 = vpack.c.b16 %v1280_v36, %v1279_v21  ;;  %v2197_v46 = vrot.slane %v2195_v18, 5 }
 0x132   : > { %v2391_v49 = vpop.f32.mrf.mxu0  ;;  %v1016_v54 = vadd.f32 %v1015_v53, %v6170_v16  ;;  %v5644_v16 = vld [vmem:[%s5732_s23 + $0xac] sm:$0xf] }
 0x133   : > { %v1224_v11 = vrot.slane %v5644_v16, 5 }
 0x134   : > { %v1709_v20 = vpop.f32.mrf.mxu3 }
 0x135   : > { %2430 = vmatmul.bf16.gmra.mxu0 %v2294_v42  ;;  %v1777_v62 = vadd.f32 %v1709_v20, %v1462_v24  ;;  %v2174_v42 = vsel %vm5747_vm2, %v2169_v29, %v2173_v19  ;;  %v2184_v24 = vsel %vm5747_vm2, %v2179_v37, %v2183_v27  ;;  %v1226_v29 = vrot.slane %v1224_v11, 4  ;;  %v5645_v37 = vld [vmem:[%s5732_s23 + $0xb0] sm:$0x1] }
 0x136   : > { %v2276_v20 = vunpack.c.l.b16 %v2174_v42  ;;  %v2277_v21 = vunpack.c.l.b16 %v2184_v24  ;;  %v1227_v27 = vrot.slane %v5645_v37, 5  ;;  %v2210_v37 = vshrl.u32 %v4924_v4, 16 }
 0x137   : > { %v1396_v57 = vpop.f32.mrf.mxu2  ;;  %v6448_v60 = vadd.f32 %v2391_v49, %v1777_v62  ;;  %v2188_v49 = vrot.slane %v2186_v61, 4  ;;  %v4685_v62 = vrot.slane %v1087_v13, 9 }
 0x138   : > { %v1463_v35 = vadd.f32 %v1396_v57, %v1016_v54  ;;  %v2201_v54 = vrot.slane %v2199_v22, 4 }
 0x139   : > { %v1018_v8 = vpop.f32.mrf.mxu1  ;;  %v2192_v31 = vor.u32 %v2191_v56, %v2188_v49  ;;  %v1225_v42 = vsel %vm6047_vm5, %v4685_v62, %v1224_v11  ;;  %v4925_v56 = vld [vmem:[%s5732_s23 + $0xc4] sm:$0xf]  ;;  %v5392_v62 = vld [vmem:[%s5732_s23 + $0xa8] sm:$0xff] }
 0x13a   : > { %v2393_v53 = vpop.f32.mrf.mxu0  ;;  %v1019_v44 = vadd.f32 %v1018_v8, %v6194_v45  ;;  %v1228_v45 = vsel %vm6047_vm5, %v1226_v29, %v1227_v27  ;;  %v2202_v24 = vor.u32 %v2201_v54, %v2197_v46  ;;  %v1281_v22 = vunpack.c.l.b16 %v1225_v42 }
 0x13b   : > { %1057 = vmatmul.bf16.gmra.mxu1 %v5391_v26  ;;  %v4923_v26 = vld [vmem:[%s5732_s23 + $0xbc] sm:$0x1]  ;;  %v2193_v13 = vrot.slane %v2192_v31, 4  ;;  %v2213_v27 = vshll.u32 %v4924_v4, 16  ;;  %v2223_v31 = vshrl.u32 %v4925_v56, 16 }
 0x13c   : > { %v1711_v19 = vpop.f32.mrf.mxu3  ;;  %1438 = vmatmul.bf16.gmra.mxu2 %v1298_v23  ;;  %v2205_v16 = vshll.u32 %v4923_v26, 16  ;;  %v2219_v26 = vshll.u32 %v4925_v56, 16 }
 0x13d   : > { %v1778_v36 = vadd.f32 %v1711_v19, %v1463_v35  ;;  %v2295_v35 = vpack.c.b16 %v2277_v21, %v2276_v20  ;;  %v5646_v19 = vld [vmem:[%s5732_s23 + $0x10] sm:$0xf]  ;;  %v2203_v21 = vrot.slane %v2202_v24, 4  ;;  %v2198_v29 = vsel %vm5747_vm2, %v2193_v13, %v2197_v46 }
 0x13e   : > { %v2549_v20 = vrot.slane %v5646_v19, 5  ;;  %v2212_v13 = vrot.slane %v2210_v37, 4  ;;  %v2225_v56 = vrot.slane %v2223_v31, 4 }
 0x13f   : > { %v1399_v57 = vpop.f32.mrf.mxu2  ;;  %v6463_v55 = vadd.f32 %v2393_v53, %v1778_v36  ;;  %v1282_v53 = vunpack.c.l.b16 %v1228_v45  ;;  %v2207_v36 = vrot.slane %v2205_v16, 5  ;;  %v5648_v45 = vld [vmem:[%s5732_s23 + $0x14] sm:$0x1] }
 0x140   : > { %v1464_v61 = vadd.f32 %v1399_v57, %v1019_v44  ;;  %v2551_v42 = vrot.slane %v2549_v20, 4  ;;  %v2552_v24 = vrot.slane %v5648_v45, 5 }
 0x141   : > { %7154 = vst [vmem:[#allocation2_spill] sm:$0xff] %v6463_v55  ;;  %1753 = vmatmul.bf16.gmra.mxu3 %v5431_v7  ;;  %v1020_v23 = vpop.f32.mrf.mxu1  ;;  %v1299_v57 = vpack.c.b16 %v1282_v53, %v1281_v22  ;;  %v2208_v46 = vsel %vm5747_vm2, %v2203_v21, %v2207_v36  ;;  %v4975_v22 = vld [vmem:[%s5732_s23 + $0xc] sm:$0xe]  ;;  %v4926_v21 = vld [vmem:[%s5732_s23 + $0xc8] sm:$0x1] }
 0x142   : > { %v2396_v8 = vpop.f32.mrf.mxu0  ;;  %v1021_v11 = vadd.f32 %v1020_v23, %v6214_v9  ;;  %v5647_v9 = vld [vmem:[%s5732_s23 + $0xb8] sm:$0xf]  ;;  %v4991_v19 = vrot.slane %v4975_v22, 9 }
 0x143   : > { %v1231_v23 = vrot.slane %v5647_v9, 5  ;;  %v2279_v9 = vunpack.c.l.b16 %v2208_v46 }
 0x144   : > { %v1714_v18 = vpop.f32.mrf.mxu3 }
 0x145   : > { %2435 = vmatmul.bf16.gmra.mxu0 %v2295_v35  ;;  %v1779_v49 = vadd.f32 %v1714_v18, %v1464_v61  ;;  %v1088_v35 = vld [vmem:[%s5732_s23 + $0xb4] sm:$0xe]  ;;  %v2215_v18 = vrot.slane %v2213_v27, 5  ;;  %v1233_v45 = vrot.slane %v1231_v23, 4 }
 0x146   : > { %v4686_v4 = vrot.slane %v1088_v35, 9  ;;  %v2229_v35 = vshll.u32 %v4926_v21, 16  ;;  %v5393_v21 = vld [vmem:[%s5732_s23 + $0xb4] sm:$0xff] }
 0x147   : > { %v1401_v7 = vpop.f32.mrf.mxu2  ;;  %v6476_v44 = vadd.f32 %v2396_v8, %v1779_v49  ;;  %v2278_v8 = vunpack.c.l.b16 %v2198_v29  ;;  %v2221_v49 = vrot.slane %v2219_v26, 5  ;;  %v2553_v29 = vsel %vm6047_vm5, %v2551_v42, %v2552_v24  ;;  %v5199_v42 = vld [vmem:[%s5732_s23 + $0x18] sm:$0xf] }
 0x148   : > { %v1465_v54 = vadd.f32 %v1401_v7, %v1021_v11  ;;  %v5432_v7 = vld [vmem:[%s5732_s23 + $0xb4] sm:$0xff]  ;;  %v2216_v27 = vor.u32 %v2215_v18, %v2212_v13  ;;  %v1232_v31 = vsel %vm6047_vm5, %v4686_v4, %v1231_v23  ;;  %v6502_v18 = vld [vmem:[%s5732_s23 + $0x1c] sm:$0xf] }
 0x149   : > { %7155 = vst [vmem:[#allocation3_spill] sm:$0xff] %v6476_v44  ;;  %v1023_v61 = vpop.f32.mrf.mxu1  ;;  %v5649_v44 = vld [vmem:[%s5732_s23 + $0xbc] sm:$0x1]  ;;  %v1283_v22 = vunpack.c.l.b16 %v1232_v31 }
 0x14a   : > { %v2398_v16 = vpop.f32.mrf.mxu0  ;;  %v1234_v55 = vrot.slane %v5649_v44, 5  ;;  %v1024_v36 = vadd.f32 %v1023_v61, %v6231_v33  ;;  %v2226_v44 = vor.u32 %v2225_v56, %v2221_v49  ;;  %v2296_v33 = vpack.c.b16 %v2279_v9, %v2278_v8 }
 0x14b   : > { %1062 = vmatmul.bf16.gmra.mxu1 %v5392_v62  ;;  %v2550_v62 = vsel %vm6047_vm5, %v4991_v19, %v2549_v20  ;;  %v2231_v19 = vrot.slane %v2229_v35, 5  ;;  %v3273_v8 = vshrl.u32 %v5199_v42, 16  ;;  %v3276_v9 = vshll.u32 %v5199_v42, 16  ;;  %v5201_v35 = vld [vmem:[%s5732_s23 + $0x20] sm:$0x1] }
 0x14c   : > { %v1716_v53 = vpop.f32.mrf.mxu3  ;;  %1443 = vmatmul.bf16.gmra.mxu2 %v1299_v57  ;;  %v2676_v57 = vunpack.c.l.b16 %v2550_v62  ;;  %v1235_v20 = vsel %vm6047_vm5, %v1233_v45, %v1234_v55  ;;  %v2227_v56 = vrot.slane %v2226_v44, 4  ;;  %v3282_v55 = vshll.u32 %v6502_v18, 16 }
 0x14d   : > { %v1780_v11 = vadd.f32 %v1716_v53, %v1465_v54  ;;  %v2677_v54 = vunpack.c.l.b16 %v2553_v29  ;;  %v2217_v53 = vrot.slane %v2216_v27, 4  ;;  %v1284_v4 = vunpack.c.l.b16 %v1235_v20 }
 0x14e   : > { %v2232_v27 = vsel %vm5747_vm2, %v2227_v56, %v2231_v19  ;;  %v3284_v31 = vrot.slane %v3282_v55, 5  ;;  %v5202_v56 = vld [vmem:[%s5732_s23 + $0x24] sm:$0xf] }
 0x14f   : > { %v1404_v37 = vpop.f32.mrf.mxu2  ;;  %v6496_v46 = vpack.c.b16 %v2677_v54, %v2676_v57  ;;  %v6499_v24 = vadd.f32 %v2398_v16, %v1780_v11  ;;  %v3286_v16 = vshrl.u32 %v6502_v18, 16  ;;  %v1300_v29 = vpack.c.b16 %v1284_v4, %v1283_v22 }
 0x150   : > { %v1466_v26 = vadd.f32 %v1404_v37, %v1024_v36  ;;  %v2222_v37 = vsel %vm5747_vm2, %v2217_v53, %v2221_v49  ;;  %v3275_v54 = vrot.slane %v3273_v8, 4  ;;  %v2281_v20 = vunpack.c.l.b16 %v2232_v27 }
 0x151   : > { %1758 = vmatmul.bf16.gmra.mxu3 %v5432_v7  ;;  %v1025_v61 = vpop.f32.mrf.mxu1  ;;  %v3288_v44 = vrot.slane %v3286_v16, 4  ;;  %v3292_v53 = vshll.u32 %v5201_v35, 16  ;;  %v3300_v27 = vshll.u32 %v5202_v56, 16 }
 0x152   : > { %v2401_v13 = vpop.f32.mrf.mxu0  ;;  %v1026_v11 = vadd.f32 %v1025_v61, %v6246_v0  ;;  %v2280_v61 = vunpack.c.l.b16 %v2222_v37  ;;  %v3297_v37 = vshrl.u32 %v5202_v56, 16  ;;  %v5650_v56 = vld [vmem:[%s5732_s23 + $0x1c] sm:$0xf] }
 0x153   : > { %v3289_v22 = vor.u32 %v3288_v44, %v3284_v31 }
 0x154   : > { %v1719_v23 = vpop.f32.mrf.mxu3  ;;  %v2297_v19 = vpack.c.b16 %v2281_v20, %v2280_v61  ;;  %v3975_v20 = vrot.slane %v5201_v35, 5 }
 0x155   : > { %2440 = vmatmul.bf16.gmra.mxu0 %v2296_v33  ;;  %v1781_v7 = vadd.f32 %v1719_v23, %v1466_v26  ;;  %v3278_v26 = vrot.slane %v3276_v9, 5  ;;  %v3290_v16 = vrot.slane %v3289_v22, 4 }
 0x157   : > { %v1406_v45 = vpop.f32.mrf.mxu2  ;;  %v6508_v36 = vadd.f32 %v2401_v13, %v1781_v7  ;;  %v5433_v13 = vld [vmem:[%s5732_s23 + $0xc0] sm:$0xff]  ;;  %v3279_v49 = vor.u32 %v3278_v26, %v3275_v54  ;;  %v6519_v7 = vld [vmem:[%s5732_s23 + $0x28] sm:$0xf] }
 0x158   : > { %v1467_v62 = vadd.f32 %v1406_v45, %v1026_v11  ;;  %v3294_v11 = vrot.slane %v3292_v53, 5 }
 0x159   : > { %v1028_v57 = vpop.f32.mrf.mxu1  ;;  %v3280_v55 = vrot.slane %v3279_v49, 4  ;;  %v3302_v49 = vrot.slane %v3300_v27, 5 }
 0x15a   : > { %v2403_v0 = vpop.f32.mrf.mxu0  ;;  %v1029_v23 = vadd.f32 %v1028_v57, %v6268_v32  ;;  %v3306_v32 = vshll.u32 %v6519_v7, 16  ;;  %v3310_v57 = vshrl.u32 %v6519_v7, 16 }
 0x15b   : > { %1067 = vmatmul.bf16.gmra.mxu1 %v5393_v21  ;;  %v3285_v44 = vsel %vm5747_vm2, %v3280_v55, %v3284_v31  ;;  %v5458_v31 = vld [vmem:[%s5732_s23 + $0x18] sm:$0xff] }
 0x15c   : > { %v1721_v33 = vpop.f32.mrf.mxu3  ;;  %1448 = vmatmul.bf16.gmra.mxu2 %v1300_v29  ;;  %v3972_v29 = vrot.slane %v6502_v18, 5  ;;  %v6532_v22 = vrot.slane %v3306_v32, 5  ;;  %v3312_v53 = vrot.slane %v3310_v57, 4 }
 0x15d   : > { %v1782_v42 = vadd.f32 %v1721_v33, %v1467_v62  ;;  %v5295_v62 = vld [vmem:[%s5732_s23 + $0x18] sm:$0xe] }
 0x15e   : > { %v5311_v33 = vrot.slane %v5295_v62, 9  ;;  %v3974_v61 = vrot.slane %v3972_v29, 4 }
 0x15f   : > { %v1409_v4 = vpop.f32.mrf.mxu2  ;;  %v6521_v45 = vadd.f32 %v2403_v0, %v1782_v42  ;;  %v3295_v0 = vsel %vm5747_vm2, %v3290_v16, %v3294_v11  ;;  %v3299_v42 = vrot.slane %v3297_v37, 4  ;;  %v4976_v16 = vld [vmem:[%s5732_s23 + $0x18] sm:$0xe]  ;;  %v3313_v37 = vor.u32 %v3312_v53, %v6532_v22 }
 0x160   : > { %v1468_v8 = vadd.f32 %v1409_v4, %v1029_v23  ;;  %v3973_v11 = vsel %vm6047_vm5, %v5311_v33, %v3972_v29  ;;  %v3976_v62 = vsel %vm6047_vm5, %v3974_v61, %v3975_v20  ;;  %v4992_v57 = vrot.slane %v4976_v16, 9  ;;  %v5205_v16 = vld [vmem:[%s5732_s23 + $0x30] sm:$0xf] }
 0x161   : > { %1763 = vmatmul.bf16.gmra.mxu3 %v5433_v13  ;;  %v1030_v9 = vpop.f32.mrf.mxu1  ;;  %v4099_v29 = vunpack.c.l.b16 %v3973_v11  ;;  %v4100_v33 = vunpack.c.l.b16 %v3976_v62  ;;  %v6561_v11 = vld [vmem:[%s5732_s23 + $0x34] sm:$0xf] }
 0x162   : > { %v2406_v21 = vpop.f32.mrf.mxu0  ;;  %v1031_v18 = vadd.f32 %v1030_v9, %v6286_v3  ;;  %v3673_v3 = vunpack.c.l.b16 %v3285_v44  ;;  %v3674_v9 = vunpack.c.l.b16 %v3295_v0 }
 0x164   : > { %v1724_v54 = vpop.f32.mrf.mxu3 }
 0x165   : > { %2445 = vmatmul.bf16.gmra.mxu0 %v2297_v19  ;;  %v1783_v26 = vadd.f32 %v1724_v54, %v1468_v8  ;;  %v2556_v19 = vrot.slane %v5650_v56, 5  ;;  %v6539_v8 = vld [vmem:[%s5732_s23 + $0x2c] sm:$0x1]  ;;  %v5296_v56 = vld [vmem:[%s5732_s23 + $0x24] sm:$0xe] }
 0x166   : > { %v3316_v27 = vshll.u32 %v6539_v8, 16 }
 0x167   : > { %v1411_v13 = vpop.f32.mrf.mxu2  ;;  %v6534_v23 = vadd.f32 %v2406_v21, %v1783_v26  ;;  %v3303_v21 = vor.u32 %v3302_v49, %v3299_v42  ;;  %v2558_v54 = vrot.slane %v2556_v19, 4  ;;  %v5651_v26 = vld [vmem:[%s5732_s23 + $0x20] sm:$0x1]  ;;  %v3314_v42 = vrot.slane %v3313_v37, 4 }
 0x168   : > { %v1469_v4 = vadd.f32 %v1411_v13, %v1031_v18  ;;  %v2559_v44 = vrot.slane %v5651_v26, 5  ;;  %v3705_v18 = vpack.c.b16 %v3674_v9, %v3673_v3  ;;  %v3318_v13 = vrot.slane %v3316_v27, 5 }
 0x169   : > { %v1033_v55 = vpop.f32.mrf.mxu1  ;;  %v3304_v20 = vrot.slane %v3303_v21, 4  ;;  %v2557_v53 = vsel %vm6047_vm5, %v4992_v57, %v2556_v19  ;;  %v4131_v3 = vpack.c.b16 %v4100_v33, %v4099_v29  ;;  %v5312_v37 = vrot.slane %v5296_v56, 9 }
 0x16a   : > { %v2408_v35 = vpop.f32.mrf.mxu0  ;;  %v1034_v61 = vadd.f32 %v1033_v55, %v6165_v17  ;;  %v2678_v62 = vunpack.c.l.b16 %v2557_v53  ;;  %v3321_v57 = vshrl.u32 %v5205_v16, 16  ;;  %v3982_v26 = vrot.slane %v6539_v8, 5  ;;  %v4977_v53 = vld [vmem:[%s5732_s23 + $0x24] sm:$0xe] }
 0x16b   : > { %2796 = vmatmul.bf16.vlgmr.msra.gmra.mxu1 %v6496_v46  ;;  %v3309_v19 = vsel %vm5747_vm2, %v3304_v20, %v6532_v22 }
 0x16c   : > { %v1726_v32 = vpop.f32.mrf.mxu3  ;;  %3111 = vmatmul.bf16.vlgmr.msra.gmra.mxu2 %v5458_v31  ;;  %v2560_v31 = vsel %vm6047_vm5, %v2558_v54, %v2559_v44  ;;  %v3330_v44 = vshll.u32 %v6561_v11, 16  ;;  %v3675_v33 = vunpack.c.l.b16 %v3309_v19  ;;  %v3323_v8 = vrot.slane %v3321_v57, 4 }
 0x16d   : > { %v1784_v0 = vadd.f32 %v1726_v32, %v1469_v4  ;;  %v3979_v4 = vrot.slane %v6519_v7, 5  ;;  %v2679_v21 = vunpack.c.l.b16 %v2560_v31  ;;  %v3319_v7 = vsel %vm5747_vm2, %v3314_v42, %v3318_v13  ;;  %v5459_v13 = vld [vmem:[%s5732_s23 + $0x24] sm:$0xff] }
 0x16f   : > { %v1414_v46 = vpop.f32.mrf.mxu2  ;;  %v6558_v17 = vadd.f32 %v2408_v35, %v1784_v0  ;;  %v3981_v32 = vrot.slane %v3979_v4, 4  ;;  %v3324_v35 = vshll.u32 %v5205_v16, 16  ;;  %v3334_v0 = vshrl.u32 %v6561_v11, 16 }
 0x170   : > { %v1470_v49 = vadd.f32 %v1414_v46, %v1034_v61  ;;  %v2709_v29 = vpack.c.b16 %v2679_v21, %v2678_v62  ;;  %v5652_v61 = vld [vmem:[%s5732_s23 + $0x28] sm:$0xf]  ;;  %v4993_v21 = vrot.slane %v4977_v53, 9 }
 0x171   : > { %3793 = vmatmul.bf16.vlgmr.msra.gmra.mxu3 %v3705_v18  ;;  %v1035_v9 = vpop.f32.mrf.mxu1  ;;  %v2563_v46 = vrot.slane %v5652_v61, 5  ;;  %v3326_v31 = vrot.slane %v3324_v35, 5  ;;  %v3336_v16 = vrot.slane %v3334_v0, 4  ;;  %v5208_v61 = vld [vmem:[%s5732_s23 + $0x3c] sm:$0xf] }
 0x172   : > { %v2411_v55 = vpop.f32.mrf.mxu0  ;;  %v1036_v22 = vadd.f32 %v1035_v9, %v6189_v39  ;;  %v3983_v39 = vsel %vm6047_vm5, %v3981_v32, %v3982_v26  ;;  %v6581_v9 = vrot.slane %v3330_v44, 5 }
 0x173   : > { %v2565_v19 = vrot.slane %v2563_v46, 4 }
 0x174   : > { %v1729_v27 = vpop.f32.mrf.mxu3  ;;  %v3337_v26 = vor.u32 %v3336_v16, %v6581_v9  ;;  %v5297_v16 = vld [vmem:[%s5732_s23 + $0x30] sm:$0xe] }
 0x175   : > { %4219 = vmatmul.bf16.vlgmr.msra.gmra.mxu0 %v4131_v3  ;;  %v1785_v54 = vadd.f32 %v1729_v27, %v1470_v49  ;;  %v3676_v49 = vunpack.c.l.b16 %v3319_v7  ;;  %v3980_v3 = vsel %vm6047_vm5, %v5312_v37, %v3979_v4  ;;  %v5653_v27 = vld [vmem:[%s5732_s23 + $0x2c] sm:$0x1]  ;;  %v4102_v4 = vunpack.c.l.b16 %v3983_v39 }
 0x176   : > { %v2566_v7 = vrot.slane %v5653_v27, 5  ;;  %v4101_v35 = vunpack.c.l.b16 %v3980_v3  ;;  %v3327_v37 = vor.u32 %v3326_v31, %v3323_v8 }
 0x177   : > { %v1416_v18 = vpop.f32.mrf.mxu2  ;;  %v6573_v20 = vadd.f32 %v2411_v55, %v1785_v54  ;;  %v6584_v55 = vld [vmem:[%s5732_s23 + $0x38] sm:$0x1]  ;;  %v3706_v32 = vpack.c.b16 %v3676_v49, %v3675_v33  ;;  %v3338_v49 = vrot.slane %v3337_v26, 4 }
 0x178   : > { %v1471_v42 = vadd.f32 %v1416_v18, %v1036_v22  ;;  %v3340_v44 = vshll.u32 %v6584_v55, 16  ;;  %v2564_v18 = vsel %vm6047_vm5, %v4993_v21, %v2563_v46  ;;  %v3328_v8 = vrot.slane %v3327_v37, 4 }
 0x179   : > { %v1038_v56 = vpop.f32.mrf.mxu1  ;;  %v2680_v46 = vunpack.c.l.b16 %v2564_v18  ;;  %v3345_v21 = vshrl.u32 %v5208_v61, 16  ;;  %v3989_v26 = vrot.slane %v6584_v55, 5 }
 0x17a   : > { %v2413_v62 = vpop.f32.mrf.mxu0  ;;  %v1039_v0 = vadd.f32 %v1038_v56, %v6209_v2  ;;  %v3342_v31 = vrot.slane %v3340_v44, 5  ;;  %v3986_v2 = vrot.slane %v6561_v11, 5 }
 0x17b   : > { %2801 = vmatmul.bf16.gmra.mxu1 %v2709_v29  ;;  %v2567_v29 = vsel %vm6047_vm5, %v2565_v19, %v2566_v7  ;;  %v3348_v19 = vshll.u32 %v5208_v61, 16  ;;  %v3347_v44 = vrot.slane %v3345_v21, 4 }
 0x17c   : > { %v1731_v57 = vpop.f32.mrf.mxu3  ;;  %3116 = vmatmul.bf16.gmra.mxu2 %v5459_v13  ;;  %v4132_v13 = vpack.c.b16 %v4102_v4, %v4101_v35  ;;  %v2681_v39 = vunpack.c.l.b16 %v2567_v29  ;;  %v3333_v35 = vsel %vm5747_vm2, %v3328_v8, %v6581_v9  ;;  %v5313_v4 = vrot.slane %v5297_v16, 9 }
 0x17d   : > { %v1786_v54 = vadd.f32 %v1731_v57, %v1471_v42  ;;  %v6596_v42 = vld [vmem:[%s5732_s23 + $0x40] sm:$0xf]  ;;  %v3988_v37 = vrot.slane %v3986_v2, 4 }
 0x17e   : > { %v3354_v27 = vshll.u32 %v6596_v42, 16  ;;  %v3358_v7 = vshrl.u32 %v6596_v42, 16 }
 0x17f   : > { %v1419_v22 = vpop.f32.mrf.mxu2  ;;  %v6599_v56 = vadd.f32 %v2413_v62, %v1786_v54  ;;  %v3343_v62 = vsel %vm5747_vm2, %v3338_v49, %v3342_v31  ;;  %v6618_v49 = vld [vmem:[%s5732_s23 + $0x44] sm:$0x1]  ;;  %v3990_v16 = vsel %vm6047_vm5, %v3988_v37, %v3989_v26 }
 0x180   : > { %v1472_v53 = vadd.f32 %v1419_v22, %v1039_v0  ;;  %v3350_v22 = vrot.slane %v3348_v19, 5  ;;  %v6611_v9 = vrot.slane %v3354_v27, 5  ;;  %v3360_v18 = vrot.slane %v3358_v7, 4 }
 0x181   : > { %3798 = vmatmul.bf16.gmra.mxu3 %v3706_v32  ;;  %v1040_v33 = vpop.f32.mrf.mxu1  ;;  %v2710_v32 = vpack.c.b16 %v2681_v39, %v2680_v46  ;;  %v3678_v31 = vunpack.c.l.b16 %v3343_v62  ;;  %v4978_v46 = vld [vmem:[%s5732_s23 + $0x30] sm:$0xe]  ;;  %v3987_v39 = vsel %vm6047_vm5, %v5313_v4, %v3986_v2  ;;  %v3364_v19 = vshll.u32 %v6618_v49, 16 }
 0x182   : > { %v2416_v3 = vpop.f32.mrf.mxu0  ;;  %v1041_v54 = vadd.f32 %v1040_v33, %v6224_v25  ;;  %v3677_v33 = vunpack.c.l.b16 %v3333_v35  ;;  %v3361_v21 = vor.u32 %v3360_v18, %v6611_v9  ;;  %v4994_v7 = vrot.slane %v4978_v46, 9  ;;  %v5655_v35 = vld [vmem:[%s5732_s23 + $0x38] sm:$0x1]  ;;  %v5211_v46 = vld [vmem:[%s5732_s23 + $0x48] sm:$0xf] }
 0x183   : > { %v4103_v2 = vunpack.c.l.b16 %v3987_v39  ;;  %v4104_v4 = vunpack.c.l.b16 %v3990_v16  ;;  %v6639_v39 = vld [vmem:[%s5732_s23 + $0x4c] sm:$0xf] }
 0x184   : > { %v1734_v57 = vpop.f32.mrf.mxu3 }
 0x185   : > { %4224 = vmatmul.bf16.gmra.mxu0 %v4132_v13  ;;  %v1787_v11 = vadd.f32 %v1734_v57, %v1472_v53  ;;  %v5460_v13 = vld [vmem:[%s5732_s23 + $0x30] sm:$0xff] }
 0x186   : > { %v5654_v53 = vld [vmem:[%s5732_s23 + $0x34] sm:$0xf] }
 0x187   : > { %v1421_v0 = vpop.f32.mrf.mxu2  ;;  %v6613_v29 = vadd.f32 %v2416_v3, %v1787_v11  ;;  %v2570_v8 = vrot.slane %v5654_v53, 5  ;;  %v3351_v3 = vor.u32 %v3350_v22, %v3347_v44  ;;  %v2573_v11 = vrot.slane %v5655_v35, 5  ;;  %v5298_v53 = vld [vmem:[%s5732_s23 + $0x3c] sm:$0xe] }
 0x188   : > { %v1473_v61 = vadd.f32 %v1421_v0, %v1041_v54  ;;  %v3707_v54 = vpack.c.b16 %v3678_v31, %v3677_v33  ;;  %v3362_v44 = vrot.slane %v3361_v21, 4  ;;  %v3366_v0 = vrot.slane %v3364_v19, 5 }
 0x189   : > { %v1043_v25 = vpop.f32.mrf.mxu1  ;;  %v2572_v57 = vrot.slane %v2570_v8, 4  ;;  %v3352_v26 = vrot.slane %v3351_v3, 4  ;;  %v2571_v18 = vsel %vm6047_vm5, %v4994_v7, %v2570_v8  ;;  %v4133_v33 = vpack.c.b16 %v4104_v4, %v4103_v2 }
 0x18a   : > { %v2418_v55 = vpop.f32.mrf.mxu0  ;;  %v1044_v37 = vadd.f32 %v1043_v25, %v6239_v58  ;;  %v2682_v16 = vunpack.c.l.b16 %v2571_v18  ;;  %v5314_v21 = vrot.slane %v5298_v53, 9  ;;  %v3369_v7 = vshrl.u32 %v5211_v46, 16  ;;  %v4979_v18 = vld [vmem:[%s5732_s23 + $0x3c] sm:$0xe] }
 0x18b   : > { %2806 = vmatmul.bf16.gmra.mxu1 %v2710_v32  ;;  %v3357_v8 = vsel %vm5747_vm2, %v3352_v26, %v6611_v9  ;;  %v3996_v35 = vrot.slane %v6618_v49, 5 }
 0x18c   : > { %v1736_v27 = vpop.f32.mrf.mxu3  ;;  %3121 = vmatmul.bf16.gmra.mxu2 %v5460_v13  ;;  %v2574_v13 = vsel %vm6047_vm5, %v2572_v57, %v2573_v11  ;;  %v3378_v11 = vshll.u32 %v6639_v39, 16  ;;  %v3679_v4 = vunpack.c.l.b16 %v3357_v8  ;;  %v3371_v49 = vrot.slane %v3369_v7, 4 }
 0x18d   : > { %v1788_v62 = vadd.f32 %v1736_v27, %v1473_v61  ;;  %v3993_v61 = vrot.slane %v6596_v42, 5  ;;  %v2683_v3 = vunpack.c.l.b16 %v2574_v13  ;;  %v3367_v42 = vsel %vm5747_vm2, %v3362_v44, %v3366_v0  ;;  %v5461_v0 = vld [vmem:[%s5732_s23 + $0x3c] sm:$0xff] }
 0x18f   : > { %v1424_v32 = vpop.f32.mrf.mxu2  ;;  %v6636_v58 = vadd.f32 %v2418_v55, %v1788_v62  ;;  %v3995_v27 = vrot.slane %v3993_v61, 4  ;;  %v3372_v55 = vshll.u32 %v5211_v46, 16  ;;  %v3382_v62 = vshrl.u32 %v6639_v39, 16 }
 0x190   : > { %v1474_v22 = vadd.f32 %v1424_v32, %v1044_v37  ;;  %v2711_v2 = vpack.c.b16 %v2683_v3, %v2682_v16  ;;  %v5656_v37 = vld [vmem:[%s5732_s23 + $0x40] sm:$0xf]  ;;  %v4995_v3 = vrot.slane %v4979_v18, 9 }
 0x191   : > { %3803 = vmatmul.bf16.gmra.mxu3 %v3707_v54  ;;  %v1045_v31 = vpop.f32.mrf.mxu1  ;;  %v2577_v32 = vrot.slane %v5656_v37, 5  ;;  %v3374_v13 = vrot.slane %v3372_v55, 5  ;;  %v3384_v46 = vrot.slane %v3382_v62, 4  ;;  %v5214_v37 = vld [vmem:[%s5732_s23 + $0x54] sm:$0xf] }
 0x192   : > { %v2421_v25 = vpop.f32.mrf.mxu0  ;;  %v1046_v9 = vadd.f32 %v1045_v31, %v6262_v51  ;;  %v3997_v51 = vsel %vm6047_vm5, %v3995_v27, %v3996_v35  ;;  %v6659_v31 = vrot.slane %v3378_v11, 5 }
 0x193   : > { %v2579_v8 = vrot.slane %v2577_v32, 4 }
 0x194   : > { %v1739_v19 = vpop.f32.mrf.mxu3  ;;  %v3385_v35 = vor.u32 %v3384_v46, %v6659_v31  ;;  %v5299_v46 = vld [vmem:[%s5732_s23 + $0x48] sm:$0xe] }
 0x195   : > { %4229 = vmatmul.bf16.gmra.mxu0 %v4133_v33  ;;  %v1789_v57 = vadd.f32 %v1739_v19, %v1474_v22  ;;  %v3680_v22 = vunpack.c.l.b16 %v3367_v42  ;;  %v3994_v33 = vsel %vm6047_vm5, %v5314_v21, %v3993_v61  ;;  %v5657_v19 = vld [vmem:[%s5732_s23 + $0x44] sm:$0x1]  ;;  %v4106_v61 = vunpack.c.l.b16 %v3997_v51 }
 0x196   : > { %v2580_v42 = vrot.slane %v5657_v19, 5  ;;  %v4105_v55 = vunpack.c.l.b16 %v3994_v33  ;;  %v3375_v21 = vor.u32 %v3374_v13, %v3371_v49 }
 0x197   : > { %v1426_v54 = vpop.f32.mrf.mxu2  ;;  %v6651_v26 = vadd.f32 %v2421_v25, %v1789_v57  ;;  %v6662_v25 = vld [vmem:[%s5732_s23 + $0x50] sm:$0x1]  ;;  %v3708_v27 = vpack.c.b16 %v3680_v22, %v3679_v4  ;;  %v3386_v22 = vrot.slane %v3385_v35, 4 }
 0x198   : > { %v1475_v44 = vadd.f32 %v1426_v54, %v1046_v9  ;;  %v3388_v11 = vshll.u32 %v6662_v25, 16  ;;  %v2578_v54 = vsel %vm6047_vm5, %v4995_v3, %v2577_v32  ;;  %v3376_v49 = vrot.slane %v3375_v21, 4 }
 0x199   : > { %v1048_v53 = vpop.f32.mrf.mxu1  ;;  %v2684_v32 = vunpack.c.l.b16 %v2578_v54  ;;  %v3393_v3 = vshrl.u32 %v5214_v37, 16  ;;  %v4003_v35 = vrot.slane %v6662_v25, 5 }
 0x19a   : > { %v2423_v16 = vpop.f32.mrf.mxu0  ;;  %v1049_v62 = vadd.f32 %v1048_v53, %v6283_v14  ;;  %v3390_v13 = vrot.slane %v3388_v11, 5  ;;  %v4000_v14 = vrot.slane %v6639_v39, 5 }
 0x19b   : > { %2811 = vmatmul.bf16.gmra.mxu1 %v2711_v2  ;;  %v2581_v2 = vsel %vm6047_vm5, %v2579_v8, %v2580_v42  ;;  %v3396_v8 = vshll.u32 %v5214_v37, 16  ;;  %v3395_v11 = vrot.slane %v3393_v3, 4 }
 0x19c   : > { %v1741_v7 = vpop.f32.mrf.mxu3  ;;  %3126 = vmatmul.bf16.gmra.mxu2 %v5461_v0  ;;  %v4134_v0 = vpack.c.b16 %v4106_v61, %v4105_v55  ;;  %v2685_v51 = vunpack.c.l.b16 %v2581_v2  ;;  %v3381_v55 = vsel %vm5747_vm2, %v3376_v49, %v6659_v31  ;;  %v5315_v61 = vrot.slane %v5299_v46, 9 }
 0x19d   : > { %v1790_v57 = vadd.f32 %v1741_v7, %v1475_v44  ;;  %v6674_v44 = vld [vmem:[%s5732_s23 + $0x58] sm:$0xf]  ;;  %v4002_v21 = vrot.slane %v4000_v14, 4 }
 0x19e   : > { %v3402_v19 = vshll.u32 %v6674_v44, 16  ;;  %v3406_v42 = vshrl.u32 %v6674_v44, 16 }
 0x19f   : > { %v1429_v9 = vpop.f32.mrf.mxu2  ;;  %v6677_v53 = vadd.f32 %v2423_v16, %v1790_v57  ;;  %v3391_v16 = vsel %vm5747_vm2, %v3386_v22, %v3390_v13  ;;  %v6696_v22 = vld [vmem:[%s5732_s23 + $0x5c] sm:$0x1]  ;;  %v4004_v46 = vsel %vm6047_vm5, %v4002_v21, %v4003_v35 }
 0x1a0   : > { %v1476_v18 = vadd.f32 %v1429_v9, %v1049_v62  ;;  %v3398_v9 = vrot.slane %v3396_v8, 5  ;;  %v6689_v31 = vrot.slane %v3402_v19, 5  ;;  %v3408_v54 = vrot.slane %v3406_v42, 4 }
 0x1a1   : > { %3808 = vmatmul.bf16.gmra.mxu3 %v3708_v27  ;;  %v1050_v4 = vpop.f32.mrf.mxu1  ;;  %v2712_v27 = vpack.c.b16 %v2685_v51, %v2684_v32  ;;  %v3682_v13 = vunpack.c.l.b16 %v3391_v16  ;;  %v4980_v32 = vld [vmem:[%s5732_s23 + $0x48] sm:$0xe]  ;;  %v4001_v51 = vsel %vm6047_vm5, %v5315_v61, %v4000_v14  ;;  %v3412_v8 = vshll.u32 %v6696_v22, 16 }
 0x1a2   : > { %v2426_v33 = vpop.f32.mrf.mxu0  ;;  %v1051_v57 = vadd.f32 %v1050_v4, %v6298_v38  ;;  %v3681_v4 = vunpack.c.l.b16 %v3381_v55  ;;  %v3409_v3 = vor.u32 %v3408_v54, %v6689_v31  ;;  %v4996_v42 = vrot.slane %v4980_v32, 9  ;;  %v5659_v55 = vld [vmem:[%s5732_s23 + $0x50] sm:$0x1]  ;;  %v5217_v32 = vld [vmem:[%s5732_s23 + $0x60] sm:$0xf] }
 0x1a3   : > { %v4107_v14 = vunpack.c.l.b16 %v4001_v51  ;;  %v4108_v61 = vunpack.c.l.b16 %v4004_v46  ;;  %v6717_v51 = vld [vmem:[%s5732_s23 + $0x64] sm:$0xf] }
 0x1a4   : > { %v1744_v7 = vpop.f32.mrf.mxu3 }
 0x1a5   : > { %4234 = vmatmul.bf16.gmra.mxu0 %v4134_v0  ;;  %v1791_v39 = vadd.f32 %v1744_v7, %v1476_v18  ;;  %v5462_v0 = vld [vmem:[%s5732_s23 + $0x48] sm:$0xff] }
 0x1a6   : > { %v5658_v18 = vld [vmem:[%s5732_s23 + $0x4c] sm:$0xf] }
 0x1a7   : > { %v1431_v62 = vpop.f32.mrf.mxu2  ;;  %v6691_v2 = vadd.f32 %v2426_v33, %v1791_v39  ;;  %v2584_v49 = vrot.slane %v5658_v18, 5  ;;  %v3399_v33 = vor.u32 %v3398_v9, %v3395_v11  ;;  %v2587_v39 = vrot.slane %v5659_v55, 5  ;;  %v5300_v18 = vld [vmem:[%s5732_s23 + $0x54] sm:$0xe] }
 0x1a8   : > { %v1477_v37 = vadd.f32 %v1431_v62, %v1051_v57  ;;  %v3709_v57 = vpack.c.b16 %v3682_v13, %v3681_v4  ;;  %v3410_v11 = vrot.slane %v3409_v3, 4  ;;  %v3414_v62 = vrot.slane %v3412_v8, 5 }
 0x1a9   : > { %v1053_v38 = vpop.f32.mrf.mxu1  ;;  %v2586_v7 = vrot.slane %v2584_v49, 4  ;;  %v3400_v35 = vrot.slane %v3399_v33, 4  ;;  %v2585_v54 = vsel %vm6047_vm5, %v4996_v42, %v2584_v49  ;;  %v4135_v4 = vpack.c.b16 %v4108_v61, %v4107_v14 }
 0x1aa   : > { %v2428_v25 = vpop.f32.mrf.mxu0  ;;  %v1054_v21 = vadd.f32 %v1053_v38, %v6168_v50  ;;  %v2686_v46 = vunpack.c.l.b16 %v2585_v54  ;;  %v5316_v3 = vrot.slane %v5300_v18, 9  ;;  %v3417_v42 = vshrl.u32 %v5217_v32, 16  ;;  %v4981_v54 = vld [vmem:[%s5732_s23 + $0x54] sm:$0xe] }
 0x1ab   : > { %2816 = vmatmul.bf16.gmra.mxu1 %v2712_v27  ;;  %v3405_v49 = vsel %vm5747_vm2, %v3400_v35, %v6689_v31  ;;  %v4010_v55 = vrot.slane %v6696_v22, 5 }
 0x1ac   : > { %v1746_v19 = vpop.f32.mrf.mxu3  ;;  %3131 = vmatmul.bf16.gmra.mxu2 %v5462_v0  ;;  %v2588_v0 = vsel %vm6047_vm5, %v2586_v7, %v2587_v39  ;;  %v3426_v39 = vshll.u32 %v6717_v51, 16  ;;  %v3683_v61 = vunpack.c.l.b16 %v3405_v49  ;;  %v3419_v22 = vrot.slane %v3417_v42, 4 }
 0x1ad   : > { %v1792_v16 = vadd.f32 %v1746_v19, %v1477_v37  ;;  %v4007_v37 = vrot.slane %v6674_v44, 5  ;;  %v2687_v33 = vunpack.c.l.b16 %v2588_v0  ;;  %v3415_v44 = vsel %vm5747_vm2, %v3410_v11, %v3414_v62  ;;  %v5463_v62 = vld [vmem:[%s5732_s23 + $0x54] sm:$0xff] }
 0x1af   : > { %v1434_v27 = vpop.f32.mrf.mxu2  ;;  %v6714_v50 = vadd.f32 %v2428_v25, %v1792_v16  ;;  %v4009_v19 = vrot.slane %v4007_v37, 4  ;;  %v3420_v25 = vshll.u32 %v5217_v32, 16  ;;  %v3430_v16 = vshrl.u32 %v6717_v51, 16 }
 0x1b0   : > { %v1478_v9 = vadd.f32 %v1434_v27, %v1054_v21  ;;  %v2713_v14 = vpack.c.b16 %v2687_v33, %v2686_v46  ;;  %v5660_v21 = vld [vmem:[%s5732_s23 + $0x58] sm:$0xf]  ;;  %v6738_v33 = vld [vmem:[%s5732_s23 + $0x68] sm:$0x1] }
 0x1b1   : > { %3813 = vmatmul.bf16.gmra.mxu3 %v3709_v57  ;;  %v1055_v13 = vpop.f32.mrf.mxu1  ;;  %v2591_v27 = vrot.slane %v5660_v21, 5  ;;  %v3422_v0 = vrot.slane %v3420_v25, 5  ;;  %v3432_v32 = vrot.slane %v3430_v16, 4  ;;  %v5220_v21 = vld [vmem:[%s5732_s23 + $0x6c] sm:$0xf] }
 0x1b2   : > { %v2431_v38 = vpop.f32.mrf.mxu0  ;;  %v1056_v31 = vadd.f32 %v1055_v13, %v6191_v40  ;;  %v4011_v40 = vsel %vm6047_vm5, %v4009_v19, %v4010_v55  ;;  %v3428_v13 = vrot.slane %v3426_v39, 5  ;;  %v3436_v55 = vshll.u32 %v6738_v33, 16 }
 0x1b3   : > { %v2593_v49 = vrot.slane %v2591_v27, 4 }
 0x1b4   : > { %v1749_v8 = vpop.f32.mrf.mxu3  ;;  %v3433_v19 = vor.u32 %v3432_v32, %v3428_v13  ;;  %v5301_v32 = vld [vmem:[%s5732_s23 + $0x60] sm:$0xe] }
 0x1b5   : > { %4239 = vmatmul.bf16.gmra.mxu0 %v4135_v4  ;;  %v1793_v7 = vadd.f32 %v1749_v8, %v1478_v9  ;;  %v3684_v9 = vunpack.c.l.b16 %v3415_v44  ;;  %v4008_v4 = vsel %vm6047_vm5, %v5316_v3, %v4007_v37  ;;  %v5661_v8 = vld [vmem:[%s5732_s23 + $0x5c] sm:$0x1]  ;;  %v3423_v37 = vor.u32 %v3422_v0, %v3419_v22  ;;  %v6749_v22 = vld [vmem:[%s5732_s23 + $0x70] sm:$0xf] }
 0x1b6   : > { %v2594_v44 = vrot.slane %v5661_v8, 5  ;;  %v4109_v25 = vunpack.c.l.b16 %v4008_v4  ;;  %v3450_v8 = vshll.u32 %v6749_v22, 16 }
 0x1b7   : > { %v1436_v57 = vpop.f32.mrf.mxu2  ;;  %v6729_v35 = vadd.f32 %v2431_v38, %v1793_v7  ;;  %v4997_v38 = vrot.slane %v4981_v54, 9  ;;  %v4110_v7 = vunpack.c.l.b16 %v4011_v40  ;;  %v3424_v4 = vrot.slane %v3423_v37, 4 }
 0x1b8   : > { %v1479_v11 = vadd.f32 %v1436_v57, %v1056_v31  ;;  %v3710_v31 = vpack.c.b16 %v3684_v9, %v3683_v61  ;;  %v3438_v9 = vrot.slane %v3436_v55, 5 }
 0x1b9   : > { %v1058_v18 = vpop.f32.mrf.mxu1  ;;  %v2592_v57 = vsel %vm6047_vm5, %v4997_v38, %v2591_v27  ;;  %v3441_v38 = vshrl.u32 %v5220_v21, 16 }
 0x1ba   : > { %v2433_v46 = vpop.f32.mrf.mxu0  ;;  %v1059_v39 = vadd.f32 %v1058_v18, %v6212_v6  ;;  %v4014_v6 = vrot.slane %v6717_v51, 5  ;;  %v2688_v27 = vunpack.c.l.b16 %v2592_v57 }
 0x1bb   : > { %2821 = vmatmul.bf16.gmra.mxu1 %v2713_v14  ;;  %v2595_v14 = vsel %vm6047_vm5, %v2593_v49, %v2594_v44  ;;  %v3444_v49 = vshll.u32 %v5220_v21, 16  ;;  %v3454_v44 = vshrl.u32 %v6749_v22, 16  ;;  %v3443_v55 = vrot.slane %v3441_v38, 4 }
 0x1bc   : > { %v1751_v42 = vpop.f32.mrf.mxu3  ;;  %3136 = vmatmul.bf16.gmra.mxu2 %v5463_v62  ;;  %v4136_v62 = vpack.c.b16 %v4110_v7, %v4109_v25  ;;  %v2689_v40 = vunpack.c.l.b16 %v2595_v14  ;;  %v3429_v25 = vsel %vm5747_vm2, %v3424_v4, %v3428_v13  ;;  %v5317_v7 = vrot.slane %v5301_v32, 9 }
 0x1bd   : > { %v1794_v3 = vadd.f32 %v1751_v42, %v1479_v11  ;;  %v3434_v11 = vrot.slane %v3433_v19, 4  ;;  %v4016_v37 = vrot.slane %v4014_v6, 4  ;;  %v4017_v19 = vrot.slane %v6738_v33, 5 }
 0x1be   : > { %v6763_v13 = vrot.slane %v3450_v8, 5  ;;  %v3456_v57 = vrot.slane %v3454_v44, 4 }
 0x1bf   : > { %v1439_v16 = vpop.f32.mrf.mxu2  ;;  %v6752_v0 = vadd.f32 %v2433_v46, %v1794_v3  ;;  %v3439_v46 = vsel %vm5747_vm2, %v3434_v11, %v3438_v9  ;;  %v4982_v9 = vld [vmem:[%s5732_s23 + $0x60] sm:$0xe]  ;;  %v4018_v32 = vsel %vm6047_vm5, %v4016_v37, %v4017_v19 }
 0x1c0   : > { %v1480_v54 = vadd.f32 %v1439_v16, %v1059_v39  ;;  %v3446_v16 = vrot.slane %v3444_v49, 5  ;;  %v3457_v38 = vor.u32 %v3456_v57, %v6763_v13  ;;  %v4998_v8 = vrot.slane %v4982_v9, 9 }
 0x1c1   : > { %3818 = vmatmul.bf16.gmra.mxu3 %v3710_v31  ;;  %v1060_v61 = vpop.f32.mrf.mxu1  ;;  %v2714_v31 = vpack.c.b16 %v2689_v40, %v2688_v27  ;;  %v6771_v27 = vld [vmem:[%s5732_s23 + $0x74] sm:$0x1]  ;;  %v4015_v40 = vsel %vm6047_vm5, %v5317_v7, %v4014_v6  ;;  %v4112_v6 = vunpack.c.l.b16 %v4018_v32 }
 0x1c2   : > { %v2436_v18 = vpop.f32.mrf.mxu0  ;;  %v1061_v3 = vadd.f32 %v1060_v61, %v6226_v28  ;;  %v3685_v28 = vunpack.c.l.b16 %v3429_v25  ;;  %v3686_v61 = vunpack.c.l.b16 %v3439_v46  ;;  %v3458_v19 = vrot.slane %v3457_v38, 4 }
 0x1c4   : > { %v1754_v42 = vpop.f32.mrf.mxu3 }
 0x1c5   : > { %4244 = vmatmul.bf16.gmra.mxu0 %v4136_v62  ;;  %v1795_v51 = vadd.f32 %v1754_v42, %v1480_v54  ;;  %v5464_v62 = vld [vmem:[%s5732_s23 + $0x60] sm:$0xff]  ;;  %v5663_v42 = vld [vmem:[%s5732_s23 + $0x68] sm:$0x1] }
 0x1c6   : > { %v5662_v54 = vld [vmem:[%s5732_s23 + $0x64] sm:$0xf]  ;;  %v2601_v25 = vrot.slane %v5663_v42, 5 }
 0x1c7   : > { %v1441_v39 = vpop.f32.mrf.mxu2  ;;  %v6765_v14 = vadd.f32 %v2436_v18, %v1795_v51  ;;  %v2598_v4 = vrot.slane %v5662_v54, 5  ;;  %v3447_v18 = vor.u32 %v3446_v16, %v3443_v55  ;;  %v3460_v51 = vshll.u32 %v6771_v27, 16 }
 0x1c8   : > { %v1481_v21 = vadd.f32 %v1441_v39, %v1061_v3  ;;  %v3711_v3 = vpack.c.b16 %v3686_v61, %v3685_v28  ;;  %v4111_v39 = vunpack.c.l.b16 %v4015_v40  ;;  %v5302_v28 = vld [vmem:[%s5732_s23 + $0x6c] sm:$0xe]  ;;  %v4021_v61 = vrot.slane %v6749_v22, 5 }
 0x1c9   : > { %v1063_v11 = vpop.f32.mrf.mxu1  ;;  %v2600_v44 = vrot.slane %v2598_v4, 4  ;;  %v2599_v16 = vsel %vm6047_vm5, %v4998_v8, %v2598_v4  ;;  %v5318_v8 = vrot.slane %v5302_v28, 9 }
 0x1ca   : > { %v2438_v33 = vpop.f32.mrf.mxu0  ;;  %v1064_v7 = vadd.f32 %v1063_v11, %v6244_v63  ;;  %v5223_v11 = vld [vmem:[%s5732_s23 + $0x78] sm:$0xf]  ;;  %v2690_v40 = vunpack.c.l.b16 %v2599_v16 }
 0x1cb   : > { %2826 = vmatmul.bf16.gmra.mxu1 %v2714_v31  ;;  %v3448_v31 = vrot.slane %v3447_v18, 4  ;;  %v2602_v57 = vsel %vm6047_vm5, %v2600_v44, %v2601_v25  ;;  %v6791_v18 = vld [vmem:[%s5732_s23 + $0x7c] sm:$0xf]  ;;  %v3465_v44 = vshrl.u32 %v5223_v11, 16  ;;  %v3468_v42 = vshll.u32 %v5223_v11, 16 }
 0x1cc   : > { %v1756_v49 = vpop.f32.mrf.mxu3  ;;  %3141 = vmatmul.bf16.gmra.mxu2 %v5464_v62  ;;  %v3462_v62 = vrot.slane %v3460_v51, 5  ;;  %v2691_v32 = vunpack.c.l.b16 %v2602_v57  ;;  %v4024_v51 = vrot.slane %v6771_v27, 5  ;;  %v4983_v27 = vld [vmem:[%s5732_s23 + $0x6c] sm:$0xe] }
 0x1cd   : > { %v1796_v46 = vadd.f32 %v1756_v49, %v1481_v21  ;;  %v4137_v21 = vpack.c.b16 %v4112_v6, %v4111_v39  ;;  %v3453_v4 = vsel %vm5747_vm2, %v3448_v31, %v6763_v13  ;;  %v3478_v13 = vshrl.u32 %v6791_v18, 16 }
 0x1ce   : > { %v3463_v49 = vsel %vm5747_vm2, %v3458_v19, %v3462_v62  ;;  %v2715_v39 = vpack.c.b16 %v2691_v32, %v2690_v40  ;;  %v3687_v31 = vunpack.c.l.b16 %v3453_v4  ;;  %v5664_v19 = vld [vmem:[%s5732_s23 + $0x70] sm:$0xf]  ;;  %v3467_v62 = vrot.slane %v3465_v44, 4  ;;  %v6812_v40 = vld [vmem:[%s5732_s23 + $0x80] sm:$0x1] }
 0x1cf   : > { %v1444_v37 = vpop.f32.mrf.mxu2  ;;  %v6787_v9 = vadd.f32 %v2438_v33, %v1796_v46  ;;  %v4023_v33 = vrot.slane %v4021_v61, 4  ;;  %v3474_v46 = vshll.u32 %v6791_v18, 16  ;;  %v3688_v57 = vunpack.c.l.b16 %v3463_v49 }
 0x1d0   : > { %v1482_v55 = vadd.f32 %v1444_v37, %v1064_v7  ;;  %v5465_v37 = vld [vmem:[%s5732_s23 + $0x6c] sm:$0xff]  ;;  %v3480_v11 = vrot.slane %v3478_v13, 4  ;;  %v4999_v4 = vrot.slane %v4983_v27, 9 }
 0x1d1   : > { %3823 = vmatmul.bf16.gmra.mxu3 %v3711_v3  ;;  %v1065_v54 = vpop.f32.mrf.mxu1  ;;  %v4025_v28 = vsel %vm6047_vm5, %v4023_v33, %v4024_v51  ;;  %v3712_v44 = vpack.c.b16 %v3688_v57, %v3687_v31 }
 0x1d2   : > { %v2441_v63 = vpop.f32.mrf.mxu0  ;;  %v1066_v25 = vadd.f32 %v1065_v54, %v6275_v41  ;;  %v4022_v41 = vsel %vm6047_vm5, %v5318_v8, %v4021_v61 }
 0x1d4   : > { %v1759_v38 = vpop.f32.mrf.mxu3 }
 0x1d5   : > { %4249 = vmatmul.bf16.gmra.mxu0 %v4137_v21  ;;  %v1797_v22 = vadd.f32 %v1759_v38, %v1482_v55  ;;  %v2605_v55 = vrot.slane %v5664_v19, 5  ;;  %v3470_v21 = vrot.slane %v3468_v42, 5  ;;  %v4113_v38 = vunpack.c.l.b16 %v4022_v41  ;;  %v5226_v19 = vld [vmem:[%s5732_s23 + $0x84] sm:$0xf]  ;;  %v6823_v41 = vld [vmem:[%s5732_s23 + $0x88] sm:$0xf] }
 0x1d6   : > { %v4114_v42 = vunpack.c.l.b16 %v4025_v28  ;;  %v4028_v28 = vrot.slane %v6791_v18, 5 }
 0x1d7   : > { %v1446_v3 = vpop.f32.mrf.mxu2  ;;  %v6802_v6 = vadd.f32 %v2441_v63, %v1797_v22  ;;  %v3476_v63 = vrot.slane %v3474_v46, 5  ;;  %v2607_v49 = vrot.slane %v2605_v55, 4  ;;  %v5665_v22 = vld [vmem:[%s5732_s23 + $0x74] sm:$0x1]  ;;  %v3484_v46 = vshll.u32 %v6812_v40, 16 }
 0x1d8   : > { %v1483_v7 = vadd.f32 %v1446_v3, %v1066_v25  ;;  %v2608_v61 = vrot.slane %v5665_v22, 5  ;;  %v3471_v25 = vor.u32 %v3470_v21, %v3467_v62  ;;  %v5303_v21 = vld [vmem:[%s5732_s23 + $0x78] sm:$0xe]  ;;  %v3498_v22 = vshll.u32 %v6823_v41, 16 }
 0x1d9   : > { %v1068_v16 = vpop.f32.mrf.mxu1  ;;  %v3481_v51 = vor.u32 %v3480_v11, %v3476_v63  ;;  %v3486_v62 = vrot.slane %v3484_v46, 5 }
 0x1da   : > { %v2443_v54 = vpop.f32.mrf.mxu0  ;;  %v1069_v33 = vadd.f32 %v1068_v16, %v6295_v15  ;;  %v3472_v57 = vrot.slane %v3471_v25, 4  ;;  %v4031_v25 = vrot.slane %v6812_v40, 5  ;;  %v4984_v40 = vld [vmem:[%s5732_s23 + $0x78] sm:$0xe] }
 0x1db   : > { %2831 = vmatmul.bf16.gmra.mxu1 %v2715_v39  ;;  %v2606_v39 = vsel %vm6047_vm5, %v4999_v4, %v2605_v55  ;;  %v3482_v27 = vrot.slane %v3481_v51, 4  ;;  %v3492_v4 = vshll.u32 %v5226_v19, 16 }
 0x1dc   : > { %v1761_v32 = vpop.f32.mrf.mxu3  ;;  %3146 = vmatmul.bf16.gmra.mxu2 %v5465_v37  ;;  %v2609_v37 = vsel %vm6047_vm5, %v2607_v49, %v2608_v61  ;;  %v2692_v11 = vunpack.c.l.b16 %v2606_v39  ;;  %v3477_v61 = vsel %vm5747_vm2, %v3472_v57, %v3476_v63 }
 0x1dd   : > { %v1798_v8 = vadd.f32 %v1761_v32, %v1483_v7  ;;  %v4138_v7 = vpack.c.b16 %v4114_v42, %v4113_v38  ;;  %v2693_v55 = vunpack.c.l.b16 %v2609_v37  ;;  %v3489_v32 = vshrl.u32 %v5226_v19, 16  ;;  %v5466_v37 = vld [vmem:[%s5732_s23 + $0x78] sm:$0xff] }
 0x1de   : > { %v3502_v38 = vshrl.u32 %v6823_v41, 16  ;;  %v4030_v42 = vrot.slane %v4028_v28, 4  ;;  %v5666_v19 = vld [vmem:[%s5732_s23 + $0x7c] sm:$0xf] }
 0x1df   : > { %v1449_v13 = vpop.f32.mrf.mxu2  ;;  %v6825_v15 = vadd.f32 %v2443_v54, %v1798_v8  ;;  %v5319_v8 = vrot.slane %v5303_v21, 9  ;;  %v2716_v51 = vpack.c.b16 %v2693_v55, %v2692_v11  ;;  %v3491_v46 = vrot.slane %v3489_v32, 4 }
 0x1e0   : > { %v1484_v3 = vadd.f32 %v1449_v13, %v1069_v33  ;;  %v3494_v13 = vrot.slane %v3492_v4, 5  ;;  %v2612_v63 = vrot.slane %v5666_v19, 5 }
 0x1e1   : > { %3828 = vmatmul.bf16.gmra.mxu3 %v3712_v44  ;;  %v1070_v31 = vpop.f32.mrf.mxu1  ;;  %v3487_v44 = vsel %vm5747_vm2, %v3482_v27, %v3486_v62  ;;  %v3689_v27 = vunpack.c.l.b16 %v3477_v61  ;;  %v4029_v11 = vsel %vm6047_vm5, %v5319_v8, %v4028_v28 }
 0x1e2   : > { %v2446_v16 = vpop.f32.mrf.mxu0  ;;  %v1071_v18 = vadd.f32 %v1070_v31, %v6310_v1  ;;  %v3500_v1 = vrot.slane %v3498_v22, 5  ;;  %v3504_v31 = vrot.slane %v3502_v38, 4  ;;  %v3690_v62 = vunpack.c.l.b16 %v3487_v44  ;;  %v5667_v38 = vld [vmem:[%s5732_s23 + $0x80] sm:$0x1] }
 0x1e3   : > { %v3495_v55 = vor.u32 %v3494_v13, %v3491_v46  ;;  %v2614_v22 = vrot.slane %v2612_v63, 4 }
 0x1e4   : > { %v1764_v49 = vpop.f32.mrf.mxu3  ;;  %v3505_v61 = vor.u32 %v3504_v31, %v3500_v1  ;;  %v3713_v44 = vpack.c.b16 %v3690_v62, %v3689_v27  ;;  %v5304_v31 = vld [vmem:[%s5732_s23 + $0x84] sm:$0xe]  ;;  %v4035_v27 = vrot.slane %v6823_v41, 5  ;;  %v5229_v62 = vld [vmem:[%s5732_s23 + $0x90] sm:$0xf] }
 0x1e5   : > { %4254 = vmatmul.bf16.gmra.mxu0 %v4138_v7  ;;  %v1799_v54 = vadd.f32 %v1764_v49, %v1484_v3  ;;  %v6842_v7 = vld [vmem:[%s5732_s23 + $0x8c] sm:$0x1]  ;;  %v5000_v49 = vrot.slane %v4984_v40, 9  ;;  %v3513_v41 = vshrl.u32 %v5229_v62, 16 }
 0x1e6   : > { %v3508_v32 = vshll.u32 %v6842_v7, 16  ;;  %v3506_v46 = vrot.slane %v3505_v61, 4 }
 0x1e7   : > { %v1451_v33 = vpop.f32.mrf.mxu2  ;;  %v6837_v39 = vadd.f32 %v2446_v16, %v1799_v54  ;;  %v4032_v16 = vsel %vm6047_vm5, %v4030_v42, %v4031_v25  ;;  %v2615_v54 = vrot.slane %v5667_v38, 5  ;;  %v3496_v42 = vrot.slane %v3495_v55, 4 }
 0x1e8   : > { %v1485_v3 = vadd.f32 %v1451_v33, %v1071_v18  ;;  %v4115_v33 = vunpack.c.l.b16 %v4029_v11  ;;  %v4116_v28 = vunpack.c.l.b16 %v4032_v16  ;;  %v2613_v25 = vsel %vm6047_vm5, %v5000_v49, %v2612_v63  ;;  %v6862_v16 = vld [vmem:[%s5732_s23 + $0x94] sm:$0xf] }
 0x1e9   : > { %v2797_v57 = vpop.f32.mrf.mxu1  ;;  %v3510_v13 = vrot.slane %v3508_v32, 5  ;;  %v2694_v55 = vunpack.c.l.b16 %v2613_v25  ;;  %v3501_v32 = vsel %vm5747_vm2, %v3496_v42, %v3500_v1  ;;  %v4038_v38 = vrot.slane %v6842_v7, 5  ;;  %v5467_v42 = vld [vmem:[%s5732_s23 + $0x84] sm:$0xff] }
 0x1ea   : > { %v2448_v21 = vpop.f32.mrf.mxu0  ;;  %v4139_v19 = vpack.c.b16 %v4116_v28, %v4115_v33  ;;  %v3526_v61 = vshrl.u32 %v6862_v16, 16  ;;  %v3515_v7 = vrot.slane %v3513_v41, 4 }
 0x1eb   : > { %2836 = vmatmul.bf16.gmra.mxu1 %v2716_v51  ;;  %v2616_v51 = vsel %vm6047_vm5, %v2614_v22, %v2615_v54  ;;  %v4037_v22 = vrot.slane %v4035_v27, 4  ;;  %v3522_v54 = vshll.u32 %v6862_v16, 16 }
 0x1ec   : > { %v1766_v4 = vpop.f32.mrf.mxu3  ;;  %3151 = vmatmul.bf16.gmra.mxu2 %v5466_v37  ;;  %v2877_v37 = vadd.f32 %v2797_v57, %v6336_v59  ;;  %v3511_v59 = vsel %vm5747_vm2, %v3506_v46, %v3510_v13  ;;  %v5320_v57 = vrot.slane %v5304_v31, 9  ;;  %v5668_v46 = vld [vmem:[%s5732_s23 + $0x88] sm:$0xf] }
 0x1ed   : > { %v1800_v18 = vadd.f32 %v1766_v4, %v1485_v3  ;;  %v2695_v4 = vunpack.c.l.b16 %v2616_v51  ;;  %v4985_v51 = vld [vmem:[%s5732_s23 + $0x84] sm:$0xe]  ;;  %v2619_v13 = vrot.slane %v5668_v46, 5 }
 0x1ee   : > { %v4036_v25 = vsel %vm6047_vm5, %v5320_v57, %v4035_v27  ;;  %v6887_v27 = vld [vmem:[%s7148_s2] ss:$0 sm:$0xff] }
 0x1ef   : > { %v3112_v8 = vpop.f32.mrf.mxu2  ;;  %v6859_v40 = vadd.f32 %v2448_v21, %v1800_v18  ;;  %v3516_v21 = vshll.u32 %v5229_v62, 16  ;;  %v3691_v18 = vunpack.c.l.b16 %v3501_v32  ;;  %v2717_v28 = vpack.c.b16 %v2695_v4, %v2694_v55  ;;  %v6882_v55 = vld [vmem:[%s5732_s23 + $0x98] sm:$0x1] }
 0x1f0   : > { %v3192_v63 = vadd.f32 %v3112_v8, %v2877_v37  ;;  %v3692_v8 = vunpack.c.l.b16 %v3511_v59  ;;  %v4039_v62 = vsel %vm6047_vm5, %v4037_v22, %v4038_v38  ;;  %v4117_v32 = vunpack.c.l.b16 %v4036_v25  ;;  %v5232_v25 = vld [vmem:[%s5732_s23 + $0x9c] sm:$0xf] }
 0x1f1   : > { %3833 = vmatmul.bf16.gmra.mxu3 %v3713_v44  ;;  %v2799_v3 = vpop.f32.mrf.mxu1  ;;  %v3518_v37 = vrot.slane %v3516_v21, 5  ;;  %v4118_v57 = vunpack.c.l.b16 %v4039_v62  ;;  %v2621_v41 = vrot.slane %v2619_v13, 4  ;;  %v5669_v21 = vld [vmem:[%s5732_s23 + $0x8c] sm:$0x1] }
 0x1f2   : > { %v4220_v11 = vpop.f32.mrf.mxu0  ;;  %v2878_v44 = vadd.f32 %v2799_v3, %v6347_v5  ;;  %v6879_v5 = vrot.slane %v3522_v54, 5  ;;  %v3528_v3 = vrot.slane %v3526_v61, 4  ;;  %v2622_v22 = vrot.slane %v5669_v21, 5 }
 0x1f3   : > { %v3519_v38 = vor.u32 %v3518_v37, %v3515_v7  ;;  %v3714_v61 = vpack.c.b16 %v3692_v8, %v3691_v18 }
 0x1f4   : > { %v3794_v49 = vpop.f32.mrf.mxu3  ;;  %v2623_v46 = vsel %vm6047_vm5, %v2621_v41, %v2622_v22 }
 0x1f5   : > { %4259 = vmatmul.bf16.gmra.mxu0 %v4139_v19  ;;  %v3874_v1 = vadd.f32 %v3794_v49, %v3192_v63  ;;  %v5001_v49 = vrot.slane %v4985_v51, 9  ;;  %v4140_v51 = vpack.c.b16 %v4118_v57, %v4117_v32  ;;  %v3520_v7 = vrot.slane %v3519_v38, 4 }
 0x1f6   : > { %v4042_v32 = vrot.slane %v6862_v16, 5  ;;  %v2697_v22 = vunpack.c.l.b16 %v2623_v46 }
 0x1f7   : > { %v3114_v33 = vpop.f32.mrf.mxu2  ;;  %v4300_v4 = vadd.f32 %v4220_v11, %v3874_v1  ;;  %v3529_v11 = vor.u32 %v3528_v3, %v6879_v5  ;;  %v3532_v1 = vshll.u32 %v6882_v55, 16  ;;  %v6902_v3 = vld [vmem:[%s5732_s23 + $0xa0] sm:$0xf] }
 0x1f8   : > { %v3193_v19 = vadd.f32 %v3114_v33, %v2878_v44  ;;  %v3550_v38 = vshrl.u32 %v6902_v3, 16 }
 0x1f9   : > { %v2802_v31 = vpop.f32.mrf.mxu1  ;;  %v4336_v44 = vadd.f32 %v6887_v27, %v4300_v4  ;;  %v3534_v62 = vrot.slane %v3532_v1, 5  ;;  %v4044_v1 = vrot.slane %v4042_v32, 4 }
 0x1fa   : > { %v4222_v63 = vpop.f32.mrf.mxu0  ;;  %v2879_v8 = vadd.f32 %v2802_v31, %v6357_v48  ;;  %v3546_v31 = vshll.u32 %v6902_v3, 16 }
 0x1fb   : > { %2841 = vmatmul.bf16.gmra.mxu1 %v2717_v28  ;;  %v4368_v57 = vmax.f32 %v4336_v44, 0.0  ;;  %v4045_v44 = vrot.slane %v6882_v55, 5 }
 0x1fc   : > { %v3796_v59 = vpop.f32.mrf.mxu3  ;;  %3156 = vmatmul.bf16.gmra.mxu2 %v5467_v42  ;;  %v2620_v42 = vsel %vm6047_vm5, %v5001_v49, %v2619_v13  ;;  %v5305_v13 = vld [vmem:[%s5732_s23 + $0x90] sm:$0xe]  ;;  %v3537_v49 = vshrl.u32 %v5232_v25, 16 }
 0x1fd   : > { %v3875_v54 = vadd.f32 %v3796_v59, %v3193_v19  ;;  %v3530_v19 = vrot.slane %v3529_v11, 4  ;;  %v2696_v4 = vunpack.c.l.b16 %v2620_v42  ;;  %v3540_v59 = vshll.u32 %v5232_v25, 16 }
 0x1fe   : > { %v5321_v11 = vrot.slane %v5305_v13, 9 }
 0x1ff   : > { %v4301_v33 = vadd.f32 %v4222_v63, %v3875_v54  ;;  %v3117_v28 = vpop.f32.mrf.mxu2  ;;  %v3525_v54 = vsel %vm5747_vm2, %v3520_v7, %v6879_v5  ;;  %v3548_v7 = vrot.slane %v3546_v31, 5 }
 0x200   : > { %v3194_v21 = vadd.f32 %v3117_v28, %v2879_v8  ;;  %v3542_v28 = vrot.slane %v3540_v59, 5  ;;  %v4986_v8 = vld [vmem:[%s5732_s23 + $0x90] sm:$0xe]  ;;  %v3693_v13 = vunpack.c.l.b16 %v3525_v54 }
 0x201   : > { %v4337_v18 = vadd.f32 %v6887_v27, %v4301_v33  ;;  %3838 = vmatmul.bf16.gmra.mxu3 %v3714_v61  ;;  %v2804_v37 = vpop.f32.mrf.mxu1  ;;  %v3535_v61 = vsel %vm5747_vm2, %v3530_v19, %v3534_v62  ;;  %v3539_v33 = vrot.slane %v3537_v49, 4  ;;  %v6925_v49 = vld [vmem:[%s5732_s23 + $0xa4] sm:$0x1] }
 0x202   : > { %v4225_v63 = vpop.f32.mrf.mxu0  ;;  %v2880_v25 = vadd.f32 %v2804_v37, %v6371_v47  ;;  %v3694_v55 = vunpack.c.l.b16 %v3535_v61  ;;  %v4046_v47 = vsel %vm6047_vm5, %v4044_v1, %v4045_v44  ;;  %v3556_v61 = vshll.u32 %v6925_v49, 16 }
 0x203   : > { %v4369_v41 = vmax.f32 %v4337_v18, 0.0  ;;  %v5468_v18 = vld [vmem:[%s5732_s23 + $0x90] sm:$0xff]  ;;  %v3543_v37 = vor.u32 %v3542_v28, %v3539_v33  ;;  %v5306_v28 = vld [vmem:[%s5732_s23 + $0x9c] sm:$0xe] }
 0x204   : > { %v3799_v48 = vpop.f32.mrf.mxu3 }
 0x205   : > { %v5501_v16 = vpack.c.bf16 %v4369_v41, %v4368_v57  ;;  %4264 = vmatmul.bf16.gmra.mxu0 %v4140_v51  ;;  %v3876_v42 = vadd.f32 %v3799_v48, %v3194_v21  ;;  %v2718_v51 = vpack.c.b16 %v2697_v22, %v2696_v4  ;;  %v5670_v57 = vld [vmem:[%s5732_s23 + $0x94] sm:$0xf]  ;;  %v3552_v41 = vrot.slane %v3550_v38, 4  ;;  %v5671_v38 = vld [vmem:[%s5732_s23 + $0x98] sm:$0x1] }
 0x206   : > { %v2626_v5 = vrot.slane %v5670_v57, 5  ;;  %v4043_v21 = vsel %vm6047_vm5, %v5321_v11, %v4042_v32  ;;  %v5002_v22 = vrot.slane %v4986_v8, 9  ;;  %v4120_v32 = vunpack.c.l.b16 %v4046_v47 }
 0x207   : > { %5502 = vst [vmem:[%s6909_s21] sm:$0xff] %v5501_v16   ;;  %v3119_v46 = vpop.f32.mrf.mxu2  ;;  %v4302_v4 = vadd.f32 %v4225_v63, %v3876_v42  ;;  %v2629_v16 = vrot.slane %v5671_v38, 5  ;;  %v3553_v54 = vor.u32 %v3552_v41, %v3548_v7  ;;  %v4119_v57 = vunpack.c.l.b16 %v4043_v21 }
 0x208   : > { %v3195_v19 = vadd.f32 %v3119_v46, %v2880_v25  ;;  %v2628_v31 = vrot.slane %v2626_v5, 4  ;;  %v3715_v46 = vpack.c.b16 %v3694_v55, %v3693_v13  ;;  %v3544_v11 = vrot.slane %v3543_v37, 4 }
 0x209   : > { %v2807_v62 = vpop.f32.mrf.mxu1  ;;  %v4338_v1 = vadd.f32 %v6887_v27, %v4302_v4  ;;  %v2627_v33 = vsel %vm6047_vm5, %v5002_v22, %v2626_v5  ;;  %v4049_v8 = vrot.slane %v6902_v3, 5  ;;  %v4141_v13 = vpack.c.b16 %v4120_v32, %v4119_v57  ;;  %v6946_v4 = vld [vmem:[%s5732_s23 + $0xac] sm:$0xf] }
 0x20a   : > { %v4227_v59 = vpop.f32.mrf.mxu0  ;;  %v2630_v42 = vsel %vm6047_vm5, %v2628_v31, %v2629_v16  ;;  %v2698_v47 = vunpack.c.l.b16 %v2627_v33  ;;  %v3549_v5 = vsel %vm5747_vm2, %v3544_v11, %v3548_v7  ;;  %v5322_v37 = vrot.slane %v5306_v28, 9  ;;  %v5469_v33 = vld [vmem:[%s5732_s23 + $0x9c] sm:$0xff] }
 0x20b   : > { %2846 = vmatmul.bf16.gmra.mxu1 %v2718_v51  ;;  %v3554_v51 = vrot.slane %v3553_v54, 4  ;;  %v4370_v22 = vmax.f32 %v4338_v1, 0.0  ;;  %v2699_v31 = vunpack.c.l.b16 %v2630_v42  ;;  %v4052_v7 = vrot.slane %v6925_v49, 5  ;;  %v4987_v42 = vld [vmem:[%s5732_s23 + $0x9c] sm:$0xe] }
 0x20c   : > { %v3801_v48 = vpop.f32.mrf.mxu3  ;;  %3161 = vmatmul.bf16.gmra.mxu2 %v5468_v18  ;;  %v3558_v18 = vrot.slane %v3556_v61, 5  ;;  %v3695_v57 = vunpack.c.l.b16 %v3549_v5  ;;  %v4050_v28 = vsel %vm6047_vm5, %v5322_v37, %v4049_v8  ;;  %v6965_v5 = vld [vmem:[%s5732_s23 + $0xb0] sm:$0x1]  ;;  %v5003_v37 = vrot.slane %v4987_v42, 9 }
 0x20d   : > { %v3877_v25 = vadd.f32 %v3801_v48, %v3195_v19  ;;  %v2881_v19 = vadd.f32 %v2807_v62, %v6391_v52  ;;  %v4051_v62 = vrot.slane %v4049_v8, 4  ;;  %v4121_v8 = vunpack.c.l.b16 %v4050_v28 }
 0x20e   : > { %v3559_v52 = vsel %vm5747_vm2, %v3554_v51, %v3558_v18  ;;  %v5672_v51 = vld [vmem:[%s5732_s23 + $0xa0] sm:$0xf] }
 0x20f   : > { %v4303_v63 = vadd.f32 %v4227_v59, %v3877_v25  ;;  %v3122_v44 = vpop.f32.mrf.mxu2  ;;  %v5235_v59 = vld [vmem:[%s5732_s23 + $0xa8] sm:$0xf]  ;;  %v3570_v25 = vshll.u32 %v6946_v4, 16  ;;  %v2633_v49 = vrot.slane %v5672_v51, 5 }
 0x210   : > { %v3196_v3 = vadd.f32 %v3122_v44, %v2881_v19  ;;  %v3561_v16 = vshrl.u32 %v5235_v59, 16  ;;  %v3564_v54 = vshll.u32 %v5235_v59, 16  ;;  %v3696_v44 = vunpack.c.l.b16 %v3559_v52 }
 0x211   : > { %v4339_v41 = vadd.f32 %v6887_v27, %v4303_v63  ;;  %3843 = vmatmul.bf16.gmra.mxu3 %v3715_v46  ;;  %v2809_v55 = vpop.f32.mrf.mxu1  ;;  %v3574_v46 = vshrl.u32 %v6946_v4, 16  ;;  %v2719_v63 = vpack.c.b16 %v2699_v31, %v2698_v47  ;;  %v4053_v59 = vsel %vm6047_vm5, %v4051_v62, %v4052_v7 }
 0x212   : > { %v4230_v21 = vpop.f32.mrf.mxu0  ;;  %v2882_v11 = vadd.f32 %v2809_v55, %v6411_v34  ;;  %v3563_v18 = vrot.slane %v3561_v16, 4  ;;  %v6962_v34 = vrot.slane %v3570_v25, 5  ;;  %v2635_v31 = vrot.slane %v2633_v49, 4 }
 0x213   : > { %v4371_v48 = vmax.f32 %v4339_v41, 0.0  ;;  %v3566_v41 = vrot.slane %v3564_v54, 5  ;;  %v3576_v55 = vrot.slane %v3574_v46, 4  ;;  %v3716_v62 = vpack.c.b16 %v3696_v44, %v3695_v57 }
 0x214   : > { %v3804_v38 = vpop.f32.mrf.mxu3  ;;  %v3580_v7 = vshll.u32 %v6965_v5, 16 }
 0x215   : > { %v5506_v61 = vpack.c.bf16 %v4371_v48, %v4370_v22  ;;  %4269 = vmatmul.bf16.gmra.mxu0 %v4141_v13  ;;  %v3878_v32 = vadd.f32 %v3804_v38, %v3196_v3  ;;  %v4122_v3 = vunpack.c.l.b16 %v4053_v59  ;;  %v5673_v38 = vld [vmem:[%s5732_s23 + $0xa4] sm:$0x1]  ;;  %v3567_v16 = vor.u32 %v3566_v41, %v3563_v18  ;;  %v6979_v18 = vld [vmem:[%s5732_s23 + $0xb8] sm:$0xf]  ;;  %v5307_v59 = vld [vmem:[%s5732_s23 + $0xa8] sm:$0xe] }
 0x216   : > { %v2636_v52 = vrot.slane %v5673_v38, 5  ;;  %v3582_v51 = vrot.slane %v3580_v7, 5 }
 0x217   : > { %5578 = vst [vmem:[%s6909_s21 + $0x8] sm:$0xff] %v5506_v61   ;;  %v3124_v1 = vpop.f32.mrf.mxu2  ;;  %v4304_v22 = vadd.f32 %v4230_v21, %v3878_v32  ;;  %v3577_v61 = vor.u32 %v3576_v55, %v6962_v34  ;;  %v2634_v32 = vsel %vm6047_vm5, %v5003_v37, %v2633_v49  ;;  %v4056_v49 = vrot.slane %v6946_v4, 5 }
 0x218   : > { %v3197_v19 = vadd.f32 %v3124_v1, %v2882_v11  ;;  %v5238_v11 = vld [vmem:[%s5732_s23 + $0xb4] sm:$0xf]  ;;  %v4142_v1 = vpack.c.b16 %v4122_v3, %v4121_v8 }
 0x219   : > { %v2812_v13 = vpop.f32.mrf.mxu1  ;;  %v4340_v21 = vadd.f32 %v6887_v27, %v4304_v22  ;;  %v3578_v42 = vrot.slane %v3577_v61, 4  ;;  %v3585_v55 = vshrl.u32 %v5238_v11, 16 }
 0x21a   : > { %v4232_v47 = vpop.f32.mrf.mxu0  ;;  %v2883_v44 = vadd.f32 %v2812_v13, %v6421_v10  ;;  %v3594_v10 = vshll.u32 %v6979_v18, 16  ;;  %v3598_v13 = vshrl.u32 %v6979_v18, 16 }
 0x21b   : > { %2851 = vmatmul.bf16.gmra.mxu1 %v2719_v63  ;;  %v2637_v63 = vsel %vm6047_vm5, %v2635_v31, %v2636_v52  ;;  %v4372_v22 = vmax.f32 %v4340_v21, 0.0  ;;  %v3583_v38 = vsel %vm5747_vm2, %v3578_v42, %v3582_v51  ;;  %v5323_v52 = vrot.slane %v5307_v59, 9  ;;  %v6997_v51 = vld [vmem:[%s5732_s23 + $0xbc] sm:$0x1] }
 0x21c   : > { %v3806_v48 = vpop.f32.mrf.mxu3  ;;  %3166 = vmatmul.bf16.gmra.mxu2 %v5469_v33  ;;  %v3568_v33 = vrot.slane %v3567_v16, 4  ;;  %v4058_v16 = vrot.slane %v4056_v49, 4 }
 0x21d   : > { %v3879_v54 = vadd.f32 %v3806_v48, %v3197_v19  ;;  %v2700_v19 = vunpack.c.l.b16 %v2634_v32  ;;  %v2701_v48 = vunpack.c.l.b16 %v2637_v63  ;;  %v5470_v32 = vld [vmem:[%s5732_s23 + $0xa8] sm:$0xff]  ;;  %v3596_v63 = vrot.slane %v3594_v10, 5 }
 0x21e   : > { %v3573_v4 = vsel %vm5747_vm2, %v3568_v33, %v6962_v34  ;;  %v3600_v33 = vrot.slane %v3598_v13, 4  ;;  %v3604_v10 = vshll.u32 %v6997_v51, 16 }
 0x21f   : > { %v4305_v25 = vadd.f32 %v4232_v47, %v3879_v54  ;;  %v3127_v46 = vpop.f32.mrf.mxu2  ;;  %v3588_v47 = vshll.u32 %v5238_v11, 16  ;;  %v4059_v54 = vrot.slane %v6965_v5, 5  ;;  %v4988_v11 = vld [vmem:[%s5732_s23 + $0xa8] sm:$0xe]  ;;  %v3697_v42 = vunpack.c.l.b16 %v3573_v4 }
 0x220   : > { %v3198_v37 = vadd.f32 %v3127_v46, %v2883_v44  ;;  %v2720_v46 = vpack.c.b16 %v2701_v48, %v2700_v19  ;;  %v3698_v5 = vunpack.c.l.b16 %v3583_v38 }
 0x221   : > { %v4341_v57 = vadd.f32 %v6887_v27, %v4305_v25  ;;  %3848 = vmatmul.bf16.gmra.mxu3 %v3716_v62  ;;  %v2814_v28 = vpop.f32.mrf.mxu1  ;;  %v3587_v62 = vrot.slane %v3585_v55, 4  ;;  %v3590_v61 = vrot.slane %v3588_v47, 5  ;;  %v4057_v55 = vsel %vm6047_vm5, %v5323_v52, %v4056_v49 }
 0x222   : > { %v4235_v41 = vpop.f32.mrf.mxu0  ;;  %v2884_v21 = vadd.f32 %v2814_v28, %v6429_v12  ;;  %v4060_v12 = vsel %vm6047_vm5, %v4058_v16, %v4059_v54  ;;  %v5004_v47 = vrot.slane %v4988_v11, 9  ;;  %v4123_v4 = vunpack.c.l.b16 %v4057_v55 }
 0x223   : > { %v4373_v8 = vmax.f32 %v4341_v57, 0.0  ;;  %v3591_v28 = vor.u32 %v3590_v61, %v3587_v62  ;;  %v4124_v49 = vunpack.c.l.b16 %v4060_v12  ;;  %v5308_v62 = vld [vmem:[%s5732_s23 + $0xb4] sm:$0xe] }
 0x224   : > { %v3809_v3 = vpop.f32.mrf.mxu3 }
 0x225   : > { %v5511_v31 = vpack.c.bf16 %v4373_v8, %v4372_v22  ;;  %4274 = vmatmul.bf16.gmra.mxu0 %v4142_v1  ;;  %v3880_v7 = vadd.f32 %v3809_v3, %v3198_v37  ;;  %v5674_v1 = vld [vmem:[%s5732_s23 + $0xac] sm:$0xf]  ;;  %v5675_v37 = vld [vmem:[%s5732_s23 + $0xb0] sm:$0x1]  ;;  %v3601_v3 = vor.u32 %v3600_v33, %v3596_v63  ;;  %v3592_v38 = vrot.slane %v3591_v28, 4 }
 0x226   : > { %v2640_v34 = vrot.slane %v5674_v1, 5  ;;  %v2643_v48 = vrot.slane %v5675_v37, 5  ;;  %v4143_v11 = vpack.c.b16 %v4124_v49, %v4123_v4  ;;  %v5241_v33 = vld [vmem:[%s5732_s23 + $0xc0] sm:$0xf] }
 0x227   : > { %5579 = vst [vmem:[%s6909_s21 + $0x10] sm:$0xff] %v5511_v31   ;;  %v3129_v25 = vpop.f32.mrf.mxu2  ;;  %v4306_v19 = vadd.f32 %v4235_v41, %v3880_v7  ;;  %v3717_v31 = vpack.c.b16 %v3698_v5, %v3697_v42  ;;  %v3602_v7 = vrot.slane %v3601_v3, 4  ;;  %v5324_v5 = vrot.slane %v5308_v62, 9 }
 0x228   : > { %v3199_v57 = vadd.f32 %v3129_v25, %v2884_v21  ;;  %v2642_v8 = vrot.slane %v2640_v34, 4  ;;  %v2641_v54 = vsel %vm6047_vm5, %v5004_v47, %v2640_v34  ;;  %v3606_v21 = vrot.slane %v3604_v10, 5 }
 0x229   : > { %v2817_v44 = vpop.f32.mrf.mxu1  ;;  %v4342_v52 = vadd.f32 %v6887_v27, %v4306_v19  ;;  %v4063_v25 = vrot.slane %v6979_v18, 5  ;;  %v2702_v42 = vunpack.c.l.b16 %v2641_v54  ;;  %v3597_v34 = vsel %vm5747_vm2, %v3592_v38, %v3596_v63  ;;  %v5676_v54 = vld [vmem:[%s5732_s23 + $0xb8] sm:$0xf] }
 0x22a   : > { %v4237_v59 = vpop.f32.mrf.mxu0  ;;  %v2644_v61 = vsel %vm6047_vm5, %v2642_v8, %v2643_v48  ;;  %v3609_v47 = vshrl.u32 %v5241_v33, 16  ;;  %v4066_v63 = vrot.slane %v6997_v51, 5  ;;  %v3699_v3 = vunpack.c.l.b16 %v3597_v34 }
 0x22b   : > { %2856 = vmatmul.bf16.gmra.mxu1 %v2720_v46  ;;  %v4374_v55 = vmax.f32 %v4342_v52, 0.0  ;;  %v2703_v28 = vunpack.c.l.b16 %v2644_v61  ;;  %v5471_v52 = vld [vmem:[%s5732_s23 + $0xb4] sm:$0xff]  ;;  %v2647_v51 = vrot.slane %v5676_v54, 5 }
 0x22c   : > { %v3811_v22 = vpop.f32.mrf.mxu3  ;;  %3171 = vmatmul.bf16.gmra.mxu2 %v5470_v32  ;;  %v2885_v32 = vadd.f32 %v2817_v44, %v6448_v60  ;;  %v3607_v60 = vsel %vm5747_vm2, %v3602_v7, %v3606_v21  ;;  %v4065_v44 = vrot.slane %v4063_v25, 4  ;;  %v3611_v62 = vrot.slane %v3609_v47, 4 }
 0x22d   : > { %v3881_v13 = vadd.f32 %v3811_v22, %v3199_v57  ;;  %v3612_v22 = vshll.u32 %v5241_v33, 16  ;;  %v2721_v49 = vpack.c.b16 %v2703_v28, %v2702_v42  ;;  %v3700_v38 = vunpack.c.l.b16 %v3607_v60  ;;  %v7035_v33 = vld [vmem:[%s5732_s23 + $0xc8] sm:$0x1] }
 0x22f   : > { %v4307_v41 = vadd.f32 %v4237_v59, %v3881_v13  ;;  %v3132_v16 = vpop.f32.mrf.mxu2  ;;  %v7018_v59 = vld [vmem:[%s5732_s23 + $0xc4] sm:$0xf]  ;;  %v3614_v61 = vrot.slane %v3612_v22, 5  ;;  %v3718_v47 = vpack.c.b16 %v3700_v38, %v3699_v3  ;;  %v3628_v22 = vshll.u32 %v7035_v33, 16 }
 0x230   : > { %v3200_v18 = vadd.f32 %v3132_v16, %v2885_v32  ;;  %v3618_v37 = vshll.u32 %v7018_v59, 16  ;;  %v3622_v48 = vshrl.u32 %v7018_v59, 16  ;;  %v7156_v13 = vld [vmem:[#allocation2_spill] sm:$0xff]  ;;  %v4989_v16 = vld [vmem:[%s5732_s23 + $0xb4] sm:$0xe] }
 0x231   : > { %v4343_v46 = vadd.f32 %v6887_v27, %v4307_v41  ;;  %3853 = vmatmul.bf16.gmra.mxu3 %v3717_v31  ;;  %v2819_v1 = vpop.f32.mrf.mxu1  ;;  %v4064_v41 = vsel %vm6047_vm5, %v5324_v5, %v4063_v25  ;;  %v5005_v25 = vrot.slane %v4989_v16, 9 }
 0x232   : > { %v4240_v57 = vpop.f32.mrf.mxu0  ;;  %v2886_v31 = vadd.f32 %v2819_v1, %v7156_v13  ;;  %v3620_v32 = vrot.slane %v3618_v37, 5  ;;  %v4125_v34 = vunpack.c.l.b16 %v4064_v41  ;;  %v5309_v41 = vld [vmem:[%s5732_s23 + $0xc0] sm:$0xe] }
 0x233   : > { %v4375_v12 = vmax.f32 %v4343_v46, 0.0  ;;  %v4067_v46 = vsel %vm6047_vm5, %v4065_v44, %v4066_v63  ;;  %v2648_v37 = vsel %vm6047_vm5, %v5005_v25, %v2647_v51 }
 0x234   : > { %v3814_v19 = vpop.f32.mrf.mxu3  ;;  %v2704_v54 = vunpack.c.l.b16 %v2648_v37  ;;  %v5678_v37 = vld [vmem:[%s5732_s23 + $0xc4] sm:$0xf] }
 0x235   : > { %v5516_v8 = vpack.c.bf16 %v4375_v12, %v4374_v55  ;;  %4279 = vmatmul.bf16.gmra.mxu0 %v4143_v11  ;;  %v3882_v10 = vadd.f32 %v3814_v19, %v3200_v18  ;;  %v3624_v11 = vrot.slane %v3622_v48, 4  ;;  %v4126_v55 = vunpack.c.l.b16 %v4067_v46  ;;  %v5677_v18 = vld [vmem:[%s5732_s23 + $0xbc] sm:$0x1] }
 0x236   : > { %v2649_v12 = vrot.slane %v2647_v51, 4  ;;  %v2650_v28 = vrot.slane %v5677_v18, 5  ;;  %v3615_v19 = vor.u32 %v3614_v61, %v3611_v62  ;;  %v4070_v62 = vrot.slane %v7018_v59, 5  ;;  %v5244_v51 = vld [vmem:[%s5732_s23 + $0xcc] sm:$0xf] }
 0x237   : > { %5580 = vst [vmem:[%s6909_s21 + $0x18] sm:$0xff] %v5516_v8   ;;  %v3134_v4 = vpop.f32.mrf.mxu2  ;;  %v4308_v42 = vadd.f32 %v4240_v57, %v3882_v10  ;;  %v3625_v44 = vor.u32 %v3624_v11, %v3620_v32  ;;  %v4144_v48 = vpack.c.b16 %v4126_v55, %v4125_v34  ;;  %v5325_v34 = vrot.slane %v5309_v41, 9 }
 0x238   : > { %v3201_v7 = vadd.f32 %v3134_v4, %v2886_v31  ;;  %v2651_v10 = vsel %vm6047_vm5, %v2649_v12, %v2650_v28  ;;  %v3616_v13 = vrot.slane %v3615_v19, 4  ;;  %v7157_v31 = vld [vmem:[#allocation3_spill] sm:$0xff]  ;;  %v3636_v55 = vshll.u32 %v5244_v51, 16 }
 0x239   : > { %v2822_v21 = vpop.f32.mrf.mxu1  ;;  %v4344_v8 = vadd.f32 %v6887_v27, %v4308_v42  ;;  %v3626_v38 = vrot.slane %v3625_v44, 4  ;;  %v2705_v11 = vunpack.c.l.b16 %v2651_v10  ;;  %v4072_v12 = vrot.slane %v4070_v62, 4 }
 0x23a   : > { %v4242_v1 = vpop.f32.mrf.mxu0  ;;  %v2887_v4 = vadd.f32 %v2822_v21, %v7157_v31  ;;  %v3621_v21 = vsel %vm5747_vm2, %v3616_v13, %v3620_v32  ;;  %v4073_v18 = vrot.slane %v7035_v33, 5 }
 0x23b   : > { %2861 = vmatmul.bf16.gmra.mxu1 %v2721_v49  ;;  %v4376_v61 = vmax.f32 %v4344_v8, 0.0  ;;  %v2722_v44 = vpack.c.b16 %v2705_v11, %v2704_v54  ;;  %v3701_v8 = vunpack.c.l.b16 %v3621_v21  ;;  %v5246_v54 = vld [vmem:[%s5732_s23 + $0xd4] sm:$0x1] }
 0x23c   : > { %v3816_v5 = vpop.f32.mrf.mxu3  ;;  %3176 = vmatmul.bf16.gmra.mxu2 %v5471_v52  ;;  %v3630_v52 = vrot.slane %v3628_v22, 5  ;;  %v5472_v22 = vld [vmem:[%s5732_s23 + $0xc0] sm:$0xff] }
 0x23d   : > { %v3883_v60 = vadd.f32 %v3816_v5, %v3201_v7  ;;  %v3633_v5 = vshrl.u32 %v5244_v51, 16 }
 0x23e   : > { %v3631_v59 = vsel %vm5747_vm2, %v3626_v38, %v3630_v52 }
 0x23f   : > { %v4309_v63 = vadd.f32 %v4242_v1, %v3883_v60  ;;  %v3137_v57 = vpop.f32.mrf.mxu2  ;;  %v7050_v1 = vld [vmem:[%s5732_s23 + $0xd0] sm:$0xf]  ;;  %v3635_v33 = vrot.slane %v3633_v5, 4 }
 0x240   : > { %v3202_v46 = vadd.f32 %v3137_v57, %v2887_v4  ;;  %v3642_v28 = vshll.u32 %v7050_v1, 16  ;;  %v3646_v19 = vshrl.u32 %v7050_v1, 16  ;;  %v4990_v57 = vld [vmem:[%s5732_s23 + $0xc0] sm:$0xe]  ;;  %v4071_v4 = vsel %vm6047_vm5, %v5325_v34, %v4070_v62 }
 0x241   : > { %v4345_v3 = vadd.f32 %v6887_v27, %v4309_v63  ;;  %3858 = vmatmul.bf16.gmra.mxu3 %v3718_v47  ;;  %v2824_v49 = vpop.f32.mrf.mxu1  ;;  %v3702_v63 = vunpack.c.l.b16 %v3631_v59  ;;  %v5006_v41 = vrot.slane %v4990_v57, 9  ;;  %v4127_v21 = vunpack.c.l.b16 %v4071_v4 }
 0x242   : > { %v4245_v16 = vpop.f32.mrf.mxu0  ;;  %v2888_v60 = vadd.f32 %v2824_v49, %v6499_v24  ;;  %v4074_v24 = vsel %vm6047_vm5, %v4072_v12, %v4073_v18  ;;  %v3644_v49 = vrot.slane %v3642_v28, 5  ;;  %v3648_v38 = vrot.slane %v3646_v19, 4 }
 0x243   : > { %v4377_v7 = vmax.f32 %v4345_v3, 0.0  ;;  %v3638_v3 = vrot.slane %v3636_v55, 5  ;;  %v3652_v34 = vshll.u32 %v5246_v54, 16  ;;  %v4077_v57 = vrot.slane %v7050_v1, 5 }
 0x244   : > { %v3819_v42 = vpop.f32.mrf.mxu3  ;;  %v3649_v62 = vor.u32 %v3648_v38, %v3644_v49 }
 0x245   : > { %v5521_v25 = vpack.c.bf16 %v4377_v7, %v4376_v61  ;;  %4284 = vmatmul.bf16.gmra.mxu0 %v4144_v48  ;;  %v3884_v32 = vadd.f32 %v3819_v42, %v3202_v46  ;;  %v2654_v48 = vrot.slane %v5678_v37, 5  ;;  %v3719_v61 = vpack.c.b16 %v3702_v63, %v3701_v8  ;;  %v5679_v46 = vld [vmem:[%s5732_s23 + $0xc8] sm:$0x1] }
 0x246   : > { %v2657_v11 = vrot.slane %v5679_v46, 5  ;;  %v3639_v59 = vor.u32 %v3638_v3, %v3635_v33  ;;  %v3650_v8 = vrot.slane %v3649_v62, 4  ;;  %v3654_v63 = vrot.slane %v3652_v34, 5  ;;  %v5310_v3 = vld [vmem:[%s5732_s23 + $0xcc] sm:$0xe] }
 0x247   : > { %5581 = vst [vmem:[%s6909_s21 + $0x20] sm:$0xff] %v5521_v25   ;;  %v3139_v47 = vpop.f32.mrf.mxu2  ;;  %v4310_v52 = vadd.f32 %v4245_v16, %v3884_v32  ;;  %v2656_v7 = vrot.slane %v2654_v48, 4  ;;  %v4128_v25 = vunpack.c.l.b16 %v4074_v24  ;;  %v2655_v16 = vsel %vm6047_vm5, %v5006_v41, %v2654_v48 }
 0x248   : > { %v3203_v10 = vadd.f32 %v3139_v47, %v2888_v60  ;;  %v3640_v47 = vrot.slane %v3639_v59, 4  ;;  %v5326_v24 = vrot.slane %v5310_v3, 9  ;;  %v4079_v38 = vrot.slane %v4077_v57, 4 }
 0x249   : > { %v2827_v13 = vpop.f32.mrf.mxu1  ;;  %v4346_v5 = vadd.f32 %v6887_v27, %v4310_v52  ;;  %v2658_v18 = vsel %vm6047_vm5, %v2656_v7, %v2657_v11  ;;  %v4145_v32 = vpack.c.b16 %v4128_v25, %v4127_v21  ;;  %v4080_v52 = vrot.slane %v5246_v54, 5  ;;  %v5473_v7 = vld [vmem:[%s5732_s23 + $0xcc] sm:$0xff] }
 0x24a   : > { %v4247_v31 = vpop.f32.mrf.mxu0  ;;  %v2889_v19 = vadd.f32 %v2827_v13, %v6508_v36  ;;  %v2707_v33 = vunpack.c.l.b16 %v2658_v18  ;;  %v3645_v36 = vsel %vm5747_vm2, %v3640_v47, %v3644_v49  ;;  %v3655_v13 = vsel %vm5747_vm2, %v3650_v8, %v3654_v63 }
 0x24b   : > { %2866 = vmatmul.bf16.gmra.mxu1 %v2722_v44  ;;  %v4378_v37 = vmax.f32 %v4346_v5, 0.0  ;;  %v3704_v21 = vunpack.c.l.b16 %v3655_v13  ;;  %v4078_v49 = vsel %vm6047_vm5, %v5326_v24, %v4077_v57  ;;  %v4081_v30 = vsel %vm6047_vm5, %v4079_v38, %v4080_v52 }
 0x24c   : > { %v3821_v51 = vpop.f32.mrf.mxu3  ;;  %3181 = vmatmul.bf16.gmra.mxu2 %v5472_v22  ;;  %v2706_v22 = vunpack.c.l.b16 %v2655_v16  ;;  %v4129_v34 = vunpack.c.l.b16 %v4078_v49  ;;  %v4130_v5 = vunpack.c.l.b16 %v4081_v30 }
 0x24d   : > { %v3885_v42 = vadd.f32 %v3821_v51, %v3203_v10 }
 0x24e   : > { %v4146_v43 = vpack.c.b16 %v4130_v5, %v4129_v34 }
 0x24f   : > { %v4311_v55 = vadd.f32 %v4247_v31, %v3885_v42  ;;  %v3142_v12 = vpop.f32.mrf.mxu2  ;;  %v3703_v42 = vunpack.c.l.b16 %v3645_v36 }
 0x250   : > { %v3204_v10 = vadd.f32 %v3142_v12, %v2889_v19 }
 0x251   : > { %v4347_v28 = vadd.f32 %v6887_v27, %v4311_v55  ;;  %3863 = vmatmul.bf16.gmra.mxu3 %v3719_v61  ;;  %v2829_v60 = vpop.f32.mrf.mxu1  ;;  %v2723_v61 = vpack.c.b16 %v2707_v33, %v2706_v22 }
 0x252   : > { %v4250_v44 = vpop.f32.mrf.mxu0  ;;  %v2890_v41 = vadd.f32 %v2829_v60, %v6521_v45  ;;  %v3720_v45 = vpack.c.b16 %v3704_v21, %v3703_v42 }
 0x253   : > { %v4379_v48 = vmax.f32 %v4347_v28, 0.0 }
 0x254   : > { %v3824_v31 = vpop.f32.mrf.mxu3 }
 0x255   : > { %v5526_v4 = vpack.c.bf16 %v4379_v48, %v4378_v37  ;;  %4289 = vmatmul.bf16.gmra.mxu0 %v4145_v32  ;;  %v3886_v1 = vadd.f32 %v3824_v31, %v3204_v10 }
 0x257   : > { %5582 = vst [vmem:[%s6909_s21 + $0x28] sm:$0xff] %v5526_v4   ;;  %v3144_v51 = vpop.f32.mrf.mxu2  ;;  %v4312_v59 = vadd.f32 %v4250_v44, %v3886_v1 }
 0x258   : > { %v3205_v46 = vadd.f32 %v3144_v51, %v2890_v41 }
 0x259   : > { %v2832_v11 = vpop.f32.mrf.mxu1  ;;  %v4348_v55 = vadd.f32 %v6887_v27, %v4312_v59 }
 0x25a   : > { %v4252_v25 = vpop.f32.mrf.mxu0  ;;  %v2891_v28 = vadd.f32 %v2832_v11, %v6534_v23 }
 0x25b   : > { %2871 = vmatmul.bf16.gmra.mxu1 %v2723_v61  ;;  %v4380_v60 = vmax.f32 %v4348_v55, 0.0 }
 0x25c   : > { %v3826_v54 = vpop.f32.mrf.mxu3  ;;  %3186 = vmatmul.bf16.gmra.mxu2 %v5473_v7 }
 0x25d   : > { %v3887_v62 = vadd.f32 %v3826_v54, %v3205_v46 }
 0x25f   : > { %v4313_v12 = vadd.f32 %v4252_v25, %v3887_v62  ;;  %v3147_v16 = vpop.f32.mrf.mxu2 }
 0x260   : > { %v3206_v44 = vadd.f32 %v3147_v16, %v2891_v28 }
 0x261   : > { %v4349_v18 = vadd.f32 %v6887_v27, %v4313_v12  ;;  %3868 = vmatmul.bf16.gmra.mxu3 %v3720_v45  ;;  %v2834_v19 = vpop.f32.mrf.mxu1 }
 0x262   : > { %v4255_v32 = vpop.f32.mrf.mxu0  ;;  %v2892_v57 = vadd.f32 %v2834_v19, %v6558_v17 }
 0x263   : > { %v4381_v47 = vmax.f32 %v4349_v18, 0.0 }
 0x264   : > { %v3829_v22 = vpop.f32.mrf.mxu3 }
 0x265   : > { %v5531_v8 = vpack.c.bf16 %v4381_v47, %v4380_v60  ;;  %4294 = vmatmul.bf16.gmra.mxu0 %v4146_v43  ;;  %v3888_v63 = vadd.f32 %v3829_v22, %v3206_v44 }
 0x267   : > { %5583 = vst [vmem:[%s6909_s21 + $0x30] sm:$0xff] %v5531_v8   ;;  %v3149_v37 = vpop.f32.mrf.mxu2  ;;  %v4314_v23 = vadd.f32 %v4255_v32, %v3888_v63 }
 0x268   : > { %v3207_v48 = vadd.f32 %v3149_v37, %v2892_v57 }
 0x269   : > { %v2837_v10 = vpop.f32.mrf.mxu1  ;;  %v4350_v4 = vadd.f32 %v6887_v27, %v4314_v23 }
 0x26a   : > { %v4257_v33 = vpop.f32.mrf.mxu0  ;;  %v2893_v38 = vadd.f32 %v2837_v10, %v6573_v20 }
 0x26b   : > { %v4382_v41 = vmax.f32 %v4350_v4, 0.0 }
 0x26c   : > { %v3831_v3 = vpop.f32.mrf.mxu3 }
 0x26d   : > { %v3889_v31 = vadd.f32 %v3831_v3, %v3207_v48 }
 0x26f   : > { %v4315_v36 = vadd.f32 %v4257_v33, %v3889_v31  ;;  %v3152_v13 = vpop.f32.mrf.mxu2 }
 0x270   : > { %v3208_v51 = vadd.f32 %v3152_v13, %v2893_v38 }
 0x271   : > { %v4351_v24 = vadd.f32 %v6887_v27, %v4315_v36  ;;  %v2839_v52 = vpop.f32.mrf.mxu1 }
 0x272   : > { %v4260_v1 = vpop.f32.mrf.mxu0  ;;  %v2894_v11 = vadd.f32 %v2839_v52, %v6599_v56 }
 0x273   : > { %v4383_v17 = vmax.f32 %v4351_v24, 0.0 }
 0x274   : > { %v3834_v61 = vpop.f32.mrf.mxu3 }
 0x275   : > { %v5536_v7 = vpack.c.bf16 %v4383_v17, %v4382_v41  ;;  %v3890_v46 = vadd.f32 %v3834_v61, %v3208_v51 }
 0x277   : > { %5584 = vst [vmem:[%s6909_s21 + $0x38] sm:$0xff] %v5536_v7   ;;  %v3154_v42 = vpop.f32.mrf.mxu2  ;;  %v4316_v30 = vadd.f32 %v4260_v1, %v3890_v46 }
 0x278   : > { %v3209_v21 = vadd.f32 %v3154_v42, %v2894_v11 }
 0x279   : > { %v2842_v25 = vpop.f32.mrf.mxu1  ;;  %v4352_v20 = vadd.f32 %v6887_v27, %v4316_v30 }
 0x27a   : > { %v4262_v49 = vpop.f32.mrf.mxu0  ;;  %v2895_v5 = vadd.f32 %v2842_v25, %v6613_v29 }
 0x27b   : > { %v4384_v16 = vmax.f32 %v4352_v20, 0.0 }
 0x27c   : > { %v3836_v59 = vpop.f32.mrf.mxu3 }
 0x27d   : > { %v3891_v54 = vadd.f32 %v3836_v59, %v3209_v21 }
 0x27f   : > { %v4317_v62 = vadd.f32 %v4262_v49, %v3891_v54  ;;  %v3157_v45 = vpop.f32.mrf.mxu2 }
 0x280   : > { %v3210_v18 = vadd.f32 %v3157_v45, %v2895_v5 }
 0x281   : > { %v4353_v34 = vadd.f32 %v6887_v27, %v4317_v62  ;;  %v2844_v55 = vpop.f32.mrf.mxu1 }
 0x282   : > { %v4265_v12 = vpop.f32.mrf.mxu0  ;;  %v2896_v32 = vadd.f32 %v2844_v55, %v6636_v58 }
 0x283   : > { %v4385_v56 = vmax.f32 %v4353_v34, 0.0 }
 0x284   : > { %v3839_v28 = vpop.f32.mrf.mxu3 }
 0x285   : > { %v5541_v43 = vpack.c.bf16 %v4385_v56, %v4384_v16  ;;  %v3892_v19 = vadd.f32 %v3839_v28, %v3210_v18 }
 0x287   : > { %5585 = vst [vmem:[%s6909_s21 + $0x40] sm:$0xff] %v5541_v43   ;;  %v3159_v60 = vpop.f32.mrf.mxu2  ;;  %v4318_v8 = vadd.f32 %v4265_v12, %v3892_v19 }
 0x288   : > { %v3211_v47 = vadd.f32 %v3159_v60, %v2896_v32 }
 0x289   : > { %v2847_v44 = vpop.f32.mrf.mxu1  ;;  %v4354_v29 = vadd.f32 %v6887_v27, %v4318_v8 }
 0x28a   : > { %v4267_v22 = vpop.f32.mrf.mxu0  ;;  %v2897_v33 = vadd.f32 %v2847_v44, %v6651_v26 }
 0x28b   : > { %v4386_v31 = vmax.f32 %v4354_v29, 0.0 }
 0x28c   : > { %v3841_v63 = vpop.f32.mrf.mxu3 }
 0x28d   : > { %v3893_v57 = vadd.f32 %v3841_v63, %v3211_v47 }
 0x28f   : > { %v4319_v37 = vadd.f32 %v4267_v22, %v3893_v57  ;;  %v3162_v48 = vpop.f32.mrf.mxu2 }
 0x290   : > { %v3212_v4 = vadd.f32 %v3162_v48, %v2897_v33 }
 0x291   : > { %v4355_v10 = vadd.f32 %v6887_v27, %v4319_v37  ;;  %v2849_v23 = vpop.f32.mrf.mxu1 }
 0x292   : > { %v4270_v3 = vpop.f32.mrf.mxu0  ;;  %v2898_v38 = vadd.f32 %v2849_v23, %v6677_v53 }
 0x293   : > { %v4387_v58 = vmax.f32 %v4355_v10, 0.0 }
 0x294   : > { %v3844_v36 = vpop.f32.mrf.mxu3 }
 0x295   : > { %v5546_v13 = vpack.c.bf16 %v4387_v58, %v4386_v31  ;;  %v3894_v24 = vadd.f32 %v3844_v36, %v3212_v4 }
 0x297   : > { %5586 = vst [vmem:[%s6909_s21 + $0x48] sm:$0xff] %v5546_v13   ;;  %v3164_v52 = vpop.f32.mrf.mxu2  ;;  %v4320_v51 = vadd.f32 %v4270_v3, %v3894_v24 }
 0x298   : > { %v3213_v1 = vadd.f32 %v3164_v52, %v2898_v38 }
 0x299   : > { %v2852_v41 = vpop.f32.mrf.mxu1  ;;  %v4356_v26 = vadd.f32 %v6887_v27, %v4320_v51 }
 0x29a   : > { %v4272_v17 = vpop.f32.mrf.mxu0  ;;  %v2899_v21 = vadd.f32 %v2852_v41, %v6691_v2  ;;  %v7118_v2 = vld [vmem:[%s7148_s2] ss:$0 sm:$0xff] }
 0x29b   : > { %v4388_v30 = vmax.f32 %v4356_v26, 0.0 }
 0x29c   : > { %v3846_v61 = vpop.f32.mrf.mxu3 }
 0x29d   : > { %v3895_v7 = vadd.f32 %v3846_v61, %v3213_v1 }
 0x29f   : > { %v4321_v46 = vadd.f32 %v4272_v17, %v3895_v7  ;;  %v3167_v11 = vpop.f32.mrf.mxu2 }
 0x2a0   : > { %v3214_v59 = vadd.f32 %v3167_v11, %v2899_v21 }
 0x2a1   : > { %v4357_v42 = vadd.f32 %v6887_v27, %v4321_v46  ;;  %v2854_v25 = vpop.f32.mrf.mxu1 }
 0x2a2   : > { %v4275_v49 = vpop.f32.mrf.mxu0  ;;  %v2900_v45 = vadd.f32 %v2854_v25, %v6714_v50 }
 0x2a3   : > { %v4389_v53 = vmax.f32 %v4357_v42, 0.0 }
 0x2a4   : > { %v3849_v54 = vpop.f32.mrf.mxu3 }
 0x2a5   : > { %v5551_v20 = vpack.c.bf16 %v4389_v53, %v4388_v30  ;;  %v3896_v62 = vadd.f32 %v3849_v54, %v3214_v59 }
 0x2a7   : > { %5587 = vst [vmem:[%s6909_s21 + $0x50] sm:$0xff] %v5551_v20   ;;  %v3169_v34 = vpop.f32.mrf.mxu2  ;;  %v4322_v16 = vadd.f32 %v4275_v49, %v3896_v62 }
 0x2a8   : > { %v3215_v5 = vadd.f32 %v3169_v34, %v2900_v45 }
 0x2a9   : > { %v2857_v55 = vpop.f32.mrf.mxu1  ;;  %v4358_v18 = vadd.f32 %v7118_v2, %v4322_v16 }
 0x2aa   : > { %v4277_v12 = vpop.f32.mrf.mxu0  ;;  %v2901_v50 = vadd.f32 %v2857_v55, %v6729_v35 }
 0x2ab   : > { %v4390_v47 = vmax.f32 %v4358_v18, 0.0 }
 0x2ac   : > { %v3851_v27 = vpop.f32.mrf.mxu3 }
 0x2ad   : > { %v3897_v56 = vadd.f32 %v3851_v27, %v3215_v5 }
 0x2af   : > { %v4323_v28 = vadd.f32 %v4277_v12, %v3897_v56  ;;  %v3172_v43 = vpop.f32.mrf.mxu2 }
 0x2b0   : > { %v3216_v22 = vadd.f32 %v3172_v43, %v2901_v50 }
 0x2b1   : > { %v4359_v19 = vadd.f32 %v7118_v2, %v4323_v28  ;;  %v2859_v32 = vpop.f32.mrf.mxu1 }
 0x2b2   : > { %v4280_v60 = vpop.f32.mrf.mxu0  ;;  %v2902_v29 = vadd.f32 %v2859_v32, %v6752_v0 }
 0x2b3   : > { %v4391_v44 = vmax.f32 %v4359_v19, 0.0 }
 0x2b4   : > { %v3854_v8 = vpop.f32.mrf.mxu3 }
 0x2b5   : > { %v5556_v63 = vpack.c.bf16 %v4391_v44, %v4390_v47  ;;  %v3898_v57 = vadd.f32 %v3854_v8, %v3216_v22 }
 0x2b7   : > { %5588 = vst [vmem:[%s6909_s21 + $0x58] sm:$0xff] %v5556_v63   ;;  %v3174_v37 = vpop.f32.mrf.mxu2  ;;  %v4324_v23 = vadd.f32 %v4280_v60, %v3898_v57 }
 0x2b8   : > { %v3217_v48 = vadd.f32 %v3174_v37, %v2902_v29 }
 0x2b9   : > { %v2862_v10 = vpop.f32.mrf.mxu1  ;;  %v4360_v35 = vadd.f32 %v7118_v2, %v4324_v23 }
 0x2ba   : > { %v4282_v33 = vpop.f32.mrf.mxu0  ;;  %v2903_v13 = vadd.f32 %v2862_v10, %v6765_v14 }
 0x2bb   : > { %v4392_v52 = vmax.f32 %v4360_v35, 0.0 }
 0x2bc   : > { %v3856_v3 = vpop.f32.mrf.mxu3 }
 0x2bd   : > { %v3899_v31 = vadd.f32 %v3856_v3, %v3217_v48 }
 0x2bf   : > { %v4325_v58 = vadd.f32 %v4282_v33, %v3899_v31  ;;  %v3177_v4 = vpop.f32.mrf.mxu2 }
 0x2c0   : > { %v3218_v1 = vadd.f32 %v3177_v4, %v2903_v13 }
 0x2c1   : > { %v4361_v36 = vadd.f32 %v7118_v2, %v4325_v58  ;;  %v2864_v24 = vpop.f32.mrf.mxu1 }
 0x2c2   : > { %v4285_v38 = vpop.f32.mrf.mxu0  ;;  %v2904_v61 = vadd.f32 %v2864_v24, %v6787_v9 }
 0x2c3   : > { %v4393_v0 = vmax.f32 %v4361_v36, 0.0 }
 0x2c4   : > { %v3859_v41 = vpop.f32.mrf.mxu3 }
 0x2c5   : > { %v5561_v17 = vpack.c.bf16 %v4393_v0, %v4392_v52  ;;  %v3900_v51 = vadd.f32 %v3859_v41, %v3218_v1 }
 0x2c7   : > { %5589 = vst [vmem:[%s6909_s21 + $0x60] sm:$0xff] %v5561_v17   ;;  %v3179_v7 = vpop.f32.mrf.mxu2  ;;  %v4326_v42 = vadd.f32 %v4285_v38, %v3900_v51 }
 0x2c8   : > { %v3219_v26 = vadd.f32 %v3179_v7, %v2904_v61 }
 0x2c9   : > { %v2867_v46 = vpop.f32.mrf.mxu1  ;;  %v4362_v14 = vadd.f32 %v7118_v2, %v4326_v42 }
 0x2ca   : > { %v4287_v11 = vpop.f32.mrf.mxu0  ;;  %v2905_v59 = vadd.f32 %v2867_v46, %v6802_v6 }
 0x2cb   : > { %v4394_v62 = vmax.f32 %v4362_v14, 0.0 }
 0x2cc   : > { %v3861_v21 = vpop.f32.mrf.mxu3 }
 0x2cd   : > { %v3901_v25 = vadd.f32 %v3861_v21, %v3219_v26 }
 0x2cf   : > { %v4327_v49 = vadd.f32 %v4287_v11, %v3901_v25  ;;  %v3182_v30 = vpop.f32.mrf.mxu2 }
 0x2d0   : > { %v3220_v45 = vadd.f32 %v3182_v30, %v2905_v59 }
 0x2d1   : > { %v4363_v53 = vadd.f32 %v7118_v2, %v4327_v49  ;;  %v2869_v54 = vpop.f32.mrf.mxu1 }
 0x2d2   : > { %v4290_v20 = vpop.f32.mrf.mxu0  ;;  %v2906_v12 = vadd.f32 %v2869_v54, %v6825_v15 }
 0x2d3   : > { %v4395_v9 = vmax.f32 %v4363_v53, 0.0 }
 0x2d4   : > { %v3864_v34 = vpop.f32.mrf.mxu3 }
 0x2d5   : > { %v5566_v5 = vpack.c.bf16 %v4395_v9, %v4394_v62  ;;  %v3902_v55 = vadd.f32 %v3864_v34, %v3220_v45 }
 0x2d7   : > { %5590 = vst [vmem:[%s6909_s21 + $0x68] sm:$0xff] %v5566_v5   ;;  %v3184_v16 = vpop.f32.mrf.mxu2  ;;  %v4328_v28 = vadd.f32 %v4290_v20, %v3902_v55 }
 0x2d8   : > { %v3221_v27 = vadd.f32 %v3184_v16, %v2906_v12 }
 0x2d9   : > { %v2872_v56 = vpop.f32.mrf.mxu1  ;;  %v4364_v6 = vadd.f32 %v7118_v2, %v4328_v28 }
 0x2da   : > { %v4292_v18 = vpop.f32.mrf.mxu0  ;;  %v2907_v47 = vadd.f32 %v2872_v56, %v6837_v39 }
 0x2db   : > { %v4396_v44 = vmax.f32 %v4364_v6, 0.0 }
 0x2dc   : > { %v3866_v43 = vpop.f32.mrf.mxu3 }
 0x2dd   : > { %v3903_v19 = vadd.f32 %v3866_v43, %v3221_v27 }
 0x2df   : > { %v4329_v50 = vadd.f32 %v4292_v18, %v3903_v19  ;;  %v3187_v32 = vpop.f32.mrf.mxu2 }
 0x2e0   : > { %v3222_v8 = vadd.f32 %v3187_v32, %v2907_v47 }
 0x2e1   : > { %v4365_v60 = vadd.f32 %v7118_v2, %v4329_v50  ;;  %v2874_v15 = vpop.f32.mrf.mxu1 }
 0x2e2   : > { %v4295_v63 = vpop.f32.mrf.mxu0  ;;  %v2908_v48 = vadd.f32 %v2874_v15, %v6859_v40 }
 0x2e3   : > { %v4397_v22 = vmax.f32 %v4365_v60, 0.0 }
 0x2e4   : > { %v3869_v57 = vpop.f32.mrf.mxu3 }
 0x2e5   : > { %v5571_v29 = vpack.c.bf16 %v4397_v22, %v4396_v44  ;;  %v3904_v37 = vadd.f32 %v3869_v57, %v3222_v8 }
 0x2e7   : > { %5591 = vst [vmem:[%s6909_s21 + $0x70] sm:$0xff] %v5571_v29   ;;  %v3189_v10 = vpop.f32.mrf.mxu2  ;;  %v4330_v23 = vadd.f32 %v4295_v63, %v3904_v37 }
 0x2e8   : > { %v3223_v33 = vadd.f32 %v3189_v10, %v2908_v48 }
 0x2e9   : > { %v4366_v39 = vadd.f32 %v7118_v2, %v4330_v23 }
 0x2ea   : > { %v4297_v35 = vpop.f32.mrf.mxu0 }
 0x2eb   : > { %v4398_v36 = vmax.f32 %v4366_v39, 0.0 }
 0x2ec   : > { %v3871_v3 = vpop.f32.mrf.mxu3 }
 0x2ed   : > { %v3905_v31 = vadd.f32 %v3871_v3, %v3223_v33 }
 0x2ef   : > { %v4331_v58 = vadd.f32 %v4297_v35, %v3905_v31 }
 0x2f1   : > { %v4367_v4 = vadd.f32 %v7118_v2, %v4331_v58 }
 0x2f3   : > { %v4399_v13 = vmax.f32 %v4367_v4, 0.0 }
 0x2f5   : > { %v5576_v24 = vpack.c.bf16 %v4399_v13, %v4398_v36 }
 0x2f7   : > { %5592 = vst [vmem:[%s6909_s21 + $0x78] sm:$0xff] %v5576_v24  }
 0x2f8 PF: > { %s13_s12 = sadd.s32 1, %s5687_s12  }
 0x2f9   : > { %p10_p4 = scmp.ge.s32.totalorder %s13_s12, 4  }
 0x2fb   :  { %12 = sbr.rel (!%p10_p4) target bundleno = 1 (0x1), region = 72 }

</bundles_post_ra>
